<compile_context>
chip_gen: v7x
topology: tpu7x:2x2x1
jax: 0.10.0
libtpu: 0.0.40
codegen_flags: <defaults>
</compile_context>

<pallas_src>
import jax
import jax.numpy as jnp
import numpy as np
from jax.experimental import pallas as pl
from jax.experimental.pallas import tpu as pltpu


# --------------------------------------------------------------------------
# Pallas kernels
# --------------------------------------------------------------------------
def conv_pool_kernel(x_ref, w_ref, b_ref, o_ref):
    # x_ref: (1, 4, 9*Cin, Ho*Wo) bf16   -- im2col patches, one slab per 2x2 pool corner
    # w_ref: (Cout, 9*Cin)        bf16   -- conv weight, tap-major then channel
    # b_ref: (Cout, 1)            f32
    # o_ref: (1, Cout, Ho*Wo)     bf16   -- fused conv + bias + ReLU + maxpool output
    w = w_ref[...]
    m = jnp.dot(w, x_ref[0, 0, :, :], preferred_element_type=jnp.float32)
    for c in range(1, 4):  # max over the 4 pool-window corners (bias/ReLU commute)
        m = jnp.maximum(
            m, jnp.dot(w, x_ref[0, c, :, :], preferred_element_type=jnp.float32))
    y = jnp.maximum(m + b_ref[...], 0.0)
    o_ref[0, :, :] = y.astype(o_ref.dtype)


def mlp_kernel(x_ref, w1_ref, b1_ref, w2_ref, b2_ref, o_ref):
    # x_ref: (N, 7680) bf16   w1_ref: (7680, 128) bf16   b1_ref: (1, 128) f32
    # w2_ref: (128, 128) bf16 (fc2 zero-padded to lane width)  b2_ref: (1, 128) f32
    # o_ref: (N, 128) f32   (wrapper keeps only the first 2 columns)
    h = jnp.dot(x_ref[...], w1_ref[...], preferred_element_type=jnp.float32)
    h = jnp.maximum(h + b1_ref[...], 0.0)
    # TODO(synk): nn.Dropout(0.5) is identity in eval mode; training-mode masking not implemented.
    out = jnp.dot(h.astype(jnp.bfloat16), w2_ref[...],
                  preferred_element_type=jnp.float32) + b2_ref[...]
    o_ref[...] = out


# --------------------------------------------------------------------------
# pallas_call wrappers
# --------------------------------------------------------------------------
def conv_pool_pallas(pat, wk, bk):
    # pat: (N, 4, 9*Cin, Ho*Wo) bf16   wk: (Cout, 9*Cin) bf16   bk: (Cout, 1) f32
    n, _, k, hwo = pat.shape
    cout = wk.shape[0]
    return pl.pallas_call(
        conv_pool_kernel,
        out_shape=jax.ShapeDtypeStruct((n, cout, hwo), jnp.bfloat16),
        grid=(n,),
        in_specs=[
            pl.BlockSpec((1, 4, k, hwo), lambda i: (i, 0, 0, 0)),
            pl.BlockSpec((cout, k), lambda i: (0, 0)),
            pl.BlockSpec((cout, 1), lambda i: (0, 0)),
        ],
        out_specs=pl.BlockSpec((1, cout, hwo), lambda i: (i, 0, 0)),
        compiler_params=pltpu.CompilerParams(dimension_semantics=("parallel",)),
    )(pat, wk, bk)


def mlp_pallas(x, w1, b1, w2, b2):
    n = x.shape[0]
    vmem = pl.BlockSpec(memory_space=pltpu.MemorySpace.VMEM)
    return pl.pallas_call(
        mlp_kernel,
        out_shape=jax.ShapeDtypeStruct((n, w2.shape[1]), jnp.float32),
        in_specs=[vmem, vmem, vmem, vmem, vmem],
        out_specs=vmem,
    )(x, w1, b1, w2, b2)


# --------------------------------------------------------------------------
# JAX glue (layout plumbing only; no hot-path compute)
# --------------------------------------------------------------------------
def build_patches(x_nchw):
    """(N,C,H,W) -> (N, 4, 9*C, (H//2)*(W//2)) pool-corner-major im2col tensor.

    pat[n, r*2+s, (dy*3+dx)*C + c, i*Wo + j] = xpad[n, c, 2i+r+dy, 2j+s+dx]
    i.e. exactly the inputs needed for the conv output at pooled position (i,j),
    pool corner (r,s), 3x3 tap (dy,dx).
    """
    n, c, h, w = x_nchw.shape
    ho, wo = h // 2, w // 2
    xp = jnp.pad(x_nchw, ((0, 0), (0, 0), (1, 1), (1, 1)))
    corners = []
    for r in range(2):
        for s in range(2):
            taps = []
            for dy in range(3):
                for dx in range(3):
                    t = xp[:, :, r + dy:r + dy + h - 1:2, s + dx:s + dx + w - 1:2]
                    taps.append(t)                      # (N, C, Ho, Wo)
            corners.append(jnp.stack(taps, axis=1))     # (N, 9, C, Ho, Wo)
    pat = jnp.stack(corners, axis=1)                    # (N, 4, 9, C, Ho, Wo)
    return pat.reshape(n, 4, 9 * c, ho * wo)


def pack_conv_weight(w_oihw):
    """PyTorch OIHW -> (Cout, 9*Cin), K index = (dy*3+dx)*Cin + c, bf16."""
    cout, cin = w_oihw.shape[0], w_oihw.shape[1]
    return jnp.transpose(w_oihw, (0, 2, 3, 1)).reshape(cout, 9 * cin).astype(jnp.bfloat16)


def conv_block(x_nchw, w_oihw, b):
    n, _, h, w = x_nchw.shape
    cout = w_oihw.shape[0]
    pat = build_patches(x_nchw)
    wk = pack_conv_weight(w_oihw)
    bk = b.reshape(cout, 1).astype(jnp.float32)
    y = conv_pool_pallas(pat, wk, bk)                   # (N, Cout, Ho*Wo) bf16
    return y.reshape(n, cout, h // 2, w // 2)


def forward(params, x_nchw):
    x = x_nchw.astype(jnp.bfloat16)
    n = x.shape[0]
    x = conv_block(x, params['w1'], params['b1'])       # (N,  32, 20, 48)
    x = conv_block(x, params['w2'], params['b2'])       # (N,  64, 10, 24)
    x = conv_block(x, params['w3'], params['b3'])       # (N, 128,  5, 12)

    feat = x.reshape(n, -1)                             # NCHW flatten == torch x.view(N,-1)

    w1 = params['wf1'].T.astype(jnp.bfloat16)                       # (7680, 128)
    b1 = params['bf1'].reshape(1, -1).astype(jnp.float32)           # (1, 128)
    pad = 128 - params['wf2'].shape[0]                              # pad 2 -> 128 lanes
    w2 = jnp.pad(params['wf2'].T, ((0, 0), (0, pad))).astype(jnp.bfloat16)   # (128, 128)
    b2 = jnp.pad(params['bf2'], (0, pad)).reshape(1, -1).astype(jnp.float32)  # (1, 128)

    logits = mlp_pallas(feat, w1, b1, w2, b2)           # (N, 128) f32
    return logits[:, :params['wf2'].shape[0]]           # (N, 2)


# --------------------------------------------------------------------------
# Pure-JAX f32 reference (PyTorch semantics) for verification
# --------------------------------------------------------------------------
def forward_ref(params, x):
    def conv(x, w, b):
        y = jax.lax.conv_general_dilated(
            x, w, window_strides=(1, 1), padding=((1, 1), (1, 1)),
            dimension_numbers=('NCHW', 'OIHW', 'NCHW'))
        return y + b[None, :, None, None]

    def pool(x):
        n, c, h, w = x.shape
        return x.reshape(n, c, h // 2, 2, w // 2, 2).max(axis=(3, 5))

    x = pool(jax.nn.relu(conv(x, params['w1'], params['b1'])))
    x = pool(jax.nn.relu(conv(x, params['w2'], params['b2'])))
    x = pool(jax.nn.relu(conv(x, params['w3'], params['b3'])))
    x = x.reshape(x.shape[0], -1)
    x = jax.nn.relu(x @ params['wf1'].T + params['bf1'])
    return x @ params['wf2'].T + params['bf2']


# --------------------------------------------------------------------------
# Deterministic parameter init (PyTorch shapes)
# --------------------------------------------------------------------------
def init_params(key):
    ks = jax.random.split(key, 10)

    def u(k, shape, fan_in):
        bound = 1.0 / np.sqrt(fan_in)
        return jax.random.uniform(k, shape, jnp.float32, -bound, bound)

    return {
        'w1': u(ks[0], (32, 1, 3, 3), 1 * 9),    'b1': u(ks[1], (32,), 1 * 9),
        'w2': u(ks[2], (64, 32, 3, 3), 32 * 9),  'b2': u(ks[3], (64,), 32 * 9),
        'w3': u(ks[4], (128, 64, 3, 3), 64 * 9), 'b3': u(ks[5], (128,), 64 * 9),
        'wf1': u(ks[6], (128, 128 * 5 * 12), 128 * 5 * 12),
        'bf1': u(ks[7], (128,), 128 * 5 * 12),
        'wf2': u(ks[8], (2, 128), 128),          'bf2': u(ks[9], (2,), 128),
    }


if __name__ == "__main__":
    key = jax.random.PRNGKey(0)
    kp, kx = jax.random.split(key)
    params = init_params(kp)
    # fc1 expects 128*5*12 features => input spatial 40x96 (40/8=5, 96/8=12), NCHW like PyTorch
    x = jax.random.normal(kx, (2, 1, 40, 96), jnp.float32)

    fwd = jax.jit(forward)
    out = jax.block_until_ready(fwd(params, x))

    ref = forward_ref(params, x)
    assert out.shape == (2, 2), out.shape
    # bf16 MXU operands => slightly looser tolerance vs the f32 reference.
    assert np.allclose(np.asarray(out, np.float32), np.asarray(ref),
                       rtol=5e-2, atol=5e-2), (out, ref)
    print("KERNEL_OK")
</pallas_src>

<mosaic_0001>
module attributes {stable_mosaic.version = 11 : i64} {
  func.func @conv_pool_kernel(%arg0: i32, %arg1: memref<1x4x9x960xbf16, #tpu.memory_space<vmem>>, %arg2: memref<32x9xbf16, #tpu.memory_space<vmem>>, %arg3: memref<32x1xf32, #tpu.memory_space<vmem>>, %arg4: memref<1x32x960xbf16, #tpu.memory_space<vmem>>) attributes {dimension_semantics = [#tpu.dimension_semantics<parallel>], iteration_bounds = array<i64: 2>, scalar_prefetch = 0 : i64, scratch_operands = 0 : i64, tpu.core_type = #tpu.core_type<tc>, window_params = [{transform_indices = @transform_0, window_bounds = array<i64: 1, 4, 9, 960>}, {pipeline_mode = #tpu.pipeline_mode<synchronous>, transform_indices = @transform_1, window_bounds = array<i64: 32, 9>}, {pipeline_mode = #tpu.pipeline_mode<synchronous>, transform_indices = @transform_2, window_bounds = array<i64: 32, 1>}, {transform_indices = @transform_3, window_bounds = array<i64: 1, 32, 960>}]} {
    %c0 = arith.constant 0 : index
    %c0_0 = arith.constant 0 : index
    %0 = vector.load %arg2[%c0, %c0_0] : memref<32x9xbf16, #tpu.memory_space<vmem>>, vector<32x9xbf16>
    %c0_1 = arith.constant 0 : index
    %c0_2 = arith.constant 0 : index
    %c0_3 = arith.constant 0 : index
    %c0_4 = arith.constant 0 : index
    %1 = vector.load %arg1[%c0_1, %c0_2, %c0_3, %c0_4] : memref<1x4x9x960xbf16, #tpu.memory_space<vmem>>, vector<1x1x9x960xbf16>
    %2 = vector.shape_cast %1 : vector<1x1x9x960xbf16> to vector<9x960xbf16>
    %cst = arith.constant dense<0.000000e+00> : vector<32x960xf32>
    %3 = tpu.matmul %0, %2, %cst {dimension_numbers = #tpu.dot_dimension_numbers<[1], [0], [0], [1], [0, 0, 1, 1], [], []>} : vector<32x9xbf16>, vector<9x960xbf16>, vector<32x960xf32> -> vector<32x960xf32>
    %c0_5 = arith.constant 0 : index
    %c1 = arith.constant 1 : index
    %c0_6 = arith.constant 0 : index
    %c0_7 = arith.constant 0 : index
    %4 = vector.load %arg1[%c0_5, %c1, %c0_6, %c0_7] : memref<1x4x9x960xbf16, #tpu.memory_space<vmem>>, vector<1x1x9x960xbf16>
    %5 = vector.shape_cast %4 : vector<1x1x9x960xbf16> to vector<9x960xbf16>
    %cst_8 = arith.constant dense<0.000000e+00> : vector<32x960xf32>
    %6 = tpu.matmul %0, %5, %cst_8 {dimension_numbers = #tpu.dot_dimension_numbers<[1], [0], [0], [1], [0, 0, 1, 1], [], []>} : vector<32x9xbf16>, vector<9x960xbf16>, vector<32x960xf32> -> vector<32x960xf32>
    %7 = arith.maximumf %3, %6 : vector<32x960xf32>
    %c0_9 = arith.constant 0 : index
    %c2 = arith.constant 2 : index
    %c0_10 = arith.constant 0 : index
    %c0_11 = arith.constant 0 : index
    %8 = vector.load %arg1[%c0_9, %c2, %c0_10, %c0_11] : memref<1x4x9x960xbf16, #tpu.memory_space<vmem>>, vector<1x1x9x960xbf16>
    %9 = vector.shape_cast %8 : vector<1x1x9x960xbf16> to vector<9x960xbf16>
    %cst_12 = arith.constant dense<0.000000e+00> : vector<32x960xf32>
    %10 = tpu.matmul %0, %9, %cst_12 {dimension_numbers = #tpu.dot_dimension_numbers<[1], [0], [0], [1], [0, 0, 1, 1], [], []>} : vector<32x9xbf16>, vector<9x960xbf16>, vector<32x960xf32> -> vector<32x960xf32>
    %11 = arith.maximumf %7, %10 : vector<32x960xf32>
    %c0_13 = arith.constant 0 : index
    %c3 = arith.constant 3 : index
    %c0_14 = arith.constant 0 : index
    %c0_15 = arith.constant 0 : index
    %12 = vector.load %arg1[%c0_13, %c3, %c0_14, %c0_15] : memref<1x4x9x960xbf16, #tpu.memory_space<vmem>>, vector<1x1x9x960xbf16>
    %13 = vector.shape_cast %12 : vector<1x1x9x960xbf16> to vector<9x960xbf16>
    %cst_16 = arith.constant dense<0.000000e+00> : vector<32x960xf32>
    %14 = tpu.matmul %0, %13, %cst_16 {dimension_numbers = #tpu.dot_dimension_numbers<[1], [0], [0], [1], [0, 0, 1, 1], [], []>} : vector<32x9xbf16>, vector<9x960xbf16>, vector<32x960xf32> -> vector<32x960xf32>
    %15 = arith.maximumf %11, %14 : vector<32x960xf32>
    %c0_17 = arith.constant 0 : index
    %c0_18 = arith.constant 0 : index
    %16 = vector.load %arg3[%c0_17, %c0_18] : memref<32x1xf32, #tpu.memory_space<vmem>>, vector<32x1xf32>
    %17 = vector.broadcast %16 : vector<32x1xf32> to vector<32x960xf32>
    %18 = arith.addf %15, %17 : vector<32x960xf32>
    %cst_19 = arith.constant 0.000000e+00 : f32
    %19 = vector.broadcast %cst_19 : f32 to vector<32x960xf32>
    %20 = arith.maximumf %18, %19 : vector<32x960xf32>
    %21 = arith.truncf %20 : vector<32x960xf32> to vector<32x960xbf16>
    %c0_20 = arith.constant 0 : index
    %c0_21 = arith.constant 0 : index
    %c0_22 = arith.constant 0 : index
    %22 = vector.load %arg4[%c0_20, %c0_21, %c0_22] : memref<1x32x960xbf16, #tpu.memory_space<vmem>>, vector<1x32x960xbf16>
    %23 = vector.shape_cast %22 : vector<1x32x960xbf16> to vector<32x960xbf16>
    %24 = vector.shape_cast %21 : vector<32x960xbf16> to vector<1x32x960xbf16>
    tpu.vector_store %arg4[%c0_20, %c0_21, %c0_22], %24 {strides = array<i32>} : memref<1x32x960xbf16, #tpu.memory_space<vmem>>, vector<1x32x960xbf16>,
    return
  }
  func.func @transform_0(%arg0: i32) -> (i32, i32, i32, i32) {
    %c0_i32 = arith.constant 0 : i32
    %c0_i32_0 = arith.constant 0 : i32
    %c0_i32_1 = arith.constant 0 : i32
    %c0_i32_2 = arith.constant 0 : i32
    return %arg0, %c0_i32, %c0_i32_0, %c0_i32_1 : i32, i32, i32, i32
  }
  func.func @transform_1(%arg0: i32) -> (i32, i32) {
    %c0_i32 = arith.constant 0 : i32
    %c0_i32_0 = arith.constant 0 : i32
    %c0_i32_1 = arith.constant 0 : i32
    return %c0_i32, %c0_i32_0 : i32, i32
  }
  func.func @transform_2(%arg0: i32) -> (i32, i32) {
    %c0_i32 = arith.constant 0 : i32
    %c0_i32_0 = arith.constant 0 : i32
    %c0_i32_1 = arith.constant 0 : i32
    return %c0_i32, %c0_i32_0 : i32, i32
  }
  func.func @transform_3(%arg0: i32) -> (i32, i32, i32) {
    %c0_i32 = arith.constant 0 : i32
    %c0_i32_0 = arith.constant 0 : i32
    %c0_i32_1 = arith.constant 0 : i32
    return %arg0, %c0_i32, %c0_i32_0 : i32, i32, i32
  }
}

module attributes {stable_mosaic.version = 11 : i64} {
  func.func @conv_pool_kernel(%arg0: i32, %arg1: memref<1x4x288x240xbf16, #tpu.memory_space<vmem>>, %arg2: memref<64x288xbf16, #tpu.memory_space<vmem>>, %arg3: memref<64x1xf32, #tpu.memory_space<vmem>>, %arg4: memref<1x64x240xbf16, #tpu.memory_space<vmem>>) attributes {dimension_semantics = [#tpu.dimension_semantics<parallel>], iteration_bounds = array<i64: 2>, scalar_prefetch = 0 : i64, scratch_operands = 0 : i64, tpu.core_type = #tpu.core_type<tc>, window_params = [{transform_indices = @transform_0, window_bounds = array<i64: 1, 4, 288, 240>}, {pipeline_mode = #tpu.pipeline_mode<synchronous>, transform_indices = @transform_1, window_bounds = array<i64: 64, 288>}, {pipeline_mode = #tpu.pipeline_mode<synchronous>, transform_indices = @transform_2, window_bounds = array<i64: 64, 1>}, {transform_indices = @transform_3, window_bounds = array<i64: 1, 64, 240>}]} {
    %c0 = arith.constant 0 : index
    %c0_0 = arith.constant 0 : index
    %0 = vector.load %arg2[%c0, %c0_0] : memref<64x288xbf16, #tpu.memory_space<vmem>>, vector<64x288xbf16>
    %c0_1 = arith.constant 0 : index
    %c0_2 = arith.constant 0 : index
    %c0_3 = arith.constant 0 : index
    %c0_4 = arith.constant 0 : index
    %1 = vector.load %arg1[%c0_1, %c0_2, %c0_3, %c0_4] : memref<1x4x288x240xbf16, #tpu.memory_space<vmem>>, vector<1x1x288x240xbf16>
    %2 = vector.shape_cast %1 : vector<1x1x288x240xbf16> to vector<288x240xbf16>
    %cst = arith.constant dense<0.000000e+00> : vector<64x240xf32>
    %3 = tpu.matmul %0, %2, %cst {dimension_numbers = #tpu.dot_dimension_numbers<[1], [0], [0], [1], [0, 0, 1, 1], [], []>} : vector<64x288xbf16>, vector<288x240xbf16>, vector<64x240xf32> -> vector<64x240xf32>
    %c0_5 = arith.constant 0 : index
    %c1 = arith.constant 1 : index
    %c0_6 = arith.constant 0 : index
    %c0_7 = arith.constant 0 : index
    %4 = vector.load %arg1[%c0_5, %c1, %c0_6, %c0_7] : memref<1x4x288x240xbf16, #tpu.memory_space<vmem>>, vector<1x1x288x240xbf16>
    %5 = vector.shape_cast %4 : vector<1x1x288x240xbf16> to vector<288x240xbf16>
    %cst_8 = arith.constant dense<0.000000e+00> : vector<64x240xf32>
    %6 = tpu.matmul %0, %5, %cst_8 {dimension_numbers = #tpu.dot_dimension_numbers<[1], [0], [0], [1], [0, 0, 1, 1], [], []>} : vector<64x288xbf16>, vector<288x240xbf16>, vector<64x240xf32> -> vector<64x240xf32>
    %7 = arith.maximumf %3, %6 : vector<64x240xf32>
    %c0_9 = arith.constant 0 : index
    %c2 = arith.constant 2 : index
    %c0_10 = arith.constant 0 : index
    %c0_11 = arith.constant 0 : index
    %8 = vector.load %arg1[%c0_9, %c2, %c0_10, %c0_11] : memref<1x4x288x240xbf16, #tpu.memory_space<vmem>>, vector<1x1x288x240xbf16>
    %9 = vector.shape_cast %8 : vector<1x1x288x240xbf16> to vector<288x240xbf16>
    %cst_12 = arith.constant dense<0.000000e+00> : vector<64x240xf32>
    %10 = tpu.matmul %0, %9, %cst_12 {dimension_numbers = #tpu.dot_dimension_numbers<[1], [0], [0], [1], [0, 0, 1, 1], [], []>} : vector<64x288xbf16>, vector<288x240xbf16>, vector<64x240xf32> -> vector<64x240xf32>
    %11 = arith.maximumf %7, %10 : vector<64x240xf32>
    %c0_13 = arith.constant 0 : index
    %c3 = arith.constant 3 : index
    %c0_14 = arith.constant 0 : index
    %c0_15 = arith.constant 0 : index
    %12 = vector.load %arg1[%c0_13, %c3, %c0_14, %c0_15] : memref<1x4x288x240xbf16, #tpu.memory_space<vmem>>, vector<1x1x288x240xbf16>
    %13 = vector.shape_cast %12 : vector<1x1x288x240xbf16> to vector<288x240xbf16>
    %cst_16 = arith.constant dense<0.000000e+00> : vector<64x240xf32>
    %14 = tpu.matmul %0, %13, %cst_16 {dimension_numbers = #tpu.dot_dimension_numbers<[1], [0], [0], [1], [0, 0, 1, 1], [], []>} : vector<64x288xbf16>, vector<288x240xbf16>, vector<64x240xf32> -> vector<64x240xf32>
    %15 = arith.maximumf %11, %14 : vector<64x240xf32>
    %c0_17 = arith.constant 0 : index
    %c0_18 = arith.constant 0 : index
    %16 = vector.load %arg3[%c0_17, %c0_18] : memref<64x1xf32, #tpu.memory_space<vmem>>, vector<64x1xf32>
    %17 = vector.broadcast %16 : vector<64x1xf32> to vector<64x240xf32>
    %18 = arith.addf %15, %17 : vector<64x240xf32>
    %cst_19 = arith.constant 0.000000e+00 : f32
    %19 = vector.broadcast %cst_19 : f32 to vector<64x240xf32>
    %20 = arith.maximumf %18, %19 : vector<64x240xf32>
    %21 = arith.truncf %20 : vector<64x240xf32> to vector<64x240xbf16>
    %c0_20 = arith.constant 0 : index
    %c0_21 = arith.constant 0 : index
    %c0_22 = arith.constant 0 : index
    %22 = vector.load %arg4[%c0_20, %c0_21, %c0_22] : memref<1x64x240xbf16, #tpu.memory_space<vmem>>, vector<1x64x240xbf16>
    %23 = vector.shape_cast %22 : vector<1x64x240xbf16> to vector<64x240xbf16>
    %24 = vector.shape_cast %21 : vector<64x240xbf16> to vector<1x64x240xbf16>
    tpu.vector_store %arg4[%c0_20, %c0_21, %c0_22], %24 {strides = array<i32>} : memref<1x64x240xbf16, #tpu.memory_space<vmem>>, vector<1x64x240xbf16>,
    return
  }
  func.func @transform_0(%arg0: i32) -> (i32, i32, i32, i32) {
    %c0_i32 = arith.constant 0 : i32
    %c0_i32_0 = arith.constant 0 : i32
    %c0_i32_1 = arith.constant 0 : i32
    %c0_i32_2 = arith.constant 0 : i32
    return %arg0, %c0_i32, %c0_i32_0, %c0_i32_1 : i32, i32, i32, i32
  }
  func.func @transform_1(%arg0: i32) -> (i32, i32) {
    %c0_i32 = arith.constant 0 : i32
    %c0_i32_0 = arith.constant 0 : i32
    %c0_i32_1 = arith.constant 0 : i32
    return %c0_i32, %c0_i32_0 : i32, i32
  }
  func.func @transform_2(%arg0: i32) -> (i32, i32) {
    %c0_i32 = arith.constant 0 : i32
    %c0_i32_0 = arith.constant 0 : i32
    %c0_i32_1 = arith.constant 0 : i32
    return %c0_i32, %c0_i32_0 : i32, i32
  }
  func.func @transform_3(%arg0: i32) -> (i32, i32, i32) {
    %c0_i32 = arith.constant 0 : i32
    %c0_i32_0 = arith.constant 0 : i32
    %c0_i32_1 = arith.constant 0 : i32
    return %arg0, %c0_i32, %c0_i32_0 : i32, i32, i32
  }
}

module attributes {stable_mosaic.version = 11 : i64} {
  func.func @conv_pool_kernel(%arg0: i32, %arg1: memref<1x4x576x60xbf16, #tpu.memory_space<vmem>>, %arg2: memref<128x576xbf16, #tpu.memory_space<vmem>>, %arg3: memref<128x1xf32, #tpu.memory_space<vmem>>, %arg4: memref<1x128x60xbf16, #tpu.memory_space<vmem>>) attributes {dimension_semantics = [#tpu.dimension_semantics<parallel>], iteration_bounds = array<i64: 2>, scalar_prefetch = 0 : i64, scratch_operands = 0 : i64, tpu.core_type = #tpu.core_type<tc>, window_params = [{transform_indices = @transform_0, window_bounds = array<i64: 1, 4, 576, 60>}, {pipeline_mode = #tpu.pipeline_mode<synchronous>, transform_indices = @transform_1, window_bounds = array<i64: 128, 576>}, {pipeline_mode = #tpu.pipeline_mode<synchronous>, transform_indices = @transform_2, window_bounds = array<i64: 128, 1>}, {transform_indices = @transform_3, window_bounds = array<i64: 1, 128, 60>}]} {
    %c0 = arith.constant 0 : index
    %c0_0 = arith.constant 0 : index
    %0 = vector.load %arg2[%c0, %c0_0] : memref<128x576xbf16, #tpu.memory_space<vmem>>, vector<128x576xbf16>
    %c0_1 = arith.constant 0 : index
    %c0_2 = arith.constant 0 : index
    %c0_3 = arith.constant 0 : index
    %c0_4 = arith.constant 0 : index
    %1 = vector.load %arg1[%c0_1, %c0_2, %c0_3, %c0_4] : memref<1x4x576x60xbf16, #tpu.memory_space<vmem>>, vector<1x1x576x60xbf16>
    %2 = vector.shape_cast %1 : vector<1x1x576x60xbf16> to vector<576x60xbf16>
    %cst = arith.constant dense<0.000000e+00> : vector<128x60xf32>
    %3 = tpu.matmul %0, %2, %cst {dimension_numbers = #tpu.dot_dimension_numbers<[1], [0], [0], [1], [0, 0, 1, 1], [], []>} : vector<128x576xbf16>, vector<576x60xbf16>, vector<128x60xf32> -> vector<128x60xf32>
    %c0_5 = arith.constant 0 : index
    %c1 = arith.constant 1 : index
    %c0_6 = arith.constant 0 : index
    %c0_7 = arith.constant 0 : index
    %4 = vector.load %arg1[%c0_5, %c1, %c0_6, %c0_7] : memref<1x4x576x60xbf16, #tpu.memory_space<vmem>>, vector<1x1x576x60xbf16>
    %5 = vector.shape_cast %4 : vector<1x1x576x60xbf16> to vector<576x60xbf16>
    %cst_8 = arith.constant dense<0.000000e+00> : vector<128x60xf32>
    %6 = tpu.matmul %0, %5, %cst_8 {dimension_numbers = #tpu.dot_dimension_numbers<[1], [0], [0], [1], [0, 0, 1, 1], [], []>} : vector<128x576xbf16>, vector<576x60xbf16>, vector<128x60xf32> -> vector<128x60xf32>
    %7 = arith.maximumf %3, %6 : vector<128x60xf32>
    %c0_9 = arith.constant 0 : index
    %c2 = arith.constant 2 : index
    %c0_10 = arith.constant 0 : index
    %c0_11 = arith.constant 0 : index
    %8 = vector.load %arg1[%c0_9, %c2, %c0_10, %c0_11] : memref<1x4x576x60xbf16, #tpu.memory_space<vmem>>, vector<1x1x576x60xbf16>
    %9 = vector.shape_cast %8 : vector<1x1x576x60xbf16> to vector<576x60xbf16>
    %cst_12 = arith.constant dense<0.000000e+00> : vector<128x60xf32>
    %10 = tpu.matmul %0, %9, %cst_12 {dimension_numbers = #tpu.dot_dimension_numbers<[1], [0], [0], [1], [0, 0, 1, 1], [], []>} : vector<128x576xbf16>, vector<576x60xbf16>, vector<128x60xf32> -> vector<128x60xf32>
    %11 = arith.maximumf %7, %10 : vector<128x60xf32>
    %c0_13 = arith.constant 0 : index
    %c3 = arith.constant 3 : index
    %c0_14 = arith.constant 0 : index
    %c0_15 = arith.constant 0 : index
    %12 = vector.load %arg1[%c0_13, %c3, %c0_14, %c0_15] : memref<1x4x576x60xbf16, #tpu.memory_space<vmem>>, vector<1x1x576x60xbf16>
    %13 = vector.shape_cast %12 : vector<1x1x576x60xbf16> to vector<576x60xbf16>
    %cst_16 = arith.constant dense<0.000000e+00> : vector<128x60xf32>
    %14 = tpu.matmul %0, %13, %cst_16 {dimension_numbers = #tpu.dot_dimension_numbers<[1], [0], [0], [1], [0, 0, 1, 1], [], []>} : vector<128x576xbf16>, vector<576x60xbf16>, vector<128x60xf32> -> vector<128x60xf32>
    %15 = arith.maximumf %11, %14 : vector<128x60xf32>
    %c0_17 = arith.constant 0 : index
    %c0_18 = arith.constant 0 : index
    %16 = vector.load %arg3[%c0_17, %c0_18] : memref<128x1xf32, #tpu.memory_space<vmem>>, vector<128x1xf32>
    %17 = vector.broadcast %16 : vector<128x1xf32> to vector<128x60xf32>
    %18 = arith.addf %15, %17 : vector<128x60xf32>
    %cst_19 = arith.constant 0.000000e+00 : f32
    %19 = vector.broadcast %cst_19 : f32 to vector<128x60xf32>
    %20 = arith.maximumf %18, %19 : vector<128x60xf32>
    %21 = arith.truncf %20 : vector<128x60xf32> to vector<128x60xbf16>
    %c0_20 = arith.constant 0 : index
    %c0_21 = arith.constant 0 : index
    %c0_22 = arith.constant 0 : index
    %22 = vector.load %arg4[%c0_20, %c0_21, %c0_22] : memref<1x128x60xbf16, #tpu.memory_space<vmem>>, vector<1x128x60xbf16>
    %23 = vector.shape_cast %22 : vector<1x128x60xbf16> to vector<128x60xbf16>
    %24 = vector.shape_cast %21 : vector<128x60xbf16> to vector<1x128x60xbf16>
    tpu.vector_store %arg4[%c0_20, %c0_21, %c0_22], %24 {strides = array<i32>} : memref<1x128x60xbf16, #tpu.memory_space<vmem>>, vector<1x128x60xbf16>,
    return
  }
  func.func @transform_0(%arg0: i32) -> (i32, i32, i32, i32) {
    %c0_i32 = arith.constant 0 : i32
    %c0_i32_0 = arith.constant 0 : i32
    %c0_i32_1 = arith.constant 0 : i32
    %c0_i32_2 = arith.constant 0 : i32
    return %arg0, %c0_i32, %c0_i32_0, %c0_i32_1 : i32, i32, i32, i32
  }
  func.func @transform_1(%arg0: i32) -> (i32, i32) {
    %c0_i32 = arith.constant 0 : i32
    %c0_i32_0 = arith.constant 0 : i32
    %c0_i32_1 = arith.constant 0 : i32
    return %c0_i32, %c0_i32_0 : i32, i32
  }
  func.func @transform_2(%arg0: i32) -> (i32, i32) {
    %c0_i32 = arith.constant 0 : i32
    %c0_i32_0 = arith.constant 0 : i32
    %c0_i32_1 = arith.constant 0 : i32
    return %c0_i32, %c0_i32_0 : i32, i32
  }
  func.func @transform_3(%arg0: i32) -> (i32, i32, i32) {
    %c0_i32 = arith.constant 0 : i32
    %c0_i32_0 = arith.constant 0 : i32
    %c0_i32_1 = arith.constant 0 : i32
    return %arg0, %c0_i32, %c0_i32_0 : i32, i32, i32
  }
}

module attributes {stable_mosaic.version = 11 : i64} {
  func.func @mlp_kernel(%arg0: memref<2x7680xbf16, #tpu.memory_space<vmem>>, %arg1: memref<7680x128xbf16, #tpu.memory_space<vmem>>, %arg2: memref<1x128xf32, #tpu.memory_space<vmem>>, %arg3: memref<128x128xbf16, #tpu.memory_space<vmem>>, %arg4: memref<1x128xf32, #tpu.memory_space<vmem>>, %arg5: memref<2x128xf32, #tpu.memory_space<vmem>>) attributes {dimension_semantics = [], scalar_prefetch = 0 : i64, scratch_operands = 0 : i64, tpu.core_type = #tpu.core_type<tc>} {
    %c0 = arith.constant 0 : index
    %c0_0 = arith.constant 0 : index
    %0 = vector.load %arg0[%c0, %c0_0] : memref<2x7680xbf16, #tpu.memory_space<vmem>>, vector<2x7680xbf16>
    %c0_1 = arith.constant 0 : index
    %c0_2 = arith.constant 0 : index
    %1 = vector.load %arg1[%c0_1, %c0_2] : memref<7680x128xbf16, #tpu.memory_space<vmem>>, vector<7680x128xbf16>
    %cst = arith.constant dense<0.000000e+00> : vector<2x128xf32>
    %2 = tpu.matmul %0, %1, %cst {dimension_numbers = #tpu.dot_dimension_numbers<[1], [0], [0], [1], [0, 0, 1, 1], [], []>} : vector<2x7680xbf16>, vector<7680x128xbf16>, vector<2x128xf32> -> vector<2x128xf32>
    %c0_3 = arith.constant 0 : index
    %c0_4 = arith.constant 0 : index
    %3 = vector.load %arg2[%c0_3, %c0_4] : memref<1x128xf32, #tpu.memory_space<vmem>>, vector<1x128xf32>
    %4 = vector.broadcast %3 : vector<1x128xf32> to vector<2x128xf32>
    %5 = arith.addf %2, %4 : vector<2x128xf32>
    %cst_5 = arith.constant 0.000000e+00 : f32
    %6 = vector.broadcast %cst_5 : f32 to vector<2x128xf32>
    %7 = arith.maximumf %5, %6 : vector<2x128xf32>
    %8 = arith.truncf %7 : vector<2x128xf32> to vector<2x128xbf16>
    %c0_6 = arith.constant 0 : index
    %c0_7 = arith.constant 0 : index
    %9 = vector.load %arg3[%c0_6, %c0_7] : memref<128x128xbf16, #tpu.memory_space<vmem>>, vector<128x128xbf16>
    %cst_8 = arith.constant dense<0.000000e+00> : vector<2x128xf32>
    %10 = tpu.matmul %8, %9, %cst_8 {dimension_numbers = #tpu.dot_dimension_numbers<[1], [0], [0], [1], [0, 0, 1, 1], [], []>} : vector<2x128xbf16>, vector<128x128xbf16>, vector<2x128xf32> -> vector<2x128xf32>
    %c0_9 = arith.constant 0 : index
    %c0_10 = arith.constant 0 : index
    %11 = vector.load %arg4[%c0_9, %c0_10] : memref<1x128xf32, #tpu.memory_space<vmem>>, vector<1x128xf32>
    %12 = vector.broadcast %11 : vector<1x128xf32> to vector<2x128xf32>
    %13 = arith.addf %10, %12 : vector<2x128xf32>
    %c0_11 = arith.constant 0 : index
    %c0_12 = arith.constant 0 : index
    %14 = vector.load %arg5[%c0_11, %c0_12] : memref<2x128xf32, #tpu.memory_space<vmem>>, vector<2x128xf32>
    tpu.vector_store %arg5[%c0_11, %c0_12], %13 {strides = array<i32>} : memref<2x128xf32, #tpu.memory_space<vmem>>, vector<2x128xf32>,
    return
  }
}

</mosaic_0001>

<bundles_post_ra>
// kernel: forward.4
= control target key start
LH: loop header
LB: loop body
LE: loop exit
PB: predicated region body
PF: predicated region fallthrough
CT: control target
= control target key end

     0   :  { %s1836_s12 = smov 0   ;;  %s2542_s0 = inlined_call_operand.vmem [shape: bf16[2,4,9,960], index: 0, kind: input, shape index: {}]   ;;  %s2543_s1 = inlined_call_operand.vmem [shape: bf16[32,9], index: 1, kind: input, shape index: {}]   ;;  %s2544_s2 = inlined_call_operand.vmem [shape: f32[32,1], index: 2, kind: input, shape index: {}]   ;;  %s2545_s3 = inlined_call_operand.vmem [shape: bf16[2,32,960], index: 3, kind: output, shape index: {}]  }
   0x1 LB: > { %s1657_s13 = sadd.s32 4294967295, %s1812_s12   ;;  %p1661_p0 = scmp.ge.s32.totalorder %s1812_s12, 1  ;;  %s1812_s12 = sphi %s1836_s12, %s13_s12  }
   0x2   : > { %p137_p1 = scmp.lt.s32.totalorder %s1812_s12, 3 }
   0x4   : > { %p138_p2 = pnand %p1661_p0, %p137_p1 }
   0x6   : > { %141 = sbr.rel (%p138_p2) target bundleno = 373 (0x175), region = 32 }
   0xd   : > { %p161_p3 = scmp.lt.s32.totalorder %s1657_s13, 1  ;;  %vm233_vm0 = vcmask 1043456   ;;  %v1814_v0 = vmov 0   ;;  %vm234_vm1 = vcmask 1044480   ;;  %v1815_v1 = vmov 65535   ;;  %v1887_v29 = vld [vmem:[%s2543_s1] sm:$0xff]  }
   0xe   : > { %293 = vmatprep.mubr.bf16.mxu0 %v1814_v0  ;;  %346 = vmatprep.mubr.bf16.mxu1 %v1814_v0  ;;  %v235_v2 = vsel %vm233_vm0, 4294967295, %v1815_v1  ;;  %vm226_vm2 = vcmask 72704   ;;  %v1400_v41 = vld [vmem:[%s2544_s2] sm:$0xff]  ;;  %v1402_v42 = vld [vmem:[%s2544_s2 + $0x10] sm:$0xff]  ;;  %v1917_v43 = vld [vmem:[%s2543_s1 + $0x8] sm:$0xff]   ;;  %vm1587_vm3 = vcmask 523268  }
   0xf   : > { %s2617_s13 = smov (!%p161_p3, %s1657_s13), 1  ;;  %1802 = vset.pattern.permute.xlu0 %v1814_v0  ;;  %1803 = vset.pattern.permute.xlu1 %v1814_v0  ;;  %v1859_v5 = vsel %vm234_vm1, %v235_v2, 0  ;;  %v1401_v57 = vld [vmem:[%s2544_s2 + $0x8] sm:$0xff]  ;;  %v1403_v63 = vld [vmem:[%s2544_s2 + $0x18] sm:$0xff]  ;;  %vm2503_vm4 = vmor %vm1587_vm3, %vm233_vm0 }
  0x10   : > { %s1774_s14 = sshll.u32 %s2617_s13, 8  ;;  %1406 = vperm.xlu0 %1802, %v1400_v41   ;;  %1416 = vperm.xlu1 %1803, %v1402_v42   ;;  %s1775_s30 = sshll.u32 %s2617_s13, 7 }
  0x11   : > { %s1855_s17 = scalar_lea.vmem %s2542_s0, %s1774_s14  ;;  %s2456_s6 = scalar_lea.vmem %s2545_s3, %s1775_s30 }
  0x12   : > { %v176_v3 = vld [vmem:[%s1855_s17] sm:$0xff]  ;;  %v177_v6 = vld [vmem:[%s1855_s17 + $0x8] sm:$0xff]  ;;  %v178_v10 = vld [vmem:[%s1855_s17 + $0x10] sm:$0xff] }
  0x13   : > { %v180_v4 = vld [vmem:[%s1855_s17 + $0x20] sm:$0x11]  ;;  %v181_v8 = vld [vmem:[%s1855_s17 + $0x28] sm:$0x11]  ;;  %v182_v11 = vld [vmem:[%s1855_s17 + $0x30] sm:$0x11] }
  0x14   : > { %v1669_v7 = vcombine.high %v176_v3, %v180_v4  ;;  %v1668_v9 = vcombine.low %v176_v3, %v180_v4  ;;  %v1671_v12 = vcombine.high %v177_v6, %v181_v8  ;;  %v1670_v13 = vcombine.low %v177_v6, %v181_v8  ;;  %v179_v16 = vld [vmem:[%s1855_s17 + $0x18] sm:$0xff]  ;;  %v1868_v18 = vld [vmem:[%s1855_s17 + $0x40] sm:$0xff]  ;;  %v1876_v24 = vld [vmem:[%s1855_s17 + $0x48] sm:$0xff]  ;;  %1411 = vperm.xlu0 %1802, %v1401_v57  }
  0x15   : > { %v1672_v14 = vcombine.low %v178_v10, %v182_v11  ;;  %v1673_v15 = vcombine.high %v178_v10, %v182_v11  ;;  %v183_v17 = vld [vmem:[%s1855_s17 + $0x38] sm:$0x11]  ;;  %v1873_v23 = vld [vmem:[%s1855_s17 + $0x60] sm:$0x11]  ;;  %v1879_v25 = vld [vmem:[%s1855_s17 + $0x68] sm:$0x11]  ;;  %1421 = vperm.xlu1 %1803, %v1403_v63  }
  0x16   : > { %v241_v19 = vand.u32 %v1669_v7, %v1859_v5  ;;  %v238_v20 = vand.u32 %v1668_v9, %v1859_v5  ;;  %v1674_v21 = vcombine.low %v179_v16, %v183_v17  ;;  %v1675_v22 = vcombine.high %v179_v16, %v183_v17  ;;  %v1732_v37 = vld [vmem:[%s1855_s17 + $0xc0] sm:$0xff]  ;;  %v1733_v39 = vld [vmem:[%s1855_s17 + $0xc8] sm:$0xff]  ;;  %v1734_v45 = vld [vmem:[%s1855_s17 + $0xd0] sm:$0xff] }
  0x17   : > { %v247_v26 = vand.u32 %v1671_v12, %v1859_v5  ;;  %v244_v27 = vand.u32 %v1670_v13, %v1859_v5  ;;  %v253_v28 = vand.u32 %v1673_v15, %v1859_v5  ;;  %v1693_v31 = vcombine.high %v1868_v18, %v1873_v23  ;;  %v1736_v38 = vld [vmem:[%s1855_s17 + $0xe0] sm:$0x11]  ;;  %v1737_v40 = vld [vmem:[%s1855_s17 + $0xe8] sm:$0x11]  ;;  %v1738_v46 = vld [vmem:[%s1855_s17 + $0xf0] sm:$0x11] }
  0x18   : > { %261 = vmatprep.subr.bf16.mxu0 %v241_v19  ;;  %v259_v30 = vand.u32 %v1675_v22, %v1859_v5  ;;  %v250_v32 = vand.u32 %v1672_v14, %v1859_v5  ;;  %v1695_v33 = vcombine.high %v1876_v24, %v1879_v25  ;;  %v256_v34 = vand.u32 %v1674_v21, %v1859_v5  ;;  %v1735_v49 = vld [vmem:[%s1855_s17 + $0xd8] sm:$0xff]  ;;  %v1686_v58 = vld [vmem:[%s1855_s17 + $0x50] sm:$0xff]  ;;  %v1708_v16 = vld [vmem:[%s1855_s17 + $0x80] sm:$0xff] }
  0x19   : > { %314 = vmatprep.subr.bf16.mxu1 %v247_v26  ;;  %262 = vmatpush1.bf16.msra.mxu0 %v238_v20  ;;  %v518_v35 = vand.u32 %v1693_v31, %v1859_v5  ;;  %v1740_v44 = vcombine.low %v1732_v37, %v1736_v38  ;;  %v1741_v47 = vcombine.high %v1732_v37, %v1736_v38  ;;  %v1739_v50 = vld [vmem:[%s1855_s17 + $0xf8] sm:$0x11]  ;;  %v1690_v59 = vld [vmem:[%s1855_s17 + $0x70] sm:$0x11]  ;;  %v1712_v17 = vld [vmem:[%s1855_s17 + $0xa0] sm:$0x11] }
  0x1a   : > { %315 = vmatpush1.bf16.msra.mxu1 %v244_v27  ;;  %367 = vmatprep.subr.bf16.mxu0 %v253_v28  ;;  %v524_v36 = vand.u32 %v1695_v33, %v1859_v5  ;;  %v1742_v48 = vcombine.low %v1733_v39, %v1737_v40  ;;  %v1743_v51 = vcombine.high %v1733_v39, %v1737_v40  ;;  %v1687_v2 = vld [vmem:[%s1855_s17 + $0x58] sm:$0xff]  ;;  %v1709_v19 = vld [vmem:[%s1855_s17 + $0x88] sm:$0xff]  ;;  %v1710_v28 = vld [vmem:[%s1855_s17 + $0x90] sm:$0xff] }
  0x1b   : > { %420 = vmatprep.subr.bf16.mxu1 %v259_v30  ;;  %v1924_v52 = vand.u32 %v1740_v44, %v1859_v5  ;;  %v1927_v53 = vand.u32 %v1741_v47, %v1859_v5  ;;  %v1744_v55 = vcombine.low %v1734_v45, %v1738_v46  ;;  %v1745_v56 = vcombine.high %v1734_v45, %v1738_v46  ;;  %v1691_v3 = vld [vmem:[%s1855_s17 + $0x78] sm:$0x11]  ;;  %v1713_v20 = vld [vmem:[%s1855_s17 + $0xa8] sm:$0x11]  ;;  %v1714_v30 = vld [vmem:[%s1855_s17 + $0xb0] sm:$0x11] }
  0x1c   : > { %1676 = vmatmul.mubr.msk.bf16.vlgmr.msra.gmra.mrb[0].mxu0 %vm226_vm2, %v1887_v29  ;;  %v1930_v54 = vand.u32 %v1742_v48, %v1859_v5  ;;  %v1940_v60 = vand.u32 %v1743_v51, %v1859_v5  ;;  %v1746_v61 = vcombine.low %v1735_v49, %v1739_v50  ;;  %v1747_v62 = vcombine.high %v1735_v49, %v1739_v50  ;;  %v1715_v33 = vld [vmem:[%s1855_s17 + $0xb8] sm:$0x11] }
  0x1d   : > { %1678 = vmatmul.mubr.msk.bf16.vlgmr.msra.gmra.mrb[0].mxu1 %vm226_vm2, %v1887_v29  ;;  %368 = vmatpush1.bf16.msra.mxu0 %v250_v32  ;;  %v1692_v1 = vcombine.low %v1868_v18, %v1873_v23  ;;  %v1953_v4 = vand.u32 %v1745_v56, %v1859_v5  ;;  %v1956_v6 = vand.u32 %v1744_v55, %v1859_v5  ;;  %v1711_v32 = vld [vmem:[%s1855_s17 + $0x98] sm:$0xff] }
  0x1e   : > { %421 = vmatpush1.bf16.msra.mxu1 %v256_v34  ;;  %303 = vmatprep.mubr.bf16.mxu0 %v1814_v0  ;;  %v1694_v7 = vcombine.low %v1876_v24, %v1879_v25  ;;  %v1962_v8 = vand.u32 %v1747_v62, %v1859_v5  ;;  %v1965_v9 = vand.u32 %v1746_v61, %v1859_v5 }
  0x1f   : > { %356 = vmatprep.mubr.bf16.mxu1 %v1814_v0  ;;  %538 = vmatprep.subr.bf16.mxu0 %v518_v35  ;;  %v1697_v10 = vcombine.high %v1686_v58, %v1690_v59  ;;  %v1699_v11 = vcombine.high %v1687_v2, %v1691_v3  ;;  %v515_v12 = vand.u32 %v1692_v1, %v1859_v5 }
  0x20   : > { %591 = vmatprep.subr.bf16.mxu1 %v524_v36  ;;  %v521_v13 = vand.u32 %v1694_v7, %v1859_v5  ;;  %v1696_v18 = vcombine.low %v1686_v58, %v1690_v59  ;;  %v1698_v21 = vcombine.low %v1687_v2, %v1691_v3  ;;  %v1717_v22 = vcombine.high %v1708_v16, %v1712_v17 }
  0x21   : > { %v530_v14 = vand.u32 %v1697_v10, %v1859_v5  ;;  %v536_v15 = vand.u32 %v1699_v11, %v1859_v5  ;;  %v1719_v23 = vcombine.high %v1709_v19, %v1713_v20  ;;  %v1716_v31 = vcombine.low %v1708_v16, %v1712_v17 }
  0x22   : > { %v527_v24 = vand.u32 %v1696_v18, %v1859_v5  ;;  %v533_v25 = vand.u32 %v1698_v21, %v1859_v5  ;;  %v827_v26 = vand.u32 %v1717_v22, %v1859_v5  ;;  %v1718_v34 = vcombine.low %v1709_v19, %v1713_v20 }
  0x23   : > { %v833_v27 = vand.u32 %v1719_v23, %v1859_v5  ;;  %v1721_v35 = vcombine.high %v1710_v28, %v1714_v30  ;;  %v1723_v36 = vcombine.high %v1711_v32, %v1715_v33  ;;  %v824_v37 = vand.u32 %v1716_v31, %v1859_v5 }
  0x24   : > { %1677 = vmatmul.mubr.msk.bf16.gmra.mrb[4].mxu0 %vm226_vm2, %v1917_v43  ;;  %v830_v38 = vand.u32 %v1718_v34, %v1859_v5  ;;  %v1720_v41 = vcombine.low %v1710_v28, %v1714_v30  ;;  %v1722_v42 = vcombine.low %v1711_v32, %v1715_v33 }
  0x25   : > { %1679 = vmatmul.mubr.msk.bf16.gmra.mrb[4].mxu1 %vm226_vm2, %v1917_v43  ;;  %399 = vmatprep.mubr.bf16.mxu0 %v1814_v0  ;;  %v839_v39 = vand.u32 %v1721_v35, %v1859_v5  ;;  %v845_v40 = vand.u32 %v1723_v36, %v1859_v5 }
  0x26   : > { %452 = vmatprep.mubr.bf16.mxu1 %v1814_v0  ;;  %v836_v44 = vand.u32 %v1720_v41, %v1859_v5  ;;  %v842_v45 = vand.u32 %v1722_v42, %v1859_v5 }
  0x2c   : > { %1680 = vmatmul.mubr.msk.bf16.vlgmr.msra.gmra.mrb[8].mxu0 %vm226_vm2, %v1887_v29 }
  0x2d   : > { %1682 = vmatmul.mubr.msk.bf16.vlgmr.msra.gmra.mrb[8].mxu1 %vm226_vm2, %v1887_v29  ;;  %539 = vmatpush1.bf16.msra.mxu0 %v515_v12 }
  0x2e   : > { %592 = vmatpush1.bf16.msra.mxu1 %v521_v13  ;;  %409 = vmatprep.mubr.bf16.mxu0 %v1814_v0 }
  0x2f   : > { %462 = vmatprep.mubr.bf16.mxu1 %v1814_v0  ;;  %644 = vmatprep.subr.bf16.mxu0 %v530_v14 }
  0x30   : > { %697 = vmatprep.subr.bf16.mxu1 %v536_v15 }
  0x34   : > { %1681 = vmatmul.mubr.msk.bf16.gmra.mrb[12].mxu0 %vm226_vm2, %v1917_v43 }
  0x35   : > { %1683 = vmatmul.mubr.msk.bf16.gmra.mrb[12].mxu1 %vm226_vm2, %v1917_v43  ;;  %570 = vmatprep.mubr.bf16.mxu0 %v1814_v0 }
  0x36   : > { %623 = vmatprep.mubr.bf16.mxu1 %v1814_v0 }
  0x3c   : > { %1700 = vmatmul.mubr.msk.bf16.vlgmr.msra.gmra.mrb[16].mxu0 %vm226_vm2, %v1887_v29 }
  0x3d   : > { %1702 = vmatmul.mubr.msk.bf16.vlgmr.msra.gmra.mrb[16].mxu1 %vm226_vm2, %v1887_v29  ;;  %645 = vmatpush1.bf16.msra.mxu0 %v527_v24 }
  0x3e   : > { %698 = vmatpush1.bf16.msra.mxu1 %v533_v25  ;;  %580 = vmatprep.mubr.bf16.mxu0 %v1814_v0 }
  0x3f   : > { %633 = vmatprep.mubr.bf16.mxu1 %v1814_v0  ;;  %847 = vmatprep.subr.bf16.mxu0 %v827_v26 }
  0x40   : > { %900 = vmatprep.subr.bf16.mxu1 %v833_v27 }
  0x44   : > { %1701 = vmatmul.mubr.msk.bf16.gmra.mrb[20].mxu0 %vm226_vm2, %v1917_v43 }
  0x45   : > { %1703 = vmatmul.mubr.msk.bf16.gmra.mrb[20].mxu1 %vm226_vm2, %v1917_v43  ;;  %676 = vmatprep.mubr.bf16.mxu0 %v1814_v0 }
  0x46   : > { %729 = vmatprep.mubr.bf16.mxu1 %v1814_v0 }
  0x4c   : > { %1704 = vmatmul.mubr.msk.bf16.vlgmr.msra.gmra.mrb[24].mxu0 %vm226_vm2, %v1887_v29 }
  0x4d   : > { %1706 = vmatmul.mubr.msk.bf16.vlgmr.msra.gmra.mrb[24].mxu1 %vm226_vm2, %v1887_v29  ;;  %848 = vmatpush1.bf16.msra.mxu0 %v824_v37 }
  0x4e   : > { %901 = vmatpush1.bf16.msra.mxu1 %v830_v38  ;;  %686 = vmatprep.mubr.bf16.mxu0 %v1814_v0 }
  0x4f   : > { %739 = vmatprep.mubr.bf16.mxu1 %v1814_v0  ;;  %953 = vmatprep.subr.bf16.mxu0 %v839_v39 }
  0x50   : > { %1006 = vmatprep.subr.bf16.mxu1 %v845_v40 }
  0x54   : > { %1705 = vmatmul.mubr.msk.bf16.gmra.mrb[28].mxu0 %vm226_vm2, %v1917_v43 }
  0x55   : > { %1707 = vmatmul.mubr.msk.bf16.gmra.mrb[28].mxu1 %vm226_vm2, %v1917_v43  ;;  %879 = vmatprep.mubr.bf16.mxu0 %v1814_v0 }
  0x56   : > { %932 = vmatprep.mubr.bf16.mxu1 %v1814_v0 }
  0x5c   : > { %1724 = vmatmul.mubr.msk.bf16.vlgmr.msra.gmra.mrb[32].mxu0 %vm226_vm2, %v1887_v29 }
  0x5d   : > { %1726 = vmatmul.mubr.msk.bf16.vlgmr.msra.gmra.mrb[32].mxu1 %vm226_vm2, %v1887_v29  ;;  %954 = vmatpush1.bf16.msra.mxu0 %v836_v44 }
  0x5e   : > { %1007 = vmatpush1.bf16.msra.mxu1 %v842_v45  ;;  %889 = vmatprep.mubr.bf16.mxu0 %v1814_v0 }
  0x5f   : > { %942 = vmatprep.mubr.bf16.mxu1 %v1814_v0  ;;  %1156 = vmatprep.subr.bf16.mxu0 %v1927_v53 }
  0x60   : > { %1209 = vmatprep.subr.bf16.mxu1 %v1940_v60 }
  0x64   : > { %1725 = vmatmul.mubr.msk.bf16.gmra.mrb[36].mxu0 %vm226_vm2, %v1917_v43 }
  0x65   : > { %1727 = vmatmul.mubr.msk.bf16.gmra.mrb[36].mxu1 %vm226_vm2, %v1917_v43  ;;  %985 = vmatprep.mubr.bf16.mxu0 %v1814_v0 }
  0x66   : > { %1038 = vmatprep.mubr.bf16.mxu1 %v1814_v0 }
  0x6c   : > { %1728 = vmatmul.mubr.msk.bf16.vlgmr.msra.gmra.mrb[40].mxu0 %vm226_vm2, %v1887_v29 }
  0x6d   : > { %1730 = vmatmul.mubr.msk.bf16.vlgmr.msra.gmra.mrb[40].mxu1 %vm226_vm2, %v1887_v29  ;;  %1157 = vmatpush1.bf16.msra.mxu0 %v1924_v52 }
  0x6e   : > { %1210 = vmatpush1.bf16.msra.mxu1 %v1930_v54  ;;  %995 = vmatprep.mubr.bf16.mxu0 %v1814_v0 }
  0x6f   : > { %1048 = vmatprep.mubr.bf16.mxu1 %v1814_v0  ;;  %1262 = vmatprep.subr.bf16.mxu0 %v1953_v4 }
  0x70   : > { %1315 = vmatprep.subr.bf16.mxu1 %v1962_v8 }
  0x74   : > { %1729 = vmatmul.mubr.msk.bf16.gmra.mrb[44].mxu0 %vm226_vm2, %v1917_v43 }
  0x75   : > { %1731 = vmatmul.mubr.msk.bf16.gmra.mrb[44].mxu1 %vm226_vm2, %v1917_v43  ;;  %1188 = vmatprep.mubr.bf16.mxu0 %v1814_v0 }
  0x76   : > { %1241 = vmatprep.mubr.bf16.mxu1 %v1814_v0 }
  0x7c   : > { %1748 = vmatmul.mubr.msk.bf16.vlgmr.msra.gmra.mrb[48].mxu0 %vm226_vm2, %v1887_v29 }
  0x7d   : > { %1750 = vmatmul.mubr.msk.bf16.vlgmr.msra.gmra.mrb[48].mxu1 %vm226_vm2, %v1887_v29  ;;  %1263 = vmatpush1.bf16.msra.mxu0 %v1956_v6 }
  0x7e   : > { %1316 = vmatpush1.bf16.msra.mxu1 %v1965_v9  ;;  %1198 = vmatprep.mubr.bf16.mxu0 %v1814_v0 }
  0x7f   : > { %1251 = vmatprep.mubr.bf16.mxu1 %v1814_v0 }
  0x84   : > { %1749 = vmatmul.mubr.msk.bf16.gmra.mrb[52].mxu0 %vm226_vm2, %v1917_v43 }
  0x85   : > { %1751 = vmatmul.mubr.msk.bf16.gmra.mrb[52].mxu1 %vm226_vm2, %v1917_v43  ;;  %1294 = vmatprep.mubr.bf16.mxu0 %v1814_v0 }
  0x86   : > { %1347 = vmatprep.mubr.bf16.mxu1 %v1814_v0 }
  0x8c   : > { %1752 = vmatmul.mubr.msk.bf16.vlgmr.msra.gmra.mrb[56].mxu0 %vm226_vm2, %v1887_v29 }
  0x8d   : > { %1754 = vmatmul.mubr.msk.bf16.vlgmr.msra.gmra.mrb[56].mxu1 %vm226_vm2, %v1887_v29  ;;  %1304 = vmatprep.mubr.bf16.mxu0 %v1814_v0 }
  0x8e   : > { %1357 = vmatprep.mubr.bf16.mxu1 %v1814_v0 }
  0x94   : > { %1753 = vmatmul.mubr.msk.bf16.gmra.mrb[60].mxu0 %vm226_vm2, %v1917_v43 }
  0x95   : > { %1755 = vmatmul.mubr.msk.bf16.gmra.mrb[60].mxu1 %vm226_vm2, %v1917_v43 }
  0xef   : > { %v2079_v5 = vpop.f32.mrb[0].mxu0 }
  0xf0   : > { %v2081_v46 = vpop.f32.mrb[0].mxu1  ;;  %v2083_v47 = vpop.f32.mrb[1].mxu0 }
  0xf1   : > { %v2085_v48 = vpop.f32.mrb[1].mxu1  ;;  %v2087_v49 = vpop.f32.mrb[2].mxu0 }
  0xf2   : > { %v2089_v29 = vpop.f32.mrb[2].mxu1  ;;  %v2091_v50 = vpop.f32.mrb[3].mxu0 }
  0xf3   : > { %v2093_v0 = vpop.f32.mrb[3].mxu1 }
  0xf7   : > { %v2095_v51 = vpop.f32.mrb[4].mxu0 }
  0xf8   : > { %v2097_v52 = vpop.f32.mrb[4].mxu1  ;;  %v2099_v43 = vpop.f32.mrb[5].mxu0 }
  0xf9   : > { %v2101_v53 = vpop.f32.mrb[5].mxu1  ;;  %v2103_v54 = vpop.f32.mrb[6].mxu0 }
  0xfa   : > { %v2105_v55 = vpop.f32.mrb[6].mxu1  ;;  %v2107_v56 = vpop.f32.mrb[7].mxu0 }
  0xfb   : > { %v2109_v57 = vpop.f32.mrb[7].mxu1 }
  0xff   : > { %v2111_v58 = vpop.f32.mrb[8].mxu0 }
 0x100   : > { %v2113_v59 = vpop.f32.mrb[8].mxu1  ;;  %v2115_v60 = vpop.f32.mrb[9].mxu0 }
 0x101   : > { %v2117_v61 = vpop.f32.mrb[9].mxu1  ;;  %v2119_v62 = vpop.f32.mrb[10].mxu0 }
 0x102   : > { %v2121_v63 = vpop.f32.mrb[10].mxu1  ;;  %v2123_v1 = vpop.f32.mrb[11].mxu0 }
 0x103   : > { %v2125_v2 = vpop.f32.mrb[11].mxu1 }
 0x107   : > { %v2127_v3 = vpop.f32.mrb[12].mxu0 }
 0x108   : > { %2558 = vst [vmem:[#allocation2_spill] sm:$0xff] %v2127_v3  ;;  %v2129_v4 = vpop.f32.mrb[12].mxu1  ;;  %v2131_v6 = vpop.f32.mrb[13].mxu0 }
 0x109   : > { %2559 = vst [vmem:[#allocation3_spill] sm:$0xff] %v2131_v6  ;;  %v2133_v7 = vpop.f32.mrb[13].mxu1  ;;  %v2135_v8 = vpop.f32.mrb[14].mxu0 }
 0x10a   : > { %2560 = vst [vmem:[#allocation4_spill] sm:$0xff] %v2135_v8  ;;  %v2137_v9 = vpop.f32.mrb[14].mxu1  ;;  %v2139_v10 = vpop.f32.mrb[15].mxu0 }
 0x10b   : > { %2561 = vst [vmem:[#allocation5_spill] sm:$0xff] %v2139_v10  ;;  %v2141_v11 = vpop.f32.mrb[15].mxu1 }
 0x10f   : > { %v2143_v12 = vpop.f32.mrb[16].mxu0 }
 0x110   : > { %v2147_v14 = vpop.f32.mrb[16].mxu1  ;;  %v2149_v15 = vpop.f32.mrb[17].mxu0  ;;  %v2570_v20 = vmax.f32 %v2079_v5, %v2143_v12 }
 0x111   : > { %v2155_v18 = vpop.f32.mrb[17].mxu1  ;;  %v2157_v19 = vpop.f32.mrb[18].mxu0  ;;  %v2572_v42 = vmax.f32 %v2083_v47, %v2149_v15 }
 0x112   : > { %v2163_v22 = vpop.f32.mrb[18].mxu1  ;;  %v2165_v23 = vpop.f32.mrb[19].mxu0  ;;  %v2574_v12 = vmax.f32 %v2087_v49, %v2157_v19 }
 0x113   : > { %v2171_v26 = vpop.f32.mrb[19].mxu1 }
 0x117   : > { %v2175_v28 = vpop.f32.mrb[20].mxu0 }
 0x118   : > { %v2179_v31 = vpop.f32.mrb[20].mxu1  ;;  %v2181_v32 = vpop.f32.mrb[21].mxu0 }
 0x119   : > { %v2187_v35 = vpop.f32.mrb[21].mxu1  ;;  %v2189_v36 = vpop.f32.mrb[22].mxu0 }
 0x11a   : > { %v2195_v39 = vpop.f32.mrb[22].mxu1  ;;  %v2197_v40 = vpop.f32.mrb[23].mxu0 }
 0x11b   : > { %v2203_v44 = vpop.f32.mrb[23].mxu1 }
 0x11f   : > { %v2207_v34 = vpop.f32.mrb[24].mxu0 }
 0x120   : > { %v2211_v37 = vpop.f32.mrb[24].mxu1  ;;  %v2213_v33 = vpop.f32.mrb[25].mxu0 }
 0x121   : > { %v2219_v30 = vpop.f32.mrb[25].mxu1  ;;  %v2221_v27 = vpop.f32.mrb[26].mxu0 }
 0x122   : > { %v2227_v25 = vpop.f32.mrb[26].mxu1  ;;  %v2229_v24 = vpop.f32.mrb[27].mxu0 }
 0x123   : > { %2562 = vst [vmem:[#allocation6_spill] sm:$0xff] %v2229_v24  ;;  %v2235_v21 = vpop.f32.mrb[27].mxu1 }
 0x127   : > { %v2239_v17 = vpop.f32.mrb[28].mxu0 }
 0x128   : > { %2563 = vst [vmem:[#allocation7_spill] sm:$0xff] %v2239_v17  ;;  %v2243_v45 = vpop.f32.mrb[28].mxu1  ;;  %v2245_v16 = vpop.f32.mrb[29].mxu0 }
 0x129   : > { %2564 = vst [vmem:[#allocation8_spill] sm:$0xff] %v2243_v45  ;;  %2565 = vst [vmem:[#allocation9_spill] sm:$0xff] %v2245_v16  ;;  %v2251_v13 = vpop.f32.mrb[29].mxu1  ;;  %v2253_v24 = vpop.f32.mrb[30].mxu0 }
 0x12a   : > { %2566 = vst [vmem:[#allocation10_spill] sm:$0xff] %v2251_v13  ;;  %2567 = vst [vmem:[#allocation11_spill] sm:$0xff] %v2253_v24  ;;  %v2259_v17 = vpop.f32.mrb[30].mxu1  ;;  %v2261_v3 = vpop.f32.mrb[31].mxu0  ;;  %v2571_v13 = vmax.f32 %v2081_v46, %v2147_v14  ;;  %v2575_v14 = vmax.f32 %v2089_v29, %v2163_v22  ;;  %v2579_v22 = vmax.f32 %v2097_v52, %v2179_v31 }
 0x12b   : > { %2568 = vst [vmem:[#allocation12_spill] sm:$0xff] %v2261_v3  ;;  %v2267_v16 = vpop.f32.mrb[31].mxu1 }
 0x12c   : > { %2569 = vst [vmem:[#allocation13_spill] sm:$0xff] %v2267_v16  ;;  %v2573_v16 = vmax.f32 %v2085_v48, %v2155_v18 }
 0x12f   : > { %v881_v45 = vpop.f32.mrb[32].mxu0 }
 0x130   : > { %v2274_v38 = vmax.f32 %v2570_v20, %v881_v45  ;;  %v934_v24 = vpop.f32.mrb[32].mxu1  ;;  %v883_v8 = vpop.f32.mrb[33].mxu0 }
 0x131   : > { %v2279_v41 = vmax.f32 %v2571_v13, %v934_v24  ;;  %v2284_v3 = vmax.f32 %v2572_v42, %v883_v8  ;;  %v936_v10 = vpop.f32.mrb[33].mxu1  ;;  %v885_v6 = vpop.f32.mrb[34].mxu0  ;;  %v2576_v8 = vmax.f32 %v2091_v50, %v2165_v23  ;;  %v2580_v23 = vmax.f32 %v2099_v43, %v2181_v32 }
 0x132   : > { %v2289_v5 = vmax.f32 %v2573_v16, %v936_v10  ;;  %v2294_v20 = vmax.f32 %v2574_v12, %v885_v6  ;;  %v938_v46 = vpop.f32.mrb[34].mxu1  ;;  %v887_v13 = vpop.f32.mrb[35].mxu0  ;;  %v2577_v10 = vmax.f32 %v2093_v0, %v2171_v26  ;;  %v2578_v6 = vmax.f32 %v2095_v51, %v2175_v28 }
 0x133   : > { %v2299_v47 = vmax.f32 %v2575_v14, %v938_v46  ;;  %v2304_v15 = vmax.f32 %v2576_v8, %v887_v13  ;;  %v940_v48 = vpop.f32.mrb[35].mxu1  ;;  %v2581_v42 = vmax.f32 %v2101_v53, %v2187_v35  ;;  %v2582_v28 = vmax.f32 %v2103_v54, %v2189_v36 }
 0x134   : > { %v2309_v16 = vmax.f32 %v2577_v10, %v940_v48  ;;  %v2583_v12 = vmax.f32 %v2105_v55, %v2195_v39  ;;  %v2584_v32 = vmax.f32 %v2107_v56, %v2197_v40  ;;  %v2585_v35 = vmax.f32 %v2109_v57, %v2203_v44 }
 0x135   : > { %v2586_v36 = vmax.f32 %v2111_v58, %v2207_v34  ;;  %v2587_v8 = vmax.f32 %v2113_v59, %v2211_v37  ;;  %v2588_v40 = vmax.f32 %v2115_v60, %v2213_v33  ;;  %v2589_v10 = vmax.f32 %v2117_v61, %v2219_v30  ;;  %v2592_v33 = vld [vmem:[#allocation6_spill] sm:$0xff] }
 0x136   : > { %v2590_v34 = vmax.f32 %v2119_v62, %v2221_v27  ;;  %v2594_v30 = vmax.f32 %v2125_v2, %v2235_v21  ;;  %v2391_v27 = vpop.permute.xlu0 %1406 }
 0x137   : > { %v891_v49 = vpop.f32.mrb[36].mxu0 }
 0x138   : > { %v2314_v18 = vmax.f32 %v2578_v6, %v891_v49  ;;  %v944_v29 = vpop.f32.mrb[36].mxu1  ;;  %v893_v19 = vpop.f32.mrb[37].mxu0  ;;  %v2591_v6 = vmax.f32 %v2121_v63, %v2227_v25 }
 0x139   : > { %v2319_v50 = vmax.f32 %v2579_v22, %v944_v29  ;;  %v2324_v24 = vmax.f32 %v2580_v23, %v893_v19  ;;  %v946_v0 = vpop.f32.mrb[37].mxu1  ;;  %v895_v26 = vpop.f32.mrb[38].mxu0  ;;  %v2593_v29 = vmax.f32 %v2123_v1, %v2592_v33  ;;  %v2595_v23 = vld [vmem:[#allocation2_spill] sm:$0xff]  ;;  %v2598_v1 = vld [vmem:[#allocation8_spill] sm:$0xff]  ;;  %v2612_v33 = vld [vmem:[#allocation13_spill] sm:$0xff] }
 0x13a   : > { %v2329_v51 = vmax.f32 %v2581_v42, %v946_v0  ;;  %v2334_v45 = vmax.f32 %v2582_v28, %v895_v26  ;;  %v948_v52 = vpop.f32.mrb[38].mxu1  ;;  %v897_v31 = vpop.f32.mrb[39].mxu0  ;;  %v2596_v0 = vld [vmem:[#allocation7_spill] sm:$0xff]  ;;  %v2599_v28 = vmax.f32 %v2129_v4, %v2598_v1 }
 0x13b   : > { %v2339_v43 = vmax.f32 %v2583_v12, %v948_v52  ;;  %v2344_v46 = vmax.f32 %v2584_v32, %v897_v31  ;;  %v950_v53 = vpop.f32.mrb[39].mxu1  ;;  %v2597_v26 = vmax.f32 %v2595_v23, %v2596_v0  ;;  %v2600_v31 = vld [vmem:[#allocation3_spill] sm:$0xff]  ;;  %v2601_v12 = vld [vmem:[#allocation9_spill] sm:$0xff]  ;;  %v2435_v23 = vpop.permute.xlu1 %1416 }
 0x13c   : > { %v2349_v13 = vmax.f32 %v2585_v35, %v950_v53  ;;  %v2602_v2 = vmax.f32 %v2600_v31, %v2601_v12  ;;  %v2603_v35 = vld [vmem:[#allocation10_spill] sm:$0xff] }
 0x13f   : > { %v987_v54 = vpop.f32.mrb[40].mxu0 }
 0x140   : > { %v2354_v14 = vmax.f32 %v2586_v36, %v987_v54  ;;  %v1040_v55 = vpop.f32.mrb[40].mxu1  ;;  %v989_v39 = vpop.f32.mrb[41].mxu0  ;;  %v2604_v54 = vmax.f32 %v2133_v7, %v2603_v35 }
 0x141   : > { %v2359_v56 = vmax.f32 %v2587_v8, %v1040_v55  ;;  %v2364_v48 = vmax.f32 %v2588_v40, %v989_v39  ;;  %v1042_v57 = vpop.f32.mrb[41].mxu1  ;;  %v991_v44 = vpop.f32.mrb[42].mxu0  ;;  %v2605_v55 = vld [vmem:[#allocation4_spill] sm:$0xff]  ;;  %v2606_v39 = vld [vmem:[#allocation11_spill] sm:$0xff] }
 0x142   : > { %v2369_v58 = vmax.f32 %v2589_v10, %v1042_v57  ;;  %v2374_v49 = vmax.f32 %v2590_v34, %v991_v44  ;;  %v1044_v59 = vpop.f32.mrb[42].mxu1  ;;  %v993_v37 = vpop.f32.mrb[43].mxu0  ;;  %v2607_v8 = vmax.f32 %v2605_v55, %v2606_v39  ;;  %v2608_v44 = vmax.f32 %v2137_v9, %v2259_v17  ;;  %v2609_v34 = vld [vmem:[#allocation5_spill] sm:$0xff] }
 0x143   : > { %v2379_v60 = vmax.f32 %v2591_v6, %v1044_v59  ;;  %v2384_v19 = vmax.f32 %v2593_v29, %v993_v37  ;;  %v1046_v61 = vpop.f32.mrb[43].mxu1  ;;  %v2610_v59 = vld [vmem:[#allocation12_spill] sm:$0xff]  ;;  %v2613_v29 = vmax.f32 %v2141_v11, %v2612_v33 }
 0x144   : > { %v2389_v22 = vmax.f32 %v2594_v30, %v1046_v61  ;;  %v2611_v37 = vmax.f32 %v2609_v34, %v2610_v59  ;;  %v2433_v30 = vpop.permute.xlu0 %1411 }
 0x147   : > { %v997_v62 = vpop.f32.mrb[44].mxu0 }
 0x148   : > { %v2396_v63 = vmax.f32 %v2597_v26, %v997_v62  ;;  %v1050_v25 = vpop.f32.mrb[44].mxu1  ;;  %v999_v42 = vpop.f32.mrb[45].mxu0 }
 0x149   : > { %v2401_v52 = vmax.f32 %v2599_v28, %v1050_v25  ;;  %v2406_v21 = vmax.f32 %v2602_v2, %v999_v42  ;;  %v1052_v32 = vpop.f32.mrb[45].mxu1  ;;  %v1001_v53 = vpop.f32.mrb[46].mxu0 }
 0x14a   : > { %v2411_v36 = vmax.f32 %v2604_v54, %v1052_v32  ;;  %v2416_v40 = vmax.f32 %v2607_v8, %v1001_v53  ;;  %v1054_v4 = vpop.f32.mrb[46].mxu1  ;;  %v1003_v57 = vpop.f32.mrb[47].mxu0 }
 0x14b   : > { %v2421_v10 = vmax.f32 %v2608_v44, %v1054_v4  ;;  %v2426_v6 = vmax.f32 %v2611_v37, %v1003_v57  ;;  %v1056_v7 = vpop.f32.mrb[47].mxu1  ;;  %v2459_v37 = vpop.permute.xlu1 %1421 }
 0x14c   : > { %v2431_v61 = vmax.f32 %v2613_v29, %v1056_v7 }
 0x14f   : > { %v1190_v62 = vpop.f32.mrb[48].mxu0 }
 0x150   : > { %v1368_v9 = vmax.f32 %v2274_v38, %v1190_v62  ;;  %v1243_v17 = vpop.f32.mrb[48].mxu1  ;;  %v1192_v0 = vpop.f32.mrb[49].mxu0 }
 0x151   : > { %v1370_v26 = vmax.f32 %v2279_v41, %v1243_v17  ;;  %v1369_v25 = vmax.f32 %v2284_v3, %v1192_v0  ;;  %v1245_v42 = vpop.f32.mrb[49].mxu1  ;;  %v1194_v1 = vpop.f32.mrb[50].mxu0 }
 0x152   : > { %v1424_v11 = vadd.f32 %v2391_v27, %v1368_v9  ;;  %v1371_v28 = vmax.f32 %v2289_v5, %v1245_v42  ;;  %v1376_v31 = vmax.f32 %v2294_v20, %v1194_v1  ;;  %v1247_v12 = vpop.f32.mrb[50].mxu1  ;;  %v1196_v2 = vpop.f32.mrb[51].mxu0 }
 0x153   : > { %v1426_v32 = vadd.f32 %v2391_v27, %v1370_v26  ;;  %v1425_v38 = vadd.f32 %v2391_v27, %v1369_v25  ;;  %v1378_v53 = vmax.f32 %v2299_v47, %v1247_v12  ;;  %v1377_v41 = vmax.f32 %v2304_v15, %v1196_v2  ;;  %v1249_v3 = vpop.f32.mrb[51].mxu1 }
 0x154   : > { %v1456_v35 = vmax.f32 %v1424_v11, 0.0  ;;  %v1427_v54 = vadd.f32 %v2391_v27, %v1371_v28  ;;  %v1379_v55 = vmax.f32 %v2309_v16, %v1249_v3  ;;  %v1432_v5 = vadd.f32 %v2433_v30, %v1376_v31 }
 0x155   : > { %v1458_v20 = vmax.f32 %v1426_v32, 0.0  ;;  %v1457_v39 = vmax.f32 %v1425_v38, 0.0  ;;  %v1433_v8 = vadd.f32 %v2433_v30, %v1377_v41  ;;  %v1434_v4 = vadd.f32 %v2433_v30, %v1378_v53 }
 0x156   : > { %v1459_v47 = vmax.f32 %v1427_v54, 0.0  ;;  %v1435_v15 = vadd.f32 %v2433_v30, %v1379_v55  ;;  %v1464_v57 = vmax.f32 %v1432_v5, 0.0 }
 0x157   : > { %v1776_v44 = vpack.c.bf16 %v1457_v39, %v1456_v35  ;;  %v1465_v16 = vmax.f32 %v1433_v8, 0.0  ;;  %v1466_v34 = vmax.f32 %v1434_v4, 0.0  ;;  %v1200_v59 = vpop.f32.mrb[52].mxu0 }
 0x158   : > { %v1777_v7 = vpack.c.bf16 %v1459_v47, %v1458_v20  ;;  %v1467_v33 = vmax.f32 %v1435_v15, 0.0  ;;  %v1384_v29 = vmax.f32 %v2314_v18, %v1200_v59  ;;  %v1253_v62 = vpop.f32.mrb[52].mxu1  ;;  %v1202_v9 = vpop.f32.mrb[53].mxu0 }
 0x159   : > { %1584 = vst [vmem:[%s2456_s6] sm:$0xff] %v1776_v44  ;;  %v1780_v17 = vpack.c.bf16 %v1465_v16, %v1464_v57  ;;  %v1386_v0 = vmax.f32 %v2319_v50, %v1253_v62  ;;  %v1385_v26 = vmax.f32 %v2324_v24, %v1202_v9  ;;  %v1255_v25 = vpop.f32.mrb[53].mxu1  ;;  %v1204_v42 = vpop.f32.mrb[54].mxu0 }
 0x15a   : > { %1585 = vst [vmem:[%s2456_s6 + $0x8] sm:$0xff] %v1777_v7  ;;  %v1781_v1 = vpack.c.bf16 %v1467_v33, %v1466_v34  ;;  %v1440_v11 = vadd.f32 %v2435_v23, %v1384_v29  ;;  %v1387_v28 = vmax.f32 %v2329_v51, %v1255_v25  ;;  %v1392_v18 = vmax.f32 %v2334_v45, %v1204_v42  ;;  %v1257_v31 = vpop.f32.mrb[54].mxu1  ;;  %v1206_v12 = vpop.f32.mrb[55].mxu0 }
 0x15b   : > { %1590 = vst [vmem:[%s2456_s6 + $0x20] sm:$0xff] %v1780_v17  ;;  %v1442_v2 = vadd.f32 %v2435_v23, %v1386_v0  ;;  %v1441_v50 = vadd.f32 %v2435_v23, %v1385_v26  ;;  %v1394_v24 = vmax.f32 %v2339_v43, %v1257_v31  ;;  %v1393_v32 = vmax.f32 %v2344_v46, %v1206_v12  ;;  %v1259_v38 = vpop.f32.mrb[55].mxu1 }
 0x15c   : > { %1591 = vst [vmem:[%s2456_s6 + $0x28] sm:$0xff] %v1781_v1  ;;  %v1472_v53 = vmax.f32 %v1440_v11, 0.0  ;;  %v1443_v41 = vadd.f32 %v2435_v23, %v1387_v28  ;;  %v1395_v51 = vmax.f32 %v2349_v13, %v1259_v38  ;;  %v1448_v45 = vadd.f32 %v2459_v37, %v1392_v18 }
 0x15d   : > { %v1474_v3 = vmax.f32 %v1442_v2, 0.0  ;;  %v1473_v35 = vmax.f32 %v1441_v50, 0.0  ;;  %v1449_v54 = vadd.f32 %v2459_v37, %v1393_v32  ;;  %v1450_v55 = vadd.f32 %v2459_v37, %v1394_v24 }
 0x15e   : > { %v1475_v5 = vmax.f32 %v1443_v41, 0.0  ;;  %v1451_v43 = vadd.f32 %v2459_v37, %v1395_v51  ;;  %v1480_v46 = vmax.f32 %v1448_v45, 0.0 }
 0x15f   : > { %v1784_v20 = vpack.c.bf16 %v1473_v35, %v1472_v53  ;;  %v1481_v39 = vmax.f32 %v1449_v54, 0.0  ;;  %v1482_v8 = vmax.f32 %v1450_v55, 0.0  ;;  %v1296_v4 = vpop.f32.mrb[56].mxu0 }
 0x160   : > { %v1785_v47 = vpack.c.bf16 %v1475_v5, %v1474_v3  ;;  %v1483_v13 = vmax.f32 %v1451_v43, 0.0  ;;  %v1372_v15 = vmax.f32 %v2354_v14, %v1296_v4  ;;  %v1349_v57 = vpop.f32.mrb[56].mxu1  ;;  %v1298_v44 = vpop.f32.mrb[57].mxu0 }
 0x161   : > { %1594 = vst [vmem:[%s2456_s6 + $0x40] sm:$0xff] %v1784_v20  ;;  %v1788_v16 = vpack.c.bf16 %v1481_v39, %v1480_v46  ;;  %v1374_v34 = vmax.f32 %v2359_v56, %v1349_v57  ;;  %v1373_v59 = vmax.f32 %v2364_v48, %v1298_v44  ;;  %v1351_v7 = vpop.f32.mrb[57].mxu1  ;;  %v1300_v33 = vpop.f32.mrb[58].mxu0 }
 0x162   : > { %1595 = vst [vmem:[%s2456_s6 + $0x48] sm:$0xff] %v1785_v47  ;;  %v1789_v29 = vpack.c.bf16 %v1483_v13, %v1482_v8  ;;  %v1428_v62 = vadd.f32 %v2391_v27, %v1372_v15  ;;  %v1375_v9 = vmax.f32 %v2369_v58, %v1351_v7  ;;  %v1380_v14 = vmax.f32 %v2374_v49, %v1300_v33  ;;  %v1353_v17 = vpop.f32.mrb[58].mxu1  ;;  %v1302_v0 = vpop.f32.mrb[59].mxu0 }
 0x163   : > { %1598 = vst [vmem:[%s2456_s6 + $0x60] sm:$0xff] %v1788_v16  ;;  %v1430_v26 = vadd.f32 %v2391_v27, %v1374_v34  ;;  %v1429_v56 = vadd.f32 %v2391_v27, %v1373_v59  ;;  %v1382_v48 = vmax.f32 %v2379_v60, %v1353_v17  ;;  %v1381_v25 = vmax.f32 %v2384_v19, %v1302_v0  ;;  %v1355_v42 = vpop.f32.mrb[59].mxu1 }
 0x164   : > { %1599 = vst [vmem:[%s2456_s6 + $0x68] sm:$0xff] %v1789_v29  ;;  %v1460_v1 = vmax.f32 %v1428_v62, 0.0  ;;  %v1431_v11 = vadd.f32 %v2391_v27, %v1375_v9  ;;  %v1436_v58 = vadd.f32 %v2433_v30, %v1380_v14  ;;  %v1383_v49 = vmax.f32 %v2389_v22, %v1355_v42 }
 0x165   : > { %v1462_v28 = vmax.f32 %v1430_v26, 0.0  ;;  %v1461_v18 = vmax.f32 %v1429_v56, 0.0  ;;  %v1438_v31 = vadd.f32 %v2433_v30, %v1382_v48  ;;  %v1437_v12 = vadd.f32 %v2433_v30, %v1381_v25 }
 0x166   : > { %v1463_v2 = vmax.f32 %v1431_v11, 0.0  ;;  %v1468_v60 = vmax.f32 %v1436_v58, 0.0  ;;  %v1439_v19 = vadd.f32 %v2433_v30, %v1383_v49 }
 0x167   : > { %v1778_v50 = vpack.c.bf16 %v1461_v18, %v1460_v1  ;;  %v1470_v22 = vmax.f32 %v1438_v31, 0.0  ;;  %v1469_v24 = vmax.f32 %v1437_v12, 0.0  ;;  %v1306_v32 = vpop.f32.mrb[60].mxu0 }
 0x168   : > { %v1779_v38 = vpack.c.bf16 %v1463_v2, %v1462_v28  ;;  %v1471_v53 = vmax.f32 %v1439_v19, 0.0  ;;  %v1388_v41 = vmax.f32 %v2396_v63, %v1306_v32  ;;  %v1359_v51 = vpop.f32.mrb[60].mxu1  ;;  %v1308_v45 = vpop.f32.mrb[61].mxu0 }
 0x169   : > { %1586 = vst [vmem:[%s2456_s6 + $0x10] sm:$0xff] %v1778_v50  ;;  %v1782_v30 = vpack.c.bf16 %v1469_v24, %v1468_v60  ;;  %v1390_v3 = vmax.f32 %v2401_v52, %v1359_v51  ;;  %v1389_v35 = vmax.f32 %v2406_v21, %v1308_v45  ;;  %v1361_v54 = vpop.f32.mrb[61].mxu1  ;;  %v1310_v55 = vpop.f32.mrb[62].mxu0 }
 0x16a   : > { %1589 = vst.msk [vmem:[%s2456_s6 + $0x18] sm:$0xff] %vm2503_vm4, %v1779_v38  ;;  %v1783_v5 = vpack.c.bf16 %v1471_v53, %v1470_v22  ;;  %v1444_v43 = vadd.f32 %v2435_v23, %v1388_v41  ;;  %v1391_v63 = vmax.f32 %v2411_v36, %v1361_v54  ;;  %v1396_v46 = vmax.f32 %v2416_v40, %v1310_v55  ;;  %v1363_v20 = vpop.f32.mrb[62].mxu1  ;;  %v1312_v39 = vpop.f32.mrb[63].mxu0 }
 0x16b   : > { %1592 = vst [vmem:[%s2456_s6 + $0x30] sm:$0xff] %v1782_v30  ;;  %v1446_v52 = vadd.f32 %v2435_v23, %v1390_v3  ;;  %v1445_v21 = vadd.f32 %v2435_v23, %v1389_v35  ;;  %v1398_v8 = vmax.f32 %v2421_v10, %v1363_v20  ;;  %v1397_v4 = vmax.f32 %v2426_v6, %v1312_v39  ;;  %v1365_v47 = vpop.f32.mrb[63].mxu1 }
 0x16c   : > { %1593 = vst.msk [vmem:[%s2456_s6 + $0x38] sm:$0xff] %vm2503_vm4, %v1783_v5  ;;  %v1476_v13 = vmax.f32 %v1444_v43, 0.0  ;;  %v1447_v36 = vadd.f32 %v2435_v23, %v1391_v63  ;;  %v1452_v40 = vadd.f32 %v2459_v37, %v1396_v46  ;;  %v1399_v15 = vmax.f32 %v2431_v61, %v1365_v47 }
 0x16d   : > { %v1478_v57 = vmax.f32 %v1446_v52, 0.0  ;;  %v1477_v44 = vmax.f32 %v1445_v21, 0.0  ;;  %v1454_v10 = vadd.f32 %v2459_v37, %v1398_v8  ;;  %v1453_v6 = vadd.f32 %v2459_v37, %v1397_v4 }
 0x16e   : > { %v1479_v16 = vmax.f32 %v1447_v36, 0.0  ;;  %v1484_v34 = vmax.f32 %v1452_v40, 0.0  ;;  %v1455_v59 = vadd.f32 %v2459_v37, %v1399_v15 }
 0x16f   : > { %v1786_v7 = vpack.c.bf16 %v1477_v44, %v1476_v13  ;;  %v1486_v33 = vmax.f32 %v1454_v10, 0.0  ;;  %v1485_v23 = vmax.f32 %v1453_v6, 0.0 }
 0x170   : > { %v1787_v29 = vpack.c.bf16 %v1479_v16, %v1478_v57  ;;  %v1487_v62 = vmax.f32 %v1455_v59, 0.0 }
 0x171   : > { %1596 = vst [vmem:[%s2456_s6 + $0x50] sm:$0xff] %v1786_v7  ;;  %v1790_v9 = vpack.c.bf16 %v1485_v23, %v1484_v34 }
 0x172   : > { %1597 = vst.msk [vmem:[%s2456_s6 + $0x58] sm:$0xff] %vm2503_vm4, %v1787_v29  ;;  %v1791_v61 = vpack.c.bf16 %v1487_v62, %v1486_v33 }
 0x173   : > { %1600 = vst [vmem:[%s2456_s6 + $0x70] sm:$0xff] %v1790_v9 }
 0x174   : > { %1601 = vst.msk [vmem:[%s2456_s6 + $0x78] sm:$0xff] %vm2503_vm4, %v1791_v61 }
 0x175 PF: > { %s13_s12 = sadd.s32 1, %s1812_s12  }
 0x176   : > { %p10_p4 = scmp.ge.s32.totalorder %s13_s12, 4  }
 0x178   :  { %12 = sbr.rel (!%p10_p4) target bundleno = 1 (0x1), region = 65 }

// kernel: forward.5
= control target key start
LH: loop header
LB: loop body
LE: loop exit
PB: predicated region body
PF: predicated region fallthrough
CT: control target
= control target key end

     0   :  { %s2598_s12 = smov 0   ;;  %s3069_s0 = inlined_call_operand.vmem [shape: bf16[2,4,288,240], index: 0, kind: input, shape index: {}]   ;;  %s3070_s1 = inlined_call_operand.vmem [shape: bf16[64,288], index: 1, kind: input, shape index: {}]   ;;  %s3071_s2 = inlined_call_operand.vmem [shape: f32[64,1], index: 2, kind: input, shape index: {}]   ;;  %s3072_s3 = inlined_call_operand.vmem [shape: bf16[2,64,240], index: 3, kind: output, shape index: {}]  }
   0x1 LB: > { %s1954_s13 = sadd.s32 4294967295, %s2575_s12   ;;  %p1958_p0 = scmp.ge.s32.totalorder %s2575_s12, 1  ;;  %s2575_s12 = sphi %s2598_s12, %s13_s12  }
   0x2   : > { %p137_p1 = scmp.lt.s32.totalorder %s2575_s12, 3 }
   0x4   : > { %p138_p2 = pnand %p1958_p0, %p137_p1 }
   0x5   : > { %p161_p3 = scmp.lt.s32.totalorder (!%p138_p2), %s1954_s13, 1  ;;  %v2609_v0 = vld [vmem:[%s3070_s1 + $0x4] ss:$12 sps:$4 sm:$0xff] (!%p138_p2)   ;;  %v2577_v1 = vmov (!%p138_p2), 0   ;;  %vm464_vm0 = vcmask (!%p138_p2), 261120   ;;  %vm1888_vm1 = vcmask (!%p138_p2), 1043456  }
   0x6   : > { %141 = sbr.rel (%p138_p2) target bundleno = 460 (0x1cc), region = 32  ;;  %2335 = vset.pattern.permute.xlu0 (!%p138_p2), %v2577_v1  ;;  %2336 = vset.pattern.permute.xlu1 (!%p138_p2), %v2577_v1  ;;  %vm1889_vm2 = vcmask (!%p138_p2), 916484  }
   0x7   : > { %509 = vmatprep.mubr.bf16.mxu0 (!%p138_p2), %v2609_v0  ;;  %872 = vmatprep.mubr.bf16.mxu1 (!%p138_p2), %v2609_v0  ;;  %vm2997_vm3 = vmor (!%p138_p2), %vm1889_vm2, %vm1888_vm1 }
   0xd   : > { %s3076_s13 = smov (!%p161_p3, %s1954_s13), 1 }
   0xe   : > { %s2325_s16 = smul.u32 1152, %s3076_s13 }
  0x10   : > { %s2621_s19 = scalar_lea.vmem %s3069_s0, %s2325_s16 }
  0x11   : > { %v2337_v2 = vld [vmem:[%s2621_s19 + $0x4] ss:$8 sps:$4 sm:$0xff]   ;;  %v2341_v4 = vld [vmem:[%s2621_s19] ss:$8 sps:$4 sm:$0xff]   ;;  %v2343_v6 = vld [vmem:[%s2621_s19 + $0x14] ss:$8 sps:$4 sm:$0xff]  }
  0x12   : > { %v2339_v3 = vld [vmem:[%s2621_s19 + $0x124] ss:$8 sps:$4 sm:$0xff]   ;;  %477 = vmatprep.subr.bf16.mxu0 %v2337_v2  ;;  %v2342_v5 = vld [vmem:[%s2621_s19 + $0x120] ss:$8 sps:$4 sm:$0xff]   ;;  %v2345_v7 = vld [vmem:[%s2621_s19 + $0x134] ss:$8 sps:$4 sm:$0xff]  }
  0x13   : > { %840 = vmatprep.subr.bf16.mxu1 %v2339_v3  ;;  %478 = vmatpush1.bf16.msra.mxu0 %v2341_v4  ;;  %v2347_v8 = vld [vmem:[%s2621_s19 + $0x10] ss:$8 sps:$4 sm:$0xff]   ;;  %v2349_v10 = vld [vmem:[%s2621_s19 + $0x24] ss:$8 sps:$4 sm:$0xff]   ;;  %v2353_v12 = vld [vmem:[%s2621_s19 + $0x20] ss:$8 sps:$4 sm:$0xff]  }
  0x14   : > { %841 = vmatpush1.bf16.msra.mxu1 %v2342_v5  ;;  %479 = vmatprep.subr.bf16.mxu0 %v2343_v6  ;;  %v2348_v9 = vld [vmem:[%s2621_s19 + $0x130] ss:$8 sps:$4 sm:$0xff]   ;;  %v2351_v11 = vld [vmem:[%s2621_s19 + $0x144] ss:$8 sps:$4 sm:$0xff]   ;;  %v2354_v13 = vld [vmem:[%s2621_s19 + $0x140] ss:$8 sps:$4 sm:$0xff]  }
  0x15   : > { %842 = vmatprep.subr.bf16.mxu1 %v2345_v7  ;;  %v2355_v14 = vld [vmem:[%s2621_s19 + $0x34] ss:$8 sps:$4 sm:$0xff]   ;;  %v2359_v16 = vld [vmem:[%s2621_s19 + $0x30] ss:$8 sps:$4 sm:$0xff]   ;;  %v2361_v18 = vld [vmem:[%s2621_s19 + $0x44] ss:$8 sps:$4 sm:$0xff]  }
  0x16   : > { %v2357_v15 = vld [vmem:[%s2621_s19 + $0x154] ss:$8 sps:$4 sm:$0xff]   ;;  %v2360_v17 = vld [vmem:[%s2621_s19 + $0x150] ss:$8 sps:$4 sm:$0xff]   ;;  %v2363_v19 = vld [vmem:[%s2621_s19 + $0x164] ss:$8 sps:$4 sm:$0xff]  }
  0x17   : > { %480 = vmatpush1.bf16.msra.mxu0 %v2347_v8  ;;  %v2365_v20 = vld [vmem:[%s2621_s19 + $0x40] ss:$8 sps:$4 sm:$0xff]   ;;  %v2367_v22 = vld [vmem:[%s2621_s19 + $0x54] ss:$8 sps:$4 sm:$0xff]   ;;  %v2371_v24 = vld [vmem:[%s2621_s19 + $0x50] ss:$8 sps:$4 sm:$0xff]  }
  0x18   : > { %843 = vmatpush1.bf16.msra.mxu1 %v2348_v9  ;;  %481 = vmatprep.subr.bf16.mxu0 %v2349_v10  ;;  %v2366_v21 = vld [vmem:[%s2621_s19 + $0x160] ss:$8 sps:$4 sm:$0xff]   ;;  %v2369_v23 = vld [vmem:[%s2621_s19 + $0x174] ss:$8 sps:$4 sm:$0xff]   ;;  %v2372_v25 = vld [vmem:[%s2621_s19 + $0x170] ss:$8 sps:$4 sm:$0xff]  }
  0x19   : > { %844 = vmatprep.subr.bf16.mxu1 %v2351_v11  ;;  %v2373_v26 = vld [vmem:[%s2621_s19 + $0x64] ss:$8 sps:$4 sm:$0xff]   ;;  %v2377_v28 = vld [vmem:[%s2621_s19 + $0x60] ss:$8 sps:$4 sm:$0xff]   ;;  %v2379_v30 = vld [vmem:[%s2621_s19 + $0x74] ss:$8 sps:$4 sm:$0xff]  }
  0x1a   : > { %v2375_v27 = vld [vmem:[%s2621_s19 + $0x184] ss:$8 sps:$4 sm:$0xff]   ;;  %v2378_v29 = vld [vmem:[%s2621_s19 + $0x180] ss:$8 sps:$4 sm:$0xff]   ;;  %v2381_v31 = vld [vmem:[%s2621_s19 + $0x194] ss:$8 sps:$4 sm:$0xff]  }
  0x1b   : > { %482 = vmatpush1.bf16.msra.mxu0 %v2353_v12  ;;  %v2383_v32 = vld [vmem:[%s2621_s19 + $0x70] ss:$8 sps:$4 sm:$0xff]   ;;  %v2385_v34 = vld [vmem:[%s2621_s19 + $0x84] ss:$8 sps:$4 sm:$0xff]   ;;  %v2389_v36 = vld [vmem:[%s2621_s19 + $0x80] ss:$8 sps:$4 sm:$0xff]  }
  0x1c   : > { %845 = vmatpush1.bf16.msra.mxu1 %v2354_v13  ;;  %483 = vmatprep.subr.bf16.mxu0 %v2355_v14  ;;  %v2384_v33 = vld [vmem:[%s2621_s19 + $0x190] ss:$8 sps:$4 sm:$0xff]   ;;  %v2387_v35 = vld [vmem:[%s2621_s19 + $0x1a4] ss:$8 sps:$4 sm:$0xff]   ;;  %v2390_v37 = vld [vmem:[%s2621_s19 + $0x1a0] ss:$8 sps:$4 sm:$0xff]  }
  0x1d   : > { %846 = vmatprep.subr.bf16.mxu1 %v2357_v15  ;;  %v2391_v38 = vld [vmem:[%s2621_s19 + $0x94] ss:$8 sps:$4 sm:$0xff]   ;;  %v2395_v40 = vld [vmem:[%s2621_s19 + $0x90] ss:$8 sps:$4 sm:$0xff]   ;;  %v2397_v42 = vld [vmem:[%s2621_s19 + $0xa4] ss:$8 sps:$4 sm:$0xff]  }
  0x1e   : > { %v2393_v39 = vld [vmem:[%s2621_s19 + $0x1b4] ss:$8 sps:$4 sm:$0xff]   ;;  %v2396_v41 = vld [vmem:[%s2621_s19 + $0x1b0] ss:$8 sps:$4 sm:$0xff]   ;;  %v2399_v43 = vld [vmem:[%s2621_s19 + $0x1c4] ss:$8 sps:$4 sm:$0xff]  }
  0x1f   : > { %484 = vmatpush1.bf16.msra.mxu0 %v2359_v16  ;;  %v2401_v44 = vld [vmem:[%s2621_s19 + $0xa0] ss:$8 sps:$4 sm:$0xff]   ;;  %v2403_v46 = vld [vmem:[%s2621_s19 + $0xb4] ss:$8 sps:$4 sm:$0xff]   ;;  %v2407_v48 = vld [vmem:[%s2621_s19 + $0xb0] ss:$8 sps:$4 sm:$0xff]  }
  0x20   : > { %847 = vmatpush1.bf16.msra.mxu1 %v2360_v17  ;;  %485 = vmatprep.subr.bf16.mxu0 %v2361_v18  ;;  %v2402_v45 = vld [vmem:[%s2621_s19 + $0x1c0] ss:$8 sps:$4 sm:$0xff]   ;;  %v2405_v47 = vld [vmem:[%s2621_s19 + $0x1d4] ss:$8 sps:$4 sm:$0xff]   ;;  %v2408_v49 = vld [vmem:[%s2621_s19 + $0x1d0] ss:$8 sps:$4 sm:$0xff]  }
  0x21   : > { %848 = vmatprep.subr.bf16.mxu1 %v2363_v19  ;;  %v2409_v50 = vld [vmem:[%s2621_s19 + $0xc4] ss:$8 sps:$4 sm:$0xff]   ;;  %v2413_v52 = vld [vmem:[%s2621_s19 + $0xc0] ss:$8 sps:$4 sm:$0xff]   ;;  %v2415_v54 = vld [vmem:[%s2621_s19 + $0xd4] ss:$8 sps:$4 sm:$0xff]  }
  0x22   : > { %v2411_v51 = vld [vmem:[%s2621_s19 + $0x1e4] ss:$8 sps:$4 sm:$0xff]   ;;  %v2414_v53 = vld [vmem:[%s2621_s19 + $0x1e0] ss:$8 sps:$4 sm:$0xff]   ;;  %v2417_v55 = vld [vmem:[%s2621_s19 + $0x1f4] ss:$8 sps:$4 sm:$0xff]  }
  0x23   : > { %486 = vmatpush1.bf16.msra.mxu0 %v2365_v20  ;;  %v2419_v56 = vld [vmem:[%s2621_s19 + $0xd0] ss:$8 sps:$4 sm:$0xff]   ;;  %v2421_v58 = vld [vmem:[%s2621_s19 + $0xe4] ss:$8 sps:$4 sm:$0xff]   ;;  %v2425_v60 = vld [vmem:[%s2621_s19 + $0xe0] ss:$8 sps:$4 sm:$0xff]  }
  0x24   : > { %849 = vmatpush1.bf16.msra.mxu1 %v2366_v21  ;;  %487 = vmatprep.subr.bf16.mxu0 %v2367_v22  ;;  %v2420_v57 = vld [vmem:[%s2621_s19 + $0x1f0] ss:$8 sps:$4 sm:$0xff]   ;;  %v2423_v59 = vld [vmem:[%s2621_s19 + $0x204] ss:$8 sps:$4 sm:$0xff]   ;;  %v2426_v61 = vld [vmem:[%s2621_s19 + $0x200] ss:$8 sps:$4 sm:$0xff]  }
  0x25   : > { %850 = vmatprep.subr.bf16.mxu1 %v2369_v23  ;;  %v2427_v62 = vld [vmem:[%s2621_s19 + $0xf4] ss:$8 sps:$4 sm:$0xff]   ;;  %v2431_v2 = vld [vmem:[%s2621_s19 + $0xf0] ss:$8 sps:$4 sm:$0xff]   ;;  %v2438_v4 = vld [vmem:[%s2621_s19 + $0x104] ss:$8 sps:$4 sm:$0xff]  }
  0x26   : > { %v2429_v63 = vld [vmem:[%s2621_s19 + $0x214] ss:$8 sps:$4 sm:$0xff]   ;;  %v2432_v3 = vld [vmem:[%s2621_s19 + $0x210] ss:$8 sps:$4 sm:$0xff]   ;;  %v2441_v5 = vld [vmem:[%s2621_s19 + $0x224] ss:$8 sps:$4 sm:$0xff]  }
  0x27   : > { %488 = vmatpush1.bf16.msra.mxu0 %v2371_v24  ;;  %v2692_v6 = vld [vmem:[%s3070_s1] ss:$12 sps:$4 sm:$0xff]   ;;  %v2699_v9 = vld [vmem:[%s3070_s1 + $0x1c] ss:$12 sps:$4 sm:$0xff]   ;;  %v2448_v12 = vld [vmem:[%s2621_s19 + $0x110] ss:$8 sps:$4 sm:$0xff]  }
  0x28   : > { %851 = vmatpush1.bf16.msra.mxu1 %v2372_v25  ;;  %489 = vmatprep.subr.bf16.mxu0 %v2373_v26  ;;  %v2436_v7 = vld [vmem:[%s2621_s19 + $0x100] ss:$8 sps:$4 sm:$0xff]   ;;  %v2450_v10 = vld [vmem:[%s2621_s19 + $0x114] ss:$8 sps:$4 sm:$0xff]   ;;  %v2451_v13 = vld [vmem:[%s2621_s19 + $0x230] ss:$8 sps:$4 sm:$0xff]  }
  0x29   : > { %852 = vmatprep.subr.bf16.mxu1 %v2375_v27  ;;  %v2439_v8 = vld [vmem:[%s2621_s19 + $0x220] ss:$8 sps:$4 sm:$0xff]   ;;  %v2453_v11 = vld [vmem:[%s2621_s19 + $0x234] ss:$8 sps:$4 sm:$0xff]   ;;  %v2459_v14 = vld [vmem:[%s2621_s19 + $0x244] ss:$8 sps:$4 sm:$0xff]  }
  0x2a   : > { %v2462_v15 = vld [vmem:[%s2621_s19 + $0x364] ss:$8 sps:$4 sm:$0xff]   ;;  %v2719_v17 = vld [vmem:[%s3070_s1 + $0x34] ss:$12 sps:$4 sm:$0xff]   ;;  %v2728_v18 = vld [vmem:[%s3070_s1 + $0x30] ss:$12 sps:$4 sm:$0xff]  }
  0x2b   : > { %490 = vmatpush1.bf16.msra.mxu0 %v2377_v28  ;;  %v2714_v16 = vld [vmem:[%s3070_s1 + $0x18] ss:$12 sps:$4 sm:$0xff]   ;;  %v2742_v20 = vld [vmem:[%s3070_s1 + $0x48] ss:$12 sps:$4 sm:$0xff]  }
  0x2c   : > { %853 = vmatpush1.bf16.msra.mxu1 %v2378_v29  ;;  %491 = vmatprep.subr.bf16.mxu0 %v2379_v30  ;;  %v2733_v19 = vld [vmem:[%s3070_s1 + $0x4c] ss:$12 sps:$4 sm:$0xff]   ;;  %v2457_v21 = vld [vmem:[%s2621_s19 + $0x240] ss:$8 sps:$4 sm:$0xff]   ;;  %v2466_v24 = vld [vmem:[%s2621_s19 + $0x254] ss:$8 sps:$4 sm:$0xff]  }
  0x2d   : > { %854 = vmatprep.subr.bf16.mxu1 %v2381_v31  ;;  %v2752_v22 = vld [vmem:[%s3070_s1 + $0x8] ss:$12 sps:$4 sm:$0xff]   ;;  %v2464_v26 = vld [vmem:[%s2621_s19 + $0x250] ss:$8 sps:$4 sm:$0xff]   ;;  %v1760_v28 = vld [vmem:[%s3071_s2] sm:$0xff] }
  0x2e   : > { %v2460_v23 = vld [vmem:[%s2621_s19 + $0x360] ss:$8 sps:$4 sm:$0xff]   ;;  %v2469_v25 = vld [vmem:[%s2621_s19 + $0x374] ss:$8 sps:$4 sm:$0xff]   ;;  %v2467_v27 = vld [vmem:[%s2621_s19 + $0x370] ss:$8 sps:$4 sm:$0xff]   ;;  %1770 = vperm.xlu0 %2335, %v1760_v28  }
  0x2f   : > { %492 = vmatpush1.bf16.msra.mxu0 %v2383_v32  ;;  %v1762_v29 = vld [vmem:[%s3071_s2 + $0x10] sm:$0xff]  ;;  %v2472_v30 = vld [vmem:[%s2621_s19 + $0x264] ss:$8 sps:$4 sm:$0xff]  }
  0x30   : > { %855 = vmatpush1.bf16.msra.mxu1 %v2384_v33  ;;  %493 = vmatprep.subr.bf16.mxu0 %v2385_v34  ;;  %v2475_v31 = vld [vmem:[%s2621_s19 + $0x384] ss:$8 sps:$4 sm:$0xff]   ;;  %v2470_v33 = vld [vmem:[%s2621_s19 + $0x260] ss:$8 sps:$4 sm:$0xff]   ;;  %v2541_v28 = vld [vmem:[%s2621_s19 + $0x314] ss:$8 sps:$4 sm:$0xff]  }
  0x31   : > { %856 = vmatprep.subr.bf16.mxu1 %v2387_v35  ;;  %v2776_v32 = vld [vmem:[%s3070_s1 + $0x20] ss:$12 sps:$4 sm:$0xff]   ;;  %1780 = vperm.xlu1 %2336, %v1762_v29   ;;  %v2479_v35 = vld [vmem:[%s2621_s19 + $0x274] ss:$8 sps:$4 sm:$0xff]  }
  0x32   : > { %v2473_v34 = vld [vmem:[%s2621_s19 + $0x380] ss:$8 sps:$4 sm:$0xff]   ;;  %v2544_v29 = vld [vmem:[%s2621_s19 + $0x434] ss:$8 sps:$4 sm:$0xff]  }
  0x33   : > { %494 = vmatpush1.bf16.msra.mxu0 %v2389_v36  ;;  %v2482_v36 = vld [vmem:[%s2621_s19 + $0x394] ss:$8 sps:$4 sm:$0xff]  }
  0x34   : > { %857 = vmatpush1.bf16.msra.mxu1 %v2390_v37  ;;  %495 = vmatprep.subr.bf16.mxu0 %v2391_v38  ;;  %v2477_v37 = vld [vmem:[%s2621_s19 + $0x270] ss:$8 sps:$4 sm:$0xff]  }
  0x35   : > { %858 = vmatprep.subr.bf16.mxu1 %v2393_v39  ;;  %v2480_v38 = vld [vmem:[%s2621_s19 + $0x390] ss:$8 sps:$4 sm:$0xff]   ;;  %v1761_v39 = vld [vmem:[%s3071_s2 + $0x8] sm:$0xff] }
  0x36   : > { %1775 = vperm.xlu0 %2335, %v1761_v39   ;;  %v2551_v39 = vld [vmem:[%s2621_s19 + $0x330] ss:$8 sps:$4 sm:$0xff]  }
  0x37   : > { %496 = vmatpush1.bf16.msra.mxu0 %v2395_v40  ;;  %v1763_v40 = vld [vmem:[%s3071_s2 + $0x18] sm:$0xff] }
  0x38   : > { %859 = vmatpush1.bf16.msra.mxu1 %v2396_v41  ;;  %497 = vmatprep.subr.bf16.mxu0 %v2397_v42  ;;  %v2485_v41 = vld [vmem:[%s2621_s19 + $0x284] ss:$8 sps:$4 sm:$0xff]  }
  0x39   : > { %860 = vmatprep.subr.bf16.mxu1 %v2399_v43  ;;  %v2488_v42 = vld [vmem:[%s2621_s19 + $0x3a4] ss:$8 sps:$4 sm:$0xff]   ;;  %1785 = vperm.xlu1 %2336, %v1763_v40   ;;  %v2554_v40 = vld [vmem:[%s2621_s19 + $0x450] ss:$8 sps:$4 sm:$0xff]  }
  0x3a   : > { %v2801_v43 = vld [vmem:[%s3070_s1 + $0x38] ss:$12 sps:$4 sm:$0xff]  }
  0x3b   : > { %498 = vmatpush1.bf16.msra.mxu0 %v2401_v44  ;;  %v2483_v44 = vld [vmem:[%s2621_s19 + $0x280] ss:$8 sps:$4 sm:$0xff]  }
  0x3c   : > { %861 = vmatpush1.bf16.msra.mxu1 %v2402_v45  ;;  %499 = vmatprep.subr.bf16.mxu0 %v2403_v46  ;;  %v2486_v45 = vld [vmem:[%s2621_s19 + $0x3a0] ss:$8 sps:$4 sm:$0xff]   ;;  %v2492_v46 = vld [vmem:[%s2621_s19 + $0x294] ss:$8 sps:$4 sm:$0xff]  }
  0x3d   : > { %862 = vmatprep.subr.bf16.mxu1 %v2405_v47  ;;  %v2495_v47 = vld [vmem:[%s2621_s19 + $0x3b4] ss:$8 sps:$4 sm:$0xff]  }
  0x3f   : > { %500 = vmatpush1.bf16.msra.mxu0 %v2407_v48  ;;  %v2490_v48 = vld [vmem:[%s2621_s19 + $0x290] ss:$8 sps:$4 sm:$0xff]  }
  0x40   : > { %863 = vmatpush1.bf16.msra.mxu1 %v2408_v49  ;;  %501 = vmatprep.subr.bf16.mxu0 %v2409_v50  ;;  %v2493_v49 = vld [vmem:[%s2621_s19 + $0x3b0] ss:$8 sps:$4 sm:$0xff]   ;;  %v1765_v50 = vld [vmem:[%s3071_s2 + $0x28] sm:$0xff] }
  0x41   : > { %864 = vmatprep.subr.bf16.mxu1 %v2411_v51  ;;  %v1764_v51 = vld [vmem:[%s3071_s2 + $0x20] sm:$0xff]  ;;  %1795 = vperm.xlu1 %2336, %v1765_v50  }
  0x42   : > { %1790 = vperm.xlu0 %2335, %v1764_v51  }
  0x43   : > { %502 = vmatpush1.bf16.msra.mxu0 %v2413_v52  ;;  %v2498_v52 = vld [vmem:[%s2621_s19 + $0x2a4] ss:$8 sps:$4 sm:$0xff]  }
  0x44   : > { %865 = vmatpush1.bf16.msra.mxu1 %v2414_v53  ;;  %503 = vmatprep.subr.bf16.mxu0 %v2415_v54  ;;  %v2501_v53 = vld [vmem:[%s2621_s19 + $0x3c4] ss:$8 sps:$4 sm:$0xff]   ;;  %v2826_v54 = vld [vmem:[%s3070_s1 + $0x50] ss:$12 sps:$4 sm:$0xff]  }
  0x45   : > { %866 = vmatprep.subr.bf16.mxu1 %v2417_v55  ;;  %v2496_v55 = vld [vmem:[%s2621_s19 + $0x2a0] ss:$8 sps:$4 sm:$0xff]  }
  0x47   : > { %504 = vmatpush1.bf16.msra.mxu0 %v2419_v56  ;;  %v2499_v56 = vld [vmem:[%s2621_s19 + $0x3c0] ss:$8 sps:$4 sm:$0xff]  }
  0x48   : > { %867 = vmatpush1.bf16.msra.mxu1 %v2420_v57  ;;  %505 = vmatprep.subr.bf16.mxu0 %v2421_v58  ;;  %v2505_v57 = vld [vmem:[%s2621_s19 + $0x2b4] ss:$8 sps:$4 sm:$0xff]  }
  0x49   : > { %868 = vmatprep.subr.bf16.mxu1 %v2423_v59  ;;  %v2508_v58 = vld [vmem:[%s2621_s19 + $0x3d4] ss:$8 sps:$4 sm:$0xff]   ;;  %v2503_v59 = vld [vmem:[%s2621_s19 + $0x2b0] ss:$8 sps:$4 sm:$0xff]  }
  0x4b   : > { %506 = vmatpush1.bf16.msra.mxu0 %v2425_v60  ;;  %v2506_v60 = vld [vmem:[%s2621_s19 + $0x3d0] ss:$8 sps:$4 sm:$0xff]  }
  0x4c   : > { %869 = vmatpush1.bf16.msra.mxu1 %v2426_v61  ;;  %507 = vmatprep.subr.bf16.mxu0 %v2427_v62  ;;  %v1767_v61 = vld [vmem:[%s3071_s2 + $0x38] sm:$0xff]  ;;  %v1766_v62 = vld [vmem:[%s3071_s2 + $0x30] sm:$0xff] }
  0x4d   : > { %870 = vmatprep.subr.bf16.mxu1 %v2429_v63  ;;  %v2511_v63 = vld [vmem:[%s2621_s19 + $0x2c4] ss:$8 sps:$4 sm:$0xff]   ;;  %1805 = vperm.xlu1 %2336, %v1767_v61  }
  0x4e   : > { %1800 = vperm.xlu0 %2335, %v1766_v62  }
  0x4f   : > { %508 = vmatpush1.bf16.msra.mxu0 %v2431_v2  ;;  %v2514_v2 = vld [vmem:[%s2621_s19 + $0x3e4] ss:$8 sps:$4 sm:$0xff]  }
  0x50   : > { %871 = vmatpush1.bf16.msra.mxu1 %v2432_v3  ;;  %550 = vmatprep.subr.bf16.mxu0 %v2438_v4  ;;  %v2509_v3 = vld [vmem:[%s2621_s19 + $0x2c0] ss:$8 sps:$4 sm:$0xff]  }
  0x51   : > { %913 = vmatprep.subr.bf16.mxu1 %v2441_v5  ;;  %v2512_v4 = vld [vmem:[%s2621_s19 + $0x3e0] ss:$8 sps:$4 sm:$0xff]   ;;  %v2517_v5 = vld [vmem:[%s2621_s19 + $0x2d4] ss:$8 sps:$4 sm:$0xff]  }
  0x52   : > { %510 = vmatmul.mubr.bf16.vlgmr.msra.gmra.mrb[0].mxu0 %v2692_v6 }
  0x53   : > { %873 = vmatmul.mubr.bf16.vlgmr.msra.gmra.mrb[0].mxu1 %v2692_v6  ;;  %551 = vmatpush1.bf16.msra.mxu0 %v2436_v7  ;;  %v2520_v7 = vld [vmem:[%s2621_s19 + $0x3f4] ss:$8 sps:$4 sm:$0xff]  }
  0x54   : > { %914 = vmatpush1.bf16.msra.mxu1 %v2439_v8  ;;  %519 = vmatprep.mubr.bf16.mxu0 %v2699_v9  ;;  %v2515_v8 = vld [vmem:[%s2621_s19 + $0x2d0] ss:$8 sps:$4 sm:$0xff]  }
  0x55   : > { %882 = vmatprep.mubr.bf16.mxu1 %v2699_v9  ;;  %552 = vmatprep.subr.bf16.mxu0 %v2450_v10  ;;  %v2523_v10 = vld [vmem:[%s2621_s19 + $0x2e4] ss:$8 sps:$4 sm:$0xff]  }
  0x56   : > { %915 = vmatprep.subr.bf16.mxu1 %v2453_v11  ;;  %v2526_v11 = vld [vmem:[%s2621_s19 + $0x404] ss:$8 sps:$4 sm:$0xff]  }
  0x57   : > { %553 = vmatpush1.bf16.msra.mxu0 %v2448_v12  ;;  %v2521_v12 = vld [vmem:[%s2621_s19 + $0x2e0] ss:$8 sps:$4 sm:$0xff]  }
  0x58   : > { %916 = vmatpush1.bf16.msra.mxu1 %v2451_v13  ;;  %1219 = vmatprep.subr.bf16.mxu0 %v2459_v14  ;;  %v2524_v13 = vld [vmem:[%s2621_s19 + $0x400] ss:$8 sps:$4 sm:$0xff]   ;;  %v2529_v14 = vld [vmem:[%s2621_s19 + $0x2f4] ss:$8 sps:$4 sm:$0xff]  }
  0x59   : > { %1598 = vmatprep.subr.bf16.mxu1 %v2462_v15  ;;  %v2532_v15 = vld [vmem:[%s2621_s19 + $0x414] ss:$8 sps:$4 sm:$0xff]  }
  0x5a   : > { %520 = vmatmul.mubr.bf16.gmra.mrb[4].mxu0 %v2714_v16 }
  0x5b   : > { %883 = vmatmul.mubr.bf16.gmra.mrb[4].mxu1 %v2714_v16  ;;  %529 = vmatprep.mubr.bf16.mxu0 %v2719_v17 }
  0x5c   : > { %892 = vmatprep.mubr.bf16.mxu1 %v2719_v17 }
  0x62   : > { %530 = vmatmul.mubr.bf16.gmra.mrb[8].mxu0 %v2728_v18 }
  0x63   : > { %893 = vmatmul.mubr.bf16.gmra.mrb[8].mxu1 %v2728_v18  ;;  %539 = vmatprep.mubr.bf16.mxu0 %v2733_v19 }
  0x64   : > { %902 = vmatprep.mubr.bf16.mxu1 %v2733_v19 }
  0x6a   : > { %540 = vmatmul.mubr.bf16.gmra.mrb[12].mxu0 %v2742_v20 }
  0x6b   : > { %903 = vmatmul.mubr.bf16.gmra.mrb[12].mxu1 %v2742_v20  ;;  %582 = vmatprep.mubr.bf16.mxu0 %v2577_v1 }
  0x6c   : > { %945 = vmatprep.mubr.bf16.mxu1 %v2577_v1 }
  0x72   : > { %2010 = vmatmul.mubr.msk.bf16.vlgmr.msra.gmra.mrb[0].mxu0 %vm464_vm0, %v2752_v22 }
  0x73   : > { %2086 = vmatmul.mubr.msk.bf16.vlgmr.msra.gmra.mrb[0].mxu1 %vm464_vm0, %v2752_v22  ;;  %1220 = vmatpush1.bf16.msra.mxu0 %v2457_v21  ;;  %v2527_v21 = vld [vmem:[%s2621_s19 + $0x2f0] ss:$8 sps:$4 sm:$0xff]  }
  0x74   : > { %1599 = vmatpush1.bf16.msra.mxu1 %v2460_v23  ;;  %1221 = vmatprep.subr.bf16.mxu0 %v2466_v24  ;;  %v2530_v23 = vld [vmem:[%s2621_s19 + $0x410] ss:$8 sps:$4 sm:$0xff]   ;;  %v2535_v24 = vld [vmem:[%s2621_s19 + $0x304] ss:$8 sps:$4 sm:$0xff]  }
  0x75   : > { %1600 = vmatprep.subr.bf16.mxu1 %v2469_v25  ;;  %592 = vmatprep.mubr.bf16.mxu0 %v2577_v1  ;;  %v2538_v25 = vld [vmem:[%s2621_s19 + $0x424] ss:$8 sps:$4 sm:$0xff]  }
  0x76   : > { %955 = vmatprep.mubr.bf16.mxu1 %v2577_v1 }
  0x77   : > { %1222 = vmatpush1.bf16.msra.mxu0 %v2464_v26  ;;  %v2533_v26 = vld [vmem:[%s2621_s19 + $0x300] ss:$8 sps:$4 sm:$0xff]  }
  0x78   : > { %1601 = vmatpush1.bf16.msra.mxu1 %v2467_v27  ;;  %1223 = vmatprep.subr.bf16.mxu0 %v2472_v30  ;;  %v2536_v27 = vld [vmem:[%s2621_s19 + $0x420] ss:$8 sps:$4 sm:$0xff]   ;;  %v2539_v30 = vld [vmem:[%s2621_s19 + $0x310] ss:$8 sps:$4 sm:$0xff]  }
  0x79   : > { %1602 = vmatprep.subr.bf16.mxu1 %v2475_v31  ;;  %v2542_v31 = vld [vmem:[%s2621_s19 + $0x430] ss:$8 sps:$4 sm:$0xff]  }
  0x7a   : > { %2011 = vmatmul.mubr.msk.bf16.gmra.mrb[4].mxu0 %vm464_vm0, %v2776_v32 }
  0x7b   : > { %2087 = vmatmul.mubr.msk.bf16.gmra.mrb[4].mxu1 %vm464_vm0, %v2776_v32  ;;  %1224 = vmatpush1.bf16.msra.mxu0 %v2470_v33  ;;  %v2547_v33 = vld [vmem:[%s2621_s19 + $0x324] ss:$8 sps:$4 sm:$0xff]  }
  0x7c   : > { %1603 = vmatpush1.bf16.msra.mxu1 %v2473_v34  ;;  %1225 = vmatprep.subr.bf16.mxu0 %v2479_v35  ;;  %v2550_v34 = vld [vmem:[%s2621_s19 + $0x444] ss:$8 sps:$4 sm:$0xff]   ;;  %v2545_v35 = vld [vmem:[%s2621_s19 + $0x320] ss:$8 sps:$4 sm:$0xff]  }
  0x7d   : > { %1604 = vmatprep.subr.bf16.mxu1 %v2482_v36  ;;  %602 = vmatprep.mubr.bf16.mxu0 %v2577_v1  ;;  %v2548_v36 = vld [vmem:[%s2621_s19 + $0x440] ss:$8 sps:$4 sm:$0xff]  }
  0x7e   : > { %965 = vmatprep.mubr.bf16.mxu1 %v2577_v1 }
  0x7f   : > { %1226 = vmatpush1.bf16.msra.mxu0 %v2477_v37  ;;  %v2553_v37 = vld [vmem:[%s2621_s19 + $0x334] ss:$8 sps:$4 sm:$0xff]  }
  0x80   : > { %1605 = vmatpush1.bf16.msra.mxu1 %v2480_v38  ;;  %1227 = vmatprep.subr.bf16.mxu0 %v2485_v41  ;;  %v2556_v38 = vld [vmem:[%s2621_s19 + $0x454] ss:$8 sps:$4 sm:$0xff]   ;;  %v2559_v41 = vld [vmem:[%s2621_s19 + $0x344] ss:$8 sps:$4 sm:$0xff]  }
  0x81   : > { %1606 = vmatprep.subr.bf16.mxu1 %v2488_v42  ;;  %v2562_v42 = vld [vmem:[%s2621_s19 + $0x464] ss:$8 sps:$4 sm:$0xff]  }
  0x82   : > { %2012 = vmatmul.mubr.msk.bf16.gmra.mrb[8].mxu0 %vm464_vm0, %v2801_v43 }
  0x83   : > { %2088 = vmatmul.mubr.msk.bf16.gmra.mrb[8].mxu1 %vm464_vm0, %v2801_v43  ;;  %1228 = vmatpush1.bf16.msra.mxu0 %v2483_v44  ;;  %v2557_v44 = vld [vmem:[%s2621_s19 + $0x340] ss:$8 sps:$4 sm:$0xff]  }
  0x84   : > { %1607 = vmatpush1.bf16.msra.mxu1 %v2486_v45  ;;  %1229 = vmatprep.subr.bf16.mxu0 %v2492_v46  ;;  %v2560_v45 = vld [vmem:[%s2621_s19 + $0x460] ss:$8 sps:$4 sm:$0xff]   ;;  %v2565_v46 = vld [vmem:[%s2621_s19 + $0x354] ss:$8 sps:$4 sm:$0xff]  }
  0x85   : > { %1608 = vmatprep.subr.bf16.mxu1 %v2495_v47  ;;  %612 = vmatprep.mubr.bf16.mxu0 %v2577_v1  ;;  %v2568_v47 = vld [vmem:[%s2621_s19 + $0x474] ss:$8 sps:$4 sm:$0xff]  }
  0x86   : > { %975 = vmatprep.mubr.bf16.mxu1 %v2577_v1 }
  0x87   : > { %1230 = vmatpush1.bf16.msra.mxu0 %v2490_v48  ;;  %v2563_v48 = vld [vmem:[%s2621_s19 + $0x350] ss:$8 sps:$4 sm:$0xff]  }
  0x88   : > { %1609 = vmatpush1.bf16.msra.mxu1 %v2493_v49  ;;  %1231 = vmatprep.subr.bf16.mxu0 %v2498_v52  ;;  %v2566_v49 = vld [vmem:[%s2621_s19 + $0x470] ss:$8 sps:$4 sm:$0xff]  }
  0x89   : > { %1610 = vmatprep.subr.bf16.mxu1 %v2501_v53 }
  0x8a   : > { %2013 = vmatmul.mubr.msk.bf16.gmra.mrb[12].mxu0 %vm464_vm0, %v2826_v54 }
  0x8b   : > { %2089 = vmatmul.mubr.msk.bf16.gmra.mrb[12].mxu1 %vm464_vm0, %v2826_v54  ;;  %1232 = vmatpush1.bf16.msra.mxu0 %v2496_v55 }
  0x8c   : > { %1611 = vmatpush1.bf16.msra.mxu1 %v2499_v56  ;;  %1233 = vmatprep.subr.bf16.mxu0 %v2505_v57 }
  0x8d   : > { %1612 = vmatprep.subr.bf16.mxu1 %v2508_v58  ;;  %1251 = vmatprep.mubr.bf16.mxu0 %v2609_v0 }
  0x8e   : > { %1630 = vmatprep.mubr.bf16.mxu1 %v2609_v0  ;;  %v2518_v0 = vld [vmem:[%s2621_s19 + $0x3f0] ss:$8 sps:$4 sm:$0xff]   ;;  %s2252_s19 = sshll.u32 %s3076_s13, 6 }
  0x8f   : > { %1234 = vmatpush1.bf16.msra.mxu0 %v2503_v59  ;;  %s3004_s9 = scalar_lea.vmem %s3072_s3, %s2252_s19 }
  0x90   : > { %1613 = vmatpush1.bf16.msra.mxu1 %v2506_v60  ;;  %1235 = vmatprep.subr.bf16.mxu0 %v2511_v63 }
  0x91   : > { %1614 = vmatprep.subr.bf16.mxu1 %v2514_v2 }
  0x93   : > { %1236 = vmatpush1.bf16.msra.mxu0 %v2509_v3 }
  0x94   : > { %1615 = vmatpush1.bf16.msra.mxu1 %v2512_v4  ;;  %1237 = vmatprep.subr.bf16.mxu0 %v2517_v5 }
  0x95   : > { %1616 = vmatprep.subr.bf16.mxu1 %v2520_v7 }
  0x97   : > { %1238 = vmatpush1.bf16.msra.mxu0 %v2515_v8 }
  0x98   : > { %1617 = vmatpush1.bf16.msra.mxu1 %v2518_v0  ;;  %1239 = vmatprep.subr.bf16.mxu0 %v2523_v10 }
  0x99   : > { %1618 = vmatprep.subr.bf16.mxu1 %v2526_v11 }
  0x9b   : > { %1240 = vmatpush1.bf16.msra.mxu0 %v2521_v12 }
  0x9c   : > { %1619 = vmatpush1.bf16.msra.mxu1 %v2524_v13  ;;  %1241 = vmatprep.subr.bf16.mxu0 %v2529_v14 }
  0x9d   : > { %1620 = vmatprep.subr.bf16.mxu1 %v2532_v15 }
  0x9f   : > { %1242 = vmatpush1.bf16.msra.mxu0 %v2527_v21 }
  0xa0   : > { %1621 = vmatpush1.bf16.msra.mxu1 %v2530_v23  ;;  %1243 = vmatprep.subr.bf16.mxu0 %v2535_v24 }
  0xa1   : > { %1622 = vmatprep.subr.bf16.mxu1 %v2538_v25 }
  0xa3   : > { %1244 = vmatpush1.bf16.msra.mxu0 %v2533_v26 }
  0xa4   : > { %1623 = vmatpush1.bf16.msra.mxu1 %v2536_v27  ;;  %1245 = vmatprep.subr.bf16.mxu0 %v2541_v28 }
  0xa5   : > { %1624 = vmatprep.subr.bf16.mxu1 %v2544_v29 }
  0xa7   : > { %1246 = vmatpush1.bf16.msra.mxu0 %v2539_v30 }
  0xa8   : > { %1625 = vmatpush1.bf16.msra.mxu1 %v2542_v31  ;;  %1247 = vmatprep.subr.bf16.mxu0 %v2547_v33 }
  0xa9   : > { %1626 = vmatprep.subr.bf16.mxu1 %v2550_v34 }
  0xab   : > { %1248 = vmatpush1.bf16.msra.mxu0 %v2545_v35 }
  0xac   : > { %1627 = vmatpush1.bf16.msra.mxu1 %v2548_v36  ;;  %1249 = vmatprep.subr.bf16.mxu0 %v2553_v37 }
  0xad   : > { %1628 = vmatprep.subr.bf16.mxu1 %v2556_v38  ;;  %v1771_v33 = vpop.permute.xlu0 %1770 }
  0xaf   : > { %1250 = vmatpush1.bf16.msra.mxu0 %v2551_v39 }
  0xb0   : > { %1629 = vmatpush1.bf16.msra.mxu1 %v2554_v40  ;;  %1292 = vmatprep.subr.bf16.mxu0 %v2559_v41 }
  0xb1   : > { %1671 = vmatprep.subr.bf16.mxu1 %v2562_v42 }
  0xb2   : > { %1252 = vmatmul.mubr.bf16.vlgmr.msra.gmra.mrb[16].mxu0 %v2692_v6 }
  0xb3   : > { %1631 = vmatmul.mubr.bf16.vlgmr.msra.gmra.mrb[16].mxu1 %v2692_v6  ;;  %1293 = vmatpush1.bf16.msra.mxu0 %v2557_v44 }
  0xb4   : > { %1672 = vmatpush1.bf16.msra.mxu1 %v2560_v45  ;;  %1261 = vmatprep.mubr.bf16.mxu0 %v2699_v9 }
  0xb5   : > { %1640 = vmatprep.mubr.bf16.mxu1 %v2699_v9  ;;  %1294 = vmatprep.subr.bf16.mxu0 %v2565_v46 }
  0xb6   : > { %1673 = vmatprep.subr.bf16.mxu1 %v2568_v47 }
  0xb7   : > { %1295 = vmatpush1.bf16.msra.mxu0 %v2563_v48 }
  0xb8   : > { %1674 = vmatpush1.bf16.msra.mxu1 %v2566_v49  ;;  %v1776_v49 = vpop.permute.xlu0 %1775 }
  0xba   : > { %1262 = vmatmul.mubr.bf16.gmra.mrb[20].mxu0 %v2714_v16 }
  0xbb   : > { %1641 = vmatmul.mubr.bf16.gmra.mrb[20].mxu1 %v2714_v16  ;;  %1271 = vmatprep.mubr.bf16.mxu0 %v2719_v17 }
  0xbc   : > { %1650 = vmatprep.mubr.bf16.mxu1 %v2719_v17 }
  0xc2   : > { %1272 = vmatmul.mubr.bf16.gmra.mrb[24].mxu0 %v2728_v18 }
  0xc3   : > { %1651 = vmatmul.mubr.bf16.gmra.mrb[24].mxu1 %v2728_v18  ;;  %1281 = vmatprep.mubr.bf16.mxu0 %v2733_v19 }
  0xc4   : > { %1660 = vmatprep.mubr.bf16.mxu1 %v2733_v19 }
  0xca   : > { %1282 = vmatmul.mubr.bf16.gmra.mrb[28].mxu0 %v2742_v20 }
  0xcb   : > { %1661 = vmatmul.mubr.bf16.gmra.mrb[28].mxu1 %v2742_v20  ;;  %1324 = vmatprep.mubr.bf16.mxu0 %v2577_v1 }
  0xcc   : > { %1703 = vmatprep.mubr.bf16.mxu1 %v2577_v1 }
  0xd2   : > { %2162 = vmatmul.mubr.msk.bf16.vlgmr.msra.gmra.mrb[16].mxu0 %vm464_vm0, %v2752_v22 }
  0xd3   : > { %2238 = vmatmul.mubr.msk.bf16.vlgmr.msra.gmra.mrb[16].mxu1 %vm464_vm0, %v2752_v22  ;;  %1334 = vmatprep.mubr.bf16.mxu0 %v2577_v1 }
  0xd4   : > { %1713 = vmatprep.mubr.bf16.mxu1 %v2577_v1 }
  0xda   : > { %2163 = vmatmul.mubr.msk.bf16.gmra.mrb[20].mxu0 %vm464_vm0, %v2776_v32 }
  0xdb   : > { %2239 = vmatmul.mubr.msk.bf16.gmra.mrb[20].mxu1 %vm464_vm0, %v2776_v32  ;;  %1344 = vmatprep.mubr.bf16.mxu0 %v2577_v1 }
  0xdc   : > { %1723 = vmatprep.mubr.bf16.mxu1 %v2577_v1 }
  0xe2   : > { %2164 = vmatmul.mubr.msk.bf16.gmra.mrb[24].mxu0 %vm464_vm0, %v2801_v43 }
  0xe3   : > { %2240 = vmatmul.mubr.msk.bf16.gmra.mrb[24].mxu1 %vm464_vm0, %v2801_v43  ;;  %1354 = vmatprep.mubr.bf16.mxu0 %v2577_v1 }
  0xe4   : > { %1733 = vmatprep.mubr.bf16.mxu1 %v2577_v1 }
  0xea   : > { %2165 = vmatmul.mubr.msk.bf16.gmra.mrb[28].mxu0 %vm464_vm0, %v2826_v54 }
  0xeb   : > { %2241 = vmatmul.mubr.msk.bf16.gmra.mrb[28].mxu1 %vm464_vm0, %v2826_v54 }
 0x145   : > { %v584_v6 = vpop.f32.mrb[0].mxu0 }
 0x146   : > { %v947_v9 = vpop.f32.mrb[0].mxu1  ;;  %v586_v17 = vpop.f32.mrb[1].mxu0 }
 0x147   : > { %v986_v16 = vmax.f32 %v584_v6, %v947_v9  ;;  %v949_v18 = vpop.f32.mrb[1].mxu1  ;;  %v588_v20 = vpop.f32.mrb[2].mxu0 }
 0x148   : > { %v987_v19 = vmax.f32 %v586_v17, %v949_v18  ;;  %v951_v22 = vpop.f32.mrb[2].mxu1  ;;  %v590_v43 = vpop.f32.mrb[3].mxu0 }
 0x149   : > { %v988_v32 = vmax.f32 %v588_v20, %v951_v22  ;;  %v953_v50 = vpop.f32.mrb[3].mxu1  ;;  %v1781_v22 = vpop.permute.xlu1 %1780 }
 0x14a   : > { %v989_v51 = vmax.f32 %v590_v43, %v953_v50 }
 0x14d   : > { %v2924_v52 = vpop.f32.mrb[4].mxu0 }
 0x14e   : > { %v2926_v1 = vpop.f32.mrb[4].mxu1  ;;  %v2930_v54 = vpop.f32.mrb[5].mxu0 }
 0x14f   : > { %v990_v53 = vmax.f32 %v2924_v52, %v2926_v1  ;;  %v2932_v55 = vpop.f32.mrb[5].mxu1  ;;  %v2936_v57 = vpop.f32.mrb[6].mxu0 }
 0x150   : > { %v991_v56 = vmax.f32 %v2930_v54, %v2932_v55  ;;  %v2938_v58 = vpop.f32.mrb[6].mxu1  ;;  %v2942_v60 = vpop.f32.mrb[7].mxu0 }
 0x151   : > { %v992_v59 = vmax.f32 %v2936_v57, %v2938_v58  ;;  %v2944_v61 = vpop.f32.mrb[7].mxu1  ;;  %v1786_v57 = vpop.permute.xlu1 %1785 }
 0x152   : > { %v993_v62 = vmax.f32 %v2942_v60, %v2944_v61 }
 0x155   : > { %v2948_v63 = vpop.f32.mrb[8].mxu0 }
 0x156   : > { %v2950_v2 = vpop.f32.mrb[8].mxu1  ;;  %v2954_v4 = vpop.f32.mrb[9].mxu0 }
 0x157   : > { %v994_v3 = vmax.f32 %v2948_v63, %v2950_v2  ;;  %v2956_v5 = vpop.f32.mrb[9].mxu1  ;;  %v2960_v8 = vpop.f32.mrb[10].mxu0 }
 0x158   : > { %v995_v7 = vmax.f32 %v2954_v4, %v2956_v5  ;;  %v2962_v0 = vpop.f32.mrb[10].mxu1  ;;  %v2966_v11 = vpop.f32.mrb[11].mxu0 }
 0x159   : > { %v996_v10 = vmax.f32 %v2960_v8, %v2962_v0  ;;  %v2968_v12 = vpop.f32.mrb[11].mxu1  ;;  %v1791_v2 = vpop.permute.xlu0 %1790 }
 0x15a   : > { %v997_v13 = vmax.f32 %v2966_v11, %v2968_v12 }
 0x15d   : > { %v2972_v14 = vpop.f32.mrb[12].mxu0 }
 0x15e   : > { %v2974_v15 = vpop.f32.mrb[12].mxu1  ;;  %v2978_v23 = vpop.f32.mrb[13].mxu0 }
 0x15f   : > { %v998_v21 = vmax.f32 %v2972_v14, %v2974_v15  ;;  %v2980_v24 = vpop.f32.mrb[13].mxu1  ;;  %v2984_v26 = vpop.f32.mrb[14].mxu0 }
 0x160   : > { %v999_v25 = vmax.f32 %v2978_v23, %v2980_v24  ;;  %v2986_v27 = vpop.f32.mrb[14].mxu1  ;;  %v2990_v29 = vpop.f32.mrb[15].mxu0 }
 0x161   : > { %v1000_v28 = vmax.f32 %v2984_v26, %v2986_v27  ;;  %v2992_v30 = vpop.f32.mrb[15].mxu1  ;;  %v1801_v15 = vpop.permute.xlu0 %1800 }
 0x162   : > { %v1001_v31 = vmax.f32 %v2990_v29, %v2992_v30 }
 0x1a5   : > { %v1326_v34 = vpop.f32.mrb[16].mxu0 }
 0x1a6   : > { %v1705_v35 = vpop.f32.mrb[16].mxu1  ;;  %v1365_v36 = vmax.f32 %v986_v16, %v1326_v34  ;;  %v1328_v37 = vpop.f32.mrb[17].mxu0 }
 0x1a7   : > { %v1707_v38 = vpop.f32.mrb[17].mxu1  ;;  %v1366_v39 = vmax.f32 %v987_v19, %v1328_v37  ;;  %v1330_v40 = vpop.f32.mrb[18].mxu0 }
 0x1a8   : > { %v1709_v41 = vpop.f32.mrb[18].mxu1  ;;  %v1744_v42 = vmax.f32 %v1365_v36, %v1705_v35  ;;  %v1367_v44 = vmax.f32 %v988_v32, %v1330_v40  ;;  %v1332_v45 = vpop.f32.mrb[19].mxu0 }
 0x1a9   : > { %v1711_v46 = vpop.f32.mrb[19].mxu1  ;;  %v1745_v47 = vmax.f32 %v1366_v39, %v1707_v38  ;;  %v1368_v48 = vmax.f32 %v989_v51, %v1332_v45 }
 0x1aa   : > { %v1808_v6 = vadd.f32 %v1771_v33, %v1744_v42  ;;  %v1746_v9 = vmax.f32 %v1367_v44, %v1709_v41 }
 0x1ab   : > { %v1809_v17 = vadd.f32 %v1771_v33, %v1745_v47  ;;  %v1747_v16 = vmax.f32 %v1368_v48, %v1711_v46 }
 0x1ac   : > { %v1824_v18 = vmax.f32 %v1808_v6, 0.0  ;;  %v1810_v20 = vadd.f32 %v1776_v49, %v1746_v9 }
 0x1ad   : > { %v1825_v19 = vmax.f32 %v1809_v17, 0.0  ;;  %v1811_v43 = vadd.f32 %v1776_v49, %v1747_v16  ;;  %v1336_v50 = vpop.f32.mrb[20].mxu0 }
 0x1ae   : > { %v1715_v34 = vpop.f32.mrb[20].mxu1  ;;  %v1826_v51 = vmax.f32 %v1810_v20, 0.0  ;;  %v1369_v33 = vmax.f32 %v990_v53, %v1336_v50  ;;  %v1338_v35 = vpop.f32.mrb[21].mxu0 }
 0x1af   : > { %v1717_v36 = vpop.f32.mrb[21].mxu1  ;;  %v2253_v37 = vpack.c.bf16 %v1825_v19, %v1824_v18  ;;  %v1827_v38 = vmax.f32 %v1811_v43, 0.0  ;;  %v1370_v39 = vmax.f32 %v991_v56, %v1338_v35  ;;  %v1340_v40 = vpop.f32.mrb[22].mxu0 }
 0x1b0   : > { %v1719_v41 = vpop.f32.mrb[22].mxu1  ;;  %v1748_v42 = vmax.f32 %v1369_v33, %v1715_v34  ;;  %v1371_v44 = vmax.f32 %v992_v59, %v1340_v40  ;;  %v1342_v45 = vpop.f32.mrb[23].mxu0 }
 0x1b1   : > { %v1721_v46 = vpop.f32.mrb[23].mxu1  ;;  %1891 = vst.msk [vmem:[%s3004_s9] sm:$0xff] %vm2997_vm3, %v2253_v37  ;;  %v2254_v52 = vpack.c.bf16 %v1827_v38, %v1826_v51  ;;  %v1749_v1 = vmax.f32 %v1370_v39, %v1717_v36  ;;  %v1372_v53 = vmax.f32 %v993_v62, %v1342_v45  ;;  %v1796_v33 = vpop.permute.xlu1 %1795 }
 0x1b2   : > { %v1812_v54 = vadd.f32 %v1781_v22, %v1748_v42  ;;  %v1750_v55 = vmax.f32 %v1371_v44, %v1719_v41 }
 0x1b3   : > { %1892 = vst.msk [vmem:[%s3004_s9 + $0x8] sm:$0xff] %vm2997_vm3, %v2254_v52  ;;  %v1813_v56 = vadd.f32 %v1781_v22, %v1749_v1  ;;  %v1751_v47 = vmax.f32 %v1372_v53, %v1721_v46 }
 0x1b4   : > { %v1828_v58 = vmax.f32 %v1812_v54, 0.0  ;;  %v1814_v59 = vadd.f32 %v1786_v57, %v1750_v55 }
 0x1b5   : > { %v1829_v48 = vmax.f32 %v1813_v56, 0.0  ;;  %v1815_v49 = vadd.f32 %v1786_v57, %v1751_v47  ;;  %v1346_v6 = vpop.f32.mrb[24].mxu0  ;;  %v1806_v26 = vpop.permute.xlu1 %1805 }
 0x1b6   : > { %v1725_v9 = vpop.f32.mrb[24].mxu1  ;;  %v1830_v17 = vmax.f32 %v1814_v59, 0.0  ;;  %v1373_v60 = vmax.f32 %v994_v3, %v1346_v6  ;;  %v1348_v61 = vpop.f32.mrb[25].mxu0 }
 0x1b7   : > { %v1727_v62 = vpop.f32.mrb[25].mxu1  ;;  %v2255_v16 = vpack.c.bf16 %v1829_v48, %v1828_v58  ;;  %v1831_v18 = vmax.f32 %v1815_v49, 0.0  ;;  %v1374_v20 = vmax.f32 %v995_v7, %v1348_v61  ;;  %v1350_v22 = vpop.f32.mrb[26].mxu0 }
 0x1b8   : > { %v1729_v19 = vpop.f32.mrb[26].mxu1  ;;  %v1752_v43 = vmax.f32 %v1373_v60, %v1725_v9  ;;  %v1375_v50 = vmax.f32 %v996_v10, %v1350_v22  ;;  %v1352_v34 = vpop.f32.mrb[27].mxu0 }
 0x1b9   : > { %v1731_v51 = vpop.f32.mrb[27].mxu1  ;;  %1893 = vst.msk [vmem:[%s3004_s9 + $0x10] sm:$0xff] %vm2997_vm3, %v2255_v16  ;;  %v2256_v63 = vpack.c.bf16 %v1831_v18, %v1830_v17  ;;  %v1753_v3 = vmax.f32 %v1374_v20, %v1727_v62  ;;  %v1376_v4 = vmax.f32 %v997_v13, %v1352_v34 }
 0x1ba   : > { %v1816_v5 = vadd.f32 %v1791_v2, %v1752_v43  ;;  %v1754_v7 = vmax.f32 %v1375_v50, %v1729_v19 }
 0x1bb   : > { %1894 = vst.msk [vmem:[%s3004_s9 + $0x18] sm:$0xff] %vm2997_vm3, %v2256_v63  ;;  %v1817_v8 = vadd.f32 %v1791_v2, %v1753_v3  ;;  %v1755_v0 = vmax.f32 %v1376_v4, %v1731_v51 }
 0x1bc   : > { %v1832_v10 = vmax.f32 %v1816_v5, 0.0  ;;  %v1818_v35 = vadd.f32 %v1796_v33, %v1754_v7 }
 0x1bd   : > { %v1833_v36 = vmax.f32 %v1817_v8, 0.0  ;;  %v1819_v37 = vadd.f32 %v1796_v33, %v1755_v0  ;;  %v1356_v38 = vpop.f32.mrb[28].mxu0 }
 0x1be   : > { %v1735_v39 = vpop.f32.mrb[28].mxu1  ;;  %v1834_v40 = vmax.f32 %v1818_v35, 0.0  ;;  %v1377_v11 = vmax.f32 %v998_v21, %v1356_v38  ;;  %v1358_v12 = vpop.f32.mrb[29].mxu0 }
 0x1bf   : > { %v1737_v13 = vpop.f32.mrb[29].mxu1  ;;  %v2257_v41 = vpack.c.bf16 %v1833_v36, %v1832_v10  ;;  %v1835_v42 = vmax.f32 %v1819_v37, 0.0  ;;  %v1378_v44 = vmax.f32 %v999_v25, %v1358_v12  ;;  %v1360_v45 = vpop.f32.mrb[30].mxu0 }
 0x1c0   : > { %v1739_v46 = vpop.f32.mrb[30].mxu1  ;;  %v1756_v52 = vmax.f32 %v1377_v11, %v1735_v39  ;;  %v1379_v1 = vmax.f32 %v1000_v28, %v1360_v45  ;;  %v1362_v53 = vpop.f32.mrb[31].mxu0 }
 0x1c1   : > { %v1741_v54 = vpop.f32.mrb[31].mxu1  ;;  %1895 = vst.msk [vmem:[%s3004_s9 + $0x20] sm:$0xff] %vm2997_vm3, %v2257_v41  ;;  %v2258_v14 = vpack.c.bf16 %v1835_v42, %v1834_v40  ;;  %v1757_v21 = vmax.f32 %v1378_v44, %v1737_v13  ;;  %v1380_v23 = vmax.f32 %v1001_v31, %v1362_v53 }
 0x1c2   : > { %v1820_v24 = vadd.f32 %v1801_v15, %v1756_v52  ;;  %v1758_v25 = vmax.f32 %v1379_v1, %v1739_v46 }
 0x1c3   : > { %1896 = vst.msk [vmem:[%s3004_s9 + $0x28] sm:$0xff] %vm2997_vm3, %v2258_v14  ;;  %v1821_v27 = vadd.f32 %v1801_v15, %v1757_v21  ;;  %v1759_v28 = vmax.f32 %v1380_v23, %v1741_v54 }
 0x1c4   : > { %v1836_v55 = vmax.f32 %v1820_v24, 0.0  ;;  %v1822_v56 = vadd.f32 %v1806_v26, %v1758_v25 }
 0x1c5   : > { %v1837_v47 = vmax.f32 %v1821_v27, 0.0  ;;  %v1823_v57 = vadd.f32 %v1806_v26, %v1759_v28 }
 0x1c6   : > { %v1838_v58 = vmax.f32 %v1822_v56, 0.0 }
 0x1c7   : > { %v2259_v59 = vpack.c.bf16 %v1837_v47, %v1836_v55  ;;  %v1839_v48 = vmax.f32 %v1823_v57, 0.0 }
 0x1c9   : > { %1897 = vst.msk [vmem:[%s3004_s9 + $0x30] sm:$0xff] %vm2997_vm3, %v2259_v59  ;;  %v2260_v29 = vpack.c.bf16 %v1839_v48, %v1838_v58 }
 0x1cb   : > { %1898 = vst.msk [vmem:[%s3004_s9 + $0x38] sm:$0xff] %vm2997_vm3, %v2260_v29 }
 0x1cc PF: > { %s13_s12 = sadd.s32 1, %s2575_s12  }
 0x1cd   : > { %p10_p4 = scmp.ge.s32.totalorder %s13_s12, 4  }
 0x1cf   :  { %12 = sbr.rel (!%p10_p4) target bundleno = 1 (0x1), region = 65 }

// kernel: forward.6
= control target key start
LH: loop header
LB: loop body
LE: loop exit
PB: predicated region body
PF: predicated region fallthrough
CT: control target
= control target key end

     0   :  { %s4488_s12 = smov 0   ;;  %s5647_s0 = inlined_call_operand.vmem [shape: bf16[2,4,576,60], index: 0, kind: input, shape index: {}]   ;;  %s5648_s1 = inlined_call_operand.vmem [shape: bf16[128,576], index: 1, kind: input, shape index: {}]   ;;  %s5649_s2 = inlined_call_operand.vmem [shape: f32[128,1], index: 2, kind: input, shape index: {}]   ;;  %s5650_s3 = inlined_call_operand.vmem [shape: bf16[2,128,60], index: 3, kind: output, shape index: {}]  }
   0x1 LB: > { %s3076_s13 = sadd.s32 4294967295, %s4465_s12   ;;  %p3080_p0 = scmp.ge.s32.totalorder %s4465_s12, 1  ;;  %s4465_s12 = sphi %s4488_s12, %s13_s12  }
   0x2   : > { %p137_p1 = scmp.lt.s32.totalorder %s4465_s12, 3 }
   0x4   : > { %p138_p2 = pnand %p3080_p0, %p137_p1 }
   0x6   : > { %141 = sbr.rel (%p138_p2) target bundleno = 595 (0x253), region = 32 }
   0xd   : > { %p161_p3 = scmp.lt.s32.totalorder %s3076_s13, 1  ;;  %v4499_v0 = vld [vmem:[%s5648_s1 + $0x4] ss:$20 sps:$4 sm:$0xff]   ;;  %v4504_v1 = vld [vmem:[%s5648_s1 + $0xc] ss:$20 sps:$4 sm:$0xff]   ;;  %vm708_vm0 = vcmask 523264  }
   0xe   : > { %765 = vmatprep.mubr.bf16.mxu0 %v4499_v0  ;;  %862 = vmatprep.mubr.bf16.mxu1 %v4504_v1  ;;  %v4549_v32 = vld [vmem:[%s5648_s1] ss:$20 sps:$4 sm:$0xff]   ;;  %v4555_v34 = vld [vmem:[%s5648_s1 + $0x8] ss:$20 sps:$4 sm:$0xff]   ;;  %v4585_v44 = vld [vmem:[%s5648_s1 + $0x30] ss:$20 sps:$4 sm:$0xff]  }
   0xf   : > { %s5677_s13 = smov (!%p161_p3, %s3076_s13), 1  ;;  %v4561_v36 = vld [vmem:[%s5648_s1 + $0x2c] ss:$20 sps:$4 sm:$0xff]   ;;  %v4567_v38 = vld [vmem:[%s5648_s1 + $0x34] ss:$20 sps:$4 sm:$0xff]   ;;  %vm3004_vm1 = vcmask 486400  }
  0x10   : > { %s4207_s18 = smul.u32 1152, %s5677_s13  ;;  %v4578_v42 = vld [vmem:[%s5648_s1 + $0x28] ss:$20 sps:$4 sm:$0xff]   ;;  %v4609_v52 = vld [vmem:[%s5648_s1 + $0x50] ss:$20 sps:$4 sm:$0xff]   ;;  %s3534_s14 = sshll.u32 %s5677_s13, 6 }
  0x11   : > { %v4590_v45 = vld [vmem:[%s5648_s1 + $0x54] ss:$20 sps:$4 sm:$0xff]   ;;  %v4597_v48 = vld [vmem:[%s5648_s1 + $0x5c] ss:$20 sps:$4 sm:$0xff]   ;;  %v4614_v53 = vld [vmem:[%s5648_s1 + $0x58] ss:$20 sps:$4 sm:$0xff]   ;;  %s5584_s13 = scalar_lea.vmem %s5650_s3, %s3534_s14 }
  0x12   : > { %s4514_s21 = scalar_lea.vmem %s5647_s0, %s4207_s18  ;;  %v4619_v54 = vld [vmem:[%s5648_s1 + $0x7c] ss:$20 sps:$4 sm:$0xff]   ;;  %v4624_v55 = vld [vmem:[%s5648_s1 + $0x84] ss:$20 sps:$4 sm:$0xff]   ;;  %v4641_v60 = vld [vmem:[%s5648_s1 + $0x80] ss:$20 sps:$4 sm:$0xff]  }
  0x13   : > { %v4219_v2 = vld [vmem:[%s4514_s21 + $0x40] sm:$0xff]   ;;  %v4223_v6 = vld [vmem:[%s4514_s21 + $0x48] sm:$0xff]   ;;  %v4227_v10 = vld [vmem:[%s4514_s21 + $0x50] sm:$0xff]  }
  0x14   : > { %v4220_v3 = vld [vmem:[%s4514_s21 + $0xc0] sm:$0xff]   ;;  %3551 = vmatprep.subr.bf16.mxu0 %v4219_v2  ;;  %v4224_v7 = vld [vmem:[%s4514_s21 + $0xc8] sm:$0xff]   ;;  %v4228_v11 = vld [vmem:[%s4514_s21 + $0xd0] sm:$0xff]  }
  0x15   : > { %v4221_v4 = vld [vmem:[%s4514_s21] sm:$0xff]   ;;  %3615 = vmatprep.subr.bf16.mxu1 %v4220_v3  ;;  %v4225_v8 = vld [vmem:[%s4514_s21 + $0x8] sm:$0xff]   ;;  %v4229_v12 = vld [vmem:[%s4514_s21 + $0x10] sm:$0xff]  }
  0x16   : > { %v4222_v5 = vld [vmem:[%s4514_s21 + $0x80] sm:$0xff]   ;;  %3552 = vmatpush3.bf16.msra.mxu0 %v4221_v4  ;;  %v4226_v9 = vld [vmem:[%s4514_s21 + $0x88] sm:$0xff]   ;;  %v4230_v13 = vld [vmem:[%s4514_s21 + $0x90] sm:$0xff]  }
  0x17   : > { %3616 = vmatpush3.bf16.msra.mxu1 %v4222_v5  ;;  %3553 = vmatprep.subr.bf16.mxu0 %v4223_v6  ;;  %v4231_v14 = vld [vmem:[%s4514_s21 + $0x58] sm:$0xff]   ;;  %v4235_v18 = vld [vmem:[%s4514_s21 + $0x60] sm:$0xff]   ;;  %v4239_v22 = vld [vmem:[%s4514_s21 + $0x68] sm:$0xff]  }
  0x18   : > { %3617 = vmatprep.subr.bf16.mxu1 %v4224_v7  ;;  %v4232_v15 = vld [vmem:[%s4514_s21 + $0xd8] sm:$0xff]   ;;  %v4236_v19 = vld [vmem:[%s4514_s21 + $0xe0] sm:$0xff]   ;;  %v4240_v23 = vld [vmem:[%s4514_s21 + $0xe8] sm:$0xff]  }
  0x19   : > { %v4233_v16 = vld [vmem:[%s4514_s21 + $0x18] sm:$0xff]   ;;  %v4237_v20 = vld [vmem:[%s4514_s21 + $0x20] sm:$0xff]   ;;  %v4241_v24 = vld [vmem:[%s4514_s21 + $0x28] sm:$0xff]  }
  0x1a   : > { %3554 = vmatpush3.bf16.msra.mxu0 %v4225_v8  ;;  %v4234_v17 = vld [vmem:[%s4514_s21 + $0x98] sm:$0xff]   ;;  %v4238_v21 = vld [vmem:[%s4514_s21 + $0xa0] sm:$0xff]   ;;  %v4242_v25 = vld [vmem:[%s4514_s21 + $0xa8] sm:$0xff]  }
  0x1b   : > { %3618 = vmatpush3.bf16.msra.mxu1 %v4226_v9  ;;  %3555 = vmatprep.subr.bf16.mxu0 %v4227_v10  ;;  %v4243_v26 = vld [vmem:[%s4514_s21 + $0x70] sm:$0xff]   ;;  %v4247_v30 = vld [vmem:[%s4514_s21 + $0x78] sm:$0xff]   ;;  %v4257_v37 = vld [vmem:[%s4514_s21 + $0x100] sm:$0xff]  }
  0x1c   : > { %3619 = vmatprep.subr.bf16.mxu1 %v4228_v11  ;;  %v4244_v27 = vld [vmem:[%s4514_s21 + $0xf0] sm:$0xff]   ;;  %v4248_v31 = vld [vmem:[%s4514_s21 + $0xf8] sm:$0xff]   ;;  %v4258_v39 = vld [vmem:[%s4514_s21 + $0x160] sm:$0xff]  }
  0x1d   : > { %v4245_v28 = vld [vmem:[%s4514_s21 + $0x30] sm:$0xff]   ;;  %v4249_v33 = vld [vmem:[%s4514_s21 + $0x38] sm:$0xff]   ;;  %v4259_v40 = vld [vmem:[%s4514_s21 + $0x120] sm:$0xff]  }
  0x1e   : > { %3556 = vmatpush3.bf16.msra.mxu0 %v4229_v12  ;;  %v4246_v29 = vld [vmem:[%s4514_s21 + $0xb0] sm:$0xff]   ;;  %v4250_v35 = vld [vmem:[%s4514_s21 + $0xb8] sm:$0xff]   ;;  %v4266_v41 = vld [vmem:[%s4514_s21 + $0x168] sm:$0xff]  }
  0x1f   : > { %3620 = vmatpush3.bf16.msra.mxu1 %v4230_v13  ;;  %3557 = vmatprep.subr.bf16.mxu0 %v4231_v14  ;;  %v4267_v43 = vld [vmem:[%s4514_s21 + $0x128] sm:$0xff]   ;;  %v4275_v47 = vld [vmem:[%s4514_s21 + $0x170] sm:$0xff]   ;;  %v4283_v50 = vld [vmem:[%s4514_s21 + $0x178] sm:$0xff]  }
  0x20   : > { %3621 = vmatprep.subr.bf16.mxu1 %v4232_v15  ;;  %v4274_v46 = vld [vmem:[%s4514_s21 + $0x108] sm:$0xff]   ;;  %v4276_v49 = vld [vmem:[%s4514_s21 + $0x130] sm:$0xff]   ;;  %v4284_v51 = vld [vmem:[%s4514_s21 + $0x138] sm:$0xff]  }
  0x21   : > { %v4291_v56 = vld [vmem:[%s4514_s21 + $0x110] sm:$0xff]   ;;  %v4292_v57 = vld [vmem:[%s4514_s21 + $0x180] sm:$0xff]   ;;  %v4636_v59 = vld [vmem:[%s5648_s1 + $0x78] ss:$20 sps:$4 sm:$0xff]  }
  0x22   : > { %3558 = vmatpush3.bf16.msra.mxu0 %v4233_v16  ;;  %v4293_v58 = vld [vmem:[%s4514_s21 + $0x140] sm:$0xff]   ;;  %v4300_v61 = vld [vmem:[%s4514_s21 + $0x188] sm:$0xff]   ;;  %v4308_v3 = vld [vmem:[%s4514_s21 + $0x118] sm:$0xff]  }
  0x23   : > { %3622 = vmatpush3.bf16.msra.mxu1 %v4234_v17  ;;  %3559 = vmatprep.subr.bf16.mxu0 %v4235_v18  ;;  %v4301_v62 = vld [vmem:[%s4514_s21 + $0x148] sm:$0xff]   ;;  %v4648_v63 = vld [vmem:[%s5648_s1 + $0xa4] ss:$20 sps:$4 sm:$0xff]   ;;  %v4309_v4 = vld [vmem:[%s4514_s21 + $0x190] sm:$0xff]  }
  0x24   : > { %3623 = vmatprep.subr.bf16.mxu1 %v4236_v19  ;;  %v4653_v2 = vld [vmem:[%s5648_s1 + $0xac] ss:$20 sps:$4 sm:$0xff]   ;;  %v4310_v5 = vld [vmem:[%s4514_s21 + $0x150] sm:$0xff]   ;;  %v4670_v7 = vld [vmem:[%s5648_s1 + $0xa8] ss:$20 sps:$4 sm:$0xff]  }
  0x25   : > { %v4665_v6 = vld [vmem:[%s5648_s1 + $0xa0] ss:$20 sps:$4 sm:$0xff]   ;;  %v4317_v10 = vld [vmem:[%s4514_s21 + $0x198] sm:$0xff]   ;;  %v4697_v14 = vld [vmem:[%s5648_s1 + $0xd0] ss:$20 sps:$4 sm:$0xff]  }
  0x26   : > { %3560 = vmatpush3.bf16.msra.mxu0 %v4237_v20  ;;  %v4675_v8 = vld [vmem:[%s5648_s1 + $0xcc] ss:$20 sps:$4 sm:$0xff]   ;;  %v4680_v9 = vld [vmem:[%s5648_s1 + $0xd4] ss:$20 sps:$4 sm:$0xff]   ;;  %v4318_v11 = vld [vmem:[%s4514_s21 + $0x158] sm:$0xff]  }
  0x27   : > { %3624 = vmatpush3.bf16.msra.mxu1 %v4238_v21  ;;  %3561 = vmatprep.subr.bf16.mxu0 %v4239_v22  ;;  %v4691_v12 = vld [vmem:[%s5648_s1 + $0xc8] ss:$20 sps:$4 sm:$0xff]   ;;  %v4321_v13 = vld [vmem:[%s4514_s21 + $0x1e0] sm:$0xff]   ;;  %v4722_v19 = vld [vmem:[%s5648_s1 + $0xf8] ss:$20 sps:$4 sm:$0xff]  }
  0x28   : > { %3625 = vmatprep.subr.bf16.mxu1 %v4240_v23  ;;  %v4702_v15 = vld [vmem:[%s5648_s1 + $0xf4] ss:$20 sps:$4 sm:$0xff]   ;;  %v4324_v16 = vld [vmem:[%s4514_s21 + $0x220] sm:$0xff]   ;;  %v4708_v17 = vld [vmem:[%s5648_s1 + $0xfc] ss:$20 sps:$4 sm:$0xff]  }
  0x29   : > { %v4717_v18 = vld [vmem:[%s5648_s1 + $0xf0] ss:$20 sps:$4 sm:$0xff]   ;;  %v4741_v22 = vld [vmem:[%s5648_s1 + $0x118] ss:$20 sps:$4 sm:$0xff]   ;;  %v4746_v23 = vld [vmem:[%s5648_s1 + $0x120] ss:$20 sps:$4 sm:$0xff]  }
  0x2a   : > { %3562 = vmatpush3.bf16.msra.mxu0 %v4241_v24  ;;  %v4727_v20 = vld [vmem:[%s5648_s1 + $0x11c] ss:$20 sps:$4 sm:$0xff]   ;;  %v4732_v21 = vld [vmem:[%s5648_s1 + $0x124] ss:$20 sps:$4 sm:$0xff]  }
  0x2b   : > { %3626 = vmatpush3.bf16.msra.mxu1 %v4242_v25  ;;  %3563 = vmatprep.subr.bf16.mxu0 %v4243_v26  ;;  %v4751_v24 = vld [vmem:[%s5648_s1 + $0x10] ss:$20 sps:$4 sm:$0xff]   ;;  %v4761_v25 = vld [vmem:[%s5648_s1 + $0x38] ss:$20 sps:$4 sm:$0xff]  }
  0x2c   : > { %3627 = vmatprep.subr.bf16.mxu1 %v4244_v27  ;;  %v4322_v26 = vld [vmem:[%s4514_s21 + $0x1a0] sm:$0xff]   ;;  %v4323_v27 = vld [vmem:[%s4514_s21 + $0x1e8] sm:$0xff]  }
  0x2e   : > { %3564 = vmatpush3.bf16.msra.mxu0 %v4245_v28  ;;  %v4768_v28 = vld [vmem:[%s5648_s1 + $0x60] ss:$20 sps:$4 sm:$0xff]  }
  0x2f   : > { %3628 = vmatpush3.bf16.msra.mxu1 %v4246_v29  ;;  %3565 = vmatprep.subr.bf16.mxu0 %v4247_v30  ;;  %v4337_v29 = vld [vmem:[%s4514_s21 + $0x228] sm:$0xff]  }
  0x30   : > { %3629 = vmatprep.subr.bf16.mxu1 %v4248_v31  ;;  %v4778_v30 = vld [vmem:[%s5648_s1 + $0x88] ss:$20 sps:$4 sm:$0xff]   ;;  %v4328_v31 = vld [vmem:[%s4514_s21 + $0x1f0] sm:$0xff]  }
  0x32   : > { %3566 = vmatpush3.bf16.msra.mxu0 %v4249_v33  ;;  %v4347_v33 = vld [vmem:[%s4514_s21 + $0x230] sm:$0xff]  }
  0x33   : > { %3630 = vmatpush3.bf16.msra.mxu1 %v4250_v35  ;;  %4111 = vmatprep.subr.bf16.mxu0 %v4257_v37  ;;  %v4329_v35 = vld [vmem:[%s4514_s21 + $0x1b0] sm:$0xff]  }
  0x34   : > { %3691 = vmatprep.subr.bf16.mxu1 %v4258_v39  ;;  %v4331_v39 = vld [vmem:[%s4514_s21 + $0x1b8] sm:$0xff]  }
  0x35   : > { %766 = vmatmul.mubr.bf16.vlgmr.msra.gmra.mrb[0].mxu0 %v4549_v32 }
  0x36   : > { %863 = vmatmul.mubr.bf16.vlgmr.msra.gmra.mrb[0].mxu1 %v4555_v34  ;;  %4112 = vmatpush3.bf16.msra.mxu0 %v4257_v37  ;;  %v4790_v37 = vld [vmem:[%s5648_s1 + $0xb0] ss:$20 sps:$4 sm:$0xff]  }
  0x37   : > { %3692 = vmatpush3.bf16.msra.mxu1 %v4259_v40  ;;  %773 = vmatprep.mubr.bf16.mxu0 %v4561_v36  ;;  %v4802_v40 = vld [vmem:[%s5648_s1 + $0xd8] ss:$20 sps:$4 sm:$0xff]  }
  0x38   : > { %870 = vmatprep.mubr.bf16.mxu1 %v4567_v38  ;;  %3693 = vmatprep.subr.bf16.mxu1 %v4266_v41  ;;  %v4334_v41 = vld [vmem:[%s4514_s21 + $0x200] sm:$0xff]  }
  0x39   : > { %4113 = vmatprep.subr.bf16.mxu0 %v4274_v46 }
  0x3a   : > { %4114 = vmatpush3.bf16.msra.mxu0 %v4274_v46  ;;  %v4336_v46 = vld [vmem:[%s4514_s21 + $0x208] sm:$0xff]  }
  0x3b   : > { %3694 = vmatpush3.bf16.msra.mxu1 %v4267_v43  ;;  %4115 = vmatprep.subr.bf16.mxu0 %v4291_v56  ;;  %v4335_v43 = vld [vmem:[%s4514_s21 + $0x1c0] sm:$0xff]  }
  0x3c   : > { %3695 = vmatprep.subr.bf16.mxu1 %v4275_v47  ;;  %v4812_v47 = vld [vmem:[%s5648_s1 + $0x100] ss:$20 sps:$4 sm:$0xff]  }
  0x3d   : > { %774 = vmatmul.mubr.bf16.gmra.mrb[4].mxu0 %v4578_v42 }
  0x3e   : > { %871 = vmatmul.mubr.bf16.gmra.mrb[4].mxu1 %v4585_v44  ;;  %781 = vmatprep.mubr.bf16.mxu0 %v4590_v45 }
  0x3f   : > { %878 = vmatprep.mubr.bf16.mxu1 %v4597_v48  ;;  %3696 = vmatpush3.bf16.msra.mxu1 %v4276_v49  ;;  %v4341_v49 = vld [vmem:[%s4514_s21 + $0x210] sm:$0xff]  }
  0x40   : > { %3697 = vmatprep.subr.bf16.mxu1 %v4283_v50  ;;  %4116 = vmatpush3.bf16.msra.mxu0 %v4291_v56  ;;  %v4825_v50 = vld [vmem:[%s5648_s1 + $0x128] ss:$20 sps:$4 sm:$0xff]  }
  0x41   : > { %4117 = vmatprep.subr.bf16.mxu0 %v4308_v3  ;;  %v4343_v56 = vld [vmem:[%s4514_s21 + $0x218] sm:$0xff]  }
  0x43   : > { %3698 = vmatpush3.bf16.msra.mxu1 %v4284_v51  ;;  %v4342_v51 = vld [vmem:[%s4514_s21 + $0x1d0] sm:$0xff]  }
  0x44   : > { %3699 = vmatprep.subr.bf16.mxu1 %v4292_v57  ;;  %4118 = vmatpush3.bf16.msra.mxu0 %v4308_v3  ;;  %v4344_v57 = vld [vmem:[%s4514_s21 + $0x1d8] sm:$0xff]   ;;  %v4349_v3 = vld [vmem:[%s4514_s21 + $0x248] sm:$0xff]  }
  0x45   : > { %782 = vmatmul.mubr.bf16.gmra.mrb[8].mxu0 %v4609_v52  ;;  %3755 = vmatprep.subr.bf16.mxu0 %v4321_v13  ;;  %v4369_v13 = vld [vmem:[%s4514_s21 + $0x270] sm:$0xff]  }
  0x46   : > { %879 = vmatmul.mubr.bf16.gmra.mrb[8].mxu1 %v4614_v53  ;;  %789 = vmatprep.mubr.bf16.mxu0 %v4619_v54 }
  0x47   : > { %886 = vmatprep.mubr.bf16.mxu1 %v4624_v55  ;;  %3700 = vmatpush3.bf16.msra.mxu1 %v4293_v58  ;;  %v4345_v58 = vld [vmem:[%s4514_s21 + $0x280] sm:$0xff]  }
  0x48   : > { %3701 = vmatprep.subr.bf16.mxu1 %v4300_v61  ;;  %v4346_v61 = vld [vmem:[%s4514_s21 + $0x240] sm:$0xff]  }
  0x4b   : > { %3702 = vmatpush3.bf16.msra.mxu1 %v4301_v62  ;;  %v4348_v62 = vld [vmem:[%s4514_s21 + $0x288] sm:$0xff]  }
  0x4c   : > { %3703 = vmatprep.subr.bf16.mxu1 %v4309_v4  ;;  %v4350_v4 = vld [vmem:[%s4514_s21 + $0x290] sm:$0xff]  }
  0x4d   : > { %790 = vmatmul.mubr.bf16.gmra.mrb[12].mxu0 %v4636_v59 }
  0x4e   : > { %887 = vmatmul.mubr.bf16.gmra.mrb[12].mxu1 %v4641_v60  ;;  %797 = vmatprep.mubr.bf16.mxu0 %v4648_v63 }
  0x4f   : > { %894 = vmatprep.mubr.bf16.mxu1 %v4653_v2  ;;  %3704 = vmatpush3.bf16.msra.mxu1 %v4310_v5  ;;  %v4353_v5 = vld [vmem:[%s4514_s21 + $0x298] sm:$0xff]  }
  0x50   : > { %3705 = vmatprep.subr.bf16.mxu1 %v4317_v10  ;;  %v4357_v10 = vld [vmem:[%s4514_s21 + $0x260] sm:$0xff]  }
  0x53   : > { %3706 = vmatpush3.bf16.msra.mxu1 %v4318_v11  ;;  %v4361_v11 = vld [vmem:[%s4514_s21 + $0x2a8] sm:$0xff]  }
  0x54   : > { %4135 = vmatprep.subr.bf16.mxu1 %v4324_v16 }
  0x55   : > { %798 = vmatmul.mubr.bf16.gmra.mrb[16].mxu0 %v4665_v6 }
  0x56   : > { %895 = vmatmul.mubr.bf16.gmra.mrb[16].mxu1 %v4670_v7  ;;  %805 = vmatprep.mubr.bf16.mxu0 %v4675_v8 }
  0x57   : > { %902 = vmatprep.mubr.bf16.mxu1 %v4680_v9 }
  0x5d   : > { %806 = vmatmul.mubr.bf16.gmra.mrb[20].mxu0 %v4691_v12 }
  0x5e   : > { %903 = vmatmul.mubr.bf16.gmra.mrb[20].mxu1 %v4697_v14  ;;  %813 = vmatprep.mubr.bf16.mxu0 %v4702_v15 }
  0x5f   : > { %910 = vmatprep.mubr.bf16.mxu1 %v4708_v17 }
  0x65   : > { %814 = vmatmul.mubr.bf16.gmra.mrb[24].mxu0 %v4717_v18 }
  0x66   : > { %911 = vmatmul.mubr.bf16.gmra.mrb[24].mxu1 %v4722_v19  ;;  %821 = vmatprep.mubr.bf16.mxu0 %v4727_v20 }
  0x67   : > { %918 = vmatprep.mubr.bf16.mxu1 %v4732_v21 }
  0x6d   : > { %822 = vmatmul.mubr.bf16.gmra.mrb[28].mxu0 %v4741_v22 }
  0x6e   : > { %919 = vmatmul.mubr.bf16.gmra.mrb[28].mxu1 %v4746_v23  ;;  %4119 = vmatprep.mubr.msk.bf16.mxu0 %vm708_vm0, %v4751_v24 }
  0x6f   : > { %1345 = vmatprep.mubr.bf16.mxu1 %v4499_v0  ;;  %v4325_v0 = vld [vmem:[%s4514_s21 + $0x1a8] sm:$0xff]  }
  0x75   : > { %4120 = vmatmul.mubr.msk.bf16.vlgmr.msra.gmra.mrb[32].mxu0 %vm708_vm0, %v4761_v25 }
  0x76   : > { %1346 = vmatmul.mubr.bf16.vlgmr.msra.gmra.mrb[32].mxu1 %v4549_v32  ;;  %3756 = vmatpush3.bf16.msra.mxu0 %v4322_v26  ;;  %v4330_v32 = vld [vmem:[%s4514_s21 + $0x1f8] sm:$0xff]  }
  0x77   : > { %3757 = vmatprep.subr.bf16.mxu0 %v4323_v27  ;;  %4136 = vmatpush3.bf16.msra.mxu1 %v4324_v16  ;;  %v4373_v16 = vld [vmem:[%s4514_s21 + $0x2b8] sm:$0xff]   ;;  %v4379_v27 = vld [vmem:[%s4514_s21 + $0x340] sm:$0xff]  }
  0x78   : > { %4123 = vmatprep.mubr.msk.bf16.mxu0 %vm708_vm0, %v4768_v28  ;;  %1353 = vmatprep.mubr.bf16.mxu1 %v4561_v36  ;;  %v4352_v36 = vld [vmem:[%s4514_s21 + $0x238] sm:$0xff]  }
  0x79   : > { %4137 = vmatprep.subr.bf16.mxu1 %v4337_v29  ;;  %v4375_v26 = vld [vmem:[%s4514_s21 + $0x278] sm:$0xff]  }
  0x7a   : > { %3758 = vmatpush3.bf16.msra.mxu0 %v4325_v0  ;;  %v4359_v0 = vld [vmem:[%s4514_s21 + $0x308] sm:$0xff]  }
  0x7b   : > { %3759 = vmatprep.subr.bf16.mxu0 %v4328_v31  ;;  %4138 = vmatpush3.bf16.msra.mxu1 %v4337_v29  ;;  %v4358_v29 = vld [vmem:[%s4514_s21 + $0x2c0] sm:$0xff]   ;;  %v4360_v31 = vld [vmem:[%s4514_s21 + $0x2c8] sm:$0xff]  }
  0x7c   : > { %4139 = vmatprep.subr.bf16.mxu1 %v4347_v33 }
  0x7d   : > { %4124 = vmatmul.mubr.msk.bf16.gmra.mrb[36].mxu0 %vm708_vm0, %v4778_v30 }
  0x7e   : > { %1354 = vmatmul.mubr.bf16.gmra.mrb[36].mxu1 %v4578_v42  ;;  %3760 = vmatpush3.bf16.msra.mxu0 %v4329_v35  ;;  %v4356_v42 = vld [vmem:[%s4514_s21 + $0x300] sm:$0xff]   ;;  %v4364_v35 = vld [vmem:[%s4514_s21 + $0x2d0] sm:$0xff]  }
  0x7f   : > { %3761 = vmatprep.subr.bf16.mxu0 %v4330_v32  ;;  %4127 = vmatprep.mubr.msk.bf16.mxu0 %vm708_vm0, %v4790_v37  ;;  %v4365_v32 = vld [vmem:[%s4514_s21 + $0x318] sm:$0xff]  }
  0x80   : > { %1361 = vmatprep.mubr.bf16.mxu1 %v4590_v45  ;;  %4140 = vmatpush3.bf16.msra.mxu1 %v4347_v33  ;;  %v4338_v45 = vld [vmem:[%s4514_s21 + $0x1c8] sm:$0xff]   ;;  %v4362_v33 = vld [vmem:[%s4514_s21 + $0x310] sm:$0xff]  }
  0x81   : > { %4141 = vmatprep.subr.bf16.mxu1 %v4352_v36 }
  0x82   : > { %3762 = vmatpush3.bf16.msra.mxu0 %v4331_v39  ;;  %v4368_v39 = vld [vmem:[%s4514_s21 + $0x320] sm:$0xff]  }
  0x83   : > { %3763 = vmatprep.subr.bf16.mxu0 %v4334_v41  ;;  %v4370_v41 = vld [vmem:[%s4514_s21 + $0x2e0] sm:$0xff]  }
  0x84   : > { %4142 = vmatpush3.bf16.msra.mxu1 %v4352_v36  ;;  %v4366_v36 = vld [vmem:[%s4514_s21 + $0x2d8] sm:$0xff]  }
  0x85   : > { %4128 = vmatmul.mubr.msk.bf16.gmra.mrb[40].mxu0 %vm708_vm0, %v4802_v40  ;;  %3895 = vmatprep.subr.bf16.mxu1 %v4356_v42  ;;  %v4372_v42 = vld [vmem:[%s4514_s21 + $0x2e8] sm:$0xff]  }
  0x86   : > { %1362 = vmatmul.mubr.bf16.gmra.mrb[40].mxu1 %v4609_v52  ;;  %3764 = vmatpush3.bf16.msra.mxu0 %v4335_v43  ;;  %v4371_v43 = vld [vmem:[%s4514_s21 + $0x328] sm:$0xff]  }
  0x87   : > { %3765 = vmatprep.subr.bf16.mxu0 %v4336_v46  ;;  %4131 = vmatprep.mubr.msk.bf16.mxu0 %vm708_vm0, %v4812_v47  ;;  %v4374_v46 = vld [vmem:[%s4514_s21 + $0x330] sm:$0xff]  }
  0x88   : > { %1369 = vmatprep.mubr.bf16.mxu1 %v4619_v54 }
  0x8a   : > { %3766 = vmatpush3.bf16.msra.mxu0 %v4338_v45  ;;  %v4376_v45 = vld [vmem:[%s4514_s21 + $0x2f0] sm:$0xff]  }
  0x8b   : > { %3767 = vmatprep.subr.bf16.mxu0 %v4341_v49  ;;  %v4377_v49 = vld [vmem:[%s4514_s21 + $0x338] sm:$0xff]  }
  0x8d   : > { %4132 = vmatmul.mubr.msk.bf16.gmra.mrb[44].mxu0 %vm708_vm0, %v4825_v50 }
  0x8e   : > { %1370 = vmatmul.mubr.bf16.gmra.mrb[44].mxu1 %v4636_v59  ;;  %3768 = vmatpush3.bf16.msra.mxu0 %v4342_v51  ;;  %v4907_v51 = vld [vmem:[%s5648_s1 + $0x4] ss:$20 sps:$4 sm:$0xff]  }
  0x8f   : > { %3769 = vmatprep.subr.bf16.mxu0 %v4343_v56  ;;  %1377 = vmatprep.mubr.bf16.mxu1 %v4648_v63  ;;  %v4378_v56 = vld [vmem:[%s4514_s21 + $0x2f8] sm:$0xff]  }
  0x90   : > { %1442 = vmatprep.mubr.bf16.mxu0 %v4504_v1  ;;  %v4351_v1 = vld [vmem:[%s4514_s21 + $0x250] sm:$0xff]  }
  0x92   : > { %3770 = vmatpush3.bf16.msra.mxu0 %v4344_v57  ;;  %v4914_v57 = vld [vmem:[%s5648_s1 + $0xc] ss:$20 sps:$4 sm:$0xff]  }
  0x93   : > { %3831 = vmatprep.subr.bf16.mxu0 %v4345_v58  ;;  %v4380_v58 = vld [vmem:[%s4514_s21 + $0x3a0] sm:$0xff]  }
  0x95   : > { %1443 = vmatmul.mubr.bf16.vlgmr.msra.gmra.mrb[48].mxu0 %v4555_v34  ;;  %v4354_v34 = vld [vmem:[%s4514_s21 + $0x258] sm:$0xff]  }
  0x96   : > { %1378 = vmatmul.mubr.bf16.gmra.mrb[48].mxu1 %v4665_v6  ;;  %3832 = vmatpush3.bf16.msra.mxu0 %v4346_v61  ;;  %v4381_v61 = vld [vmem:[%s4514_s21 + $0x360] sm:$0xff]  }
  0x97   : > { %1385 = vmatprep.mubr.bf16.mxu1 %v4675_v8  ;;  %1450 = vmatprep.mubr.bf16.mxu0 %v4567_v38  ;;  %v4355_v38 = vld [vmem:[%s4514_s21 + $0x2a0] sm:$0xff]  }
  0x98   : > { %3833 = vmatprep.subr.bf16.mxu0 %v4348_v62  ;;  %v4382_v62 = vld [vmem:[%s4514_s21 + $0x3a8] sm:$0xff]  }
  0x9a   : > { %3834 = vmatpush3.bf16.msra.mxu0 %v4349_v3  ;;  %v4923_v3 = vld [vmem:[%s5648_s1] ss:$20 sps:$4 sm:$0xff]  }
  0x9b   : > { %3835 = vmatprep.subr.bf16.mxu0 %v4350_v4  ;;  %v4384_v4 = vld [vmem:[%s4514_s21 + $0x348] sm:$0xff]  }
  0x9d   : > { %1451 = vmatmul.mubr.bf16.gmra.mrb[52].mxu0 %v4585_v44  ;;  %v4363_v44 = vld [vmem:[%s4514_s21 + $0x268] sm:$0xff]  }
  0x9e   : > { %1386 = vmatmul.mubr.bf16.gmra.mrb[52].mxu1 %v4691_v12  ;;  %1458 = vmatprep.mubr.bf16.mxu0 %v4597_v48  ;;  %v4367_v48 = vld [vmem:[%s4514_s21 + $0x2b0] sm:$0xff]  }
  0x9f   : > { %1393 = vmatprep.mubr.bf16.mxu1 %v4702_v15  ;;  %3836 = vmatpush3.bf16.msra.mxu0 %v4351_v1  ;;  %v4930_v1 = vld [vmem:[%s5648_s1 + $0x8] ss:$20 sps:$4 sm:$0xff]  }
  0xa0   : > { %3837 = vmatprep.subr.bf16.mxu0 %v4353_v5  ;;  %v4936_v5 = vld [vmem:[%s5648_s1 + $0x2c] ss:$20 sps:$4 sm:$0xff]  }
  0xa3   : > { %3838 = vmatpush3.bf16.msra.mxu0 %v4354_v34  ;;  %v4383_v34 = vld [vmem:[%s4514_s21 + $0x368] sm:$0xff]  }
  0xa4   : > { %3839 = vmatprep.subr.bf16.mxu0 %v4355_v38  ;;  %v4389_v38 = vld [vmem:[%s4514_s21 + $0x350] sm:$0xff]  }
  0xa5   : > { %1459 = vmatmul.mubr.bf16.gmra.mrb[56].mxu0 %v4614_v53 }
  0xa6   : > { %1394 = vmatmul.mubr.bf16.gmra.mrb[56].mxu1 %v4717_v18  ;;  %1466 = vmatprep.mubr.bf16.mxu0 %v4624_v55 }
  0xa7   : > { %1401 = vmatprep.mubr.bf16.mxu1 %v4727_v20  ;;  %3840 = vmatpush3.bf16.msra.mxu0 %v4357_v10  ;;  %v4944_v10 = vld [vmem:[%s5648_s1 + $0x34] ss:$20 sps:$4 sm:$0xff]  }
  0xa8   : > { %3841 = vmatprep.subr.bf16.mxu0 %v4361_v11  ;;  %v4385_v11 = vld [vmem:[%s4514_s21 + $0x3b0] sm:$0xff]  }
  0xab   : > { %3842 = vmatpush3.bf16.msra.mxu0 %v4363_v44  ;;  %v4386_v44 = vld [vmem:[%s4514_s21 + $0x370] sm:$0xff]  }
  0xac   : > { %3843 = vmatprep.subr.bf16.mxu0 %v4367_v48  ;;  %v4387_v48 = vld [vmem:[%s4514_s21 + $0x3b8] sm:$0xff]  }
  0xad   : > { %1467 = vmatmul.mubr.bf16.gmra.mrb[60].mxu0 %v4641_v60 }
  0xae   : > { %1402 = vmatmul.mubr.bf16.gmra.mrb[60].mxu1 %v4741_v22  ;;  %1474 = vmatprep.mubr.bf16.mxu0 %v4653_v2 }
  0xaf   : > { %4143 = vmatprep.mubr.msk.bf16.mxu1 %vm708_vm0, %v4751_v24  ;;  %3844 = vmatpush3.bf16.msra.mxu0 %v4369_v13  ;;  %v4953_v13 = vld [vmem:[%s5648_s1 + $0x28] ss:$20 sps:$4 sm:$0xff]  }
  0xb0   : > { %3845 = vmatprep.subr.bf16.mxu0 %v4373_v16  ;;  %v4394_v16 = vld [vmem:[%s4514_s21 + $0x358] sm:$0xff]  }
  0xb3   : > { %3846 = vmatpush3.bf16.msra.mxu0 %v4375_v26  ;;  %v4960_v26 = vld [vmem:[%s5648_s1 + $0x30] ss:$20 sps:$4 sm:$0xff]  }
  0xb4   : > { %4159 = vmatprep.subr.bf16.mxu0 %v4379_v27 }
  0xb5   : > { %1475 = vmatmul.mubr.bf16.gmra.mrb[64].mxu0 %v4670_v7 }
  0xb6   : > { %4144 = vmatmul.mubr.msk.bf16.vlgmr.msra.gmra.mrb[64].mxu1 %vm708_vm0, %v4761_v25  ;;  %1482 = vmatprep.mubr.bf16.mxu0 %v4680_v9 }
  0xb7   : > { %3896 = vmatpush3.bf16.msra.mxu1 %v4358_v29  ;;  %4147 = vmatprep.mubr.msk.bf16.mxu1 %vm708_vm0, %v4768_v28  ;;  %v4972_v29 = vld [vmem:[%s5648_s1 + $0x5c] ss:$20 sps:$4 sm:$0xff]  }
  0xb8   : > { %3897 = vmatprep.subr.bf16.mxu1 %v4359_v0  ;;  %v4388_v0 = vld [vmem:[%s4514_s21 + $0x378] sm:$0xff]  }
  0xbb   : > { %3898 = vmatpush3.bf16.msra.mxu1 %v4360_v31  ;;  %v4390_v31 = vld [vmem:[%s4514_s21 + $0x3c0] sm:$0xff]  }
  0xbc   : > { %3899 = vmatprep.subr.bf16.mxu1 %v4362_v33  ;;  %v4399_v33 = vld [vmem:[%s4514_s21 + $0x420] sm:$0xff]  }
  0xbd   : > { %1483 = vmatmul.mubr.bf16.gmra.mrb[68].mxu0 %v4697_v14 }
  0xbe   : > { %4148 = vmatmul.mubr.msk.bf16.gmra.mrb[68].mxu1 %vm708_vm0, %v4778_v30  ;;  %1490 = vmatprep.mubr.bf16.mxu0 %v4708_v17 }
  0xbf   : > { %3900 = vmatpush3.bf16.msra.mxu1 %v4364_v35  ;;  %4151 = vmatprep.mubr.msk.bf16.mxu1 %vm708_vm0, %v4790_v37  ;;  %v4391_v35 = vld [vmem:[%s4514_s21 + $0x380] sm:$0xff]  }
  0xc0   : > { %3901 = vmatprep.subr.bf16.mxu1 %v4365_v32  ;;  %v4392_v32 = vld [vmem:[%s4514_s21 + $0x3c8] sm:$0xff]  }
  0xc3   : > { %3902 = vmatpush3.bf16.msra.mxu1 %v4366_v36  ;;  %v4393_v36 = vld [vmem:[%s4514_s21 + $0x388] sm:$0xff]  }
  0xc4   : > { %3903 = vmatprep.subr.bf16.mxu1 %v4368_v39  ;;  %v4395_v39 = vld [vmem:[%s4514_s21 + $0x3d0] sm:$0xff]  }
  0xc5   : > { %1491 = vmatmul.mubr.bf16.gmra.mrb[72].mxu0 %v4722_v19 }
  0xc6   : > { %4152 = vmatmul.mubr.msk.bf16.gmra.mrb[72].mxu1 %vm708_vm0, %v4802_v40  ;;  %1498 = vmatprep.mubr.bf16.mxu0 %v4732_v21 }
  0xc7   : > { %3904 = vmatpush3.bf16.msra.mxu1 %v4370_v41  ;;  %4155 = vmatprep.mubr.msk.bf16.mxu1 %vm708_vm0, %v4812_v47  ;;  %v4396_v41 = vld [vmem:[%s4514_s21 + $0x390] sm:$0xff]  }
  0xc8   : > { %3905 = vmatprep.subr.bf16.mxu1 %v4371_v43  ;;  %v4397_v43 = vld [vmem:[%s4514_s21 + $0x3d8] sm:$0xff]  }
  0xcb   : > { %3906 = vmatpush3.bf16.msra.mxu1 %v4372_v42 }
  0xcc   : > { %3907 = vmatprep.subr.bf16.mxu1 %v4374_v46 }
  0xcd   : > { %1499 = vmatmul.mubr.bf16.gmra.mrb[76].mxu0 %v4746_v23 }
  0xce   : > { %4156 = vmatmul.mubr.msk.bf16.gmra.mrb[76].mxu1 %vm708_vm0, %v4825_v50  ;;  %1941 = vmatprep.mubr.bf16.mxu0 %v4907_v51 }
  0xcf   : > { %3908 = vmatpush3.bf16.msra.mxu1 %v4376_v45  ;;  %2038 = vmatprep.mubr.bf16.mxu1 %v4914_v57 }
  0xd0   : > { %3909 = vmatprep.subr.bf16.mxu1 %v4377_v49 }
  0xd3   : > { %3910 = vmatpush3.bf16.msra.mxu1 %v4378_v56 }
  0xd4   : > { %3971 = vmatprep.subr.bf16.mxu1 %v4380_v58 }
  0xd5   : > { %1942 = vmatmul.mubr.bf16.vlgmr.msra.gmra.mrb[80].mxu0 %v4923_v3 }
  0xd6   : > { %2039 = vmatmul.mubr.bf16.vlgmr.msra.gmra.mrb[80].mxu1 %v4930_v1  ;;  %4160 = vmatpush3.bf16.msra.mxu0 %v4379_v27  ;;  %v4966_v27 = vld [vmem:[%s5648_s1 + $0x54] ss:$20 sps:$4 sm:$0xff]  }
  0xd7   : > { %3972 = vmatpush3.bf16.msra.mxu1 %v4381_v61  ;;  %1949 = vmatprep.mubr.bf16.mxu0 %v4936_v5 }
  0xd8   : > { %2046 = vmatprep.mubr.bf16.mxu1 %v4944_v10  ;;  %3973 = vmatprep.subr.bf16.mxu1 %v4382_v62 }
  0xd9   : > { %4161 = vmatprep.subr.bf16.mxu0 %v4384_v4 }
  0xda   : > { %4162 = vmatpush3.bf16.msra.mxu0 %v4384_v4  ;;  %v4411_v4 = vld [vmem:[%s4514_s21 + $0x468] sm:$0xff]  }
  0xdb   : > { %3974 = vmatpush3.bf16.msra.mxu1 %v4383_v34  ;;  %4163 = vmatprep.subr.bf16.mxu0 %v4389_v38 }
  0xdc   : > { %3975 = vmatprep.subr.bf16.mxu1 %v4385_v11  ;;  %v2812_v11 = vld [vmem:[%s5649_s2] sm:$0xff] }
  0xdd   : > { %1950 = vmatmul.mubr.bf16.gmra.mrb[84].mxu0 %v4953_v13 }
  0xde   : > { %2047 = vmatmul.mubr.bf16.gmra.mrb[84].mxu1 %v4960_v26  ;;  %1957 = vmatprep.mubr.bf16.mxu0 %v4966_v27 }
  0xdf   : > { %2054 = vmatprep.mubr.bf16.mxu1 %v4972_v29  ;;  %3976 = vmatpush3.bf16.msra.mxu1 %v4386_v44  ;;  %v4404_v44 = vld [vmem:[%s4514_s21 + $0x430] sm:$0xff]  }
  0xe0   : > { %3977 = vmatprep.subr.bf16.mxu1 %v4387_v48  ;;  %4164 = vmatpush3.bf16.msra.mxu0 %v4389_v38  ;;  %v4403_v38 = vld [vmem:[%s4514_s21 + $0x3e8] sm:$0xff]  }
  0xe1   : > { %4165 = vmatprep.subr.bf16.mxu0 %v4394_v16 }
  0xe3   : > { %3978 = vmatpush3.bf16.msra.mxu1 %v4388_v0 }
  0xe4   : > { %3979 = vmatprep.subr.bf16.mxu1 %v4390_v31  ;;  %4166 = vmatpush3.bf16.msra.mxu0 %v4394_v16 }
  0xe5   : > { %1958 = vmatmul.mubr.bf16.gmra.mrb[88].mxu0 %v4609_v52  ;;  %4035 = vmatprep.subr.bf16.mxu0 %v4399_v33  ;;  %v4398_v52 = vld [vmem:[%s4514_s21 + $0x398] sm:$0xff]  }
  0xe6   : > { %2055 = vmatmul.mubr.bf16.gmra.mrb[88].mxu1 %v4614_v53  ;;  %1965 = vmatprep.mubr.bf16.mxu0 %v4619_v54  ;;  %v4402_v53 = vld [vmem:[%s4514_s21 + $0x460] sm:$0xff]  }
  0xe7   : > { %2062 = vmatprep.mubr.bf16.mxu1 %v4624_v55  ;;  %3980 = vmatpush3.bf16.msra.mxu1 %v4391_v35 }
  0xe8   : > { %3981 = vmatprep.subr.bf16.mxu1 %v4392_v32 }
  0xeb   : > { %3982 = vmatpush3.bf16.msra.mxu1 %v4393_v36  ;;  %v4405_v36 = vld [vmem:[%s4514_s21 + $0x3f0] sm:$0xff]  }
  0xec   : > { %3983 = vmatprep.subr.bf16.mxu1 %v4395_v39 }
  0xed   : > { %1966 = vmatmul.mubr.bf16.gmra.mrb[92].mxu0 %v4636_v59 }
  0xee   : > { %2063 = vmatmul.mubr.bf16.gmra.mrb[92].mxu1 %v4641_v60  ;;  %1973 = vmatprep.mubr.bf16.mxu0 %v4648_v63 }
  0xef   : > { %2070 = vmatprep.mubr.bf16.mxu1 %v4653_v2  ;;  %3984 = vmatpush3.bf16.msra.mxu1 %v4396_v41 }
  0xf0   : > { %3985 = vmatprep.subr.bf16.mxu1 %v4397_v43  ;;  %v4406_v43 = vld [vmem:[%s4514_s21 + $0x438] sm:$0xff]  }
  0xf3   : > { %3986 = vmatpush3.bf16.msra.mxu1 %v4398_v52 }
  0xf4   : > { %4183 = vmatprep.subr.bf16.mxu1 %v4402_v53 }
  0xf5   : > { %1974 = vmatmul.mubr.bf16.gmra.mrb[96].mxu0 %v4665_v6 }
  0xf6   : > { %2071 = vmatmul.mubr.bf16.gmra.mrb[96].mxu1 %v4670_v7  ;;  %1981 = vmatprep.mubr.bf16.mxu0 %v4675_v8 }
  0xf7   : > { %2078 = vmatprep.mubr.bf16.mxu1 %v4680_v9 }
  0xfd   : > { %1982 = vmatmul.mubr.bf16.gmra.mrb[100].mxu0 %v4691_v12 }
  0xfe   : > { %2079 = vmatmul.mubr.bf16.gmra.mrb[100].mxu1 %v4697_v14  ;;  %1989 = vmatprep.mubr.bf16.mxu0 %v4702_v15 }
  0xff   : > { %2086 = vmatprep.mubr.bf16.mxu1 %v4708_v17 }
 0x105   : > { %1990 = vmatmul.mubr.bf16.gmra.mrb[104].mxu0 %v4717_v18 }
 0x106   : > { %2087 = vmatmul.mubr.bf16.gmra.mrb[104].mxu1 %v4722_v19  ;;  %1997 = vmatprep.mubr.bf16.mxu0 %v4727_v20 }
 0x107   : > { %2094 = vmatprep.mubr.bf16.mxu1 %v4732_v21 }
 0x108   : > { %v3567_v54 = vpop.f32.mrb[0].mxu0 }
 0x109   : > { %v3631_v55 = vpop.f32.mrb[0].mxu1  ;;  %v3568_v59 = vpop.f32.mrb[1].mxu0 }
 0x10a   : > { %v3569_v60 = vadd.f32 %v3568_v59, %v3567_v54  ;;  %v3632_v63 = vpop.f32.mrb[1].mxu1  ;;  %v3570_v2 = vpop.f32.mrb[2].mxu0 }
 0x10b   : > { %v3633_v6 = vadd.f32 %v3632_v63, %v3631_v55  ;;  %v3634_v7 = vpop.f32.mrb[2].mxu1  ;;  %v3571_v8 = vpop.f32.mrb[3].mxu0  ;;  %v4418_v55 = vld [vmem:[%s4514_s21 + $0x478] sm:$0xff]   ;;  %v2817_v63 = vld [vmem:[%s5649_s2 + $0x28] sm:$0xff] }
 0x10c   : > { %v3572_v9 = vadd.f32 %v3571_v8, %v3570_v2  ;;  %v3635_v12 = vpop.f32.mrb[3].mxu1  ;;  %v4408_v2 = vld [vmem:[%s4514_s21 + $0x440] sm:$0xff]  }
 0x10d   : > { %v3636_v14 = vadd.f32 %v3635_v12, %v3634_v7  ;;  %1998 = vmatmul.mubr.bf16.gmra.mrb[108].mxu0 %v4741_v22  ;;  %v5007_v15 = vadd.f32 %v3633_v6, %v3569_v60  ;;  %v4400_v22 = vld [vmem:[%s4514_s21 + $0x3e0] sm:$0xff]   ;;  %v4407_v60 = vld [vmem:[%s4514_s21 + $0x3f8] sm:$0xff]  }
 0x10e   : > { %2095 = vmatmul.mubr.bf16.gmra.mrb[108].mxu1 %v4746_v23  ;;  %4167 = vmatprep.mubr.msk.bf16.mxu0 %vm708_vm0, %v4751_v24  ;;  %v4401_v23 = vld [vmem:[%s4514_s21 + $0x428] sm:$0xff]   ;;  %v4467_v24 = vmov 0  }
 0x10f   : > { %2537 = vmatprep.mubr.bf16.mxu1 %v4907_v51  ;;  %v5013_v17 = vadd.f32 %v3636_v14, %v3572_v9  ;;  %4218 = vset.pattern.permute.xlu1 %v4467_v24  ;;  %v2814_v51 = vld [vmem:[%s5649_s2 + $0x10] sm:$0xff] }
 0x110   : > { %v3573_v18 = vpop.f32.mrb[4].mxu0  ;;  %4217 = vset.pattern.permute.xlu0 %v4467_v24  ;;  %2840 = vperm.xlu1 %4218, %v2814_v51   ;;  %v4430_v51 = vld [vmem:[%s5648_s1 + $0x7c] ss:$20 sps:$4 sm:$0xff]  }
 0x111   : > { %v3637_v19 = vpop.f32.mrb[4].mxu1  ;;  %v3574_v20 = vpop.f32.mrb[5].mxu0  ;;  %2830 = vperm.xlu0 %4217, %v2812_v11  }
 0x112   : > { %v3575_v21 = vadd.f32 %v3574_v20, %v3573_v18  ;;  %v3638_v42 = vpop.f32.mrb[5].mxu1  ;;  %v3576_v46 = vpop.f32.mrb[6].mxu0  ;;  %v2819_v18 = vld [vmem:[%s5649_s2 + $0x38] sm:$0xff] }
 0x113   : > { %v3639_v45 = vadd.f32 %v3638_v42, %v3637_v19  ;;  %v3640_v49 = vpop.f32.mrb[6].mxu1  ;;  %v3577_v56 = vpop.f32.mrb[7].mxu0 }
 0x114   : > { %v3578_v58 = vadd.f32 %v3577_v56, %v3576_v46  ;;  %v3641_v61 = vpop.f32.mrb[7].mxu1  ;;  %v4429_v56 = vld [vmem:[%s5648_s1 + $0x50] ss:$20 sps:$4 sm:$0xff]  }
 0x115   : > { %v3642_v62 = vadd.f32 %v3641_v61, %v3640_v49  ;;  %4168 = vmatmul.mubr.msk.bf16.vlgmr.msra.gmra.mrb[112].mxu0 %vm708_vm0, %v4761_v25  ;;  %v5023_v34 = vadd.f32 %v3639_v45, %v3575_v21  ;;  %v4417_v25 = vld [vmem:[%s4514_s21 + $0x470] sm:$0xff]   ;;  %v4410_v21 = vld [vmem:[%s4514_s21 + $0x448] sm:$0xff]  }
 0x116   : > { %2538 = vmatmul.mubr.bf16.vlgmr.msra.gmra.mrb[112].mxu1 %v4923_v3  ;;  %4036 = vmatpush3.bf16.msra.mxu0 %v4400_v22  ;;  %v2815_v3 = vld [vmem:[%s5649_s2 + $0x18] sm:$0xff]  ;;  %v2818_v49 = vld [vmem:[%s5649_s2 + $0x30] sm:$0xff] }
 0x117   : > { %4037 = vmatprep.subr.bf16.mxu0 %v4401_v23  ;;  %4184 = vmatpush3.bf16.msra.mxu1 %v4402_v53  ;;  %v5031_v48 = vadd.f32 %v3642_v62, %v3578_v58  ;;  %v4412_v23 = vld [vmem:[%s4514_s21 + $0x408] sm:$0xff]  }
 0x118   : > { %v3579_v16 = vpop.f32.mrb[8].mxu0  ;;  %4171 = vmatprep.mubr.msk.bf16.mxu0 %vm708_vm0, %v4768_v28  ;;  %2545 = vmatprep.mubr.bf16.mxu1 %v4936_v5  ;;  %v2813_v28 = vld [vmem:[%s5649_s2 + $0x8] sm:$0xff] }
 0x119   : > { %v3643_v0 = vpop.f32.mrb[8].mxu1  ;;  %v3580_v31 = vpop.f32.mrb[9].mxu0  ;;  %4185 = vmatprep.subr.bf16.mxu1 %v4411_v4  ;;  %2845 = vperm.xlu1 %4218, %v2815_v3   ;;  %v2821_v58 = vld [vmem:[%s5649_s2 + $0x48] sm:$0xff] }
 0x11a   : > { %v3581_v33 = vadd.f32 %v3580_v31, %v3579_v16  ;;  %v3644_v35 = vpop.f32.mrb[9].mxu1  ;;  %v3582_v32 = vpop.f32.mrb[10].mxu0  ;;  %4038 = vmatpush3.bf16.msra.mxu0 %v4403_v38  ;;  %2835 = vperm.xlu0 %4217, %v2813_v28   ;;  %v2820_v38 = vld [vmem:[%s5649_s2 + $0x40] sm:$0xff]  ;;  %v4414_v16 = vld [vmem:[%s4514_s21 + $0x410] sm:$0xff]  }
 0x11b   : > { %v3645_v5 = vadd.f32 %v3644_v35, %v3643_v0  ;;  %v3646_v39 = vpop.f32.mrb[10].mxu1  ;;  %v3583_v41 = vpop.f32.mrb[11].mxu0  ;;  %4039 = vmatprep.subr.bf16.mxu0 %v4404_v44  ;;  %4186 = vmatpush3.bf16.msra.mxu1 %v4411_v4 }
 0x11c   : > { %v3584_v52 = vadd.f32 %v3583_v41, %v3582_v32  ;;  %v3647_v53 = vpop.f32.mrb[11].mxu1  ;;  %4187 = vmatprep.subr.bf16.mxu1 %v4417_v25  ;;  %v4416_v41 = vld [vmem:[%s4514_s21 + $0x418] sm:$0xff]  }
 0x11d   : > { %v3648_v54 = vadd.f32 %v3647_v53, %v3646_v39  ;;  %4172 = vmatmul.mubr.msk.bf16.gmra.mrb[116].mxu0 %vm708_vm0, %v4778_v30  ;;  %v5048_v59 = vadd.f32 %v3645_v5, %v3581_v33  ;;  %v2816_v30 = vld [vmem:[%s5649_s2 + $0x20] sm:$0xff]  ;;  %2855 = vperm.xlu1 %4218, %v2817_v63   ;;  %v4415_v33 = vld [vmem:[%s4514_s21 + $0x458] sm:$0xff]   ;;  %v2822_v5 = vld [vmem:[%s5649_s2 + $0x50] sm:$0xff] }
 0x11e   : > { %2546 = vmatmul.mubr.bf16.gmra.mrb[116].mxu1 %v4953_v13  ;;  %4040 = vmatpush3.bf16.msra.mxu0 %v4405_v36  ;;  %v4431_v39 = vld [vmem:[%s5648_s1 + $0x78] ss:$20 sps:$4 sm:$0xff]  }
 0x11f   : > { %4041 = vmatprep.subr.bf16.mxu0 %v4406_v43  ;;  %4175 = vmatprep.mubr.msk.bf16.mxu0 %vm708_vm0, %v4790_v37  ;;  %v5058_v6 = vadd.f32 %v3648_v54, %v3584_v52  ;;  %v4409_v37 = vld [vmem:[%s4514_s21 + $0x400] sm:$0xff]   ;;  %v2825_v43 = vld [vmem:[%s5649_s2 + $0x68] sm:$0xff] }
 0x120   : > { %v3585_v7 = vpop.f32.mrb[12].mxu0  ;;  %2553 = vmatprep.mubr.bf16.mxu1 %v4966_v27  ;;  %4188 = vmatpush3.bf16.msra.mxu1 %v4417_v25  ;;  %v2823_v25 = vld [vmem:[%s5649_s2 + $0x58] sm:$0xff] }
 0x121   : > { %v3649_v13 = vpop.f32.mrb[12].mxu1  ;;  %v3586_v8 = vpop.f32.mrb[13].mxu0  ;;  %4189 = vmatprep.subr.bf16.mxu1 %v4418_v55  ;;  %2850 = vperm.xlu0 %4217, %v2816_v30  }
 0x122   : > { %v3587_v9 = vadd.f32 %v3586_v8, %v3585_v7  ;;  %v3650_v12 = vpop.f32.mrb[13].mxu1  ;;  %v3588_v14 = vpop.f32.mrb[14].mxu0  ;;  %4042 = vmatpush3.bf16.msra.mxu0 %v4407_v60  ;;  %2865 = vperm.xlu1 %4218, %v2819_v18   ;;  %v2824_v60 = vld [vmem:[%s5649_s2 + $0x60] sm:$0xff]  ;;  %v2827_v7 = vld [vmem:[%s5649_s2 + $0x78] sm:$0xff]  ;;  %v2826_v18 = vld [vmem:[%s5649_s2 + $0x70] sm:$0xff] }
 0x123   : > { %v3651_v19 = vadd.f32 %v3650_v12, %v3649_v13  ;;  %v3652_v20 = vpop.f32.mrb[14].mxu1  ;;  %v3589_v27 = vpop.f32.mrb[15].mxu0  ;;  %4043 = vmatprep.subr.bf16.mxu0 %v4408_v2 }
 0x124   : > { %v3590_v42 = vadd.f32 %v3589_v27, %v3588_v14  ;;  %v3653_v46 = vpop.f32.mrb[15].mxu1  ;;  %4190 = vmatpush3.bf16.msra.mxu1 %v4418_v55 }
 0x125   : > { %v3654_v22 = vadd.f32 %v3653_v46, %v3652_v20  ;;  %4176 = vmatmul.mubr.msk.bf16.gmra.mrb[120].mxu0 %vm708_vm0, %v4802_v40  ;;  %v5071_v45 = vadd.f32 %v3651_v19, %v3587_v9  ;;  %v4413_v40 = vld [vmem:[%s4514_s21 + $0x450] sm:$0xff]   ;;  %2860 = vperm.xlu0 %4217, %v2818_v49   ;;  %v4434_v20 = vld [vmem:[%s5648_s1 + $0xcc] ss:$20 sps:$4 sm:$0xff]  }
 0x126   : > { %2554 = vmatmul.mubr.bf16.gmra.mrb[120].mxu1 %v4429_v56  ;;  %4044 = vmatpush3.bf16.msra.mxu0 %v4409_v37  ;;  %v4433_v19 = vld [vmem:[%s5648_s1 + $0xa0] ss:$20 sps:$4 sm:$0xff]  }
 0x127   : > { %4045 = vmatprep.subr.bf16.mxu0 %v4410_v21  ;;  %4179 = vmatprep.mubr.msk.bf16.mxu0 %vm708_vm0, %v4812_v47  ;;  %v5086_v61 = vadd.f32 %v3654_v22, %v3590_v42 }
 0x128   : > { %v3591_v24 = vpop.f32.mrb[16].mxu0  ;;  %2561 = vmatprep.mubr.bf16.mxu1 %v4430_v51  ;;  %2875 = vperm.xlu1 %4218, %v2821_v58  }
 0x129   : > { %v3655_v62 = vpop.f32.mrb[16].mxu1  ;;  %v3592_v4 = vpop.f32.mrb[17].mxu0  ;;  %2870 = vperm.xlu0 %4217, %v2820_v38  }
 0x12a   : > { %v3593_v11 = vadd.f32 %v3592_v4, %v3591_v24  ;;  %v3656_v47 = vpop.f32.mrb[17].mxu1  ;;  %v3594_v44 = vpop.f32.mrb[18].mxu0  ;;  %4046 = vmatpush3.bf16.msra.mxu0 %v4412_v23  ;;  %v4436_v4 = vld [vmem:[%s5648_s1 + $0xf4] ss:$20 sps:$4 sm:$0xff]  }
 0x12b   : > { %v3657_v3 = vadd.f32 %v3656_v47, %v3655_v62  ;;  %v3658_v0 = vpop.f32.mrb[18].mxu1  ;;  %v3595_v31 = vpop.f32.mrb[19].mxu0  ;;  %4047 = vmatprep.subr.bf16.mxu0 %v4413_v40  ;;  %v4435_v62 = vld [vmem:[%s5648_s1 + $0xc8] ss:$20 sps:$4 sm:$0xff]  }
 0x12c   : > { %v3596_v35 = vadd.f32 %v3595_v31, %v3594_v44  ;;  %v3659_v32 = vpop.f32.mrb[19].mxu1  ;;  %2885 = vperm.xlu1 %4218, %v2823_v25  }
 0x12d   : > { %v3660_v36 = vadd.f32 %v3659_v32, %v3658_v0  ;;  %4180 = vmatmul.mubr.msk.bf16.gmra.mrb[124].mxu0 %vm708_vm0, %v4825_v50  ;;  %v5101_v28 = vadd.f32 %v3657_v3, %v3593_v11  ;;  %v4432_v50 = vld [vmem:[%s5648_s1 + $0xa4] ss:$20 sps:$4 sm:$0xff]   ;;  %2880 = vperm.xlu0 %4217, %v2822_v5  }
 0x12e   : > { %2562 = vmatmul.mubr.bf16.gmra.mrb[124].mxu1 %v4431_v39  ;;  %4048 = vmatpush3.bf16.msra.mxu0 %v4414_v16  ;;  %v4438_v5 = vld [vmem:[%s5648_s1 + $0xf0] ss:$20 sps:$4 sm:$0xff]  }
 0x12f   : > { %4049 = vmatprep.subr.bf16.mxu0 %v4415_v33  ;;  %2569 = vmatprep.mubr.bf16.mxu1 %v4432_v50  ;;  %v5116_v52 = vadd.f32 %v3660_v36, %v3596_v35  ;;  %v4439_v39 = vld [vmem:[%s5648_s1 + $0x84] ss:$20 sps:$4 sm:$0xff]  }
 0x130   : > { %v3597_v53 = vpop.f32.mrb[20].mxu0  ;;  %2634 = vmatprep.mubr.bf16.mxu0 %v4914_v57  ;;  %2895 = vperm.xlu1 %4218, %v2825_v43  }
 0x131   : > { %v3661_v54 = vpop.f32.mrb[20].mxu1  ;;  %v3598_v55 = vpop.f32.mrb[21].mxu0  ;;  %2890 = vperm.xlu0 %4217, %v2824_v60  }
 0x132   : > { %v3599_v63 = vadd.f32 %v3598_v55, %v3597_v53  ;;  %v3662_v2 = vpop.f32.mrb[21].mxu1  ;;  %v3600_v30 = vpop.f32.mrb[22].mxu0  ;;  %4050 = vmatpush3.bf16.msra.mxu0 %v4416_v41  ;;  %v4440_v41 = vld [vmem:[%s5648_s1 + $0x11c] ss:$20 sps:$4 sm:$0xff]  }
 0x133   : > { %v3663_v13 = vadd.f32 %v3662_v2, %v3661_v54  ;;  %v3664_v8 = vpop.f32.mrb[22].mxu1  ;;  %v3601_v9 = vpop.f32.mrb[23].mxu0 }
 0x134   : > { %v3602_v57 = vadd.f32 %v3601_v9, %v3600_v30  ;;  %v3665_v12 = vpop.f32.mrb[23].mxu1  ;;  %2905 = vperm.xlu1 %4218, %v2827_v7  }
 0x135   : > { %v3666_v14 = vadd.f32 %v3665_v12, %v3664_v8  ;;  %2635 = vmatmul.mubr.bf16.vlgmr.msra.gmra.mrb[128].mxu0 %v4930_v1  ;;  %v5126_v37 = vadd.f32 %v3663_v13, %v3599_v63  ;;  %2900 = vperm.xlu0 %4217, %v2826_v18   ;;  %v4443_v12 = vld [vmem:[%s5648_s1 + $0xac] ss:$20 sps:$4 sm:$0xff]  }
 0x136   : > { %2570 = vmatmul.mubr.bf16.gmra.mrb[128].mxu1 %v4433_v19  ;;  %2642 = vmatprep.mubr.bf16.mxu0 %v4944_v10 }
 0x137   : > { %2577 = vmatprep.mubr.bf16.mxu1 %v4434_v20  ;;  %v5138_v1 = vadd.f32 %v3666_v14, %v3602_v57 }
 0x138   : > { %v3603_v27 = vpop.f32.mrb[24].mxu0 }
 0x139   : > { %v3667_v21 = vpop.f32.mrb[24].mxu1  ;;  %v3604_v42 = vpop.f32.mrb[25].mxu0 }
 0x13a   : > { %v3605_v46 = vadd.f32 %v3604_v42, %v3603_v27  ;;  %v3668_v22 = vpop.f32.mrb[25].mxu1  ;;  %v3606_v49 = vpop.f32.mrb[26].mxu0 }
 0x13b   : > { %v3669_v56 = vadd.f32 %v3668_v22, %v3667_v21  ;;  %v3670_v23 = vpop.f32.mrb[26].mxu1  ;;  %v3607_v58 = vpop.f32.mrb[27].mxu0 }
 0x13c   : > { %v3608_v40 = vadd.f32 %v3607_v58, %v3606_v49  ;;  %v3671_v24 = vpop.f32.mrb[27].mxu1 }
 0x13d   : > { %v3672_v10 = vadd.f32 %v3671_v24, %v3670_v23  ;;  %2643 = vmatmul.mubr.bf16.gmra.mrb[132].mxu0 %v4960_v26  ;;  %v5141_v51 = vadd.f32 %v3669_v56, %v3605_v46 }
 0x13e   : > { %2578 = vmatmul.mubr.bf16.gmra.mrb[132].mxu1 %v4435_v62  ;;  %2650 = vmatprep.mubr.bf16.mxu0 %v4972_v29  ;;  %v4437_v29 = vld [vmem:[%s5648_s1 + $0x58] ss:$20 sps:$4 sm:$0xff]  }
 0x13f   : > { %2585 = vmatprep.mubr.bf16.mxu1 %v4436_v4  ;;  %v5150_v38 = vadd.f32 %v3672_v10, %v3608_v40  ;;  %v4447_v40 = vld [vmem:[%s5648_s1 + $0xd4] ss:$20 sps:$4 sm:$0xff]  }
 0x140   : > { %v3609_v11 = vpop.f32.mrb[28].mxu0 }
 0x141   : > { %v3673_v47 = vpop.f32.mrb[28].mxu1  ;;  %v3610_v44 = vpop.f32.mrb[29].mxu0 }
 0x142   : > { %v3611_v26 = vadd.f32 %v3610_v44, %v3609_v11  ;;  %v3674_v16 = vpop.f32.mrb[29].mxu1  ;;  %v3612_v25 = vpop.f32.mrb[30].mxu0 }
 0x143   : > { %v3675_v3 = vadd.f32 %v3674_v16, %v3673_v47  ;;  %v3676_v0 = vpop.f32.mrb[30].mxu1  ;;  %v3613_v31 = vpop.f32.mrb[31].mxu0 }
 0x144   : > { %v3614_v33 = vadd.f32 %v3613_v31, %v3612_v25  ;;  %v3677_v35 = vpop.f32.mrb[31].mxu1 }
 0x145   : > { %v3678_v32 = vadd.f32 %v3677_v35, %v3676_v0  ;;  %2651 = vmatmul.mubr.bf16.gmra.mrb[136].mxu0 %v4437_v29  ;;  %v5155_v36 = vadd.f32 %v3675_v3, %v3611_v26 }
 0x146   : > { %2586 = vmatmul.mubr.bf16.gmra.mrb[136].mxu1 %v4438_v5  ;;  %2658 = vmatprep.mubr.bf16.mxu0 %v4439_v39 }
 0x147   : > { %2593 = vmatprep.mubr.bf16.mxu1 %v4440_v41  ;;  %v5166_v43 = vadd.f32 %v3678_v32, %v3614_v33  ;;  %v4451_v33 = vld [vmem:[%s5648_s1 + $0xfc] ss:$20 sps:$4 sm:$0xff]  }
 0x148   : > { %v4121_v50 = vpop.f32.mrb[32].mxu0 }
 0x149   : > { %v5169_v53 = vadd.f32 %v4121_v50, %v5023_v34  ;;  %v961_v54 = vpop.f32.mrb[33].mxu0  ;;  %v3707_v55 = vpop.f32.mrb[32].mxu1 }
 0x14a   : > { %v5172_v60 = vadd.f32 %v961_v54, %v5007_v15  ;;  %v4122_v63 = vpop.f32.mrb[34].mxu0  ;;  %v3708_v2 = vpop.f32.mrb[33].mxu1  ;;  %v4441_v15 = vld [vmem:[%s5648_s1 + $0x80] ss:$20 sps:$4 sm:$0xff]  }
 0x14b   : > { %v5175_v30 = vadd.f32 %v4122_v63, %v5031_v48  ;;  %v964_v7 = vpop.f32.mrb[35].mxu0  ;;  %v5177_v13 = vadd.f32 %v3708_v2, %v3707_v55  ;;  %v3710_v8 = vpop.f32.mrb[34].mxu1  ;;  %v4442_v48 = vld [vmem:[%s5648_s1 + $0x118] ss:$20 sps:$4 sm:$0xff]  }
 0x14c   : > { %v5180_v9 = vadd.f32 %v964_v7, %v5013_v17  ;;  %v3711_v57 = vpop.f32.mrb[35].mxu1  ;;  %v4444_v17 = vld [vmem:[%s5648_s1 + $0x10] ss:$20 sps:$4 sm:$0xff]  }
 0x14d   : > { %v5182_v34 = vadd.f32 %v3711_v57, %v3710_v8  ;;  %2659 = vmatmul.mubr.bf16.gmra.mrb[140].mxu0 %v4441_v15  ;;  %v4455_v57 = vld [vmem:[%s5648_s1 + $0x124] ss:$20 sps:$4 sm:$0xff]  }
 0x14e   : > { %2594 = vmatmul.mubr.bf16.gmra.mrb[140].mxu1 %v4442_v48  ;;  %2666 = vmatprep.mubr.bf16.mxu0 %v4443_v12 }
 0x14f   : > { %4191 = vmatprep.mubr.msk.bf16.mxu1 %vm708_vm0, %v4444_v17 }
 0x150   : > { %v4125_v14 = vpop.f32.mrb[36].mxu0 }
 0x151   : > { %v5198_v18 = vadd.f32 %v4125_v14, %v5071_v45  ;;  %v977_v19 = vpop.f32.mrb[37].mxu0  ;;  %v3713_v20 = vpop.f32.mrb[36].mxu1 }
 0x152   : > { %v5201_v27 = vadd.f32 %v977_v19, %v5048_v59  ;;  %v4126_v21 = vpop.f32.mrb[38].mxu0  ;;  %v3714_v42 = vpop.f32.mrb[37].mxu1  ;;  %v4445_v59 = vld [vmem:[%s5648_s1 + $0xa8] ss:$20 sps:$4 sm:$0xff]  }
 0x153   : > { %v5204_v46 = vadd.f32 %v4126_v21, %v5086_v61  ;;  %v980_v22 = vpop.f32.mrb[39].mxu0  ;;  %v5206_v49 = vadd.f32 %v3714_v42, %v3713_v20  ;;  %v3716_v56 = vpop.f32.mrb[38].mxu1  ;;  %v4446_v61 = vld [vmem:[%s5648_s1 + $0x38] ss:$20 sps:$4 sm:$0xff]  }
 0x154   : > { %v5209_v23 = vadd.f32 %v980_v22, %v5058_v6  ;;  %v3717_v58 = vpop.f32.mrb[39].mxu1  ;;  %v4448_v6 = vld [vmem:[%s5648_s1 + $0x60] ss:$20 sps:$4 sm:$0xff]  }
 0x155   : > { %v5211_v45 = vadd.f32 %v3717_v58, %v3716_v56  ;;  %2667 = vmatmul.mubr.bf16.gmra.mrb[144].mxu0 %v4445_v59 }
 0x156   : > { %4192 = vmatmul.mubr.msk.bf16.vlgmr.msra.gmra.mrb[144].mxu1 %vm708_vm0, %v4446_v61  ;;  %2674 = vmatprep.mubr.bf16.mxu0 %v4447_v40  ;;  %v4457_v61 = vld [vmem:[%s5648_s1 + $0x120] ss:$20 sps:$4 sm:$0xff]   ;;  %v4458_v40 = vld [vmem:[%s5648_s1 + $0x128] ss:$20 sps:$4 sm:$0xff]  }
 0x157   : > { %4195 = vmatprep.mubr.msk.bf16.mxu1 %vm708_vm0, %v4448_v6 }
 0x158   : > { %v4129_v24 = vpop.f32.mrb[40].mxu0 }
 0x159   : > { %v5228_v10 = vadd.f32 %v4129_v24, %v5126_v37  ;;  %v993_v62 = vpop.f32.mrb[41].mxu0  ;;  %v3719_v4 = vpop.f32.mrb[40].mxu1 }
 0x15a   : > { %v5231_v11 = vadd.f32 %v993_v62, %v5101_v28  ;;  %v4130_v47 = vpop.f32.mrb[42].mxu0  ;;  %v3720_v44 = vpop.f32.mrb[41].mxu1  ;;  %v4449_v28 = vld [vmem:[%s5648_s1 + $0xd0] ss:$20 sps:$4 sm:$0xff]  }
 0x15b   : > { %v5234_v26 = vadd.f32 %v4130_v47, %v5138_v1  ;;  %v996_v16 = vpop.f32.mrb[43].mxu0  ;;  %v5236_v25 = vadd.f32 %v3720_v44, %v3719_v4  ;;  %v3722_v3 = vpop.f32.mrb[42].mxu1  ;;  %v4450_v1 = vld [vmem:[%s5648_s1 + $0x88] ss:$20 sps:$4 sm:$0xff]  }
 0x15c   : > { %v5239_v0 = vadd.f32 %v996_v16, %v5116_v52  ;;  %v3723_v31 = vpop.f32.mrb[43].mxu1  ;;  %v4452_v52 = vld [vmem:[%s5648_s1 + $0xb0] ss:$20 sps:$4 sm:$0xff]  }
 0x15d   : > { %v5241_v37 = vadd.f32 %v3723_v31, %v3722_v3  ;;  %2675 = vmatmul.mubr.bf16.gmra.mrb[148].mxu0 %v4449_v28 }
 0x15e   : > { %4196 = vmatmul.mubr.msk.bf16.gmra.mrb[148].mxu1 %vm708_vm0, %v4450_v1  ;;  %2682 = vmatprep.mubr.bf16.mxu0 %v4451_v33 }
 0x15f   : > { %4199 = vmatprep.mubr.msk.bf16.mxu1 %vm708_vm0, %v4452_v52 }
 0x160   : > { %v4133_v35 = vpop.f32.mrb[44].mxu0 }
 0x161   : > { %v5258_v32 = vadd.f32 %v4133_v35, %v5155_v36  ;;  %v1009_v29 = vpop.f32.mrb[45].mxu0  ;;  %v3725_v5 = vpop.f32.mrb[44].mxu1 }
 0x162   : > { %v5261_v39 = vadd.f32 %v1009_v29, %v5141_v51  ;;  %v4134_v41 = vpop.f32.mrb[46].mxu0  ;;  %v3726_v50 = vpop.f32.mrb[45].mxu1  ;;  %v4453_v51 = vld [vmem:[%s5648_s1 + $0xf8] ss:$20 sps:$4 sm:$0xff]  }
 0x163   : > { %v5264_v54 = vadd.f32 %v4134_v41, %v5166_v43  ;;  %v1012_v55 = vpop.f32.mrb[47].mxu0  ;;  %v5266_v63 = vadd.f32 %v3726_v50, %v3725_v5  ;;  %v3728_v2 = vpop.f32.mrb[46].mxu1  ;;  %v4454_v43 = vld [vmem:[%s5648_s1 + $0xd8] ss:$20 sps:$4 sm:$0xff]  }
 0x164   : > { %v5269_v7 = vadd.f32 %v1012_v55, %v5150_v38  ;;  %v3729_v8 = vpop.f32.mrb[47].mxu1  ;;  %v4456_v38 = vld [vmem:[%s5648_s1 + $0x100] ss:$20 sps:$4 sm:$0xff]  }
 0x165   : > { %v5271_v36 = vadd.f32 %v3729_v8, %v3728_v2  ;;  %2683 = vmatmul.mubr.bf16.gmra.mrb[152].mxu0 %v4453_v51 }
 0x166   : > { %5654 = vst [vmem:[#allocation2_spill] sm:$0xff] %v5269_v7  ;;  %4200 = vmatmul.mubr.msk.bf16.gmra.mrb[152].mxu1 %vm708_vm0, %v4454_v43  ;;  %2690 = vmatprep.mubr.bf16.mxu0 %v4455_v57 }
 0x167   : > { %4203 = vmatprep.mubr.msk.bf16.mxu1 %vm708_vm0, %v4456_v38 }
 0x168   : > { %v3771_v15 = vpop.f32.mrb[48].mxu0 }
 0x169   : > { %v3772_v48 = vpop.f32.mrb[49].mxu0  ;;  %v3731_v12 = vpop.f32.mrb[48].mxu1 }
 0x16a   : > { %v3773_v17 = vadd.f32 %v3772_v48, %v3771_v15  ;;  %v3774_v14 = vpop.f32.mrb[50].mxu0  ;;  %v3732_v19 = vpop.f32.mrb[49].mxu1 }
 0x16b   : > { %v5287_v20 = vadd.f32 %v3732_v19, %v3731_v12  ;;  %v3775_v21 = vpop.f32.mrb[51].mxu0  ;;  %v3734_v42 = vpop.f32.mrb[50].mxu1 }
 0x16c   : > { %v3776_v22 = vadd.f32 %v3775_v21, %v3774_v14  ;;  %v3735_v56 = vpop.f32.mrb[51].mxu1  ;;  %v1445_v58 = vadd.f32 %v3773_v17, %v5177_v13 }
 0x16d   : > { %v5290_v59 = vadd.f32 %v3735_v56, %v3734_v42  ;;  %2691 = vmatmul.mubr.bf16.gmra.mrb[156].mxu0 %v4457_v61 }
 0x16e   : > { %4204 = vmatmul.mubr.msk.bf16.gmra.mrb[156].mxu1 %vm708_vm0, %v4458_v40  ;;  %v1448_v6 = vadd.f32 %v3776_v22, %v5182_v34 }
 0x170   : > { %v3777_v24 = vpop.f32.mrb[52].mxu0 }
 0x171   : > { %v3778_v62 = vpop.f32.mrb[53].mxu0  ;;  %v3737_v4 = vpop.f32.mrb[52].mxu1 }
 0x172   : > { %v3779_v47 = vadd.f32 %v3778_v62, %v3777_v24  ;;  %v3780_v13 = vpop.f32.mrb[54].mxu0  ;;  %v3738_v44 = vpop.f32.mrb[53].mxu1 }
 0x173   : > { %v5300_v16 = vadd.f32 %v3738_v44, %v3737_v4  ;;  %v3781_v3 = vpop.f32.mrb[55].mxu0  ;;  %v3740_v31 = vpop.f32.mrb[54].mxu1 }
 0x174   : > { %v3782_v28 = vadd.f32 %v3781_v3, %v3780_v13  ;;  %v3741_v1 = vpop.f32.mrb[55].mxu1  ;;  %v1453_v33 = vadd.f32 %v3779_v47, %v5206_v49 }
 0x175   : > { %v5303_v52 = vadd.f32 %v3741_v1, %v3740_v31 }
 0x176   : > { %v1456_v35 = vadd.f32 %v3782_v28, %v5211_v45 }
 0x178   : > { %v3783_v29 = vpop.f32.mrb[56].mxu0 }
 0x179   : > { %v3784_v34 = vpop.f32.mrb[57].mxu0  ;;  %v3743_v5 = vpop.f32.mrb[56].mxu1 }
 0x17a   : > { %v3785_v41 = vadd.f32 %v3784_v34, %v3783_v29  ;;  %v3786_v50 = vpop.f32.mrb[58].mxu0  ;;  %v3744_v55 = vpop.f32.mrb[57].mxu1 }
 0x17b   : > { %v5306_v2 = vadd.f32 %v3744_v55, %v3743_v5  ;;  %v3787_v8 = vpop.f32.mrb[59].mxu0  ;;  %v3746_v51 = vpop.f32.mrb[58].mxu1 }
 0x17c   : > { %v3788_v43 = vadd.f32 %v3787_v8, %v3786_v50  ;;  %v3747_v57 = vpop.f32.mrb[59].mxu1  ;;  %v1461_v38 = vadd.f32 %v3785_v41, %v5236_v25 }
 0x17d   : > { %v5309_v15 = vadd.f32 %v3747_v57, %v3746_v51 }
 0x17e   : > { %v1464_v49 = vadd.f32 %v3788_v43, %v5241_v37 }
 0x180   : > { %v3789_v48 = vpop.f32.mrb[60].mxu0 }
 0x181   : > { %v3790_v45 = vpop.f32.mrb[61].mxu0  ;;  %v3749_v12 = vpop.f32.mrb[60].mxu1 }
 0x182   : > { %v3791_v17 = vadd.f32 %v3790_v45, %v3789_v48  ;;  %v3792_v14 = vpop.f32.mrb[62].mxu0  ;;  %v3750_v19 = vpop.f32.mrb[61].mxu1 }
 0x183   : > { %v5312_v21 = vadd.f32 %v3750_v19, %v3749_v12  ;;  %v3793_v42 = vpop.f32.mrb[63].mxu0  ;;  %v3752_v22 = vpop.f32.mrb[62].mxu1 }
 0x184   : > { %v3794_v56 = vadd.f32 %v3793_v42, %v3792_v14  ;;  %v3753_v61 = vpop.f32.mrb[63].mxu1  ;;  %v1469_v40 = vadd.f32 %v3791_v17, %v5266_v63 }
 0x185   : > { %v5315_v24 = vadd.f32 %v3753_v61, %v3752_v22 }
 0x186   : > { %v1472_v25 = vadd.f32 %v3794_v56, %v5271_v36 }
 0x188   : > { %v3795_v62 = vpop.f32.mrb[64].mxu0 }
 0x189   : > { %v4145_v37 = vpop.f32.mrb[64].mxu1  ;;  %v3796_v4 = vpop.f32.mrb[65].mxu0 }
 0x18a   : > { %v5318_v47 = vadd.f32 %v4145_v37, %v1453_v33  ;;  %v3797_v13 = vadd.f32 %v3796_v4, %v3795_v62  ;;  %v1541_v44 = vpop.f32.mrb[65].mxu1  ;;  %v3798_v3 = vpop.f32.mrb[66].mxu0 }
 0x18b   : > { %v5320_v31 = vadd.f32 %v1541_v44, %v1445_v58  ;;  %v4146_v28 = vpop.f32.mrb[66].mxu1  ;;  %v3799_v1 = vpop.f32.mrb[67].mxu0 }
 0x18c   : > { %v5324_v63 = vadd.f32 %v4146_v28, %v1456_v35  ;;  %v3800_v34 = vadd.f32 %v3799_v1, %v3798_v3  ;;  %v1544_v5 = vpop.f32.mrb[67].mxu1  ;;  %v1477_v36 = vadd.f32 %v3797_v13, %v5287_v20 }
 0x18d   : > { %v5329_v41 = vadd.f32 %v1544_v5, %v1448_v6 }
 0x18e   : > { %v1480_v50 = vadd.f32 %v3800_v34, %v5290_v59 }
 0x190   : > { %v3801_v8 = vpop.f32.mrb[68].mxu0 }
 0x191   : > { %v4149_v35 = vpop.f32.mrb[68].mxu1  ;;  %v3802_v51 = vpop.f32.mrb[69].mxu0 }
 0x192   : > { %v5336_v43 = vadd.f32 %v4149_v35, %v1469_v40  ;;  %v3803_v57 = vadd.f32 %v3802_v51, %v3801_v8  ;;  %v1557_v20 = vpop.f32.mrb[69].mxu1  ;;  %v3804_v48 = vpop.f32.mrb[70].mxu0 }
 0x193   : > { %v5338_v45 = vadd.f32 %v1557_v20, %v1461_v38  ;;  %v4150_v6 = vpop.f32.mrb[70].mxu1  ;;  %v3805_v12 = vpop.f32.mrb[71].mxu0 }
 0x194   : > { %v5342_v14 = vadd.f32 %v4150_v6, %v1472_v25  ;;  %v3806_v59 = vadd.f32 %v3805_v12, %v3804_v48  ;;  %v1560_v19 = vpop.f32.mrb[71].mxu1  ;;  %v1485_v42 = vadd.f32 %v3803_v57, %v5300_v16 }
 0x195   : > { %v5347_v56 = vadd.f32 %v1560_v19, %v1464_v49 }
 0x196   : > { %v1488_v61 = vadd.f32 %v3806_v59, %v5303_v52 }
 0x198   : > { %v3807_v62 = vpop.f32.mrb[72].mxu0 }
 0x199   : > { %v4153_v25 = vpop.f32.mrb[72].mxu1  ;;  %v3808_v37 = vpop.f32.mrb[73].mxu0 }
 0x19a   : > { %v5354_v4 = vadd.f32 %v4153_v25, %v1485_v42  ;;  %v3809_v13 = vadd.f32 %v3808_v37, %v3807_v62  ;;  %v1573_v16 = vpop.f32.mrb[73].mxu1  ;;  %v3810_v44 = vpop.f32.mrb[74].mxu0 }
 0x19b   : > { %v5356_v3 = vadd.f32 %v1573_v16, %v1477_v36  ;;  %v4154_v49 = vpop.f32.mrb[74].mxu1  ;;  %v3811_v28 = vpop.f32.mrb[75].mxu0 }
 0x19c   : > { %v5360_v34 = vadd.f32 %v4154_v49, %v1488_v61  ;;  %v3812_v52 = vadd.f32 %v3811_v28, %v3810_v44  ;;  %v1576_v5 = vpop.f32.mrb[75].mxu1  ;;  %v1493_v8 = vadd.f32 %v3809_v13, %v5306_v2 }
 0x19d   : > { %v5365_v51 = vadd.f32 %v1576_v5, %v1480_v50 }
 0x19e   : > { %v1496_v57 = vadd.f32 %v3812_v52, %v5309_v15 }
 0x1a0   : > { %v3813_v48 = vpop.f32.mrb[76].mxu0 }
 0x1a1   : > { %v4157_v6 = vpop.f32.mrb[76].mxu1  ;;  %v3814_v12 = vpop.f32.mrb[77].mxu0 }
 0x1a2   : > { %v3815_v59 = vadd.f32 %v3814_v12, %v3813_v48  ;;  %v1589_v19 = vpop.f32.mrb[77].mxu1  ;;  %v3816_v42 = vpop.f32.mrb[78].mxu0 }
 0x1a3   : > { %v5372_v2 = vadd.f32 %v1589_v19, %v1493_v8  ;;  %v4158_v61 = vpop.f32.mrb[78].mxu1  ;;  %v3817_v62 = vpop.f32.mrb[79].mxu0 }
 0x1a4   : > { %v1501_v50 = vadd.f32 %v3815_v59, %v5312_v21  ;;  %v3818_v25 = vadd.f32 %v3817_v62, %v3816_v42  ;;  %v1592_v37 = vpop.f32.mrb[79].mxu1 }
 0x1a5   : > { %v5377_v13 = vadd.f32 %v1592_v37, %v1496_v57 }
 0x1a6   : > { %v5379_v16 = vadd.f32 %v4157_v6, %v1501_v50  ;;  %v1504_v44 = vadd.f32 %v3818_v25, %v5315_v24 }
 0x1a7   : > { %5655 = vst [vmem:[#allocation3_spill] sm:$0xff] %v5377_v13 }
 0x1a8   : > { %v5384_v28 = vadd.f32 %v4158_v61, %v1504_v44  ;;  %v3847_v52 = vpop.f32.mrb[80].mxu0 }
 0x1a9   : > { %v3911_v5 = vpop.f32.mrb[80].mxu1  ;;  %v3848_v8 = vpop.f32.mrb[81].mxu0 }
 0x1aa   : > { %5656 = vst [vmem:[#allocation4_spill] sm:$0xff] %v5384_v28  ;;  %v3849_v48 = vadd.f32 %v3848_v8, %v3847_v52  ;;  %v3912_v12 = vpop.f32.mrb[81].mxu1  ;;  %v3850_v59 = vpop.f32.mrb[82].mxu0 }
 0x1ab   : > { %v3913_v6 = vadd.f32 %v3912_v12, %v3911_v5  ;;  %v3914_v19 = vpop.f32.mrb[82].mxu1  ;;  %v3851_v24 = vpop.f32.mrb[83].mxu0 }
 0x1ac   : > { %v3852_v42 = vadd.f32 %v3851_v24, %v3850_v59  ;;  %v3915_v62 = vpop.f32.mrb[83].mxu1 }
 0x1ad   : > { %v3916_v50 = vadd.f32 %v3915_v62, %v3914_v19  ;;  %v5390_v61 = vadd.f32 %v3913_v6, %v3849_v48 }
 0x1af   : > { %v5392_v25 = vadd.f32 %v3916_v50, %v3852_v42 }
 0x1b0   : > { %v3853_v37 = vpop.f32.mrb[84].mxu0 }
 0x1b1   : > { %v3917_v44 = vpop.f32.mrb[84].mxu1  ;;  %v3854_v49 = vpop.f32.mrb[85].mxu0 }
 0x1b2   : > { %v3855_v15 = vadd.f32 %v3854_v49, %v3853_v37  ;;  %v3918_v52 = vpop.f32.mrb[85].mxu1  ;;  %v3856_v8 = vpop.f32.mrb[86].mxu0 }
 0x1b3   : > { %v3919_v21 = vadd.f32 %v3918_v52, %v3917_v44  ;;  %v3920_v20 = vpop.f32.mrb[86].mxu1  ;;  %v3857_v36 = vpop.f32.mrb[87].mxu0 }
 0x1b4   : > { %v3858_v57 = vadd.f32 %v3857_v36, %v3856_v8  ;;  %v3921_v5 = vpop.f32.mrb[87].mxu1 }
 0x1b5   : > { %v3922_v12 = vadd.f32 %v3921_v5, %v3920_v20  ;;  %v5394_v35 = vadd.f32 %v3919_v21, %v3855_v15 }
 0x1b7   : > { %v5396_v59 = vadd.f32 %v3922_v12, %v3858_v57 }
 0x1b8   : > { %v3859_v48 = vpop.f32.mrb[88].mxu0 }
 0x1b9   : > { %v3923_v6 = vpop.f32.mrb[88].mxu1  ;;  %v3860_v19 = vpop.f32.mrb[89].mxu0 }
 0x1ba   : > { %v3861_v24 = vadd.f32 %v3860_v19, %v3859_v48  ;;  %v3924_v42 = vpop.f32.mrb[89].mxu1  ;;  %v3862_v62 = vpop.f32.mrb[90].mxu0 }
 0x1bb   : > { %v3925_v50 = vadd.f32 %v3924_v42, %v3923_v6  ;;  %v3926_v49 = vpop.f32.mrb[90].mxu1  ;;  %v3863_v37 = vpop.f32.mrb[91].mxu0 }
 0x1bc   : > { %v3864_v1 = vadd.f32 %v3863_v37, %v3862_v62  ;;  %v3927_v44 = vpop.f32.mrb[91].mxu1 }
 0x1bd   : > { %v3928_v52 = vadd.f32 %v3927_v44, %v3926_v49  ;;  %v5398_v40 = vadd.f32 %v3925_v50, %v3861_v24 }
 0x1bf   : > { %v5400_v36 = vadd.f32 %v3928_v52, %v3864_v1 }
 0x1c0   : > { %v3865_v20 = vpop.f32.mrb[92].mxu0 }
 0x1c1   : > { %v3929_v15 = vpop.f32.mrb[92].mxu1  ;;  %v3866_v21 = vpop.f32.mrb[93].mxu0 }
 0x1c2   : > { %v3867_v57 = vadd.f32 %v3866_v21, %v3865_v20  ;;  %v3930_v8 = vpop.f32.mrb[93].mxu1  ;;  %v3868_v5 = vpop.f32.mrb[94].mxu0 }
 0x1c3   : > { %v3931_v12 = vadd.f32 %v3930_v8, %v3929_v15  ;;  %v3932_v48 = vpop.f32.mrb[94].mxu1  ;;  %v3869_v19 = vpop.f32.mrb[95].mxu0 }
 0x1c4   : > { %v3870_v38 = vadd.f32 %v3869_v19, %v3868_v5  ;;  %v3933_v6 = vpop.f32.mrb[95].mxu1 }
 0x1c5   : > { %v3934_v42 = vadd.f32 %v3933_v6, %v3932_v48  ;;  %v5402_v22 = vadd.f32 %v3931_v12, %v3867_v57 }
 0x1c7   : > { %v5404_v62 = vadd.f32 %v3934_v42, %v3870_v38 }
 0x1c8   : > { %v3871_v24 = vpop.f32.mrb[96].mxu0 }
 0x1c9   : > { %v3935_v50 = vpop.f32.mrb[96].mxu1  ;;  %v3872_v1 = vpop.f32.mrb[97].mxu0 }
 0x1ca   : > { %v3873_v49 = vadd.f32 %v3872_v1, %v3871_v24  ;;  %v3936_v37 = vpop.f32.mrb[97].mxu1  ;;  %v3874_v44 = vpop.f32.mrb[98].mxu0 }
 0x1cb   : > { %v3937_v52 = vadd.f32 %v3936_v37, %v3935_v50  ;;  %v3938_v20 = vpop.f32.mrb[98].mxu1  ;;  %v3875_v21 = vpop.f32.mrb[99].mxu0 }
 0x1cc   : > { %v3876_v17 = vadd.f32 %v3875_v21, %v3874_v44  ;;  %v3939_v15 = vpop.f32.mrb[99].mxu1 }
 0x1cd   : > { %v3940_v8 = vadd.f32 %v3939_v15, %v3938_v20  ;;  %v5406_v55 = vadd.f32 %v3937_v52, %v3873_v49 }
 0x1cf   : > { %v5408_v5 = vadd.f32 %v3940_v8, %v3876_v17 }
 0x1d0   : > { %v3877_v57 = vpop.f32.mrb[100].mxu0 }
 0x1d1   : > { %v3941_v12 = vpop.f32.mrb[100].mxu1  ;;  %v3878_v38 = vpop.f32.mrb[101].mxu0 }
 0x1d2   : > { %v3879_v48 = vadd.f32 %v3878_v38, %v3877_v57  ;;  %v3942_v19 = vpop.f32.mrb[101].mxu1  ;;  %v3880_v6 = vpop.f32.mrb[102].mxu0 }
 0x1d3   : > { %v3943_v42 = vadd.f32 %v3942_v19, %v3941_v12  ;;  %v3944_v24 = vpop.f32.mrb[102].mxu1  ;;  %v3881_v1 = vpop.f32.mrb[103].mxu0 }
 0x1d4   : > { %v3882_v58 = vadd.f32 %v3881_v1, %v3880_v6  ;;  %v3945_v50 = vpop.f32.mrb[103].mxu1 }
 0x1d5   : > { %v3946_v37 = vadd.f32 %v3945_v50, %v3944_v24  ;;  %v5410_v33 = vadd.f32 %v3943_v42, %v3879_v48 }
 0x1d7   : > { %v5412_v44 = vadd.f32 %v3946_v37, %v3882_v58 }
 0x1d8   : > { %v3883_v49 = vpop.f32.mrb[104].mxu0 }
 0x1d9   : > { %v3947_v52 = vpop.f32.mrb[104].mxu1  ;;  %v3884_v17 = vpop.f32.mrb[105].mxu0 }
 0x1da   : > { %v3885_v20 = vadd.f32 %v3884_v17, %v3883_v49  ;;  %v3948_v21 = vpop.f32.mrb[105].mxu1  ;;  %v3886_v15 = vpop.f32.mrb[106].mxu0 }
 0x1db   : > { %v3949_v8 = vadd.f32 %v3948_v21, %v3947_v52  ;;  %v3950_v57 = vpop.f32.mrb[106].mxu1  ;;  %v3887_v38 = vpop.f32.mrb[107].mxu0 }
 0x1dc   : > { %v3888_v29 = vadd.f32 %v3887_v38, %v3886_v15  ;;  %v3951_v12 = vpop.f32.mrb[107].mxu1 }
 0x1dd   : > { %v3952_v19 = vadd.f32 %v3951_v12, %v3950_v57  ;;  %v5414_v13 = vadd.f32 %v3949_v8, %v3885_v20 }
 0x1df   : > { %v5416_v6 = vadd.f32 %v3952_v19, %v3888_v29 }
 0x1e0   : > { %v3889_v48 = vpop.f32.mrb[108].mxu0 }
 0x1e1   : > { %v3953_v42 = vpop.f32.mrb[108].mxu1  ;;  %v3890_v58 = vpop.f32.mrb[109].mxu0 }
 0x1e2   : > { %v3891_v24 = vadd.f32 %v3890_v58, %v3889_v48  ;;  %v3954_v1 = vpop.f32.mrb[109].mxu1  ;;  %v3892_v50 = vpop.f32.mrb[110].mxu0  ;;  %v5657_v48 = vmax.f32 %v5169_v53, %v5318_v47 }
 0x1e3   : > { %v3955_v37 = vadd.f32 %v3954_v1, %v3953_v42  ;;  %v3956_v49 = vpop.f32.mrb[110].mxu1  ;;  %v3893_v17 = vpop.f32.mrb[111].mxu0 }
 0x1e4   : > { %v3894_v7 = vadd.f32 %v3893_v17, %v3892_v50  ;;  %v3957_v52 = vpop.f32.mrb[111].mxu1 }
 0x1e5   : > { %v3958_v21 = vadd.f32 %v3957_v52, %v3956_v49  ;;  %v2097_v28 = vadd.f32 %v3955_v37, %v3891_v24  ;;  %v5659_v49 = vmax.f32 %v5175_v30, %v5324_v63  ;;  %v5661_v30 = vmax.f32 %v5198_v18, %v5336_v43 }
 0x1e7   : > { %v5418_v15 = vadd.f32 %v3958_v21, %v3894_v7 }
 0x1e8   : > { %v4169_v57 = vpop.f32.mrb[112].mxu0 }
 0x1e9   : > { %v2146_v20 = vadd.f32 %v4169_v57, %v5394_v35  ;;  %v2137_v29 = vpop.f32.mrb[113].mxu0  ;;  %v3987_v8 = vpop.f32.mrb[112].mxu1  ;;  %v5658_v35 = vmax.f32 %v5172_v60, %v5320_v31 }
 0x1ea   : > { %v2138_v38 = vadd.f32 %v2137_v29, %v5390_v61  ;;  %v4170_v12 = vpop.f32.mrb[114].mxu0  ;;  %v3988_v19 = vpop.f32.mrb[113].mxu1 }
 0x1eb   : > { %v5425_v42 = vmax.f32 %v5657_v48, %v2146_v20  ;;  %v2149_v58 = vadd.f32 %v4170_v12, %v5396_v59  ;;  %v2140_v1 = vpop.f32.mrb[115].mxu0  ;;  %v5428_v24 = vadd.f32 %v3988_v19, %v3987_v8  ;;  %v3990_v7 = vpop.f32.mrb[114].mxu1  ;;  %v5660_v59 = vmax.f32 %v5180_v9, %v5329_v41 }
 0x1ec   : > { %v5433_v50 = vmax.f32 %v5658_v35, %v2138_v38  ;;  %v2141_v61 = vadd.f32 %v2140_v1, %v5392_v25  ;;  %v3991_v37 = vpop.f32.mrb[115].mxu1  ;;  %v5663_v19 = vmax.f32 %v5204_v46, %v5342_v14  ;;  %v5665_v46 = vmax.f32 %v5228_v10, %v5354_v4 }
 0x1ed   : > { %v5439_v53 = vmax.f32 %v5659_v49, %v2149_v58  ;;  %v5441_v47 = vadd.f32 %v3991_v37, %v3990_v7 }
 0x1ee   : > { %v5446_v17 = vmax.f32 %v5660_v59, %v2141_v61 }
 0x1f0   : > { %v4173_v52 = vpop.f32.mrb[116].mxu0 }
 0x1f1   : > { %v2162_v60 = vadd.f32 %v4173_v52, %v5402_v22  ;;  %v2153_v31 = vpop.f32.mrb[117].mxu0  ;;  %v3993_v21 = vpop.f32.mrb[116].mxu1  ;;  %v5662_v22 = vmax.f32 %v5201_v27, %v5338_v45  ;;  %v5667_v52 = vmax.f32 %v5234_v26, %v5360_v34  ;;  %v5669_v26 = vmax.f32 %v5258_v32, %v5379_v16 }
 0x1f2   : > { %v2154_v25 = vadd.f32 %v2153_v31, %v5398_v40  ;;  %v4174_v57 = vpop.f32.mrb[118].mxu0  ;;  %v3994_v20 = vpop.f32.mrb[117].mxu1 }
 0x1f3   : > { %v5453_v63 = vmax.f32 %v5661_v30, %v2162_v60  ;;  %v2165_v29 = vadd.f32 %v4174_v57, %v5404_v62  ;;  %v2156_v8 = vpop.f32.mrb[119].mxu0  ;;  %v5456_v9 = vadd.f32 %v3994_v20, %v3993_v21  ;;  %v3996_v41 = vpop.f32.mrb[118].mxu1  ;;  %v5664_v62 = vmax.f32 %v5209_v23, %v5347_v56 }
 0x1f4   : > { %v5461_v38 = vmax.f32 %v5662_v22, %v2154_v25  ;;  %v2157_v40 = vadd.f32 %v2156_v8, %v5400_v36  ;;  %v3997_v12 = vpop.f32.mrb[119].mxu1 }
 0x1f5   : > { %v5467_v18 = vmax.f32 %v5663_v19, %v2165_v29  ;;  %v5469_v43 = vadd.f32 %v3997_v12, %v3996_v41  ;;  %v5671_v41 = vld [vmem:[#allocation4_spill] sm:$0xff] }
 0x1f6   : > { %v5474_v48 = vmax.f32 %v5664_v62, %v2157_v40  ;;  %v5672_v22 = vmax.f32 %v5264_v54, %v5671_v41  ;;  %v5673_v40 = vld [vmem:[#allocation2_spill] sm:$0xff] }
 0x1f8   : > { %v4177_v58 = vpop.f32.mrb[120].mxu0 }
 0x1f9   : > { %v2178_v27 = vadd.f32 %v4177_v58, %v5410_v33  ;;  %v2169_v45 = vpop.f32.mrb[121].mxu0  ;;  %v3999_v1 = vpop.f32.mrb[120].mxu1  ;;  %v5666_v33 = vmax.f32 %v5231_v11, %v5356_v3 }
 0x1fa   : > { %v2170_v36 = vadd.f32 %v2169_v45, %v5406_v55  ;;  %v4178_v7 = vpop.f32.mrb[122].mxu0  ;;  %v4000_v35 = vpop.f32.mrb[121].mxu1 }
 0x1fb   : > { %v5481_v14 = vmax.f32 %v5665_v46, %v2178_v27  ;;  %v2181_v61 = vadd.f32 %v4178_v7, %v5412_v44  ;;  %v2172_v37 = vpop.f32.mrb[123].mxu0  ;;  %v5484_v23 = vadd.f32 %v4000_v35, %v3999_v1  ;;  %v4002_v56 = vpop.f32.mrb[122].mxu1  ;;  %v5668_v44 = vmax.f32 %v5239_v0, %v5365_v51 }
 0x1fc   : > { %v5489_v49 = vmax.f32 %v5666_v33, %v2170_v36  ;;  %v2173_v55 = vadd.f32 %v2172_v37, %v5408_v5  ;;  %v4003_v59 = vpop.f32.mrb[123].mxu1  ;;  %v5670_v51 = vmax.f32 %v5261_v39, %v5372_v2 }
 0x1fd   : > { %v5495_v10 = vmax.f32 %v5667_v52, %v2181_v61  ;;  %v5497_v4 = vadd.f32 %v4003_v59, %v4002_v56  ;;  %v5537_v56 = vpop.permute.xlu0 %2830 }
 0x1fe   : > { %v5502_v60 = vmax.f32 %v5668_v44, %v2173_v55 }
 0x200   : > { %v4181_v31 = vpop.f32.mrb[124].mxu0 }
 0x201   : > { %v2194_v21 = vadd.f32 %v4181_v31, %v2097_v28  ;;  %v2185_v11 = vpop.f32.mrb[125].mxu0  ;;  %v4005_v3 = vpop.f32.mrb[124].mxu1 }
 0x202   : > { %v2186_v25 = vadd.f32 %v2185_v11, %v5414_v13  ;;  %v4182_v5 = vpop.f32.mrb[126].mxu0  ;;  %v4006_v57 = vpop.f32.mrb[125].mxu1 }
 0x203   : > { %v5508_v34 = vmax.f32 %v5669_v26, %v2194_v21  ;;  %v2197_v20 = vadd.f32 %v4182_v5, %v5418_v15  ;;  %v2188_v30 = vpop.f32.mrb[127].mxu0  ;;  %v5511_v29 = vadd.f32 %v4006_v57, %v4005_v3  ;;  %v4008_v0 = vpop.f32.mrb[126].mxu1  ;;  %v5674_v15 = vld [vmem:[#allocation3_spill] sm:$0xff] }
 0x204   : > { %v5516_v28 = vmax.f32 %v5670_v51, %v2186_v25  ;;  %v2189_v13 = vadd.f32 %v2188_v30, %v5416_v6  ;;  %v4009_v8 = vpop.f32.mrb[127].mxu1  ;;  %v5675_v12 = vmax.f32 %v5673_v40, %v5674_v15  ;;  %v2841_v57 = vpop.permute.xlu1 %2840 }
 0x205   : > { %v5522_v32 = vmax.f32 %v5672_v22, %v2197_v20  ;;  %v4010_v16 = vadd.f32 %v4009_v8, %v4008_v0  ;;  %v5545_v26 = vpop.permute.xlu0 %2835 }
 0x206   : > { %v5527_v19 = vmax.f32 %v5675_v12, %v2189_v13 }
 0x208   : > { %v4051_v62 = vpop.f32.mrb[128].mxu0 }
 0x209   : > { %v4052_v58 = vpop.f32.mrb[129].mxu0  ;;  %v4011_v27 = vpop.f32.mrb[128].mxu1 }
 0x20a   : > { %v4053_v39 = vadd.f32 %v4052_v58, %v4051_v62  ;;  %v4054_v2 = vpop.f32.mrb[130].mxu0  ;;  %v4012_v45 = vpop.f32.mrb[129].mxu1 }
 0x20b   : > { %v5529_v1 = vadd.f32 %v4012_v45, %v4011_v27  ;;  %v4055_v6 = vpop.f32.mrb[131].mxu0  ;;  %v4014_v36 = vpop.f32.mrb[130].mxu1 }
 0x20c   : > { %v4056_v7 = vadd.f32 %v4055_v6, %v4054_v2  ;;  %v4015_v54 = vpop.f32.mrb[131].mxu1  ;;  %v2637_v35 = vadd.f32 %v4053_v39, %v5428_v24  ;;  %v2846_v58 = vpop.permute.xlu1 %2845 }
 0x20d   : > { %v5532_v46 = vadd.f32 %v4015_v54, %v4014_v36  ;;  %v5557_v27 = vpop.permute.xlu0 %2850 }
 0x20e   : > { %v5535_v61 = vadd.f32 %v4056_v7, %v5441_v47 }
 0x210   : > { %v4057_v37 = vpop.f32.mrb[132].mxu0 }
 0x211   : > { %v4058_v33 = vpop.f32.mrb[133].mxu0  ;;  %v4017_v55 = vpop.f32.mrb[132].mxu1 }
 0x212   : > { %v4059_v59 = vadd.f32 %v4058_v33, %v4057_v37  ;;  %v4060_v52 = vpop.f32.mrb[134].mxu0  ;;  %v4018_v44 = vpop.f32.mrb[133].mxu1 }
 0x213   : > { %v5539_v31 = vadd.f32 %v4018_v44, %v4017_v55  ;;  %v4061_v21 = vpop.f32.mrb[135].mxu0  ;;  %v4020_v11 = vpop.f32.mrb[134].mxu1 }
 0x214   : > { %v4062_v3 = vadd.f32 %v4061_v21, %v4060_v52  ;;  %v4021_v25 = vpop.f32.mrb[135].mxu1  ;;  %v2645_v24 = vadd.f32 %v4059_v59, %v5456_v9  ;;  %v5564_v44 = vpop.permute.xlu1 %2855 }
 0x215   : > { %v5542_v5 = vadd.f32 %v4021_v25, %v4020_v11  ;;  %v2861_v21 = vpop.permute.xlu0 %2860 }
 0x216   : > { %v2648_v47 = vadd.f32 %v4062_v3, %v5469_v43 }
 0x218   : > { %v4063_v20 = vpop.f32.mrb[136].mxu0 }
 0x219   : > { %v4064_v30 = vpop.f32.mrb[137].mxu0  ;;  %v4023_v0 = vpop.f32.mrb[136].mxu1 }
 0x21a   : > { %v4065_v51 = vadd.f32 %v4064_v30, %v4063_v20  ;;  %v4066_v13 = vpop.f32.mrb[138].mxu0  ;;  %v4024_v8 = vpop.f32.mrb[137].mxu1 }
 0x21b   : > { %v5547_v41 = vadd.f32 %v4024_v8, %v4023_v0  ;;  %v4067_v22 = vpop.f32.mrb[139].mxu0  ;;  %v4026_v40 = vpop.f32.mrb[138].mxu1 }
 0x21c   : > { %v4068_v15 = vadd.f32 %v4067_v22, %v4066_v13  ;;  %v4027_v12 = vpop.f32.mrb[139].mxu1  ;;  %v5550_v9 = vadd.f32 %v4065_v51, %v5484_v23 }
 0x21d   : > { %v5552_v62 = vadd.f32 %v4027_v12, %v4026_v40 }
 0x21e   : > { %v5555_v43 = vadd.f32 %v4068_v15, %v5497_v4 }
 0x220   : > { %v4069_v39 = vpop.f32.mrb[140].mxu0 }
 0x221   : > { %v4070_v2 = vpop.f32.mrb[141].mxu0  ;;  %v4029_v45 = vpop.f32.mrb[140].mxu1 }
 0x222   : > { %v4071_v6 = vadd.f32 %v4070_v2, %v4069_v39  ;;  %v4072_v36 = vpop.f32.mrb[142].mxu0  ;;  %v4030_v7 = vpop.f32.mrb[141].mxu1 }
 0x223   : > { %v5559_v54 = vadd.f32 %v4030_v7, %v4029_v45  ;;  %v4073_v37 = vpop.f32.mrb[143].mxu0  ;;  %v4032_v33 = vpop.f32.mrb[142].mxu1 }
 0x224   : > { %v4074_v23 = vadd.f32 %v4073_v37, %v4072_v36  ;;  %v4033_v55 = vpop.f32.mrb[143].mxu1  ;;  %v2661_v59 = vadd.f32 %v4071_v6, %v5511_v29  ;;  %v2866_v6 = vpop.permute.xlu1 %2865 }
 0x225   : > { %v5562_v52 = vadd.f32 %v4033_v55, %v4032_v33  ;;  %v5579_v36 = vpop.permute.xlu0 %2870 }
 0x226   : > { %v2664_v4 = vadd.f32 %v4074_v23, %v4010_v16 }
 0x228   : > { %v4075_v11 = vpop.f32.mrb[144].mxu0 }
 0x229   : > { %v4193_v3 = vpop.f32.mrb[144].mxu1  ;;  %v4076_v25 = vpop.f32.mrb[145].mxu0 }
 0x22a   : > { %v2742_v20 = vadd.f32 %v4193_v3, %v2645_v24  ;;  %v4077_v30 = vadd.f32 %v4076_v25, %v4075_v11  ;;  %v2733_v0 = vpop.f32.mrb[145].mxu1  ;;  %v4078_v51 = vpop.f32.mrb[146].mxu0 }
 0x22b   : > { %v2734_v13 = vadd.f32 %v2733_v0, %v2637_v35  ;;  %v4194_v8 = vpop.f32.mrb[146].mxu1  ;;  %v4079_v22 = vpop.f32.mrb[147].mxu0 }
 0x22c   : > { %v2798_v40 = vmax.f32 %v5425_v42, %v2742_v20  ;;  %v2745_v29 = vadd.f32 %v4194_v8, %v2648_v47  ;;  %v4080_v15 = vadd.f32 %v4079_v22, %v4078_v51  ;;  %v2736_v12 = vpop.f32.mrb[147].mxu1  ;;  %v5568_v16 = vadd.f32 %v4077_v30, %v5529_v1 }
 0x22d   : > { %v2796_v39 = vmax.f32 %v5433_v50, %v2734_v13  ;;  %v2737_v2 = vadd.f32 %v2736_v12, %v5535_v61 }
 0x22e   : > { %v2910_v24 = vadd.f32 %v2841_v57, %v2798_v40  ;;  %v2799_v45 = vmax.f32 %v5439_v53, %v2745_v29  ;;  %v5575_v35 = vadd.f32 %v4080_v15, %v5532_v46 }
 0x22f   : > { %v2908_v42 = vadd.f32 %v5537_v56, %v2796_v39  ;;  %v2797_v47 = vmax.f32 %v5446_v17, %v2737_v2  ;;  %v2881_v39 = vpop.permute.xlu0 %2880 }
 0x230   : > { %v2926_v1 = vmax.f32 %v2910_v24, 0.0  ;;  %v2911_v7 = vadd.f32 %v2846_v58, %v2799_v45  ;;  %v4081_v37 = vpop.f32.mrb[148].mxu0 }
 0x231   : > { %v2924_v50 = vmax.f32 %v2908_v42, 0.0  ;;  %v2909_v53 = vadd.f32 %v5545_v26, %v2797_v47  ;;  %v4197_v46 = vpop.f32.mrb[148].mxu1  ;;  %v4082_v61 = vpop.f32.mrb[149].mxu0 }
 0x232   : > { %v3537_v56 = vpack.c.bf16 %v2926_v1, %v2926_v1  ;;  %v2927_v57 = vmax.f32 %v2911_v7, 0.0  ;;  %v2758_v17 = vadd.f32 %v4197_v46, %v2661_v59  ;;  %v4083_v33 = vadd.f32 %v4082_v61, %v4081_v37  ;;  %v2749_v23 = vpop.f32.mrb[149].mxu1  ;;  %v4084_v58 = vpop.f32.mrb[150].mxu0 }
 0x233   : > { %v3535_v55 = vpack.c.bf16 %v2924_v50, %v2924_v50  ;;  %v2925_v11 = vmax.f32 %v2909_v53, 0.0  ;;  %v2750_v3 = vadd.f32 %v2749_v23, %v5550_v9  ;;  %v4198_v25 = vpop.f32.mrb[150].mxu1  ;;  %v4085_v20 = vpop.f32.mrb[151].mxu0 }
 0x234   : > { %3007 = vst.msk [vmem:[%s5584_s13 + $0x8] sm:$0xf] %vm3004_vm1, %v3537_v56  ;;  %v3538_v26 = vpack.c.bf16 %v2927_v57, %v2927_v57  ;;  %v2802_v30 = vmax.f32 %v5453_v63, %v2758_v17  ;;  %v2761_v0 = vadd.f32 %v4198_v25, %v2664_v4  ;;  %v4086_v51 = vadd.f32 %v4085_v20, %v4084_v58  ;;  %v2752_v13 = vpop.f32.mrb[151].mxu1  ;;  %v2876_v63 = vpop.permute.xlu1 %2875 }
 0x235   : > { %3005 = vst.msk [vmem:[%s5584_s13] sm:$0xf] %vm3004_vm1, %v3535_v55  ;;  %v3536_v59 = vpack.c.bf16 %v2925_v11, %v2925_v11  ;;  %v2800_v8 = vmax.f32 %v5461_v38, %v2750_v3  ;;  %v2753_v22 = vadd.f32 %v2752_v13, %v5555_v43  ;;  %v2677_v9 = vadd.f32 %v4083_v33, %v5539_v31  ;;  %v2891_v25 = vpop.permute.xlu0 %2890 }
 0x236   : > { %3008 = vst.msk [vmem:[%s5584_s13 + $0xc] sm:$0xf] %vm3004_vm1, %v3538_v26  ;;  %v2914_v40 = vadd.f32 %v2861_v21, %v2802_v30  ;;  %v2803_v29 = vmax.f32 %v5467_v18, %v2761_v0  ;;  %v2680_v15 = vadd.f32 %v4086_v51, %v5542_v5 }
 0x237   : > { %3006 = vst.msk [vmem:[%s5584_s13 + $0x4] sm:$0xf] %vm3004_vm1, %v3536_v59  ;;  %v2912_v4 = vadd.f32 %v5557_v27, %v2800_v8  ;;  %v2801_v12 = vmax.f32 %v5474_v48, %v2753_v22 }
 0x238   : > { %v2930_v38 = vmax.f32 %v2914_v40, 0.0  ;;  %v2915_v2 = vadd.f32 %v2866_v6, %v2803_v29  ;;  %v4087_v43 = vpop.f32.mrb[152].mxu0 }
 0x239   : > { %v2928_v31 = vmax.f32 %v2912_v4, 0.0  ;;  %v2913_v24 = vadd.f32 %v5564_v44, %v2801_v12  ;;  %v4201_v21 = vpop.f32.mrb[152].mxu1  ;;  %v4088_v45 = vpop.f32.mrb[153].mxu0 }
 0x23a   : > { %v3541_v18 = vpack.c.bf16 %v2930_v38, %v2930_v38  ;;  %v2931_v42 = vmax.f32 %v2915_v2, 0.0  ;;  %v2774_v5 = vadd.f32 %v4201_v21, %v2677_v9  ;;  %v4089_v47 = vadd.f32 %v4088_v45, %v4087_v43  ;;  %v2765_v1 = vpop.f32.mrb[153].mxu1  ;;  %v4090_v7 = vpop.f32.mrb[154].mxu0 }
 0x23b   : > { %v3539_v27 = vpack.c.bf16 %v2928_v31, %v2928_v31  ;;  %v2929_v48 = vmax.f32 %v2913_v24, 0.0  ;;  %v2766_v37 = vadd.f32 %v2765_v1, %v5568_v16  ;;  %v4202_v6 = vpop.f32.mrb[154].mxu1  ;;  %v4091_v50 = vpop.f32.mrb[155].mxu0 }
 0x23c   : > { %3011 = vst.msk [vmem:[%s5584_s13 + $0x18] sm:$0xf] %vm3004_vm1, %v3541_v18  ;;  %v3542_v44 = vpack.c.bf16 %v2931_v42, %v2931_v42  ;;  %v2806_v53 = vmax.f32 %v5481_v14, %v2774_v5  ;;  %v2777_v46 = vadd.f32 %v4202_v6, %v2680_v15  ;;  %v4092_v61 = vadd.f32 %v4091_v50, %v4090_v7  ;;  %v2768_v56 = vpop.f32.mrb[155].mxu1  ;;  %v2886_v14 = vpop.permute.xlu1 %2885 }
 0x23d   : > { %3009 = vst.msk [vmem:[%s5584_s13 + $0x10] sm:$0xf] %vm3004_vm1, %v3539_v27  ;;  %v3540_v57 = vpack.c.bf16 %v2929_v48, %v2929_v48  ;;  %v2804_v17 = vmax.f32 %v5489_v49, %v2766_v37  ;;  %v2769_v33 = vadd.f32 %v2768_v56, %v5575_v35  ;;  %v2685_v16 = vadd.f32 %v4089_v47, %v5547_v41  ;;  %v2901_v45 = vpop.permute.xlu0 %2900 }
 0x23e   : > { %3012 = vst.msk [vmem:[%s5584_s13 + $0x1c] sm:$0xf] %vm3004_vm1, %v3542_v44  ;;  %v2918_v23 = vadd.f32 %v2881_v39, %v2806_v53  ;;  %v2807_v58 = vmax.f32 %v5495_v10, %v2777_v46  ;;  %v2688_v55 = vadd.f32 %v4092_v61, %v5552_v62 }
 0x23f   : > { %3010 = vst.msk [vmem:[%s5584_s13 + $0x14] sm:$0xf] %vm3004_vm1, %v3540_v57  ;;  %v2916_v11 = vadd.f32 %v5579_v36, %v2804_v17  ;;  %v2805_v3 = vmax.f32 %v5502_v60, %v2769_v33 }
 0x240   : > { %v2934_v49 = vmax.f32 %v2918_v23, 0.0  ;;  %v2919_v20 = vadd.f32 %v2886_v14, %v2807_v58  ;;  %v4093_v35 = vpop.f32.mrb[156].mxu0  ;;  %v2896_v4 = vpop.permute.xlu1 %2895 }
 0x241   : > { %v2932_v41 = vmax.f32 %v2916_v11, 0.0  ;;  %v2917_v26 = vadd.f32 %v2876_v63, %v2805_v3  ;;  %v4205_v30 = vpop.f32.mrb[156].mxu1  ;;  %v4094_v0 = vpop.f32.mrb[157].mxu0 }
 0x242   : > { %v3545_v51 = vpack.c.bf16 %v2934_v49, %v2934_v49  ;;  %v2935_v10 = vmax.f32 %v2919_v20, 0.0  ;;  %v4095_v62 = vadd.f32 %v4094_v0, %v4093_v35  ;;  %v2781_v13 = vpop.f32.mrb[157].mxu1  ;;  %v4096_v59 = vpop.f32.mrb[158].mxu0 }
 0x243   : > { %v3543_v8 = vpack.c.bf16 %v2932_v41, %v2932_v41  ;;  %v2933_v36 = vmax.f32 %v2917_v26, 0.0  ;;  %v2782_v22 = vadd.f32 %v2781_v13, %v2685_v16  ;;  %v4206_v60 = vpop.f32.mrb[158].mxu1  ;;  %v4097_v9 = vpop.f32.mrb[159].mxu0 }
 0x244   : > { %3015 = vst.msk [vmem:[%s5584_s13 + $0x28] sm:$0xf] %vm3004_vm1, %v3545_v51  ;;  %v3546_v40 = vpack.c.bf16 %v2935_v10, %v2935_v10  ;;  %v2693_v29 = vadd.f32 %v4095_v62, %v5559_v54  ;;  %v4098_v15 = vadd.f32 %v4097_v9, %v4096_v59  ;;  %v2784_v63 = vpop.f32.mrb[159].mxu1  ;;  %v2906_v47 = vpop.permute.xlu1 %2905 }
 0x245   : > { %3013 = vst.msk [vmem:[%s5584_s13 + $0x20] sm:$0xf] %vm3004_vm1, %v3543_v8  ;;  %v3544_v12 = vpack.c.bf16 %v2933_v36, %v2933_v36  ;;  %v2808_v39 = vmax.f32 %v5516_v28, %v2782_v22  ;;  %v2785_v38 = vadd.f32 %v2784_v63, %v2688_v55 }
 0x246   : > { %3016 = vst.msk [vmem:[%s5584_s13 + $0x2c] sm:$0xf] %vm3004_vm1, %v3546_v40  ;;  %v2790_v2 = vadd.f32 %v4205_v30, %v2693_v29  ;;  %v2696_v43 = vadd.f32 %v4098_v15, %v5562_v52 }
 0x247   : > { %3014 = vst.msk [vmem:[%s5584_s13 + $0x24] sm:$0xf] %vm3004_vm1, %v3544_v12  ;;  %v2920_v31 = vadd.f32 %v2891_v25, %v2808_v39  ;;  %v2809_v54 = vmax.f32 %v5527_v19, %v2785_v38 }
 0x248   : > { %v2810_v24 = vmax.f32 %v5508_v34, %v2790_v2  ;;  %v2793_v21 = vadd.f32 %v4206_v60, %v2696_v43 }
 0x249   : > { %v2936_v18 = vmax.f32 %v2920_v31, 0.0  ;;  %v2921_v28 = vadd.f32 %v2896_v4, %v2809_v54 }
 0x24a   : > { %v2922_v42 = vadd.f32 %v2901_v45, %v2810_v24  ;;  %v2811_v5 = vmax.f32 %v5522_v32, %v2793_v21 }
 0x24b   : > { %v3547_v52 = vpack.c.bf16 %v2936_v18, %v2936_v18  ;;  %v2937_v1 = vmax.f32 %v2921_v28, 0.0 }
 0x24c   : > { %v2938_v7 = vmax.f32 %v2922_v42, 0.0  ;;  %v2923_v27 = vadd.f32 %v2906_v47, %v2811_v5 }
 0x24d   : > { %3017 = vst.msk [vmem:[%s5584_s13 + $0x30] sm:$0xf] %vm3004_vm1, %v3547_v52  ;;  %v3548_v19 = vpack.c.bf16 %v2937_v1, %v2937_v1 }
 0x24e   : > { %v3549_v48 = vpack.c.bf16 %v2938_v7, %v2938_v7  ;;  %v2939_v34 = vmax.f32 %v2923_v27, 0.0 }
 0x24f   : > { %3018 = vst.msk [vmem:[%s5584_s13 + $0x34] sm:$0xf] %vm3004_vm1, %v3548_v19 }
 0x250   : > { %3019 = vst.msk [vmem:[%s5584_s13 + $0x38] sm:$0xf] %vm3004_vm1, %v3549_v48  ;;  %v3550_v37 = vpack.c.bf16 %v2939_v34, %v2939_v34 }
 0x252   : > { %3020 = vst.msk [vmem:[%s5584_s13 + $0x3c] sm:$0xf] %vm3004_vm1, %v3550_v37 }
 0x253 PF: > { %s13_s12 = sadd.s32 1, %s4465_s12  }
 0x254   : > { %p10_p4 = scmp.ge.s32.totalorder %s13_s12, 4  }
 0x256   :  { %12 = sbr.rel (!%p10_p4) target bundleno = 1 (0x1), region = 65 }

// kernel: forward.7
= control target key start
LH: loop header
LB: loop body
LE: loop exit
PB: predicated region body
PF: predicated region fallthrough
CT: control target
= control target key end

     0   :  { %v1009_v28 = vlaneseq  ;;  %v7343_v36 = vmov 1966171168   ;;  %s8985_s0 = inlined_call_operand.vmem [shape: bf16[2,7680], index: 0, kind: input, shape index: {}]   ;;  %s8986_s1 = inlined_call_operand.vmem [shape: bf16[7680,128], index: 1, kind: input, shape index: {}]   ;;  %s8987_s2 = inlined_call_operand.vmem [shape: f32[1,128], index: 2, kind: input, shape index: {}]   ;;  %s8988_s3 = inlined_call_operand.vmem [shape: bf16[128,128], index: 3, kind: input, shape index: {}]   ;;  %s8989_s4 = inlined_call_operand.vmem [shape: f32[1,128], index: 4, kind: input, shape index: {}]   ;;  %s8990_s5 = inlined_call_operand.hbm [shape: f32[2,128], index: 5, kind: output, shape index: {}]  }
   0x1   :  { %v6824_v0 = vld [vmem:[%s8986_s1 + $0x40] sm:$0xff]   ;;  %v6828_v4 = vld [vmem:[%s8986_s1 + $0x48] sm:$0xff]   ;;  %v6832_v8 = vld [vmem:[%s8986_s1 + $0x50] sm:$0xff]   ;;  %v1007_v37 = vunpack.c.l.s4 %v7343_v36 }
   0x2   :  { %v6825_v1 = vld [vmem:[%s8986_s1 + $0xc0] sm:$0xff]   ;;  %6131 = vmatprep.subr.bf16.mxu0 %v6824_v0  ;;  %v6829_v5 = vld [vmem:[%s8986_s1 + $0xc8] sm:$0xff]   ;;  %v6833_v9 = vld [vmem:[%s8986_s1 + $0xd0] sm:$0xff]   ;;  %v1010_v33 = vshrl.u32 %v1009_v28, 7 }
   0x3   :  { %v6826_v2 = vld [vmem:[%s8986_s1] sm:$0xff]   ;;  %6153 = vmatprep.subr.bf16.mxu1 %v6825_v1  ;;  %v6830_v6 = vld [vmem:[%s8986_s1 + $0x8] sm:$0xff]   ;;  %v6834_v10 = vld [vmem:[%s8986_s1 + $0x10] sm:$0xff]   ;;  %v1008_v40 = vunpack.c.0.s8 %v1007_v37 }
   0x4   :  { %v6827_v3 = vld [vmem:[%s8986_s1 + $0x80] sm:$0xff]   ;;  %6132 = vmatpush3.bf16.msra.mxu0 %v6826_v2  ;;  %v6831_v7 = vld [vmem:[%s8986_s1 + $0x88] sm:$0xff]   ;;  %v6835_v11 = vld [vmem:[%s8986_s1 + $0x90] sm:$0xff]  }
   0x5   :  { %6154 = vmatpush3.bf16.msra.mxu1 %v6827_v3  ;;  %6133 = vmatprep.subr.bf16.mxu0 %v6828_v4  ;;  %v6836_v12 = vld [vmem:[%s8986_s1 + $0x58] sm:$0xff]   ;;  %v6840_v16 = vld [vmem:[%s8986_s1 + $0x60] sm:$0xff]   ;;  %v6844_v20 = vld [vmem:[%s8986_s1 + $0x68] sm:$0xff]   ;;  %v7482_v41 = vsub.s32 %v1008_v40, %v1010_v33 }
   0x6   :  { %6155 = vmatprep.subr.bf16.mxu1 %v6829_v5  ;;  %v6837_v13 = vld [vmem:[%s8986_s1 + $0xd8] sm:$0xff]   ;;  %v6841_v17 = vld [vmem:[%s8986_s1 + $0xe0] sm:$0xff]   ;;  %v6845_v21 = vld [vmem:[%s8986_s1 + $0xe8] sm:$0xff]  }
   0x7   :  { %v6838_v14 = vld [vmem:[%s8986_s1 + $0x18] sm:$0xff]   ;;  %v6842_v18 = vld [vmem:[%s8986_s1 + $0x20] sm:$0xff]   ;;  %v6846_v22 = vld [vmem:[%s8986_s1 + $0x28] sm:$0xff]  }
   0x8   :  { %6134 = vmatpush3.bf16.msra.mxu0 %v6830_v6  ;;  %v6839_v15 = vld [vmem:[%s8986_s1 + $0x98] sm:$0xff]   ;;  %v6843_v19 = vld [vmem:[%s8986_s1 + $0xa0] sm:$0xff]   ;;  %v6847_v23 = vld [vmem:[%s8986_s1 + $0xa8] sm:$0xff]  }
   0x9   :  { %6156 = vmatpush3.bf16.msra.mxu1 %v6831_v7  ;;  %6135 = vmatprep.subr.bf16.mxu0 %v6832_v8  ;;  %v6848_v24 = vld [vmem:[%s8986_s1 + $0x70] sm:$0xff]   ;;  %v6852_v29 = vld [vmem:[%s8986_s1 + $0x78] sm:$0xff]   ;;  %v22_v34 = vld [vmem:[%s8985_s0] sm:$0xff] }
   0xa   :  { %6157 = vmatprep.subr.bf16.mxu1 %v6833_v9  ;;  %v6849_v25 = vld [vmem:[%s8986_s1 + $0xf0] sm:$0xff]   ;;  %v6853_v30 = vld [vmem:[%s8986_s1 + $0xf8] sm:$0xff]   ;;  %v6857_v35 = vld [vmem:[%s8986_s1 + $0x140] sm:$0xff]   ;;  %v1005_v39 = vcombine.high %v22_v34, %v22_v34  ;;  %v1012_v42 = vrot.slane %v22_v34, %v7482_v41 }
   0xb   :  { %v6850_v26 = vld [vmem:[%s8986_s1 + $0x30] sm:$0xff]   ;;  %v6854_v31 = vld [vmem:[%s8986_s1 + $0x38] sm:$0xff]   ;;  %v6858_v38 = vld [vmem:[%s8986_s1 + $0x1c0] sm:$0xff]  }
   0xc   :  { %6136 = vmatpush3.bf16.msra.mxu0 %v6834_v10  ;;  %v6851_v27 = vld [vmem:[%s8986_s1 + $0xb0] sm:$0xff]   ;;  %v6855_v32 = vld [vmem:[%s8986_s1 + $0xb8] sm:$0xff]   ;;  %v7486_v43 = vrot.slane %v1005_v39, %v7482_v41  ;;  %v1020_v44 = vcombine.high %v1012_v42, %v1012_v42  ;;  %v1028_v45 = vrot.slane %v1012_v42, %v7482_v41  ;;  %v6859_v47 = vld [vmem:[%s8986_s1 + $0x100] sm:$0xff]  }
   0xd   :  { %6158 = vmatpush3.bf16.msra.mxu1 %v6835_v11  ;;  %6137 = vmatprep.subr.bf16.mxu0 %v6836_v12  ;;  %v6860_v49 = vld [vmem:[%s8986_s1 + $0x180] sm:$0xff]   ;;  %v6861_v52 = vld [vmem:[%s8986_s1 + $0x148] sm:$0xff]   ;;  %v6865_v58 = vld [vmem:[%s8986_s1 + $0x150] sm:$0xff]  }
   0xe   :  { %6159 = vmatprep.subr.bf16.mxu1 %v6837_v13  ;;  %v1021_v46 = vcombine.high %v7486_v43, %v7486_v43  ;;  %v1042_v48 = vrot.slane %v1020_v44, %v7482_v41  ;;  %v1050_v51 = vcombine.high %v1028_v45, %v1028_v45  ;;  %v6862_v54 = vld [vmem:[%s8986_s1 + $0x1c8] sm:$0xff]   ;;  %v6866_v59 = vld [vmem:[%s8986_s1 + $0x1d0] sm:$0xff]   ;;  %v6869_v62 = vld [vmem:[%s8986_s1 + $0x158] sm:$0xff]  }
   0xf   :  { %v6863_v55 = vld [vmem:[%s8986_s1 + $0x108] sm:$0xff]   ;;  %v6867_v60 = vld [vmem:[%s8986_s1 + $0x110] sm:$0xff]   ;;  %v6870_v63 = vld [vmem:[%s8986_s1 + $0x1d8] sm:$0xff]  }
  0x10   :  { %6138 = vmatpush3.bf16.msra.mxu0 %v6838_v14  ;;  %v1049_v50 = vrot.slane %v1021_v46, %v7482_v41  ;;  %4344 = vmatprep.mubr.bf16.mxu0 %v1042_v48  ;;  %v1052_v53 = vcombine.high %v1042_v48, %v1042_v48  ;;  %v6864_v57 = vld [vmem:[%s8986_s1 + $0x188] sm:$0xff]   ;;  %v6868_v61 = vld [vmem:[%s8986_s1 + $0x190] sm:$0xff]   ;;  %v6871_v0 = vld [vmem:[%s8986_s1 + $0x118] sm:$0xff]  }
  0x11   :  { %6160 = vmatpush3.bf16.msra.mxu1 %v6839_v15  ;;  %6139 = vmatprep.subr.bf16.mxu0 %v6840_v16  ;;  %v6872_v1 = vld [vmem:[%s8986_s1 + $0x198] sm:$0xff]   ;;  %v6873_v2 = vld [vmem:[%s8986_s1 + $0x160] sm:$0xff]   ;;  %v6877_v6 = vld [vmem:[%s8986_s1 + $0x168] sm:$0xff]  }
  0x12   :  { %6161 = vmatprep.subr.bf16.mxu1 %v6841_v17  ;;  %v1053_v56 = vcombine.high %v1049_v50, %v1049_v50  ;;  %4384 = vmatprep.mubr.bf16.mxu1 %v1052_v53  ;;  %v6874_v3 = vld [vmem:[%s8986_s1 + $0x1e0] sm:$0xff]   ;;  %v6878_v7 = vld [vmem:[%s8986_s1 + $0x1e8] sm:$0xff]   ;;  %v6881_v10 = vld [vmem:[%s8986_s1 + $0x170] sm:$0xff]  }
  0x13   :  { %v6875_v4 = vld [vmem:[%s8986_s1 + $0x120] sm:$0xff]   ;;  %v6879_v8 = vld [vmem:[%s8986_s1 + $0x128] sm:$0xff]   ;;  %v6882_v11 = vld [vmem:[%s8986_s1 + $0x1f0] sm:$0xff]  }
  0x14   :  { %6140 = vmatpush3.bf16.msra.mxu0 %v6842_v18  ;;  %v6876_v5 = vld [vmem:[%s8986_s1 + $0x1a0] sm:$0xff]   ;;  %v6880_v9 = vld [vmem:[%s8986_s1 + $0x1a8] sm:$0xff]   ;;  %v6883_v12 = vld [vmem:[%s8986_s1 + $0x130] sm:$0xff]   ;;  %v1035_v18 = vrot.slane %v7486_v43, %v7482_v41 }
  0x15   :  { %6162 = vmatpush3.bf16.msra.mxu1 %v6843_v19  ;;  %6141 = vmatprep.subr.bf16.mxu0 %v6844_v20  ;;  %v6884_v13 = vld [vmem:[%s8986_s1 + $0x1b0] sm:$0xff]   ;;  %v6885_v14 = vld [vmem:[%s8986_s1 + $0x178] sm:$0xff]   ;;  %v6889_v19 = vld [vmem:[%s8986_s1 + $0x240] sm:$0xff]  }
  0x16   :  { %6163 = vmatprep.subr.bf16.mxu1 %v6845_v21  ;;  %v6886_v15 = vld [vmem:[%s8986_s1 + $0x1f8] sm:$0xff]   ;;  %v6890_v20 = vld [vmem:[%s8986_s1 + $0x2c0] sm:$0xff]   ;;  %v6897_v28 = vld [vmem:[%s8986_s1 + $0x250] sm:$0xff]  }
  0x17   :  { %v6887_v16 = vld [vmem:[%s8986_s1 + $0x138] sm:$0xff]   ;;  %v6891_v21 = vld [vmem:[%s8986_s1 + $0x200] sm:$0xff]   ;;  %v6909_v40 = vld [vmem:[%s8986_s1 + $0x268] sm:$0xff]  }
  0x18   :  { %6142 = vmatpush3.bf16.msra.mxu0 %v6846_v22  ;;  %v6888_v17 = vld [vmem:[%s8986_s1 + $0x1b8] sm:$0xff]   ;;  %v6892_v22 = vld [vmem:[%s8986_s1 + $0x280] sm:$0xff]   ;;  %v6910_v42 = vld [vmem:[%s8986_s1 + $0x2e8] sm:$0xff]  }
  0x19   :  { %6164 = vmatpush3.bf16.msra.mxu1 %v6847_v23  ;;  %6143 = vmatprep.subr.bf16.mxu0 %v6848_v24  ;;  %v1051_v23 = vcombine.high %v1035_v18, %v1035_v18  ;;  %v6893_v24 = vld [vmem:[%s8986_s1 + $0x248] sm:$0xff]   ;;  %v6902_v33 = vld [vmem:[%s8986_s1 + $0x2d8] sm:$0xff]   ;;  %v6905_v36 = vld [vmem:[%s8986_s1 + $0x260] sm:$0xff]  }
  0x1a   :  { %6165 = vmatprep.subr.bf16.mxu1 %v6849_v25  ;;  %v6894_v25 = vld [vmem:[%s8986_s1 + $0x2c8] sm:$0xff]   ;;  %v6903_v34 = vld [vmem:[%s8986_s1 + $0x218] sm:$0xff]   ;;  %v6906_v37 = vld [vmem:[%s8986_s1 + $0x2e0] sm:$0xff]  }
  0x1b   :  { %v6908_v39 = vld [vmem:[%s8986_s1 + $0x2a0] sm:$0xff]   ;;  %v6911_v43 = vld [vmem:[%s8986_s1 + $0x228] sm:$0xff]  }
  0x1c   :  { %6144 = vmatpush3.bf16.msra.mxu0 %v6850_v26  ;;  %v6895_v26 = vld [vmem:[%s8986_s1 + $0x208] sm:$0xff]  }
  0x1d   :  { %6166 = vmatpush3.bf16.msra.mxu1 %v6851_v27  ;;  %6145 = vmatprep.subr.bf16.mxu0 %v6852_v29  ;;  %v6896_v27 = vld [vmem:[%s8986_s1 + $0x288] sm:$0xff]   ;;  %v6898_v29 = vld [vmem:[%s8986_s1 + $0x2d0] sm:$0xff]  }
  0x1e   :  { %6167 = vmatprep.subr.bf16.mxu1 %v6853_v30  ;;  %v6899_v30 = vld [vmem:[%s8986_s1 + $0x210] sm:$0xff]   ;;  %v6912_v44 = vld [vmem:[%s8986_s1 + $0x2a8] sm:$0xff]  }
  0x1f   :  { %v23_v46 = vld [vmem:[%s8985_s0 + $0x8] sm:$0xff] }
  0x20   :  { %6146 = vmatpush3.bf16.msra.mxu0 %v6854_v31  ;;  %v6900_v31 = vld [vmem:[%s8986_s1 + $0x290] sm:$0xff]   ;;  %v1061_v48 = vrot.slane %v23_v46, %v7482_v41 }
  0x21   :  { %6168 = vmatpush3.bf16.msra.mxu1 %v6855_v32  ;;  %6175 = vmatprep.subr.bf16.mxu0 %v6857_v35  ;;  %v6901_v32 = vld [vmem:[%s8986_s1 + $0x258] sm:$0xff]  }
  0x22   :  { %6197 = vmatprep.subr.bf16.mxu1 %v6858_v38  ;;  %v6904_v35 = vld [vmem:[%s8986_s1 + $0x298] sm:$0xff]   ;;  %v6907_v38 = vld [vmem:[%s8986_s1 + $0x220] sm:$0xff]  }
  0x23   :  { %4345 = vmatmul.mubr.bf16.vlgmr.msra.gmra.mrb[0].mxu0 %v1028_v45  ;;  %v6913_v45 = vld [vmem:[%s8986_s1 + $0x270] sm:$0xff]  }
  0x24   :  { %6176 = vmatpush3.bf16.msra.mxu0 %v6859_v47  ;;  %4385 = vmatmul.mubr.bf16.vlgmr.msra.gmra.mrb[0].mxu1 %v1050_v51  ;;  %v6914_v47 = vld [vmem:[%s8986_s1 + $0x2f0] sm:$0xff]  }
  0x25   :  { %6177 = vmatprep.subr.bf16.mxu0 %v6861_v52  ;;  %6198 = vmatpush3.bf16.msra.mxu1 %v6860_v49  ;;  %v1054_v49 = vcombine.high %v23_v46, %v23_v46  ;;  %v6916_v51 = vld [vmem:[%s8986_s1 + $0x2b0] sm:$0xff]   ;;  %v1069_v52 = vcombine.high %v1061_v48, %v1061_v48 }
  0x26   :  { %4424 = vmatprep.mubr.bf16.mxu0 %v1049_v50  ;;  %6199 = vmatprep.subr.bf16.mxu1 %v6862_v54  ;;  %v6915_v50 = vld [vmem:[%s8986_s1 + $0x230] sm:$0xff]   ;;  %v6917_v54 = vld [vmem:[%s8986_s1 + $0x278] sm:$0xff]  }
  0x27   :  { %4464 = vmatprep.mubr.bf16.mxu1 %v1053_v56  ;;  %v7674_v53 = vrot.slane %v1054_v49, %v7482_v41  ;;  %v1091_v56 = vrot.slane %v1069_v52, %v7482_v41  ;;  %v6964_v46 = vld [vmem:[%s8986_s1 + $0x410] sm:$0xff]   ;;  %v6967_v49 = vld [vmem:[%s8986_s1 + $0x4d8] sm:$0xff]   ;;  %v6970_v52 = vld [vmem:[%s8986_s1 + $0x460] sm:$0xff]  }
  0x28   :  { %6178 = vmatpush3.bf16.msra.mxu0 %v6863_v55  ;;  %v6918_v55 = vld [vmem:[%s8986_s1 + $0x2f8] sm:$0xff]  }
  0x29   :  { %6179 = vmatprep.subr.bf16.mxu0 %v6865_v58  ;;  %6200 = vmatpush3.bf16.msra.mxu1 %v6864_v57  ;;  %v1070_v57 = vcombine.high %v7674_v53, %v7674_v53  ;;  %v6919_v58 = vld [vmem:[%s8986_s1 + $0x238] sm:$0xff]  }
  0x2a   :  { %6201 = vmatprep.subr.bf16.mxu1 %v6866_v59  ;;  %v6920_v59 = vld [vmem:[%s8986_s1 + $0x2b8] sm:$0xff]  }
  0x2c   :  { %6180 = vmatpush3.bf16.msra.mxu0 %v6867_v60  ;;  %v1101_v60 = vcombine.high %v1091_v56, %v1091_v56 }
  0x2d   :  { %6181 = vmatprep.subr.bf16.mxu0 %v6869_v62  ;;  %6202 = vmatpush3.bf16.msra.mxu1 %v6868_v61  ;;  %v1077_v61 = vrot.slane %v1061_v48, %v7482_v41  ;;  %v6921_v62 = vld [vmem:[%s8986_s1 + $0x340] sm:$0xff]   ;;  %v6966_v48 = vld [vmem:[%s8986_s1 + $0x458] sm:$0xff]  }
  0x2e   :  { %6203 = vmatprep.subr.bf16.mxu1 %v6870_v63  ;;  %v6922_v63 = vld [vmem:[%s8986_s1 + $0x3c0] sm:$0xff]  }
  0x30   :  { %6182 = vmatpush3.bf16.msra.mxu0 %v6871_v0  ;;  %v1098_v0 = vrot.slane %v1070_v57, %v7482_v41  ;;  %v6975_v57 = vld [vmem:[%s8986_s1 + $0x4e8] sm:$0xff]  }
  0x31   :  { %6183 = vmatprep.subr.bf16.mxu0 %v6873_v2  ;;  %6204 = vmatpush3.bf16.msra.mxu1 %v6872_v1  ;;  %v6923_v1 = vld [vmem:[%s8986_s1 + $0x300] sm:$0xff]  }
  0x32   :  { %6205 = vmatprep.subr.bf16.mxu1 %v6874_v3  ;;  %v6924_v2 = vld [vmem:[%s8986_s1 + $0x380] sm:$0xff]   ;;  %v1099_v3 = vcombine.high %v1077_v61, %v1077_v61 }
  0x34   :  { %6184 = vmatpush3.bf16.msra.mxu0 %v6875_v4  ;;  %v6925_v4 = vld [vmem:[%s8986_s1 + $0x348] sm:$0xff]  }
  0x35   :  { %6185 = vmatprep.subr.bf16.mxu0 %v6877_v6  ;;  %6206 = vmatpush3.bf16.msra.mxu1 %v6876_v5  ;;  %v6926_v5 = vld [vmem:[%s8986_s1 + $0x3c8] sm:$0xff]   ;;  %v1102_v6 = vcombine.high %v1098_v0, %v1098_v0 }
  0x36   :  { %6207 = vmatprep.subr.bf16.mxu1 %v6878_v7  ;;  %v6927_v7 = vld [vmem:[%s8986_s1 + $0x308] sm:$0xff]  }
  0x38   :  { %6186 = vmatpush3.bf16.msra.mxu0 %v6879_v8  ;;  %v6928_v8 = vld [vmem:[%s8986_s1 + $0x388] sm:$0xff]  }
  0x39   :  { %6187 = vmatprep.subr.bf16.mxu0 %v6881_v10  ;;  %6208 = vmatpush3.bf16.msra.mxu1 %v6880_v9  ;;  %v6929_v9 = vld [vmem:[%s8986_s1 + $0x350] sm:$0xff]  }
  0x3a   :  { %6209 = vmatprep.subr.bf16.mxu1 %v6882_v11  ;;  %v6930_v10 = vld [vmem:[%s8986_s1 + $0x3d0] sm:$0xff]  }
  0x3b   :  { %v6931_v11 = vld [vmem:[%s8986_s1 + $0x310] sm:$0xff]  }
  0x3c   :  { %6188 = vmatpush3.bf16.msra.mxu0 %v6883_v12  ;;  %v6932_v12 = vld [vmem:[%s8986_s1 + $0x390] sm:$0xff]  }
  0x3d   :  { %6189 = vmatprep.subr.bf16.mxu0 %v6885_v14  ;;  %6210 = vmatpush3.bf16.msra.mxu1 %v6884_v13  ;;  %v6933_v13 = vld [vmem:[%s8986_s1 + $0x358] sm:$0xff]  }
  0x3e   :  { %6211 = vmatprep.subr.bf16.mxu1 %v6886_v15  ;;  %v6934_v14 = vld [vmem:[%s8986_s1 + $0x3d8] sm:$0xff]  }
  0x3f   :  { %v6935_v15 = vld [vmem:[%s8986_s1 + $0x318] sm:$0xff]  }
  0x40   :  { %6190 = vmatpush3.bf16.msra.mxu0 %v6887_v16  ;;  %v6936_v16 = vld [vmem:[%s8986_s1 + $0x398] sm:$0xff]  }
  0x41   :  { %6219 = vmatprep.subr.bf16.mxu0 %v6889_v19  ;;  %6212 = vmatpush3.bf16.msra.mxu1 %v6888_v17  ;;  %v6937_v17 = vld [vmem:[%s8986_s1 + $0x360] sm:$0xff]  }
  0x42   :  { %6241 = vmatprep.subr.bf16.mxu1 %v6890_v20  ;;  %v6939_v19 = vld [vmem:[%s8986_s1 + $0x320] sm:$0xff]  }
  0x43   :  { %4425 = vmatmul.mubr.bf16.vlgmr.msra.gmra.mrb[4].mxu0 %v1035_v18  ;;  %v6938_v18 = vld [vmem:[%s8986_s1 + $0x3e0] sm:$0xff]  }
  0x44   :  { %6220 = vmatpush3.bf16.msra.mxu0 %v6891_v21  ;;  %4465 = vmatmul.mubr.bf16.vlgmr.msra.gmra.mrb[4].mxu1 %v1051_v23  ;;  %v6940_v20 = vld [vmem:[%s8986_s1 + $0x3a0] sm:$0xff]   ;;  %v6941_v21 = vld [vmem:[%s8986_s1 + $0x368] sm:$0xff]  }
  0x45   :  { %6221 = vmatprep.subr.bf16.mxu0 %v6893_v24  ;;  %6242 = vmatpush3.bf16.msra.mxu1 %v6892_v22  ;;  %v6942_v22 = vld [vmem:[%s8986_s1 + $0x3e8] sm:$0xff]  }
  0x46   :  { %6243 = vmatprep.subr.bf16.mxu1 %v6894_v25  ;;  %4504 = vmatprep.mubr.bf16.mxu0 %v1091_v56  ;;  %v6943_v23 = vld [vmem:[%s8986_s1 + $0x328] sm:$0xff]   ;;  %v6945_v25 = vld [vmem:[%s8986_s1 + $0x370] sm:$0xff]  }
  0x47   :  { %4544 = vmatprep.mubr.bf16.mxu1 %v1101_v60  ;;  %v6944_v24 = vld [vmem:[%s8986_s1 + $0x3a8] sm:$0xff]   ;;  %v6978_v60 = vld [vmem:[%s8986_s1 + $0x470] sm:$0xff]  }
  0x48   :  { %6222 = vmatpush3.bf16.msra.mxu0 %v6895_v26  ;;  %v6946_v26 = vld [vmem:[%s8986_s1 + $0x3f0] sm:$0xff]   ;;  %v6974_v56 = vld [vmem:[%s8986_s1 + $0x468] sm:$0xff]  }
  0x49   :  { %6223 = vmatprep.subr.bf16.mxu0 %v6897_v28  ;;  %6244 = vmatpush3.bf16.msra.mxu1 %v6896_v27  ;;  %v6947_v27 = vld [vmem:[%s8986_s1 + $0x330] sm:$0xff]  }
  0x4a   :  { %6245 = vmatprep.subr.bf16.mxu1 %v6898_v29  ;;  %v6948_v28 = vld [vmem:[%s8986_s1 + $0x3b0] sm:$0xff]   ;;  %v6949_v29 = vld [vmem:[%s8986_s1 + $0x378] sm:$0xff]  }
  0x4c   :  { %6224 = vmatpush3.bf16.msra.mxu0 %v6899_v30  ;;  %v6950_v30 = vld [vmem:[%s8986_s1 + $0x3f8] sm:$0xff]  }
  0x4d   :  { %6225 = vmatprep.subr.bf16.mxu0 %v6901_v32  ;;  %6246 = vmatpush3.bf16.msra.mxu1 %v6900_v31  ;;  %v6951_v31 = vld [vmem:[%s8986_s1 + $0x338] sm:$0xff]  }
  0x4e   :  { %6247 = vmatprep.subr.bf16.mxu1 %v6902_v33  ;;  %v6952_v32 = vld [vmem:[%s8986_s1 + $0x3b8] sm:$0xff]   ;;  %v1084_v33 = vrot.slane %v7674_v53, %v7482_v41  ;;  %v6971_v53 = vld [vmem:[%s8986_s1 + $0x4e0] sm:$0xff]  }
  0x50   :  { %6226 = vmatpush3.bf16.msra.mxu0 %v6903_v34  ;;  %v6954_v34 = vld [vmem:[%s8986_s1 + $0x440] sm:$0xff]  }
  0x51   :  { %6227 = vmatprep.subr.bf16.mxu0 %v6905_v36  ;;  %6248 = vmatpush3.bf16.msra.mxu1 %v6904_v35  ;;  %v6955_v35 = vld [vmem:[%s8986_s1 + $0x4c0] sm:$0xff]  }
  0x52   :  { %6249 = vmatprep.subr.bf16.mxu1 %v6906_v37  ;;  %v6956_v36 = vld [vmem:[%s8986_s1 + $0x400] sm:$0xff]  }
  0x53   :  { %v6957_v37 = vld [vmem:[%s8986_s1 + $0x480] sm:$0xff]  }
  0x54   :  { %6228 = vmatpush3.bf16.msra.mxu0 %v6907_v38  ;;  %v1100_v38 = vcombine.high %v1084_v33, %v1084_v33 }
  0x55   :  { %6229 = vmatprep.subr.bf16.mxu0 %v6909_v40  ;;  %6250 = vmatpush3.bf16.msra.mxu1 %v6908_v39  ;;  %v6958_v39 = vld [vmem:[%s8986_s1 + $0x448] sm:$0xff]  }
  0x56   :  { %6251 = vmatprep.subr.bf16.mxu1 %v6910_v42  ;;  %v6959_v40 = vld [vmem:[%s8986_s1 + $0x4c8] sm:$0xff]  }
  0x57   :  { %v6960_v42 = vld [vmem:[%s8986_s1 + $0x408] sm:$0xff]  }
  0x58   :  { %6230 = vmatpush3.bf16.msra.mxu0 %v6911_v43  ;;  %v6961_v43 = vld [vmem:[%s8986_s1 + $0x488] sm:$0xff]  }
  0x59   :  { %6231 = vmatprep.subr.bf16.mxu0 %v6913_v45  ;;  %6252 = vmatpush3.bf16.msra.mxu1 %v6912_v44  ;;  %v6962_v44 = vld [vmem:[%s8986_s1 + $0x450] sm:$0xff]  }
  0x5a   :  { %6253 = vmatprep.subr.bf16.mxu1 %v6914_v47  ;;  %v6963_v45 = vld [vmem:[%s8986_s1 + $0x4d0] sm:$0xff]  }
  0x5b   :  { %v6965_v47 = vld [vmem:[%s8986_s1 + $0x490] sm:$0xff]  }
  0x5c   :  { %6232 = vmatpush3.bf16.msra.mxu0 %v6915_v50  ;;  %v6968_v50 = vld [vmem:[%s8986_s1 + $0x418] sm:$0xff]  }
  0x5d   :  { %6233 = vmatprep.subr.bf16.mxu0 %v6917_v54  ;;  %6254 = vmatpush3.bf16.msra.mxu1 %v6916_v51  ;;  %v6969_v51 = vld [vmem:[%s8986_s1 + $0x498] sm:$0xff]   ;;  %v6972_v54 = vld [vmem:[%s8986_s1 + $0x420] sm:$0xff]  }
  0x5e   :  { %6255 = vmatprep.subr.bf16.mxu1 %v6918_v55  ;;  %v6973_v55 = vld [vmem:[%s8986_s1 + $0x4a0] sm:$0xff]  }
  0x60   :  { %6234 = vmatpush3.bf16.msra.mxu0 %v6919_v58  ;;  %v6976_v58 = vld [vmem:[%s8986_s1 + $0x428] sm:$0xff]  }
  0x61   :  { %6263 = vmatprep.subr.bf16.mxu0 %v6921_v62  ;;  %6256 = vmatpush3.bf16.msra.mxu1 %v6920_v59  ;;  %v6977_v59 = vld [vmem:[%s8986_s1 + $0x4a8] sm:$0xff]   ;;  %v6979_v62 = vld [vmem:[%s8986_s1 + $0x4f0] sm:$0xff]  }
  0x62   :  { %6285 = vmatprep.subr.bf16.mxu1 %v6922_v63 }
  0x63   :  { %4505 = vmatmul.mubr.bf16.vlgmr.msra.gmra.mrb[8].mxu0 %v1077_v61  ;;  %v24_v61 = vld [vmem:[%s8985_s0 + $0x10] sm:$0xff] }
  0x64   :  { %6264 = vmatpush3.bf16.msra.mxu0 %v6923_v1  ;;  %4584 = vmatprep.mubr.bf16.mxu0 %v1098_v0  ;;  %v1110_v63 = vrot.slane %v24_v61, %v7482_v41  ;;  %v1103_v0 = vcombine.high %v24_v61, %v24_v61  ;;  %v6980_v1 = vld [vmem:[%s8986_s1 + $0x430] sm:$0xff]  }
  0x65   :  { %4545 = vmatmul.mubr.bf16.vlgmr.msra.gmra.mrb[8].mxu1 %v1099_v3  ;;  %6265 = vmatprep.subr.bf16.mxu0 %v6925_v4  ;;  %v7029_v61 = vld [vmem:[%s8986_s1 + $0x610] sm:$0xff]  }
  0x66   :  { %6286 = vmatpush3.bf16.msra.mxu1 %v6924_v2  ;;  %4624 = vmatprep.mubr.bf16.mxu1 %v1102_v6  ;;  %v6981_v2 = vld [vmem:[%s8986_s1 + $0x4b0] sm:$0xff]   ;;  %v1118_v3 = vcombine.high %v1110_v63, %v1110_v63  ;;  %v7880_v4 = vrot.slane %v1103_v0, %v7482_v41  ;;  %v6983_v6 = vld [vmem:[%s8986_s1 + $0x4f8] sm:$0xff]  }
  0x67   :  { %6287 = vmatprep.subr.bf16.mxu1 %v6926_v5  ;;  %v6982_v5 = vld [vmem:[%s8986_s1 + $0x478] sm:$0xff]  }
  0x68   :  { %6266 = vmatpush3.bf16.msra.mxu0 %v6927_v7  ;;  %v1140_v7 = vrot.slane %v1118_v3, %v7482_v41  ;;  %v7032_v0 = vld [vmem:[%s8986_s1 + $0x6d8] sm:$0xff]   ;;  %v7035_v3 = vld [vmem:[%s8986_s1 + $0x660] sm:$0xff]  }
  0x69   :  { %6267 = vmatprep.subr.bf16.mxu0 %v6929_v9  ;;  %v6984_v9 = vld [vmem:[%s8986_s1 + $0x438] sm:$0xff]  }
  0x6a   :  { %6288 = vmatpush3.bf16.msra.mxu1 %v6928_v8  ;;  %v1119_v8 = vcombine.high %v7880_v4, %v7880_v4 }
  0x6b   :  { %6289 = vmatprep.subr.bf16.mxu1 %v6930_v10  ;;  %v6985_v10 = vld [vmem:[%s8986_s1 + $0x4b8] sm:$0xff]  }
  0x6c   :  { %6268 = vmatpush3.bf16.msra.mxu0 %v6931_v11  ;;  %v1150_v11 = vcombine.high %v1140_v7, %v1140_v7 }
  0x6d   :  { %6269 = vmatprep.subr.bf16.mxu0 %v6933_v13  ;;  %v6986_v13 = vld [vmem:[%s8986_s1 + $0x540] sm:$0xff]  }
  0x6e   :  { %6290 = vmatpush3.bf16.msra.mxu1 %v6932_v12  ;;  %v1126_v12 = vrot.slane %v1110_v63, %v7482_v41  ;;  %v7031_v63 = vld [vmem:[%s8986_s1 + $0x658] sm:$0xff]  }
  0x6f   :  { %6291 = vmatprep.subr.bf16.mxu1 %v6934_v14  ;;  %v6987_v14 = vld [vmem:[%s8986_s1 + $0x5c0] sm:$0xff]  }
  0x70   :  { %6270 = vmatpush3.bf16.msra.mxu0 %v6935_v15  ;;  %v1147_v15 = vrot.slane %v1119_v8, %v7482_v41  ;;  %v7040_v8 = vld [vmem:[%s8986_s1 + $0x6e8] sm:$0xff]  }
  0x71   :  { %6271 = vmatprep.subr.bf16.mxu0 %v6937_v17  ;;  %v6989_v17 = vld [vmem:[%s8986_s1 + $0x580] sm:$0xff]  }
  0x72   :  { %6292 = vmatpush3.bf16.msra.mxu1 %v6936_v16  ;;  %v6988_v16 = vld [vmem:[%s8986_s1 + $0x500] sm:$0xff]  }
  0x73   :  { %6293 = vmatprep.subr.bf16.mxu1 %v6938_v18  ;;  %v1148_v18 = vcombine.high %v1126_v12, %v1126_v12 }
  0x74   :  { %6272 = vmatpush3.bf16.msra.mxu0 %v6939_v19  ;;  %v6990_v19 = vld [vmem:[%s8986_s1 + $0x548] sm:$0xff]  }
  0x75   :  { %6273 = vmatprep.subr.bf16.mxu0 %v6941_v21  ;;  %v1151_v21 = vcombine.high %v1147_v15, %v1147_v15 }
  0x76   :  { %6294 = vmatpush3.bf16.msra.mxu1 %v6940_v20  ;;  %v6991_v20 = vld [vmem:[%s8986_s1 + $0x5c8] sm:$0xff]  }
  0x77   :  { %6295 = vmatprep.subr.bf16.mxu1 %v6942_v22  ;;  %v6992_v22 = vld [vmem:[%s8986_s1 + $0x508] sm:$0xff]  }
  0x78   :  { %6274 = vmatpush3.bf16.msra.mxu0 %v6943_v23  ;;  %v6993_v23 = vld [vmem:[%s8986_s1 + $0x588] sm:$0xff]  }
  0x79   :  { %6275 = vmatprep.subr.bf16.mxu0 %v6945_v25  ;;  %v6995_v25 = vld [vmem:[%s8986_s1 + $0x5d0] sm:$0xff]  }
  0x7a   :  { %6296 = vmatpush3.bf16.msra.mxu1 %v6944_v24  ;;  %v6994_v24 = vld [vmem:[%s8986_s1 + $0x550] sm:$0xff]  }
  0x7b   :  { %6297 = vmatprep.subr.bf16.mxu1 %v6946_v26  ;;  %v6996_v26 = vld [vmem:[%s8986_s1 + $0x510] sm:$0xff]  }
  0x7c   :  { %6276 = vmatpush3.bf16.msra.mxu0 %v6947_v27  ;;  %v6997_v27 = vld [vmem:[%s8986_s1 + $0x590] sm:$0xff]  }
  0x7d   :  { %6277 = vmatprep.subr.bf16.mxu0 %v6949_v29  ;;  %v6999_v29 = vld [vmem:[%s8986_s1 + $0x5d8] sm:$0xff]  }
  0x7e   :  { %6298 = vmatpush3.bf16.msra.mxu1 %v6948_v28  ;;  %v6998_v28 = vld [vmem:[%s8986_s1 + $0x558] sm:$0xff]  }
  0x7f   :  { %6299 = vmatprep.subr.bf16.mxu1 %v6950_v30  ;;  %v7000_v30 = vld [vmem:[%s8986_s1 + $0x518] sm:$0xff]  }
  0x80   :  { %6278 = vmatpush3.bf16.msra.mxu0 %v6951_v31  ;;  %v7001_v31 = vld [vmem:[%s8986_s1 + $0x598] sm:$0xff]  }
  0x81   :  { %6307 = vmatprep.subr.bf16.mxu0 %v6954_v34  ;;  %v7004_v34 = vld [vmem:[%s8986_s1 + $0x520] sm:$0xff]  }
  0x82   :  { %6300 = vmatpush3.bf16.msra.mxu1 %v6952_v32  ;;  %v7002_v32 = vld [vmem:[%s8986_s1 + $0x560] sm:$0xff]  }
  0x83   :  { %4585 = vmatmul.mubr.bf16.vlgmr.msra.gmra.mrb[12].mxu0 %v1084_v33  ;;  %6329 = vmatprep.subr.bf16.mxu1 %v6955_v35  ;;  %v7003_v33 = vld [vmem:[%s8986_s1 + $0x5e0] sm:$0xff]  }
  0x84   :  { %6308 = vmatpush3.bf16.msra.mxu0 %v6956_v36  ;;  %4664 = vmatprep.mubr.bf16.mxu0 %v1140_v7  ;;  %v7005_v35 = vld [vmem:[%s8986_s1 + $0x5a0] sm:$0xff]   ;;  %v7006_v36 = vld [vmem:[%s8986_s1 + $0x568] sm:$0xff]  }
  0x85   :  { %4625 = vmatmul.mubr.bf16.vlgmr.msra.gmra.mrb[12].mxu1 %v1100_v38  ;;  %6309 = vmatprep.subr.bf16.mxu0 %v6958_v39  ;;  %v7008_v38 = vld [vmem:[%s8986_s1 + $0x528] sm:$0xff]  }
  0x86   :  { %6330 = vmatpush3.bf16.msra.mxu1 %v6957_v37  ;;  %4704 = vmatprep.mubr.bf16.mxu1 %v1150_v11  ;;  %v7007_v37 = vld [vmem:[%s8986_s1 + $0x5e8] sm:$0xff]   ;;  %v7043_v11 = vld [vmem:[%s8986_s1 + $0x670] sm:$0xff]  }
  0x87   :  { %6331 = vmatprep.subr.bf16.mxu1 %v6959_v40  ;;  %v7009_v39 = vld [vmem:[%s8986_s1 + $0x5a8] sm:$0xff]   ;;  %v7010_v40 = vld [vmem:[%s8986_s1 + $0x570] sm:$0xff]  }
  0x88   :  { %6310 = vmatpush3.bf16.msra.mxu0 %v6960_v42  ;;  %v7011_v42 = vld [vmem:[%s8986_s1 + $0x5f0] sm:$0xff]   ;;  %v7039_v7 = vld [vmem:[%s8986_s1 + $0x668] sm:$0xff]  }
  0x89   :  { %6311 = vmatprep.subr.bf16.mxu0 %v6962_v44  ;;  %v7013_v44 = vld [vmem:[%s8986_s1 + $0x5b0] sm:$0xff]  }
  0x8a   :  { %6332 = vmatpush3.bf16.msra.mxu1 %v6961_v43  ;;  %v7012_v43 = vld [vmem:[%s8986_s1 + $0x530] sm:$0xff]  }
  0x8b   :  { %6333 = vmatprep.subr.bf16.mxu1 %v6963_v45  ;;  %v7014_v45 = vld [vmem:[%s8986_s1 + $0x578] sm:$0xff]  }
  0x8c   :  { %6312 = vmatpush3.bf16.msra.mxu0 %v6964_v46  ;;  %v7015_v46 = vld [vmem:[%s8986_s1 + $0x5f8] sm:$0xff]  }
  0x8d   :  { %6313 = vmatprep.subr.bf16.mxu0 %v6966_v48  ;;  %v7017_v48 = vld [vmem:[%s8986_s1 + $0x5b8] sm:$0xff]  }
  0x8e   :  { %6334 = vmatpush3.bf16.msra.mxu1 %v6965_v47  ;;  %v7016_v47 = vld [vmem:[%s8986_s1 + $0x538] sm:$0xff]  }
  0x8f   :  { %6335 = vmatprep.subr.bf16.mxu1 %v6967_v49  ;;  %v1133_v49 = vrot.slane %v7880_v4, %v7482_v41  ;;  %v7036_v4 = vld [vmem:[%s8986_s1 + $0x6e0] sm:$0xff]  }
  0x90   :  { %6314 = vmatpush3.bf16.msra.mxu0 %v6968_v50  ;;  %v7019_v50 = vld [vmem:[%s8986_s1 + $0x640] sm:$0xff]  }
  0x91   :  { %6315 = vmatprep.subr.bf16.mxu0 %v6970_v52  ;;  %v7021_v52 = vld [vmem:[%s8986_s1 + $0x600] sm:$0xff]  }
  0x92   :  { %6336 = vmatpush3.bf16.msra.mxu1 %v6969_v51  ;;  %v7020_v51 = vld [vmem:[%s8986_s1 + $0x6c0] sm:$0xff]  }
  0x93   :  { %6337 = vmatprep.subr.bf16.mxu1 %v6971_v53  ;;  %v7022_v53 = vld [vmem:[%s8986_s1 + $0x680] sm:$0xff]  }
  0x94   :  { %6316 = vmatpush3.bf16.msra.mxu0 %v6972_v54  ;;  %v1149_v54 = vcombine.high %v1133_v49, %v1133_v49 }
  0x95   :  { %6317 = vmatprep.subr.bf16.mxu0 %v6974_v56  ;;  %v7024_v56 = vld [vmem:[%s8986_s1 + $0x6c8] sm:$0xff]  }
  0x96   :  { %6338 = vmatpush3.bf16.msra.mxu1 %v6973_v55  ;;  %v7023_v55 = vld [vmem:[%s8986_s1 + $0x648] sm:$0xff]  }
  0x97   :  { %6339 = vmatprep.subr.bf16.mxu1 %v6975_v57  ;;  %v7025_v57 = vld [vmem:[%s8986_s1 + $0x608] sm:$0xff]  }
  0x98   :  { %6318 = vmatpush3.bf16.msra.mxu0 %v6976_v58  ;;  %v7026_v58 = vld [vmem:[%s8986_s1 + $0x688] sm:$0xff]  }
  0x99   :  { %6319 = vmatprep.subr.bf16.mxu0 %v6978_v60  ;;  %v7028_v60 = vld [vmem:[%s8986_s1 + $0x6d0] sm:$0xff]  }
  0x9a   :  { %6340 = vmatpush3.bf16.msra.mxu1 %v6977_v59  ;;  %v7027_v59 = vld [vmem:[%s8986_s1 + $0x650] sm:$0xff]  }
  0x9b   :  { %6341 = vmatprep.subr.bf16.mxu1 %v6979_v62  ;;  %v7030_v62 = vld [vmem:[%s8986_s1 + $0x690] sm:$0xff]  }
  0x9c   :  { %6320 = vmatpush3.bf16.msra.mxu0 %v6980_v1  ;;  %v7033_v1 = vld [vmem:[%s8986_s1 + $0x618] sm:$0xff]  }
  0x9d   :  { %6321 = vmatprep.subr.bf16.mxu0 %v6982_v5  ;;  %v7037_v5 = vld [vmem:[%s8986_s1 + $0x620] sm:$0xff]  }
  0x9e   :  { %6342 = vmatpush3.bf16.msra.mxu1 %v6981_v2  ;;  %v7034_v2 = vld [vmem:[%s8986_s1 + $0x698] sm:$0xff]  }
  0x9f   :  { %6343 = vmatprep.subr.bf16.mxu1 %v6983_v6  ;;  %v7038_v6 = vld [vmem:[%s8986_s1 + $0x6a0] sm:$0xff]  }
  0xa0   :  { %6322 = vmatpush3.bf16.msra.mxu0 %v6984_v9  ;;  %v7041_v9 = vld [vmem:[%s8986_s1 + $0x628] sm:$0xff]  }
  0xa1   :  { %6351 = vmatprep.subr.bf16.mxu0 %v6986_v13  ;;  %v7044_v13 = vld [vmem:[%s8986_s1 + $0x6f0] sm:$0xff]  }
  0xa2   :  { %6344 = vmatpush3.bf16.msra.mxu1 %v6985_v10  ;;  %v7042_v10 = vld [vmem:[%s8986_s1 + $0x6a8] sm:$0xff]  }
  0xa3   :  { %4665 = vmatmul.mubr.bf16.vlgmr.msra.gmra.mrb[16].mxu0 %v1126_v12  ;;  %6373 = vmatprep.subr.bf16.mxu1 %v6987_v14  ;;  %v25_v12 = vld [vmem:[%s8985_s0 + $0x18] sm:$0xff] }
  0xa4   :  { %6352 = vmatpush3.bf16.msra.mxu0 %v6988_v16  ;;  %4744 = vmatprep.mubr.bf16.mxu0 %v1147_v15  ;;  %v1159_v14 = vrot.slane %v25_v12, %v7482_v41  ;;  %v1152_v15 = vcombine.high %v25_v12, %v25_v12  ;;  %v7045_v16 = vld [vmem:[%s8986_s1 + $0x630] sm:$0xff]   ;;  %v7082_v12 = vld [vmem:[%s8986_s1 + $0x7b8] sm:$0xff]  }
  0xa5   :  { %4705 = vmatmul.mubr.bf16.vlgmr.msra.gmra.mrb[16].mxu1 %v1148_v18  ;;  %6353 = vmatprep.subr.bf16.mxu0 %v6990_v19 }
  0xa6   :  { %6374 = vmatpush3.bf16.msra.mxu1 %v6989_v17  ;;  %4784 = vmatprep.mubr.bf16.mxu1 %v1151_v21  ;;  %v7047_v17 = vld [vmem:[%s8986_s1 + $0x678] sm:$0xff]   ;;  %v1167_v18 = vcombine.high %v1159_v14, %v1159_v14  ;;  %v8086_v19 = vrot.slane %v1152_v15, %v7482_v41  ;;  %v7085_v15 = vld [vmem:[%s8986_s1 + $0x8c0] sm:$0xff]  }
  0xa7   :  { %6375 = vmatprep.subr.bf16.mxu1 %v6991_v20  ;;  %v7046_v20 = vld [vmem:[%s8986_s1 + $0x6b0] sm:$0xff]   ;;  %v7048_v21 = vld [vmem:[%s8986_s1 + $0x6f8] sm:$0xff]  }
  0xa8   :  { %6354 = vmatpush3.bf16.msra.mxu0 %v6992_v22  ;;  %v1189_v22 = vrot.slane %v1167_v18, %v7482_v41 }
  0xa9   :  { %6355 = vmatprep.subr.bf16.mxu0 %v6994_v24  ;;  %v7049_v24 = vld [vmem:[%s8986_s1 + $0x638] sm:$0xff]  }
  0xaa   :  { %6376 = vmatpush3.bf16.msra.mxu1 %v6993_v23  ;;  %v1168_v23 = vcombine.high %v8086_v19, %v8086_v19 }
  0xab   :  { %6377 = vmatprep.subr.bf16.mxu1 %v6995_v25  ;;  %v1199_v25 = vcombine.high %v1189_v22, %v1189_v22 }
  0xac   :  { %6356 = vmatpush3.bf16.msra.mxu0 %v6996_v26  ;;  %v1175_v26 = vrot.slane %v1159_v14, %v7482_v41  ;;  %v7084_v14 = vld [vmem:[%s8986_s1 + $0x840] sm:$0xff]  }
  0xad   :  { %6357 = vmatprep.subr.bf16.mxu0 %v6998_v28  ;;  %v7050_v28 = vld [vmem:[%s8986_s1 + $0x6b8] sm:$0xff]  }
  0xae   :  { %6378 = vmatpush3.bf16.msra.mxu1 %v6997_v27  ;;  %v7051_v27 = vld [vmem:[%s8986_s1 + $0x740] sm:$0xff]  }
  0xaf   :  { %6379 = vmatprep.subr.bf16.mxu1 %v6999_v29  ;;  %v1196_v29 = vrot.slane %v1168_v23, %v7482_v41  ;;  %v7092_v23 = vld [vmem:[%s8986_s1 + $0x850] sm:$0xff]  }
  0xb0   :  { %6358 = vmatpush3.bf16.msra.mxu0 %v7000_v30  ;;  %v7052_v30 = vld [vmem:[%s8986_s1 + $0x7c0] sm:$0xff]  }
  0xb1   :  { %6359 = vmatprep.subr.bf16.mxu0 %v7002_v32  ;;  %v1197_v32 = vcombine.high %v1175_v26, %v1175_v26 }
  0xb2   :  { %6380 = vmatpush3.bf16.msra.mxu1 %v7001_v31  ;;  %v7053_v31 = vld [vmem:[%s8986_s1 + $0x700] sm:$0xff]  }
  0xb3   :  { %6381 = vmatprep.subr.bf16.mxu1 %v7003_v33  ;;  %v7055_v33 = vld [vmem:[%s8986_s1 + $0x748] sm:$0xff]  }
  0xb4   :  { %6360 = vmatpush3.bf16.msra.mxu0 %v7004_v34  ;;  %v7054_v34 = vld [vmem:[%s8986_s1 + $0x780] sm:$0xff]  }
  0xb5   :  { %6361 = vmatprep.subr.bf16.mxu0 %v7006_v36  ;;  %v7056_v36 = vld [vmem:[%s8986_s1 + $0x7c8] sm:$0xff]  }
  0xb6   :  { %6382 = vmatpush3.bf16.msra.mxu1 %v7005_v35  ;;  %v1200_v35 = vcombine.high %v1196_v29, %v1196_v29 }
  0xb7   :  { %6383 = vmatprep.subr.bf16.mxu1 %v7007_v37  ;;  %v7057_v37 = vld [vmem:[%s8986_s1 + $0x708] sm:$0xff]  }
  0xb8   :  { %6362 = vmatpush3.bf16.msra.mxu0 %v7008_v38  ;;  %v7059_v38 = vld [vmem:[%s8986_s1 + $0x750] sm:$0xff]  }
  0xb9   :  { %6363 = vmatprep.subr.bf16.mxu0 %v7010_v40  ;;  %v7060_v40 = vld [vmem:[%s8986_s1 + $0x7d0] sm:$0xff]  }
  0xba   :  { %6384 = vmatpush3.bf16.msra.mxu1 %v7009_v39  ;;  %v7058_v39 = vld [vmem:[%s8986_s1 + $0x788] sm:$0xff]  }
  0xbb   :  { %6385 = vmatprep.subr.bf16.mxu1 %v7011_v42  ;;  %v7061_v42 = vld [vmem:[%s8986_s1 + $0x710] sm:$0xff]  }
  0xbc   :  { %6364 = vmatpush3.bf16.msra.mxu0 %v7012_v43  ;;  %v7063_v43 = vld [vmem:[%s8986_s1 + $0x758] sm:$0xff]  }
  0xbd   :  { %6365 = vmatprep.subr.bf16.mxu0 %v7014_v45  ;;  %v7064_v45 = vld [vmem:[%s8986_s1 + $0x7d8] sm:$0xff]  }
  0xbe   :  { %6386 = vmatpush3.bf16.msra.mxu1 %v7013_v44  ;;  %v7062_v44 = vld [vmem:[%s8986_s1 + $0x790] sm:$0xff]  }
  0xbf   :  { %6387 = vmatprep.subr.bf16.mxu1 %v7015_v46  ;;  %v7065_v46 = vld [vmem:[%s8986_s1 + $0x718] sm:$0xff]  }
  0xc0   :  { %6366 = vmatpush3.bf16.msra.mxu0 %v7016_v47  ;;  %v7066_v47 = vld [vmem:[%s8986_s1 + $0x798] sm:$0xff]  }
  0xc1   :  { %6395 = vmatprep.subr.bf16.mxu0 %v7019_v50  ;;  %v7069_v50 = vld [vmem:[%s8986_s1 + $0x720] sm:$0xff]  }
  0xc2   :  { %6388 = vmatpush3.bf16.msra.mxu1 %v7017_v48  ;;  %v7067_v48 = vld [vmem:[%s8986_s1 + $0x760] sm:$0xff]  }
  0xc3   :  { %4745 = vmatmul.mubr.bf16.vlgmr.msra.gmra.mrb[20].mxu0 %v1133_v49  ;;  %6417 = vmatprep.subr.bf16.mxu1 %v7020_v51  ;;  %v7068_v49 = vld [vmem:[%s8986_s1 + $0x7e0] sm:$0xff]  }
  0xc4   :  { %6396 = vmatpush3.bf16.msra.mxu0 %v7021_v52  ;;  %4824 = vmatprep.mubr.bf16.mxu0 %v1189_v22  ;;  %v7070_v51 = vld [vmem:[%s8986_s1 + $0x7a0] sm:$0xff]   ;;  %v7071_v52 = vld [vmem:[%s8986_s1 + $0x768] sm:$0xff]  }
  0xc5   :  { %4785 = vmatmul.mubr.bf16.vlgmr.msra.gmra.mrb[20].mxu1 %v1149_v54  ;;  %6397 = vmatprep.subr.bf16.mxu0 %v7023_v55  ;;  %v7073_v54 = vld [vmem:[%s8986_s1 + $0x728] sm:$0xff]  }
  0xc6   :  { %6418 = vmatpush3.bf16.msra.mxu1 %v7022_v53  ;;  %4864 = vmatprep.mubr.bf16.mxu1 %v1199_v25  ;;  %v7072_v53 = vld [vmem:[%s8986_s1 + $0x7e8] sm:$0xff]   ;;  %v7094_v25 = vld [vmem:[%s8986_s1 + $0x810] sm:$0xff]  }
  0xc7   :  { %6419 = vmatprep.subr.bf16.mxu1 %v7024_v56  ;;  %v7074_v55 = vld [vmem:[%s8986_s1 + $0x7a8] sm:$0xff]   ;;  %v5640_v56 = vld [vmem:[%s8987_s2] ss:$0 sm:$0xff] }
  0xc8   :  { %6398 = vmatpush3.bf16.msra.mxu0 %v7025_v57  ;;  %v7075_v57 = vld [vmem:[%s8986_s1 + $0x770] sm:$0xff]   ;;  %v7091_v22 = vld [vmem:[%s8986_s1 + $0x888] sm:$0xff]  }
  0xc9   :  { %6399 = vmatprep.subr.bf16.mxu0 %v7027_v59  ;;  %v7076_v59 = vld [vmem:[%s8986_s1 + $0x7f0] sm:$0xff]  }
  0xca   :  { %6420 = vmatpush3.bf16.msra.mxu1 %v7026_v58 }
  0xcb   :  { %6421 = vmatprep.subr.bf16.mxu1 %v7028_v60 }
  0xcc   :  { %6400 = vmatpush3.bf16.msra.mxu0 %v7029_v61  ;;  %v7077_v61 = vld [vmem:[%s8986_s1 + $0x730] sm:$0xff]  }
  0xcd   :  { %6401 = vmatprep.subr.bf16.mxu0 %v7031_v63 }
  0xce   :  { %6422 = vmatpush3.bf16.msra.mxu1 %v7030_v62 }
  0xcf   :  { %6423 = vmatprep.subr.bf16.mxu1 %v7032_v0 }
  0xd0   :  { %6402 = vmatpush3.bf16.msra.mxu0 %v7033_v1  ;;  %v7078_v1 = vld [vmem:[%s8986_s1 + $0x7b0] sm:$0xff]  }
  0xd1   :  { %6403 = vmatprep.subr.bf16.mxu0 %v7035_v3 }
  0xd2   :  { %6424 = vmatpush3.bf16.msra.mxu1 %v7034_v2  ;;  %v7079_v2 = vld [vmem:[%s8986_s1 + $0x778] sm:$0xff]  }
  0xd3   :  { %6425 = vmatprep.subr.bf16.mxu1 %v7036_v4 }
  0xd4   :  { %6404 = vmatpush3.bf16.msra.mxu0 %v7037_v5 }
  0xd5   :  { %6405 = vmatprep.subr.bf16.mxu0 %v7039_v7 }
  0xd6   :  { %6426 = vmatpush3.bf16.msra.mxu1 %v7038_v6 }
  0xd7   :  { %6427 = vmatprep.subr.bf16.mxu1 %v7040_v8  ;;  %v7080_v8 = vld [vmem:[%s8986_s1 + $0x7f8] sm:$0xff]  }
  0xd8   :  { %6406 = vmatpush3.bf16.msra.mxu0 %v7041_v9 }
  0xd9   :  { %6407 = vmatprep.subr.bf16.mxu0 %v7043_v11 }
  0xda   :  { %6428 = vmatpush3.bf16.msra.mxu1 %v7042_v10  ;;  %v7081_v10 = vld [vmem:[%s8986_s1 + $0x738] sm:$0xff]  }
  0xdb   :  { %6429 = vmatprep.subr.bf16.mxu1 %v7044_v13  ;;  %v1182_v13 = vrot.slane %v8086_v19, %v7482_v41  ;;  %v7088_v19 = vld [vmem:[%s8986_s1 + $0x848] sm:$0xff]  }
  0xdc   :  { %6408 = vmatpush3.bf16.msra.mxu0 %v7045_v16  ;;  %v7086_v16 = vld [vmem:[%s8986_s1 + $0x800] sm:$0xff]  }
  0xdd   :  { %6409 = vmatprep.subr.bf16.mxu0 %v7047_v17  ;;  %v7087_v17 = vld [vmem:[%s8986_s1 + $0x880] sm:$0xff]   ;;  %v1198_v18 = vcombine.high %v1182_v13, %v1182_v13 }
  0xde   :  { %6430 = vmatpush3.bf16.msra.mxu1 %v7046_v20  ;;  %v7089_v20 = vld [vmem:[%s8986_s1 + $0x8c8] sm:$0xff]  }
  0xdf   :  { %6431 = vmatprep.subr.bf16.mxu1 %v7048_v21  ;;  %v7090_v21 = vld [vmem:[%s8986_s1 + $0x808] sm:$0xff]  }
  0xe0   :  { %6410 = vmatpush3.bf16.msra.mxu0 %v7049_v24  ;;  %v7093_v24 = vld [vmem:[%s8986_s1 + $0x8d0] sm:$0xff]  }
  0xe1   :  { %6439 = vmatprep.subr.bf16.mxu0 %v7051_v27  ;;  %v7096_v27 = vld [vmem:[%s8986_s1 + $0x858] sm:$0xff]  }
  0xe2   :  { %6432 = vmatpush3.bf16.msra.mxu1 %v7050_v28  ;;  %v7097_v28 = vld [vmem:[%s8986_s1 + $0x8d8] sm:$0xff]  }
  0xe3   :  { %4825 = vmatmul.mubr.bf16.vlgmr.msra.gmra.mrb[24].mxu0 %v1175_v26  ;;  %6461 = vmatprep.subr.bf16.mxu1 %v7052_v30  ;;  %v7095_v26 = vld [vmem:[%s8986_s1 + $0x890] sm:$0xff]   ;;  %v7099_v30 = vld [vmem:[%s8986_s1 + $0x898] sm:$0xff]  }
  0xe4   :  { %6440 = vmatpush3.bf16.msra.mxu0 %v7053_v31  ;;  %4904 = vmatprep.mubr.bf16.mxu0 %v1196_v29  ;;  %v7098_v29 = vld [vmem:[%s8986_s1 + $0x818] sm:$0xff]   ;;  %v7100_v31 = vld [vmem:[%s8986_s1 + $0x860] sm:$0xff]  }
  0xe5   :  { %4865 = vmatmul.mubr.bf16.vlgmr.msra.gmra.mrb[24].mxu1 %v1197_v32  ;;  %6441 = vmatprep.subr.bf16.mxu0 %v7055_v33  ;;  %v7101_v32 = vld [vmem:[%s8986_s1 + $0x8e0] sm:$0xff]  }
  0xe6   :  { %6462 = vmatpush3.bf16.msra.mxu1 %v7054_v34  ;;  %4944 = vmatprep.mubr.bf16.mxu1 %v1200_v35  ;;  %v7102_v33 = vld [vmem:[%s8986_s1 + $0x820] sm:$0xff]   ;;  %v7104_v35 = vld [vmem:[%s8986_s1 + $0x868] sm:$0xff]  }
  0xe7   :  { %6463 = vmatprep.subr.bf16.mxu1 %v7056_v36  ;;  %v7103_v34 = vld [vmem:[%s8986_s1 + $0x8a0] sm:$0xff]   ;;  %v7105_v36 = vld [vmem:[%s8986_s1 + $0x8e8] sm:$0xff]  }
  0xe8   :  { %6442 = vmatpush3.bf16.msra.mxu0 %v7057_v37  ;;  %v7106_v37 = vld [vmem:[%s8986_s1 + $0x828] sm:$0xff]  }
  0xe9   :  { %6443 = vmatprep.subr.bf16.mxu0 %v7059_v38  ;;  %v7107_v38 = vld [vmem:[%s8986_s1 + $0x8a8] sm:$0xff]  }
  0xea   :  { %6464 = vmatpush3.bf16.msra.mxu1 %v7058_v39  ;;  %v7108_v39 = vld [vmem:[%s8986_s1 + $0x870] sm:$0xff]  }
  0xeb   :  { %6465 = vmatprep.subr.bf16.mxu1 %v7060_v40  ;;  %v7109_v40 = vld [vmem:[%s8986_s1 + $0x8f0] sm:$0xff]  }
  0xec   :  { %6444 = vmatpush3.bf16.msra.mxu0 %v7061_v42 }
  0xed   :  { %6445 = vmatprep.subr.bf16.mxu0 %v7063_v43  ;;  %v7110_v43 = vld [vmem:[%s8986_s1 + $0x830] sm:$0xff]  }
  0xee   :  { %6466 = vmatpush3.bf16.msra.mxu1 %v7062_v44 }
  0xef   :  { %6467 = vmatprep.subr.bf16.mxu1 %v7064_v45  ;;  %v26_v45 = vld [vmem:[%s8985_s0 + $0x20] sm:$0xff] }
  0xf0   :  { %6446 = vmatpush3.bf16.msra.mxu0 %v7065_v46 }
  0xf1   :  { %6447 = vmatprep.subr.bf16.mxu0 %v7067_v48 }
  0xf2   :  { %6468 = vmatpush3.bf16.msra.mxu1 %v7066_v47 }
  0xf3   :  { %6469 = vmatprep.subr.bf16.mxu1 %v7068_v49  ;;  %v7111_v49 = vld [vmem:[%s8986_s1 + $0x8b0] sm:$0xff]  }
  0xf4   :  { %6448 = vmatpush3.bf16.msra.mxu0 %v7069_v50  ;;  %v7112_v50 = vld [vmem:[%s8986_s1 + $0x878] sm:$0xff]  }
  0xf5   :  { %6449 = vmatprep.subr.bf16.mxu0 %v7071_v52  ;;  %v1201_v52 = vcombine.high %v26_v45, %v26_v45 }
  0xf6   :  { %6470 = vmatpush3.bf16.msra.mxu1 %v7070_v51  ;;  %v6147_v58 = vpop.f32.mrb[0].mxu0  ;;  %v1208_v51 = vrot.slane %v26_v45, %v7482_v41 }
  0xf7   :  { %v6148_v60 = vpop.f32.mrb[1].mxu0  ;;  %6471 = vmatprep.subr.bf16.mxu1 %v7072_v53  ;;  %v6169_v62 = vpop.f32.mrb[0].mxu1 }
  0xf8   :  { %v6149_v63 = vadd.f32 %v6148_v60, %v6147_v58  ;;  %v6150_v0 = vpop.f32.mrb[2].mxu0  ;;  %6450 = vmatpush3.bf16.msra.mxu0 %v7073_v54  ;;  %v6170_v3 = vpop.f32.mrb[1].mxu1  ;;  %v7113_v58 = vld [vmem:[%s8986_s1 + $0x8f8] sm:$0xff]  }
  0xf9   :  { %v6151_v4 = vpop.f32.mrb[3].mxu0  ;;  %6451 = vmatprep.subr.bf16.mxu0 %v7075_v57  ;;  %v6171_v6 = vadd.f32 %v6170_v3, %v6169_v62  ;;  %v6172_v7 = vpop.f32.mrb[2].mxu1  ;;  %v8307_v62 = vrot.slane %v1201_v52, %v7482_v41  ;;  %v7115_v0 = vld [vmem:[%s8986_s1 + $0x8b8] sm:$0xff]   ;;  %v7116_v3 = vld [vmem:[%s8986_s1 + $0x940] sm:$0xff]  }
  0xfa   :  { %v4347_v5 = vadd.f32 %v6149_v63, %v5640_v56  ;;  %6472 = vmatpush3.bf16.msra.mxu1 %v7074_v55  ;;  %v6173_v9 = vpop.f32.mrb[3].mxu1  ;;  %v7118_v7 = vld [vmem:[%s8986_s1 + $0x900] sm:$0xff]   ;;  %v7147_v52 = vld [vmem:[%s8986_s1 + $0x9b8] sm:$0xff]  }
  0xfb   :  { %6473 = vmatprep.subr.bf16.mxu1 %v7076_v59  ;;  %v1216_v59 = vcombine.high %v1208_v51, %v1208_v51  ;;  %v1217_v4 = vcombine.high %v8307_v62, %v8307_v62  ;;  %v7119_v9 = vld [vmem:[%s8986_s1 + $0x980] sm:$0xff]  }
  0xfc   :  { %v8201_v11 = vadd.f32 %v6171_v6, %v4347_v5  ;;  %6452 = vmatpush3.bf16.msra.mxu0 %v7077_v61  ;;  %v7114_v61 = vld [vmem:[%s8986_s1 + $0x838] sm:$0xff]   ;;  %v7117_v6 = vld [vmem:[%s8986_s1 + $0x9c0] sm:$0xff]  }
  0xfd   :  { %6453 = vmatprep.subr.bf16.mxu0 %v7079_v2  ;;  %v1224_v2 = vrot.slane %v1208_v51, %v7482_v41 }
  0xfe   :  { %6474 = vmatpush3.bf16.msra.mxu1 %v7078_v1  ;;  %v1238_v1 = vrot.slane %v1216_v59, %v7482_v41  ;;  %v7153_v59 = vld [vmem:[%s8986_s1 + $0xa48] sm:$0xff]  }
  0xff   :  { %6475 = vmatprep.subr.bf16.mxu1 %v7080_v8  ;;  %v1245_v8 = vrot.slane %v1217_v4, %v7482_v41  ;;  %v7162_v4 = vld [vmem:[%s8986_s1 + $0xad8] sm:$0xff]  }
 0x100   :  { %6454 = vmatpush3.bf16.msra.mxu0 %v7081_v10  ;;  %v1248_v5 = vcombine.high %v1238_v1, %v1238_v1  ;;  %v1246_v10 = vcombine.high %v1224_v2, %v1224_v2 }
 0x101   :  { %6483 = vmatprep.subr.bf16.mxu0 %v7084_v14  ;;  %v7122_v14 = vld [vmem:[%s8986_s1 + $0x908] sm:$0xff]  }
 0x102   :  { %6476 = vmatpush3.bf16.msra.mxu1 %v7082_v12  ;;  %v7121_v12 = vld [vmem:[%s8986_s1 + $0x9c8] sm:$0xff]  }
 0x103   :  { %4905 = vmatmul.mubr.bf16.vlgmr.msra.gmra.mrb[28].mxu0 %v1182_v13  ;;  %6505 = vmatprep.subr.bf16.mxu1 %v7085_v15  ;;  %v1249_v13 = vcombine.high %v1245_v8, %v1245_v8  ;;  %v7123_v15 = vld [vmem:[%s8986_s1 + $0x988] sm:$0xff]  }
 0x104   :  { %6484 = vmatpush3.bf16.msra.mxu0 %v7086_v16  ;;  %4984 = vmatprep.mubr.bf16.mxu0 %v1238_v1  ;;  %v7124_v16 = vld [vmem:[%s8986_s1 + $0x950] sm:$0xff]  }
 0x105   :  { %4945 = vmatmul.mubr.bf16.vlgmr.msra.gmra.mrb[28].mxu1 %v1198_v18  ;;  %6485 = vmatprep.subr.bf16.mxu0 %v7088_v19  ;;  %v7126_v18 = vld [vmem:[%s8986_s1 + $0x910] sm:$0xff]  }
 0x106   :  { %6506 = vmatpush3.bf16.msra.mxu1 %v7087_v17  ;;  %5024 = vmatprep.mubr.bf16.mxu1 %v1248_v5  ;;  %v7125_v17 = vld [vmem:[%s8986_s1 + $0x9d0] sm:$0xff]   ;;  %v7163_v5 = vld [vmem:[%s8986_s1 + $0xa18] sm:$0xff]  }
 0x107   :  { %6507 = vmatprep.subr.bf16.mxu1 %v7089_v20  ;;  %v7127_v19 = vld [vmem:[%s8986_s1 + $0x990] sm:$0xff]   ;;  %v7128_v20 = vld [vmem:[%s8986_s1 + $0x958] sm:$0xff]  }
 0x108   :  { %6486 = vmatpush3.bf16.msra.mxu0 %v7090_v21  ;;  %v7129_v21 = vld [vmem:[%s8986_s1 + $0x9d8] sm:$0xff]   ;;  %v7159_v1 = vld [vmem:[%s8986_s1 + $0xa10] sm:$0xff]  }
 0x109   :  { %6487 = vmatprep.subr.bf16.mxu0 %v7092_v23  ;;  %v7131_v23 = vld [vmem:[%s8986_s1 + $0x998] sm:$0xff]  }
 0x10a   :  { %6508 = vmatpush3.bf16.msra.mxu1 %v7091_v22  ;;  %v7130_v22 = vld [vmem:[%s8986_s1 + $0x918] sm:$0xff]  }
 0x10b   :  { %6509 = vmatprep.subr.bf16.mxu1 %v7093_v24  ;;  %v7132_v24 = vld [vmem:[%s8986_s1 + $0x960] sm:$0xff]  }
 0x10c   :  { %6488 = vmatpush3.bf16.msra.mxu0 %v7094_v25  ;;  %v7133_v25 = vld [vmem:[%s8986_s1 + $0x9e0] sm:$0xff]  }
 0x10d   :  { %6489 = vmatprep.subr.bf16.mxu0 %v7096_v27  ;;  %v7135_v27 = vld [vmem:[%s8986_s1 + $0x9a0] sm:$0xff]  }
 0x10e   :  { %6510 = vmatpush3.bf16.msra.mxu1 %v7095_v26  ;;  %v7134_v26 = vld [vmem:[%s8986_s1 + $0x920] sm:$0xff]  }
 0x10f   :  { %6511 = vmatprep.subr.bf16.mxu1 %v7097_v28  ;;  %v7136_v28 = vld [vmem:[%s8986_s1 + $0x968] sm:$0xff]  }
 0x110   :  { %6490 = vmatpush3.bf16.msra.mxu0 %v7098_v29  ;;  %v7137_v29 = vld [vmem:[%s8986_s1 + $0x9e8] sm:$0xff]  }
 0x111   :  { %6491 = vmatprep.subr.bf16.mxu0 %v7100_v31  ;;  %v7139_v31 = vld [vmem:[%s8986_s1 + $0x9a8] sm:$0xff]  }
 0x112   :  { %6512 = vmatpush3.bf16.msra.mxu1 %v7099_v30  ;;  %v7138_v30 = vld [vmem:[%s8986_s1 + $0x928] sm:$0xff]  }
 0x113   :  { %6513 = vmatprep.subr.bf16.mxu1 %v7101_v32  ;;  %v7140_v32 = vld [vmem:[%s8986_s1 + $0x970] sm:$0xff]  }
 0x114   :  { %6492 = vmatpush3.bf16.msra.mxu0 %v7102_v33 }
 0x115   :  { %6493 = vmatprep.subr.bf16.mxu0 %v7104_v35 }
 0x116   :  { %6514 = vmatpush3.bf16.msra.mxu1 %v7103_v34  ;;  %v6191_v42 = vpop.f32.mrb[4].mxu0  ;;  %v7141_v34 = vld [vmem:[%s8986_s1 + $0x9f0] sm:$0xff]  }
 0x117   :  { %v6192_v44 = vpop.f32.mrb[5].mxu0  ;;  %6515 = vmatprep.subr.bf16.mxu1 %v7105_v36  ;;  %v6213_v46 = vpop.f32.mrb[4].mxu1  ;;  %v7142_v36 = vld [vmem:[%s8986_s1 + $0x930] sm:$0xff]  }
 0x118   :  { %v6193_v47 = vadd.f32 %v6192_v44, %v6191_v42  ;;  %v6194_v48 = vpop.f32.mrb[6].mxu0  ;;  %6494 = vmatpush3.bf16.msra.mxu0 %v7106_v37  ;;  %v6214_v53 = vpop.f32.mrb[5].mxu1  ;;  %v7144_v42 = vld [vmem:[%s8986_s1 + $0x978] sm:$0xff]  }
 0x119   :  { %v6195_v54 = vpop.f32.mrb[7].mxu0  ;;  %6495 = vmatprep.subr.bf16.mxu0 %v7108_v39  ;;  %v6215_v56 = vadd.f32 %v6214_v53, %v6213_v46  ;;  %v6216_v57 = vpop.f32.mrb[6].mxu1  ;;  %v7145_v48 = vld [vmem:[%s8986_s1 + $0x9f8] sm:$0xff]   ;;  %v1231_v53 = vrot.slane %v8307_v62, %v7482_v41  ;;  %v7156_v62 = vld [vmem:[%s8986_s1 + $0xa88] sm:$0xff]  }
 0x11a   :  { %v4427_v55 = vadd.f32 %v6193_v47, %v8201_v11  ;;  %6516 = vmatpush3.bf16.msra.mxu1 %v7107_v38  ;;  %v6217_v60 = vpop.f32.mrb[7].mxu1  ;;  %v7120_v11 = vld [vmem:[%s8986_s1 + $0x948] sm:$0xff]   ;;  %v7149_v54 = vld [vmem:[%s8986_s1 + $0xa40] sm:$0xff]  }
 0x11b   :  { %6517 = vmatprep.subr.bf16.mxu1 %v7109_v40  ;;  %v7143_v40 = vld [vmem:[%s8986_s1 + $0x9b0] sm:$0xff]   ;;  %v7152_v57 = vld [vmem:[%s8986_s1 + $0xa80] sm:$0xff]   ;;  %v7154_v60 = vld [vmem:[%s8986_s1 + $0xac8] sm:$0xff]  }
 0x11c   :  { %v8309_v63 = vadd.f32 %v6215_v56, %v4427_v55  ;;  %6496 = vmatpush3.bf16.msra.mxu0 %v7110_v43  ;;  %v7150_v55 = vld [vmem:[%s8986_s1 + $0xac0] sm:$0xff]  }
 0x11d   :  { %6497 = vmatprep.subr.bf16.mxu0 %v7112_v50  ;;  %v7146_v50 = vld [vmem:[%s8986_s1 + $0x938] sm:$0xff]   ;;  %v7151_v56 = vld [vmem:[%s8986_s1 + $0xa00] sm:$0xff]  }
 0x11e   :  { %6518 = vmatpush3.bf16.msra.mxu1 %v7111_v49 }
 0x11f   :  { %6519 = vmatprep.subr.bf16.mxu1 %v7113_v58  ;;  %v1247_v58 = vcombine.high %v1231_v53, %v1231_v53 }
 0x120   :  { %6498 = vmatpush3.bf16.msra.mxu0 %v7114_v61  ;;  %v7155_v61 = vld [vmem:[%s8986_s1 + $0xa08] sm:$0xff]  }
 0x121   :  { %6527 = vmatprep.subr.bf16.mxu0 %v7116_v3  ;;  %v7161_v3 = vld [vmem:[%s8986_s1 + $0xa58] sm:$0xff]  }
 0x122   :  { %6520 = vmatpush3.bf16.msra.mxu1 %v7115_v0  ;;  %v7158_v0 = vld [vmem:[%s8986_s1 + $0xad0] sm:$0xff]  }
 0x123   :  { %4985 = vmatmul.mubr.bf16.vlgmr.msra.gmra.mrb[32].mxu0 %v1224_v2  ;;  %6549 = vmatprep.subr.bf16.mxu1 %v7117_v6  ;;  %v7160_v2 = vld [vmem:[%s8986_s1 + $0xa90] sm:$0xff]   ;;  %v7164_v6 = vld [vmem:[%s8986_s1 + $0xa98] sm:$0xff]  }
 0x124   :  { %6528 = vmatpush3.bf16.msra.mxu0 %v7118_v7  ;;  %5064 = vmatprep.mubr.bf16.mxu0 %v1245_v8  ;;  %v7165_v7 = vld [vmem:[%s8986_s1 + $0xa60] sm:$0xff]  }
 0x125   :  { %5025 = vmatmul.mubr.bf16.vlgmr.msra.gmra.mrb[32].mxu1 %v1246_v10  ;;  %6529 = vmatprep.subr.bf16.mxu0 %v7120_v11  ;;  %v7166_v8 = vld [vmem:[%s8986_s1 + $0xae0] sm:$0xff]   ;;  %v7169_v11 = vld [vmem:[%s8986_s1 + $0xa68] sm:$0xff]  }
 0x126   :  { %6550 = vmatpush3.bf16.msra.mxu1 %v7119_v9  ;;  %5104 = vmatprep.mubr.bf16.mxu1 %v1249_v13  ;;  %v7167_v9 = vld [vmem:[%s8986_s1 + $0xa20] sm:$0xff]   ;;  %v7171_v13 = vld [vmem:[%s8986_s1 + $0xa28] sm:$0xff]  }
 0x127   :  { %6551 = vmatprep.subr.bf16.mxu1 %v7121_v12  ;;  %v7168_v10 = vld [vmem:[%s8986_s1 + $0xaa0] sm:$0xff]   ;;  %v7170_v12 = vld [vmem:[%s8986_s1 + $0xae8] sm:$0xff]  }
 0x128   :  { %6530 = vmatpush3.bf16.msra.mxu0 %v7122_v14  ;;  %v7172_v14 = vld [vmem:[%s8986_s1 + $0xaa8] sm:$0xff]  }
 0x129   :  { %6531 = vmatprep.subr.bf16.mxu0 %v7124_v16 }
 0x12a   :  { %6552 = vmatpush3.bf16.msra.mxu1 %v7123_v15  ;;  %v7173_v15 = vld [vmem:[%s8986_s1 + $0xa70] sm:$0xff]  }
 0x12b   :  { %6553 = vmatprep.subr.bf16.mxu1 %v7125_v17  ;;  %v7174_v17 = vld [vmem:[%s8986_s1 + $0xaf0] sm:$0xff]  }
 0x12c   :  { %6532 = vmatpush3.bf16.msra.mxu0 %v7126_v18 }
 0x12d   :  { %6533 = vmatprep.subr.bf16.mxu0 %v7128_v20 }
 0x12e   :  { %6554 = vmatpush3.bf16.msra.mxu1 %v7127_v19  ;;  %v7175_v19 = vld [vmem:[%s8986_s1 + $0xa30] sm:$0xff]  }
 0x12f   :  { %6555 = vmatprep.subr.bf16.mxu1 %v7129_v21 }
 0x130   :  { %6534 = vmatpush3.bf16.msra.mxu0 %v7130_v22 }
 0x131   :  { %6535 = vmatprep.subr.bf16.mxu0 %v7132_v24  ;;  %v7177_v24 = vld [vmem:[%s8986_s1 + $0xa78] sm:$0xff]  }
 0x132   :  { %6556 = vmatpush3.bf16.msra.mxu1 %v7131_v23  ;;  %v7176_v23 = vld [vmem:[%s8986_s1 + $0xab0] sm:$0xff]  }
 0x133   :  { %6557 = vmatprep.subr.bf16.mxu1 %v7133_v25  ;;  %v27_v25 = vld [vmem:[%s8985_s0 + $0x28] sm:$0xff] }
 0x134   :  { %6536 = vmatpush3.bf16.msra.mxu0 %v7134_v26 }
 0x135   :  { %6537 = vmatprep.subr.bf16.mxu0 %v7136_v28  ;;  %v1257_v28 = vrot.slane %v27_v25, %v7482_v41 }
 0x136   :  { %6558 = vmatpush3.bf16.msra.mxu1 %v7135_v27  ;;  %v6235_v33 = vpop.f32.mrb[8].mxu0 }
 0x137   :  { %v6236_v35 = vpop.f32.mrb[9].mxu0  ;;  %6559 = vmatprep.subr.bf16.mxu1 %v7137_v29  ;;  %v1250_v29 = vcombine.high %v27_v25, %v27_v25  ;;  %v7211_v25 = vld [vmem:[%s8986_s1 + $0xb38] sm:$0xff]  }
 0x138   :  { %v6257_v37 = vpop.f32.mrb[8].mxu1  ;;  %v6237_v38 = vadd.f32 %v6236_v35, %v6235_v33  ;;  %v6238_v39 = vpop.f32.mrb[10].mxu0  ;;  %6538 = vmatpush3.bf16.msra.mxu0 %v7138_v30  ;;  %v7178_v33 = vld [vmem:[%s8986_s1 + $0xaf8] sm:$0xff]  }
 0x139   :  { %v6258_v43 = vpop.f32.mrb[9].mxu1  ;;  %v6239_v44 = vpop.f32.mrb[11].mxu0  ;;  %6539 = vmatprep.subr.bf16.mxu0 %v7140_v32  ;;  %v7179_v35 = vld [vmem:[%s8986_s1 + $0xa38] sm:$0xff]  }
 0x13a   :  { %v4507_v45 = vadd.f32 %v6237_v38, %v8309_v63  ;;  %v6259_v46 = vadd.f32 %v6258_v43, %v6257_v37  ;;  %v6260_v47 = vpop.f32.mrb[10].mxu1  ;;  %6560 = vmatpush3.bf16.msra.mxu1 %v7139_v31  ;;  %v7157_v63 = vld [vmem:[%s8986_s1 + $0xa50] sm:$0xff]   ;;  %v8519_v37 = vrot.slane %v1250_v29, %v7482_v41  ;;  %v7180_v39 = vld [vmem:[%s8986_s1 + $0xab8] sm:$0xff]   ;;  %v7181_v43 = vld [vmem:[%s8986_s1 + $0xb40] sm:$0xff]  }
 0x13b   :  { %v6261_v49 = vpop.f32.mrb[11].mxu1  ;;  %6561 = vmatprep.subr.bf16.mxu1 %v7141_v34  ;;  %v7183_v47 = vld [vmem:[%s8986_s1 + $0xb00] sm:$0xff]  }
 0x13c   :  { %v8413_v51 = vadd.f32 %v6259_v46, %v4507_v45  ;;  %6540 = vmatpush3.bf16.msra.mxu0 %v7142_v36  ;;  %v1265_v36 = vcombine.high %v1257_v28, %v1257_v28  ;;  %v1266_v44 = vcombine.high %v8519_v37, %v8519_v37  ;;  %v7182_v45 = vld [vmem:[%s8986_s1 + $0xbc0] sm:$0xff]  }
 0x13d   :  { %6541 = vmatprep.subr.bf16.mxu0 %v7144_v42  ;;  %v1273_v42 = vrot.slane %v1257_v28, %v7482_v41  ;;  %v7184_v49 = vld [vmem:[%s8986_s1 + $0xb80] sm:$0xff]   ;;  %v1280_v28 = vrot.slane %v8519_v37, %v7482_v41  ;;  %v7221_v37 = vld [vmem:[%s8986_s1 + $0xc88] sm:$0xff]  }
 0x13e   :  { %6562 = vmatpush3.bf16.msra.mxu1 %v7143_v40  ;;  %v1287_v40 = vrot.slane %v1265_v36, %v7482_v41  ;;  %v7214_v29 = vld [vmem:[%s8986_s1 + $0xc40] sm:$0xff]   ;;  %v7220_v36 = vld [vmem:[%s8986_s1 + $0xc08] sm:$0xff]  }
 0x13f   :  { %6563 = vmatprep.subr.bf16.mxu1 %v7145_v48  ;;  %v1294_v48 = vrot.slane %v1266_v44, %v7482_v41  ;;  %v7227_v44 = vld [vmem:[%s8986_s1 + $0xcd8] sm:$0xff]  }
 0x140   :  { %6542 = vmatpush3.bf16.msra.mxu0 %v7146_v50  ;;  %v1297_v46 = vcombine.high %v1287_v40, %v1287_v40  ;;  %v1295_v50 = vcombine.high %v1273_v42, %v1273_v42 }
 0x141   :  { %6571 = vmatprep.subr.bf16.mxu0 %v7149_v54  ;;  %v7187_v54 = vld [vmem:[%s8986_s1 + $0xb08] sm:$0xff]  }
 0x142   :  { %6564 = vmatpush3.bf16.msra.mxu1 %v7147_v52  ;;  %v7186_v52 = vld [vmem:[%s8986_s1 + $0xbc8] sm:$0xff]  }
 0x143   :  { %5065 = vmatmul.mubr.bf16.vlgmr.msra.gmra.mrb[36].mxu0 %v1231_v53  ;;  %6593 = vmatprep.subr.bf16.mxu1 %v7150_v55  ;;  %v1298_v53 = vcombine.high %v1294_v48, %v1294_v48  ;;  %v7188_v55 = vld [vmem:[%s8986_s1 + $0xb88] sm:$0xff]  }
 0x144   :  { %6572 = vmatpush3.bf16.msra.mxu0 %v7151_v56  ;;  %5144 = vmatprep.mubr.bf16.mxu0 %v1287_v40  ;;  %v7189_v56 = vld [vmem:[%s8986_s1 + $0xb50] sm:$0xff]  }
 0x145   :  { %5105 = vmatmul.mubr.bf16.vlgmr.msra.gmra.mrb[36].mxu1 %v1247_v58  ;;  %6573 = vmatprep.subr.bf16.mxu0 %v7153_v59  ;;  %v7191_v58 = vld [vmem:[%s8986_s1 + $0xb10] sm:$0xff]  }
 0x146   :  { %6594 = vmatpush3.bf16.msra.mxu1 %v7152_v57  ;;  %5184 = vmatprep.mubr.bf16.mxu1 %v1297_v46  ;;  %v7190_v57 = vld [vmem:[%s8986_s1 + $0xbd0] sm:$0xff]   ;;  %v7229_v46 = vld [vmem:[%s8986_s1 + $0xc98] sm:$0xff]  }
 0x147   :  { %6595 = vmatprep.subr.bf16.mxu1 %v7154_v60  ;;  %v7192_v59 = vld [vmem:[%s8986_s1 + $0xb90] sm:$0xff]   ;;  %v7193_v60 = vld [vmem:[%s8986_s1 + $0xb58] sm:$0xff]  }
 0x148   :  { %6574 = vmatpush3.bf16.msra.mxu0 %v7155_v61  ;;  %v7194_v61 = vld [vmem:[%s8986_s1 + $0xbd8] sm:$0xff]   ;;  %v7224_v40 = vld [vmem:[%s8986_s1 + $0xc10] sm:$0xff]  }
 0x149   :  { %6575 = vmatprep.subr.bf16.mxu0 %v7157_v63  ;;  %v7196_v63 = vld [vmem:[%s8986_s1 + $0xb98] sm:$0xff]  }
 0x14a   :  { %6596 = vmatpush3.bf16.msra.mxu1 %v7156_v62  ;;  %v7195_v62 = vld [vmem:[%s8986_s1 + $0xb18] sm:$0xff]  }
 0x14b   :  { %6597 = vmatprep.subr.bf16.mxu1 %v7158_v0  ;;  %v7197_v0 = vld [vmem:[%s8986_s1 + $0xb60] sm:$0xff]  }
 0x14c   :  { %6576 = vmatpush3.bf16.msra.mxu0 %v7159_v1  ;;  %v7198_v1 = vld [vmem:[%s8986_s1 + $0xbe0] sm:$0xff]  }
 0x14d   :  { %6577 = vmatprep.subr.bf16.mxu0 %v7161_v3  ;;  %v7200_v3 = vld [vmem:[%s8986_s1 + $0xba0] sm:$0xff]  }
 0x14e   :  { %6598 = vmatpush3.bf16.msra.mxu1 %v7160_v2  ;;  %v7199_v2 = vld [vmem:[%s8986_s1 + $0xb20] sm:$0xff]  }
 0x14f   :  { %6599 = vmatprep.subr.bf16.mxu1 %v7162_v4  ;;  %v7201_v4 = vld [vmem:[%s8986_s1 + $0xb68] sm:$0xff]  }
 0x150   :  { %6578 = vmatpush3.bf16.msra.mxu0 %v7163_v5  ;;  %v7202_v5 = vld [vmem:[%s8986_s1 + $0xbe8] sm:$0xff]  }
 0x151   :  { %6579 = vmatprep.subr.bf16.mxu0 %v7165_v7  ;;  %v7204_v7 = vld [vmem:[%s8986_s1 + $0xba8] sm:$0xff]  }
 0x152   :  { %6600 = vmatpush3.bf16.msra.mxu1 %v7164_v6  ;;  %v7203_v6 = vld [vmem:[%s8986_s1 + $0xb28] sm:$0xff]  }
 0x153   :  { %6601 = vmatprep.subr.bf16.mxu1 %v7166_v8  ;;  %v7205_v8 = vld [vmem:[%s8986_s1 + $0xb70] sm:$0xff]  }
 0x154   :  { %6580 = vmatpush3.bf16.msra.mxu0 %v7167_v9 }
 0x155   :  { %6581 = vmatprep.subr.bf16.mxu0 %v7169_v11 }
 0x156   :  { %6602 = vmatpush3.bf16.msra.mxu1 %v7168_v10  ;;  %v6279_v16 = vpop.f32.mrb[12].mxu0  ;;  %v7206_v10 = vld [vmem:[%s8986_s1 + $0xbf0] sm:$0xff]  }
 0x157   :  { %v6280_v18 = vpop.f32.mrb[13].mxu0  ;;  %6603 = vmatprep.subr.bf16.mxu1 %v7170_v12  ;;  %v7207_v12 = vld [vmem:[%s8986_s1 + $0xb30] sm:$0xff]  }
 0x158   :  { %v6301_v20 = vpop.f32.mrb[12].mxu1  ;;  %v6281_v21 = vadd.f32 %v6280_v18, %v6279_v16  ;;  %v6282_v22 = vpop.f32.mrb[14].mxu0  ;;  %6582 = vmatpush3.bf16.msra.mxu0 %v7171_v13  ;;  %v7208_v16 = vld [vmem:[%s8986_s1 + $0xbb0] sm:$0xff]  }
 0x159   :  { %v6302_v26 = vpop.f32.mrb[13].mxu1  ;;  %v6283_v27 = vpop.f32.mrb[15].mxu0  ;;  %6583 = vmatprep.subr.bf16.mxu0 %v7173_v15 }
 0x15a   :  { %v4587_v30 = vadd.f32 %v6281_v21, %v8413_v51  ;;  %v6303_v31 = vadd.f32 %v6302_v26, %v6301_v20  ;;  %v6304_v32 = vpop.f32.mrb[14].mxu1  ;;  %6604 = vmatpush3.bf16.msra.mxu1 %v7172_v14  ;;  %v7185_v51 = vld [vmem:[%s8986_s1 + $0xb48] sm:$0xff]   ;;  %v7212_v27 = vld [vmem:[%s8986_s1 + $0xbb8] sm:$0xff]  }
 0x15b   :  { %v6305_v34 = vpop.f32.mrb[15].mxu1  ;;  %6605 = vmatprep.subr.bf16.mxu1 %v7174_v17  ;;  %v7209_v17 = vld [vmem:[%s8986_s1 + $0xb78] sm:$0xff]   ;;  %v7217_v32 = vld [vmem:[%s8986_s1 + $0xc80] sm:$0xff]  }
 0x15c   :  { %v8521_v38 = vadd.f32 %v6303_v31, %v4587_v30  ;;  %6584 = vmatpush3.bf16.msra.mxu0 %v7175_v19  ;;  %v7215_v30 = vld [vmem:[%s8986_s1 + $0xcc0] sm:$0xff]   ;;  %v7218_v34 = vld [vmem:[%s8986_s1 + $0xc48] sm:$0xff]  }
 0x15d   :  { %6585 = vmatprep.subr.bf16.mxu0 %v7177_v24  ;;  %v7216_v31 = vld [vmem:[%s8986_s1 + $0xc00] sm:$0xff]  }
 0x15e   :  { %6606 = vmatpush3.bf16.msra.mxu1 %v7176_v23  ;;  %v7210_v23 = vld [vmem:[%s8986_s1 + $0xbf8] sm:$0xff]  }
 0x15f   :  { %6607 = vmatprep.subr.bf16.mxu1 %v7178_v33  ;;  %v1296_v33 = vcombine.high %v1280_v28, %v1280_v28 }
 0x160   :  { %6586 = vmatpush3.bf16.msra.mxu0 %v7179_v35  ;;  %v7219_v35 = vld [vmem:[%s8986_s1 + $0xcc8] sm:$0xff]  }
 0x161   :  { %6615 = vmatprep.subr.bf16.mxu0 %v7181_v43  ;;  %v7226_v43 = vld [vmem:[%s8986_s1 + $0xc58] sm:$0xff]  }
 0x162   :  { %6608 = vmatpush3.bf16.msra.mxu1 %v7180_v39  ;;  %v7223_v39 = vld [vmem:[%s8986_s1 + $0xcd0] sm:$0xff]  }
 0x163   :  { %5145 = vmatmul.mubr.bf16.vlgmr.msra.gmra.mrb[40].mxu0 %v1273_v42  ;;  %6637 = vmatprep.subr.bf16.mxu1 %v7182_v45  ;;  %v7225_v42 = vld [vmem:[%s8986_s1 + $0xc90] sm:$0xff]   ;;  %v7228_v45 = vld [vmem:[%s8986_s1 + $0xc18] sm:$0xff]  }
 0x164   :  { %6616 = vmatpush3.bf16.msra.mxu0 %v7183_v47  ;;  %5224 = vmatprep.mubr.bf16.mxu0 %v1294_v48  ;;  %v7230_v47 = vld [vmem:[%s8986_s1 + $0xc60] sm:$0xff]  }
 0x165   :  { %5185 = vmatmul.mubr.bf16.vlgmr.msra.gmra.mrb[40].mxu1 %v1295_v50  ;;  %6617 = vmatprep.subr.bf16.mxu0 %v7185_v51  ;;  %v7231_v48 = vld [vmem:[%s8986_s1 + $0xce0] sm:$0xff]   ;;  %v7234_v51 = vld [vmem:[%s8986_s1 + $0xc68] sm:$0xff]  }
 0x166   :  { %6638 = vmatpush3.bf16.msra.mxu1 %v7184_v49  ;;  %5264 = vmatprep.mubr.bf16.mxu1 %v1298_v53  ;;  %v7232_v49 = vld [vmem:[%s8986_s1 + $0xc20] sm:$0xff]   ;;  %v7236_v53 = vld [vmem:[%s8986_s1 + $0xc28] sm:$0xff]  }
 0x167   :  { %6639 = vmatprep.subr.bf16.mxu1 %v7186_v52  ;;  %v7233_v50 = vld [vmem:[%s8986_s1 + $0xca0] sm:$0xff]   ;;  %v7235_v52 = vld [vmem:[%s8986_s1 + $0xce8] sm:$0xff]  }
 0x168   :  { %6618 = vmatpush3.bf16.msra.mxu0 %v7187_v54  ;;  %v7237_v54 = vld [vmem:[%s8986_s1 + $0xca8] sm:$0xff]  }
 0x169   :  { %6619 = vmatprep.subr.bf16.mxu0 %v7189_v56 }
 0x16a   :  { %6640 = vmatpush3.bf16.msra.mxu1 %v7188_v55  ;;  %v7238_v55 = vld [vmem:[%s8986_s1 + $0xc70] sm:$0xff]  }
 0x16b   :  { %6641 = vmatprep.subr.bf16.mxu1 %v7190_v57  ;;  %v7239_v57 = vld [vmem:[%s8986_s1 + $0xcf0] sm:$0xff]  }
 0x16c   :  { %6620 = vmatpush3.bf16.msra.mxu0 %v7191_v58 }
 0x16d   :  { %6621 = vmatprep.subr.bf16.mxu0 %v7193_v60 }
 0x16e   :  { %6642 = vmatpush3.bf16.msra.mxu1 %v7192_v59  ;;  %v7240_v59 = vld [vmem:[%s8986_s1 + $0xc30] sm:$0xff]  }
 0x16f   :  { %6643 = vmatprep.subr.bf16.mxu1 %v7194_v61 }
 0x170   :  { %6622 = vmatpush3.bf16.msra.mxu0 %v7195_v62 }
 0x171   :  { %6623 = vmatprep.subr.bf16.mxu0 %v7197_v0 }
 0x172   :  { %6644 = vmatpush3.bf16.msra.mxu1 %v7196_v63  ;;  %v7241_v63 = vld [vmem:[%s8986_s1 + $0xcb0] sm:$0xff]  }
 0x173   :  { %6645 = vmatprep.subr.bf16.mxu1 %v7198_v1 }
 0x174   :  { %6624 = vmatpush3.bf16.msra.mxu0 %v7199_v2  ;;  %v7242_v2 = vld [vmem:[%s8986_s1 + $0xc78] sm:$0xff]  }
 0x175   :  { %6625 = vmatprep.subr.bf16.mxu0 %v7201_v4 }
 0x176   :  { %6646 = vmatpush3.bf16.msra.mxu1 %v7200_v3  ;;  %v6323_v9 = vpop.f32.mrb[16].mxu0  ;;  %v28_v3 = vld [vmem:[%s8985_s0 + $0x30] sm:$0xff] }
 0x177   :  { %v6324_v11 = vpop.f32.mrb[17].mxu0  ;;  %6647 = vmatprep.subr.bf16.mxu1 %v7202_v5 }
 0x178   :  { %v6345_v13 = vpop.f32.mrb[16].mxu1  ;;  %v6325_v14 = vadd.f32 %v6324_v11, %v6323_v9  ;;  %v6326_v15 = vpop.f32.mrb[18].mxu0  ;;  %6626 = vmatpush3.bf16.msra.mxu0 %v7203_v6  ;;  %v1299_v9 = vcombine.high %v28_v3, %v28_v3  ;;  %v7244_v11 = vld [vmem:[%s8986_s1 + $0xc38] sm:$0xff]  }
 0x179   :  { %v6346_v18 = vpop.f32.mrb[17].mxu1  ;;  %v6327_v19 = vpop.f32.mrb[19].mxu0  ;;  %6627 = vmatprep.subr.bf16.mxu0 %v7205_v8  ;;  %v1306_v8 = vrot.slane %v28_v3, %v7482_v41  ;;  %v7277_v3 = vld [vmem:[%s8986_s1 + $0xdb8] sm:$0xff]  }
 0x17a   :  { %v4667_v20 = vadd.f32 %v6325_v14, %v8521_v38  ;;  %v6347_v21 = vadd.f32 %v6346_v18, %v6345_v13  ;;  %v6348_v22 = vpop.f32.mrb[18].mxu1  ;;  %6648 = vmatpush3.bf16.msra.mxu1 %v7204_v7  ;;  %v7222_v38 = vld [vmem:[%s8986_s1 + $0xc50] sm:$0xff]   ;;  %v7243_v7 = vld [vmem:[%s8986_s1 + $0xcf8] sm:$0xff]   ;;  %v8736_v15 = vrot.slane %v1299_v9, %v7482_v41  ;;  %v7247_v19 = vld [vmem:[%s8986_s1 + $0xdc0] sm:$0xff]  }
 0x17b   :  { %v6349_v24 = vpop.f32.mrb[19].mxu1  ;;  %6649 = vmatprep.subr.bf16.mxu1 %v7206_v10  ;;  %v7245_v13 = vld [vmem:[%s8986_s1 + $0xcb8] sm:$0xff]   ;;  %v1314_v14 = vcombine.high %v1306_v8, %v1306_v8 }
 0x17c   :  { %v8625_v26 = vadd.f32 %v6347_v21, %v4667_v20  ;;  %6628 = vmatpush3.bf16.msra.mxu0 %v7207_v12  ;;  %v1315_v20 = vcombine.high %v8736_v15, %v8736_v15  ;;  %v7248_v21 = vld [vmem:[%s8986_s1 + $0xd00] sm:$0xff]  }
 0x17d   :  { %6629 = vmatprep.subr.bf16.mxu0 %v7209_v17  ;;  %v7246_v17 = vld [vmem:[%s8986_s1 + $0xd40] sm:$0xff]   ;;  %v1336_v18 = vrot.slane %v1314_v14, %v7482_v41  ;;  %v7287_v14 = vld [vmem:[%s8986_s1 + $0xe50] sm:$0xff]  }
 0x17e   :  { %6650 = vmatpush3.bf16.msra.mxu1 %v7208_v16  ;;  %v1322_v16 = vrot.slane %v1306_v8, %v7482_v41  ;;  %v1343_v24 = vrot.slane %v1315_v20, %v7482_v41  ;;  %v7282_v8 = vld [vmem:[%s8986_s1 + $0xe80] sm:$0xff]   ;;  %v7293_v20 = vld [vmem:[%s8986_s1 + $0xe18] sm:$0xff]  }
 0x17f   :  { %6651 = vmatprep.subr.bf16.mxu1 %v7210_v23  ;;  %v1346_v22 = vcombine.high %v1336_v18, %v1336_v18  ;;  %v7249_v23 = vld [vmem:[%s8986_s1 + $0xd80] sm:$0xff]  }
 0x180   :  { %6630 = vmatpush3.bf16.msra.mxu0 %v7211_v25  ;;  %v1344_v25 = vcombine.high %v1322_v16, %v1322_v16 }
 0x181   :  { %6659 = vmatprep.subr.bf16.mxu0 %v7214_v29  ;;  %v7252_v29 = vld [vmem:[%s8986_s1 + $0xd08] sm:$0xff]  }
 0x182   :  { %6652 = vmatpush3.bf16.msra.mxu1 %v7212_v27  ;;  %v7251_v27 = vld [vmem:[%s8986_s1 + $0xdc8] sm:$0xff]  }
 0x183   :  { %5225 = vmatmul.mubr.bf16.vlgmr.msra.gmra.mrb[44].mxu0 %v1280_v28  ;;  %6681 = vmatprep.subr.bf16.mxu1 %v7215_v30  ;;  %v1347_v28 = vcombine.high %v1343_v24, %v1343_v24  ;;  %v7253_v30 = vld [vmem:[%s8986_s1 + $0xd88] sm:$0xff]  }
 0x184   :  { %6660 = vmatpush3.bf16.msra.mxu0 %v7216_v31  ;;  %5304 = vmatprep.mubr.bf16.mxu0 %v1336_v18  ;;  %v7254_v31 = vld [vmem:[%s8986_s1 + $0xd50] sm:$0xff]   ;;  %v7291_v18 = vld [vmem:[%s8986_s1 + $0xe58] sm:$0xff]  }
 0x185   :  { %5265 = vmatmul.mubr.bf16.vlgmr.msra.gmra.mrb[44].mxu1 %v1296_v33  ;;  %6661 = vmatprep.subr.bf16.mxu0 %v7218_v34  ;;  %v7256_v33 = vld [vmem:[%s8986_s1 + $0xd10] sm:$0xff]  }
 0x186   :  { %6682 = vmatpush3.bf16.msra.mxu1 %v7217_v32  ;;  %5344 = vmatprep.mubr.bf16.mxu1 %v1346_v22  ;;  %v7255_v32 = vld [vmem:[%s8986_s1 + $0xdd0] sm:$0xff]   ;;  %v7295_v22 = vld [vmem:[%s8986_s1 + $0xe60] sm:$0xff]  }
 0x187   :  { %6683 = vmatprep.subr.bf16.mxu1 %v7219_v35  ;;  %v7257_v34 = vld [vmem:[%s8986_s1 + $0xd90] sm:$0xff]   ;;  %v7258_v35 = vld [vmem:[%s8986_s1 + $0xd58] sm:$0xff]  }
 0x188   :  { %6662 = vmatpush3.bf16.msra.mxu0 %v7220_v36  ;;  %v7259_v36 = vld [vmem:[%s8986_s1 + $0xdd8] sm:$0xff]  }
 0x189   :  { %6663 = vmatprep.subr.bf16.mxu0 %v7222_v38  ;;  %v7261_v38 = vld [vmem:[%s8986_s1 + $0xd98] sm:$0xff]  }
 0x18a   :  { %6684 = vmatpush3.bf16.msra.mxu1 %v7221_v37  ;;  %v7260_v37 = vld [vmem:[%s8986_s1 + $0xd18] sm:$0xff]  }
 0x18b   :  { %6685 = vmatprep.subr.bf16.mxu1 %v7223_v39  ;;  %v7262_v39 = vld [vmem:[%s8986_s1 + $0xd60] sm:$0xff]  }
 0x18c   :  { %6664 = vmatpush3.bf16.msra.mxu0 %v7224_v40  ;;  %v7263_v40 = vld [vmem:[%s8986_s1 + $0xde0] sm:$0xff]  }
 0x18d   :  { %6665 = vmatprep.subr.bf16.mxu0 %v7226_v43  ;;  %v7265_v43 = vld [vmem:[%s8986_s1 + $0xda0] sm:$0xff]  }
 0x18e   :  { %6686 = vmatpush3.bf16.msra.mxu1 %v7225_v42  ;;  %v7264_v42 = vld [vmem:[%s8986_s1 + $0xd20] sm:$0xff]  }
 0x18f   :  { %6687 = vmatprep.subr.bf16.mxu1 %v7227_v44  ;;  %v7266_v44 = vld [vmem:[%s8986_s1 + $0xd68] sm:$0xff]  }
 0x190   :  { %6666 = vmatpush3.bf16.msra.mxu0 %v7228_v45  ;;  %v7267_v45 = vld [vmem:[%s8986_s1 + $0xde8] sm:$0xff]  }
 0x191   :  { %6667 = vmatprep.subr.bf16.mxu0 %v7230_v47  ;;  %v7269_v47 = vld [vmem:[%s8986_s1 + $0xda8] sm:$0xff]  }
 0x192   :  { %6688 = vmatpush3.bf16.msra.mxu1 %v7229_v46  ;;  %v7268_v46 = vld [vmem:[%s8986_s1 + $0xd28] sm:$0xff]  }
 0x193   :  { %6689 = vmatprep.subr.bf16.mxu1 %v7231_v48  ;;  %v7270_v48 = vld [vmem:[%s8986_s1 + $0xd70] sm:$0xff]  }
 0x194   :  { %6668 = vmatpush3.bf16.msra.mxu0 %v7232_v49 }
 0x195   :  { %6669 = vmatprep.subr.bf16.mxu0 %v7234_v51 }
 0x196   :  { %6690 = vmatpush3.bf16.msra.mxu1 %v7233_v50  ;;  %v6367_v56 = vpop.f32.mrb[20].mxu0  ;;  %v7271_v50 = vld [vmem:[%s8986_s1 + $0xdf0] sm:$0xff]  }
 0x197   :  { %v6368_v58 = vpop.f32.mrb[21].mxu0  ;;  %6691 = vmatprep.subr.bf16.mxu1 %v7235_v52  ;;  %v7272_v52 = vld [vmem:[%s8986_s1 + $0xd30] sm:$0xff]  }
 0x198   :  { %v6389_v60 = vpop.f32.mrb[20].mxu1  ;;  %v6369_v61 = vadd.f32 %v6368_v58, %v6367_v56  ;;  %v6370_v62 = vpop.f32.mrb[22].mxu0  ;;  %6670 = vmatpush3.bf16.msra.mxu0 %v7236_v53  ;;  %v7273_v56 = vld [vmem:[%s8986_s1 + $0xdb0] sm:$0xff]  }
 0x199   :  { %v6390_v0 = vpop.f32.mrb[21].mxu1  ;;  %v6371_v1 = vpop.f32.mrb[23].mxu0  ;;  %6671 = vmatprep.subr.bf16.mxu0 %v7238_v55 }
 0x19a   :  { %v4747_v4 = vadd.f32 %v6369_v61, %v8625_v26  ;;  %v6391_v5 = vadd.f32 %v6390_v0, %v6389_v60  ;;  %v6392_v6 = vpop.f32.mrb[22].mxu1  ;;  %6692 = vmatpush3.bf16.msra.mxu1 %v7237_v54  ;;  %v7250_v26 = vld [vmem:[%s8986_s1 + $0xd48] sm:$0xff]   ;;  %v7276_v1 = vld [vmem:[%s8986_s1 + $0xd38] sm:$0xff]  }
 0x19b   :  { %v6393_v10 = vpop.f32.mrb[23].mxu1  ;;  %6693 = vmatprep.subr.bf16.mxu1 %v7239_v57  ;;  %v7274_v57 = vld [vmem:[%s8986_s1 + $0xd78] sm:$0xff]   ;;  %v7280_v6 = vld [vmem:[%s8986_s1 + $0xec0] sm:$0xff]  }
 0x19c   :  { %v8730_v12 = vadd.f32 %v6391_v5, %v4747_v4  ;;  %6672 = vmatpush3.bf16.msra.mxu0 %v7240_v59  ;;  %v1329_v4 = vrot.slane %v8736_v15, %v7482_v41  ;;  %v7279_v5 = vld [vmem:[%s8986_s1 + $0xe40] sm:$0xff]   ;;  %v7283_v10 = vld [vmem:[%s8986_s1 + $0xe48] sm:$0xff]   ;;  %v7288_v15 = vld [vmem:[%s8986_s1 + $0xed0] sm:$0xff]  }
 0x19d   :  { %6673 = vmatprep.subr.bf16.mxu0 %v7242_v2 }
 0x19e   :  { %6694 = vmatpush3.bf16.msra.mxu1 %v7241_v63  ;;  %v7275_v63 = vld [vmem:[%s8986_s1 + $0xdf8] sm:$0xff]   ;;  %v1345_v9 = vcombine.high %v1329_v4, %v1329_v4 }
 0x19f   :  { %6695 = vmatprep.subr.bf16.mxu1 %v7243_v7  ;;  %v7281_v7 = vld [vmem:[%s8986_s1 + $0xe00] sm:$0xff]  }
 0x1a0   :  { %6674 = vmatpush3.bf16.msra.mxu0 %v7244_v11  ;;  %v7284_v11 = vld [vmem:[%s8986_s1 + $0xec8] sm:$0xff]  }
 0x1a1   :  { %6703 = vmatprep.subr.bf16.mxu0 %v7246_v17  ;;  %v7290_v17 = vld [vmem:[%s8986_s1 + $0xe90] sm:$0xff]  }
 0x1a2   :  { %6696 = vmatpush3.bf16.msra.mxu1 %v7245_v13  ;;  %v7286_v13 = vld [vmem:[%s8986_s1 + $0xe88] sm:$0xff]  }
 0x1a3   :  { %5305 = vmatmul.mubr.bf16.vlgmr.msra.gmra.mrb[48].mxu0 %v1322_v16  ;;  %6725 = vmatprep.subr.bf16.mxu1 %v7247_v19  ;;  %v7289_v16 = vld [vmem:[%s8986_s1 + $0xe10] sm:$0xff]   ;;  %v7292_v19 = vld [vmem:[%s8986_s1 + $0xed8] sm:$0xff]  }
 0x1a4   :  { %6704 = vmatpush3.bf16.msra.mxu0 %v7248_v21  ;;  %5384 = vmatprep.mubr.bf16.mxu0 %v1343_v24  ;;  %v7294_v21 = vld [vmem:[%s8986_s1 + $0xe98] sm:$0xff]   ;;  %v7297_v24 = vld [vmem:[%s8986_s1 + $0xe20] sm:$0xff]  }
 0x1a5   :  { %5345 = vmatmul.mubr.bf16.vlgmr.msra.gmra.mrb[48].mxu1 %v1344_v25  ;;  %6705 = vmatprep.subr.bf16.mxu0 %v7250_v26  ;;  %v7298_v25 = vld [vmem:[%s8986_s1 + $0xea0] sm:$0xff]   ;;  %v7299_v26 = vld [vmem:[%s8986_s1 + $0xe68] sm:$0xff]  }
 0x1a6   :  { %6726 = vmatpush3.bf16.msra.mxu1 %v7249_v23  ;;  %5424 = vmatprep.mubr.bf16.mxu1 %v1347_v28  ;;  %v7296_v23 = vld [vmem:[%s8986_s1 + $0xee0] sm:$0xff]   ;;  %v7301_v28 = vld [vmem:[%s8986_s1 + $0xe28] sm:$0xff]  }
 0x1a7   :  { %6727 = vmatprep.subr.bf16.mxu1 %v7251_v27  ;;  %v7300_v27 = vld [vmem:[%s8986_s1 + $0xee8] sm:$0xff]  }
 0x1a8   :  { %6706 = vmatpush3.bf16.msra.mxu0 %v7252_v29  ;;  %v7302_v29 = vld [vmem:[%s8986_s1 + $0xea8] sm:$0xff]  }
 0x1a9   :  { %6707 = vmatprep.subr.bf16.mxu0 %v7254_v31 }
 0x1aa   :  { %6728 = vmatpush3.bf16.msra.mxu1 %v7253_v30  ;;  %v7303_v30 = vld [vmem:[%s8986_s1 + $0xe70] sm:$0xff]  }
 0x1ab   :  { %6729 = vmatprep.subr.bf16.mxu1 %v7255_v32  ;;  %v7304_v32 = vld [vmem:[%s8986_s1 + $0xef0] sm:$0xff]  }
 0x1ac   :  { %6708 = vmatpush3.bf16.msra.mxu0 %v7256_v33 }
 0x1ad   :  { %6709 = vmatprep.subr.bf16.mxu0 %v7258_v35 }
 0x1ae   :  { %6730 = vmatpush3.bf16.msra.mxu1 %v7257_v34  ;;  %v7305_v34 = vld [vmem:[%s8986_s1 + $0xe30] sm:$0xff]  }
 0x1af   :  { %6731 = vmatprep.subr.bf16.mxu1 %v7259_v36 }
 0x1b0   :  { %6710 = vmatpush3.bf16.msra.mxu0 %v7260_v37 }
 0x1b1   :  { %6711 = vmatprep.subr.bf16.mxu0 %v7262_v39 }
 0x1b2   :  { %6732 = vmatpush3.bf16.msra.mxu1 %v7261_v38 }
 0x1b3   :  { %6733 = vmatprep.subr.bf16.mxu1 %v7263_v40  ;;  %v7306_v40 = vld [vmem:[%s8986_s1 + $0xeb0] sm:$0xff]  }
 0x1b4   :  { %6712 = vmatpush3.bf16.msra.mxu0 %v7264_v42  ;;  %v7307_v42 = vld [vmem:[%s8986_s1 + $0xe78] sm:$0xff]  }
 0x1b5   :  { %6713 = vmatprep.subr.bf16.mxu0 %v7266_v44 }
 0x1b6   :  { %6734 = vmatpush3.bf16.msra.mxu1 %v7265_v43  ;;  %v6411_v49 = vpop.f32.mrb[24].mxu0 }
 0x1b7   :  { %v6412_v51 = vpop.f32.mrb[25].mxu0  ;;  %6735 = vmatprep.subr.bf16.mxu1 %v7267_v45 }
 0x1b8   :  { %v6433_v53 = vpop.f32.mrb[24].mxu1  ;;  %v6413_v54 = vadd.f32 %v6412_v51, %v6411_v49  ;;  %v6414_v55 = vpop.f32.mrb[26].mxu0  ;;  %6714 = vmatpush3.bf16.msra.mxu0 %v7268_v46  ;;  %v7308_v46 = vld [vmem:[%s8986_s1 + $0xef8] sm:$0xff]  }
 0x1b9   :  { %v6434_v58 = vpop.f32.mrb[25].mxu1  ;;  %v6415_v59 = vpop.f32.mrb[27].mxu0  ;;  %6715 = vmatprep.subr.bf16.mxu0 %v7270_v48  ;;  %v7309_v48 = vld [vmem:[%s8986_s1 + $0xe38] sm:$0xff]  }
 0x1ba   :  { %v4827_v60 = vadd.f32 %v6413_v54, %v8730_v12  ;;  %v6435_v61 = vadd.f32 %v6434_v58, %v6433_v53  ;;  %v6436_v62 = vpop.f32.mrb[26].mxu1  ;;  %6736 = vmatpush3.bf16.msra.mxu1 %v7269_v47  ;;  %v7285_v12 = vld [vmem:[%s8986_s1 + $0xe08] sm:$0xff]   ;;  %v5641_v49 = vld.sshfl [vmem:[%s8985_s0 + $0x38] sm:$0x33 pattern:$0x75316420] }
 0x1bb   :  { %v6437_v0 = vpop.f32.mrb[27].mxu1  ;;  %6737 = vmatprep.subr.bf16.mxu1 %v7271_v50  ;;  %v7310_v51 = vld [vmem:[%s8986_s1 + $0xeb8] sm:$0xff]   ;;  %v1362_v53 = vrot.slane %v5641_v49, %v7482_v41 }
 0x1bc   :  { %v8837_v2 = vadd.f32 %v6435_v61, %v4827_v60  ;;  %6716 = vmatpush3.bf16.msra.mxu0 %v7272_v52  ;;  %v1355_v52 = vcombine.high %v5641_v49, %v5641_v49 }
 0x1bd   :  { %6717 = vmatprep.subr.bf16.mxu0 %v7274_v57 }
 0x1be   :  { %6738 = vmatpush3.bf16.msra.mxu1 %v7273_v56  ;;  %v1369_v54 = vrot.slane %v1355_v52, %v7482_v41  ;;  %v1370_v56 = vcombine.high %v1362_v53, %v1362_v53 }
 0x1bf   :  { %6739 = vmatprep.subr.bf16.mxu1 %v7275_v63 }
 0x1c0   :  { %6718 = vmatpush3.bf16.msra.mxu0 %v7276_v1  ;;  %v1371_v55 = vcombine.high %v1369_v54, %v1369_v54 }
 0x1c1   :  { %6747 = vmatprep.subr.bf16.mxu0 %v7279_v5 }
 0x1c2   :  { %6740 = vmatpush3.bf16.msra.mxu1 %v7277_v3 }
 0x1c3   :  { %5385 = vmatmul.mubr.bf16.vlgmr.msra.gmra.mrb[52].mxu0 %v1329_v4  ;;  %6769 = vmatprep.subr.bf16.mxu1 %v7280_v6 }
 0x1c4   :  { %6748 = vmatpush3.bf16.msra.mxu0 %v7281_v7  ;;  %5464 = vmatprep.mubr.bf16.mxu0 %v1369_v54 }
 0x1c5   :  { %5425 = vmatmul.mubr.bf16.vlgmr.msra.gmra.mrb[52].mxu1 %v1345_v9  ;;  %6749 = vmatprep.subr.bf16.mxu0 %v7283_v10 }
 0x1c6   :  { %6770 = vmatpush3.bf16.msra.mxu1 %v7282_v8 }
 0x1c7   :  { %6771 = vmatprep.subr.bf16.mxu1 %v7284_v11 }
 0x1c8   :  { %6750 = vmatpush3.bf16.msra.mxu0 %v7285_v12 }
 0x1c9   :  { %6751 = vmatprep.subr.bf16.mxu0 %v7287_v14 }
 0x1ca   :  { %6772 = vmatpush3.bf16.msra.mxu1 %v7286_v13 }
 0x1cb   :  { %6773 = vmatprep.subr.bf16.mxu1 %v7288_v15 }
 0x1cc   :  { %6752 = vmatpush3.bf16.msra.mxu0 %v7289_v16 }
 0x1cd   :  { %6753 = vmatprep.subr.bf16.mxu0 %v7291_v18 }
 0x1ce   :  { %6774 = vmatpush3.bf16.msra.mxu1 %v7290_v17 }
 0x1cf   :  { %6775 = vmatprep.subr.bf16.mxu1 %v7292_v19 }
 0x1d0   :  { %6754 = vmatpush3.bf16.msra.mxu0 %v7293_v20 }
 0x1d1   :  { %6755 = vmatprep.subr.bf16.mxu0 %v7295_v22 }
 0x1d2   :  { %6776 = vmatpush3.bf16.msra.mxu1 %v7294_v21 }
 0x1d3   :  { %6777 = vmatprep.subr.bf16.mxu1 %v7296_v23 }
 0x1d4   :  { %6756 = vmatpush3.bf16.msra.mxu0 %v7297_v24 }
 0x1d5   :  { %6757 = vmatprep.subr.bf16.mxu0 %v7299_v26 }
 0x1d6   :  { %6778 = vmatpush3.bf16.msra.mxu1 %v7298_v25  ;;  %v6455_v31 = vpop.f32.mrb[28].mxu0 }
 0x1d7   :  { %v6456_v33 = vpop.f32.mrb[29].mxu0  ;;  %6779 = vmatprep.subr.bf16.mxu1 %v7300_v27 }
 0x1d8   :  { %v6477_v35 = vpop.f32.mrb[28].mxu1  ;;  %v6457_v36 = vadd.f32 %v6456_v33, %v6455_v31  ;;  %v6458_v37 = vpop.f32.mrb[30].mxu0  ;;  %6758 = vmatpush3.bf16.msra.mxu0 %v7301_v28 }
 0x1d9   :  { %v6478_v38 = vpop.f32.mrb[29].mxu1  ;;  %v6459_v39 = vpop.f32.mrb[31].mxu0  ;;  %6759 = vmatprep.subr.bf16.mxu0 %v7303_v30 }
 0x1da   :  { %v4907_v43 = vadd.f32 %v6457_v36, %v8837_v2  ;;  %v6479_v44 = vadd.f32 %v6478_v38, %v6477_v35  ;;  %v6480_v45 = vpop.f32.mrb[30].mxu1  ;;  %6780 = vmatpush3.bf16.msra.mxu1 %v7302_v29 }
 0x1db   :  { %v6481_v47 = vpop.f32.mrb[31].mxu1  ;;  %6781 = vmatprep.subr.bf16.mxu1 %v7304_v32 }
 0x1dc   :  { %v4947_v50 = vadd.f32 %v6479_v44, %v4907_v43  ;;  %6760 = vmatpush3.bf16.msra.mxu0 %v7305_v34 }
 0x1dd   :  { %6761 = vmatprep.subr.bf16.mxu0 %v7307_v42 }
 0x1de   :  { %6782 = vmatpush3.bf16.msra.mxu1 %v7306_v40 }
 0x1df   :  { %6783 = vmatprep.subr.bf16.mxu1 %v7308_v46 }
 0x1e0   :  { %6762 = vmatpush3.bf16.msra.mxu0 %v7309_v48 }
 0x1e1   :  { %10 = vsyncpa [#allocation3], 0  ;;  %5504 = vmatprep.mubr.bf16.mxu1 %v1371_v55  ;;  %v7311_v16 = vld [vmem:[%s8988_s3] sm:$0xff]   ;;  %v7344_v17 = vmov 0.0   ;;  %v7312_v18 = vld [vmem:[%s8988_s3 + $0x8] sm:$0xff]   ;;  %vm7345_vm0 = vmmov 0  }
 0x1e2   :  { %6784 = vmatpush3.bf16.msra.mxu1 %v7310_v51  ;;  %6800 = vmatprep.subr.bf16.mxu0 %v7344_v17  ;;  %v7313_v19 = vld [vmem:[%s8988_s3 + $0x10] sm:$0xff]   ;;  %v7314_v20 = vld [vmem:[%s8988_s3 + $0x18] sm:$0xff]   ;;  %v7315_v21 = vld [vmem:[%s8988_s3 + $0x20] sm:$0xff]   ;;  %s7346_s17 = smov [#allocation2]  }
 0x1e3   :  { %5465 = vmatmul.mubr.bf16.vlgmr.msra.gmra.mrb[56].mxu0 %v1362_v53  ;;  %v7316_v24 = vld [vmem:[%s8988_s3 + $0x28] sm:$0xff]   ;;  %v7317_v34 = vld [vmem:[%s8988_s3 + $0x30] sm:$0xff]   ;;  %v7318_v36 = vld [vmem:[%s8988_s3 + $0x38] sm:$0xff]   ;;  %s5632_s18 = sshll.u32 %s7346_s17, 4  ;;  %s5633_s18 = int_to_ptr.vmem [resolvable:$true] %s5632_s18 }
 0x1e4   :  { %6801 = vmatpush3.bf16.msra.mxu0 %v7311_v16  ;;  %6816 = vmatprep.mubr.msk.bf16.mxu0 %vm7345_vm0, %v7344_v17  ;;  %s7319_s19 = scalar_lea.vmem %s5633_s18, 32  ;;  %p7324_p1 = scmp.lt.s32.totalorder %s5633_s18, %s5633_s18 }
 0x1e5   :  { %5505 = vmatmul.mubr.bf16.vlgmr.msra.gmra.mrb[56].mxu1 %v1370_v56  ;;  %6802 = vmatprep.subr.bf16.mxu0 %v7344_v17  ;;  %p7320_p0 = scmp.ne.s32.totalorder %s5633_s18, %s7319_s19  ;;  %p7325_p2 = scmp.lt.s32.totalorder %s7319_s19, %s7319_s19 }
 0x1e7   :  { %p7326_p3 = por %p7325_p2, %p7324_p1 }
 0x1e8   :  { %6803 = vmatpush3.bf16.msra.mxu0 %v7312_v18 }
 0x1e9   :  { %6804 = vmatprep.subr.bf16.mxu0 %v7344_v17  ;;  %p7327_p4 = pnand %p7326_p3, %p7320_p0 }
 0x1ec   :  { %6805 = vmatpush3.bf16.msra.mxu0 %v7313_v19 }
 0x1ed   :  { %6806 = vmatprep.subr.bf16.mxu0 %v7344_v17 }
 0x1f0   :  { %6807 = vmatpush3.bf16.msra.mxu0 %v7314_v20 }
 0x1f1   :  { %6808 = vmatprep.subr.bf16.mxu0 %v7344_v17 }
 0x1f4   :  { %6809 = vmatpush3.bf16.msra.mxu0 %v7315_v21 }
 0x1f5   :  { %6810 = vmatprep.subr.bf16.mxu0 %v7344_v17 }
 0x1f6   :  { %v6499_v57 = vpop.f32.mrb[32].mxu0 }
 0x1f7   :  { %v6500_v58 = vpop.f32.mrb[33].mxu0 }
 0x1f8   :  { %v6521_v59 = vpop.f32.mrb[32].mxu1  ;;  %v6501_v60 = vadd.f32 %v6500_v58, %v6499_v57  ;;  %v6502_v61 = vpop.f32.mrb[34].mxu0  ;;  %6811 = vmatpush3.bf16.msra.mxu0 %v7316_v24 }
 0x1f9   :  { %v6522_v62 = vpop.f32.mrb[33].mxu1  ;;  %v6503_v63 = vpop.f32.mrb[35].mxu0  ;;  %6812 = vmatprep.subr.bf16.mxu0 %v7344_v17 }
 0x1fa   :  { %v4987_v0 = vadd.f32 %v6501_v60, %v4947_v50  ;;  %v6523_v1 = vadd.f32 %v6522_v62, %v6521_v59  ;;  %v6524_v41 = vpop.f32.mrb[34].mxu1 }
 0x1fb   :  { %v6525_v2 = vpop.f32.mrb[35].mxu1 }
 0x1fc   :  { %v5027_v3 = vadd.f32 %v6523_v1, %v4987_v0  ;;  %6813 = vmatpush3.bf16.msra.mxu0 %v7317_v34 }
 0x1fd   :  { %6814 = vmatprep.subr.bf16.mxu0 %v7344_v17 }
 0x200   :  { %6815 = vmatpush3.bf16.msra.mxu0 %v7318_v36 }
 0x216   :  { %v6543_v4 = vpop.f32.mrb[36].mxu0 }
 0x217   :  { %v6544_v5 = vpop.f32.mrb[37].mxu0 }
 0x218   :  { %v6565_v6 = vpop.f32.mrb[36].mxu1  ;;  %v6545_v7 = vadd.f32 %v6544_v5, %v6543_v4  ;;  %v6546_v8 = vpop.f32.mrb[38].mxu0 }
 0x219   :  { %v6566_v9 = vpop.f32.mrb[37].mxu1  ;;  %v6547_v10 = vpop.f32.mrb[39].mxu0 }
 0x21a   :  { %v5067_v11 = vadd.f32 %v6545_v7, %v5027_v3  ;;  %v6567_v12 = vadd.f32 %v6566_v9, %v6565_v6  ;;  %v6568_v13 = vpop.f32.mrb[38].mxu1 }
 0x21b   :  { %v6569_v14 = vpop.f32.mrb[39].mxu1 }
 0x21c   :  { %v5107_v15 = vadd.f32 %v6567_v12, %v5067_v11 }
 0x236   :  { %v6587_v22 = vpop.f32.mrb[40].mxu0 }
 0x237   :  { %v6588_v23 = vpop.f32.mrb[41].mxu0 }
 0x238   :  { %v6609_v25 = vpop.f32.mrb[40].mxu1  ;;  %v6589_v26 = vadd.f32 %v6588_v23, %v6587_v22  ;;  %v6590_v27 = vpop.f32.mrb[42].mxu0  ;;  %v6122_v23 = vld [vmem:[%s8989_s4] ss:$0 sm:$0xff] }
 0x239   :  { %v6610_v28 = vpop.f32.mrb[41].mxu1  ;;  %v6591_v29 = vpop.f32.mrb[43].mxu0 }
 0x23a   :  { %v5147_v30 = vadd.f32 %v6589_v26, %v5107_v15  ;;  %v6611_v31 = vadd.f32 %v6610_v28, %v6609_v25  ;;  %v6612_v32 = vpop.f32.mrb[42].mxu1 }
 0x23b   :  { %v6613_v33 = vpop.f32.mrb[43].mxu1 }
 0x23c   :  { %v5187_v35 = vadd.f32 %v6611_v31, %v5147_v30 }
 0x256   :  { %v6631_v37 = vpop.f32.mrb[44].mxu0 }
 0x257   :  { %v6632_v38 = vpop.f32.mrb[45].mxu0 }
 0x258   :  { %v6653_v39 = vpop.f32.mrb[44].mxu1  ;;  %v6633_v40 = vadd.f32 %v6632_v38, %v6631_v37  ;;  %v6634_v42 = vpop.f32.mrb[46].mxu0 }
 0x259   :  { %v6654_v43 = vpop.f32.mrb[45].mxu1  ;;  %v6635_v44 = vpop.f32.mrb[47].mxu0 }
 0x25a   :  { %v5227_v45 = vadd.f32 %v6633_v40, %v5187_v35  ;;  %v6655_v46 = vadd.f32 %v6654_v43, %v6653_v39  ;;  %v6656_v47 = vpop.f32.mrb[46].mxu1 }
 0x25b   :  { %v6657_v48 = vpop.f32.mrb[47].mxu1 }
 0x25c   :  { %v5267_v49 = vadd.f32 %v6655_v46, %v5227_v45 }
 0x276   :  { %v6675_v50 = vpop.f32.mrb[48].mxu0 }
 0x277   :  { %v6676_v51 = vpop.f32.mrb[49].mxu0 }
 0x278   :  { %v6697_v52 = vpop.f32.mrb[48].mxu1  ;;  %v6677_v53 = vadd.f32 %v6676_v51, %v6675_v50  ;;  %v6678_v54 = vpop.f32.mrb[50].mxu0 }
 0x279   :  { %v6698_v55 = vpop.f32.mrb[49].mxu1  ;;  %v6679_v56 = vpop.f32.mrb[51].mxu0 }
 0x27a   :  { %v5307_v57 = vadd.f32 %v6677_v53, %v5267_v49  ;;  %v6699_v58 = vadd.f32 %v6698_v55, %v6697_v52  ;;  %v6700_v59 = vpop.f32.mrb[50].mxu1 }
 0x27b   :  { %v6701_v60 = vpop.f32.mrb[51].mxu1 }
 0x27c   :  { %v5347_v61 = vadd.f32 %v6699_v58, %v5307_v57 }
 0x296   :  { %v6719_v62 = vpop.f32.mrb[52].mxu0 }
 0x297   :  { %v6720_v63 = vpop.f32.mrb[53].mxu0 }
 0x298   :  { %v6741_v0 = vpop.f32.mrb[52].mxu1  ;;  %v6721_v1 = vadd.f32 %v6720_v63, %v6719_v62  ;;  %v6722_v41 = vpop.f32.mrb[54].mxu0 }
 0x299   :  { %v6742_v2 = vpop.f32.mrb[53].mxu1  ;;  %v6723_v3 = vpop.f32.mrb[55].mxu0 }
 0x29a   :  { %v5387_v4 = vadd.f32 %v6721_v1, %v5347_v61  ;;  %v6743_v5 = vadd.f32 %v6742_v2, %v6741_v0  ;;  %v6744_v6 = vpop.f32.mrb[54].mxu1 }
 0x29b   :  { %v6745_v7 = vpop.f32.mrb[55].mxu1 }
 0x29c   :  { %v5427_v8 = vadd.f32 %v6743_v5, %v5387_v4 }
 0x2b6   :  { %v6763_v9 = vpop.f32.mrb[56].mxu0 }
 0x2b7   :  { %v6764_v10 = vpop.f32.mrb[57].mxu0 }
 0x2b8   :  { %v6785_v11 = vpop.f32.mrb[56].mxu1  ;;  %v6765_v12 = vadd.f32 %v6764_v10, %v6763_v9  ;;  %v6766_v13 = vpop.f32.mrb[58].mxu0 }
 0x2b9   :  { %v6786_v14 = vpop.f32.mrb[57].mxu1  ;;  %v6767_v15 = vpop.f32.mrb[59].mxu0 }
 0x2ba   :  { %v5467_v16 = vadd.f32 %v6765_v12, %v5427_v8  ;;  %v6787_v17 = vadd.f32 %v6786_v14, %v6785_v11  ;;  %v6788_v18 = vpop.f32.mrb[58].mxu1 }
 0x2bb   :  { %v6789_v19 = vpop.f32.mrb[59].mxu1 }
 0x2bc   :  { %v5507_v20 = vadd.f32 %v6787_v17, %v5467_v16 }
 0x2be   :  { %v5512_v21 = vmax.f32 %v5507_v20, 0.0 }
 0x2c0   :  { %v5513_v22 = vpack.c.bf16 %v5512_v21, %v5512_v21 }
 0x2c2   :  { %6817 = vmatmul.mubr.bf16.vlgmr.msra.gmra.mrb[60].mxu0 %v5513_v22 }
 0x395   :  { %v5619_v24 = vpop.f32.mrb[60].mxu0 }
 0x396   :  { %v5620_v25 = vadd.f32 %v6122_v23, %v5619_v24  ;;  %v6818_v26 = vpop.f32.mrb[61].mxu0 }
 0x397   :  { %v5622_v27 = vpop.f32.mrb[62].mxu0 }
 0x398   :  { %5625 = vst [vmem:[#allocation2] sm:$0x3] %v5620_v25  ;;  %v6819_v28 = vpop.f32.mrb[63].mxu0 }
 0x399   :  { %7330 = shalt.err (!%p7327_p4)
}
 0x39a   :  { %s7331_s4 = scalar_lea.hbm %s8990_s5, 32 }
 0x39b   :  { %p7332_p5 = scmp.ne.s32.totalorder %s8990_s5, %s7331_s4  ;;  %p7335_p6 = scmp.lt.u32.totalorder %s7331_s4, %s8990_s5 }
 0x39d   :  { %p7337_p7 = pnand %p7335_p6, %p7332_p5 }
 0x39f   :  { %7340 = shalt.err (!%p7337_p7)
}
 0x3a0   :  { %5635 = dma.vmem_to_hbm [thread:$0]  %s5633_s18, 32, %s8990_s5, [#allocation3]  }
 0x3a1   :  { %7341 = dma.done.wait [#allocation3], 32  }
 0x3a2   :  { %7342 = vsyncadd [#allocation3], 4294967264 }
 0x3a3   :  { %5639 = vsyncpa [#allocation3], 1 }

</bundles_post_ra>
